<compile_context>
chip_gen: v7x
topology: tpu7x:2x2x1
jax: 0.10.0
libtpu: 0.0.40
codegen_flags: <defaults>
</compile_context>

<pallas_src>
import jax
import jax.numpy as jnp
from jax.experimental import pallas as pl
from jax.experimental.pallas import tpu as pltpu

CP = 128          # padded channel / lane width
KH = KW = 5       # conv kernel size
H0 = W0 = 28      # input spatial size implied by fc1 (32*4*4 == 512)
H1 = W1 = 24      # conv1 output spatial
P1 = 12           # pool1 output spatial
H2 = W2 = 8       # conv2 output spatial
P2 = 4            # pool2 output spatial
NF1 = 256         # fc1 width
KPAD = 8          # conv1 tap dim padded 5 -> 8 (sublane-friendly K)


# ------------------------------ fused kernel -------------------------------

def _net_kernel(x5_ref, w1_ref, b1_ref, w2_ref, b2_ref,
                wf1_ref, bf1_ref, wf2_ref, bf2_ref, o_ref,
                h1_ref, p1_ref, h2_ref, p2_ref):
    B = x5_ref.shape[0]

    # ---- conv1: 5 kh-taps, each a (B*24*24, 8) @ (8, 128) MXU matmul ------
    for di in range(KH):
        lhs = x5_ref[:, di:di + H1, :, :].reshape(B * H1 * W1, KPAD)
        contrib = jnp.dot(lhs, w1_ref[di],
                          preferred_element_type=jnp.float32)
        contrib = contrib.reshape(B, H1, W1, CP)
        if di == 0:
            h1_ref[...] = contrib
        else:
            h1_ref[...] += contrib

    # ---- 2x2 max-pool + bias + ReLU (bias/ReLU commute with the max) ------
    wmax = jnp.maximum(h1_ref[:, :, pl.ds(0, P1, 2), :],
                       h1_ref[:, :, pl.ds(1, P1, 2), :])        # (B,24,12,128)
    pool1 = jnp.max(wmax.reshape(B, P1, 2, P1, CP), axis=2)     # (B,12,12,128)
    p1_ref[...] = jnp.maximum(pool1 + b1_ref[...], 0.0)
    # dropout(p=0.5): identity in eval mode.

    # ---- conv2: 25 taps, each a (B*8*8, 128) @ (128, 128) MXU matmul ------
    acc2 = None
    for di in range(KH):
        for dj in range(KW):
            lhs = p1_ref[:, di:di + H2, dj:dj + W2, :].reshape(B * H2 * W2, CP)
            t = jnp.dot(lhs, w2_ref[di, dj],
                        preferred_element_type=jnp.float32)
            acc2 = t if acc2 is None else acc2 + t
    h2_ref[...] = acc2.reshape(B, H2, W2, CP)

    wmax2 = jnp.maximum(h2_ref[:, :, pl.ds(0, P2, 2), :],
                        h2_ref[:, :, pl.ds(1, P2, 2), :])       # (B,8,4,128)
    pool2 = jnp.max(wmax2.reshape(B, P2, 2, P2, CP), axis=2)    # (B,4,4,128)
    p2_ref[...] = jnp.maximum(pool2 + b2_ref[...], 0.0)

    # ---- fc1 (512->256): 16 per-position (B,128)@(128,256) matmuls --------
    acc3 = jnp.zeros((B, NF1), jnp.float32)
    for hh in range(P2):
        for ww in range(P2):
            acc3 = acc3 + jnp.dot(p2_ref[:, hh, ww, :], wf1_ref[hh, ww],
                                  preferred_element_type=jnp.float32)
    h3 = jnp.maximum(acc3 + bf1_ref[...], 0.0)                  # (B,256)

    # ---- fc2 (256->10, N padded to 128 lanes for a dense store) -----------
    o_ref[...] = (jnp.dot(h3, wf2_ref[...],
                          preferred_element_type=jnp.float32) + bf2_ref[...])


# ----------------------------- param packing -------------------------------

def pack_params(p):
    """One-time repack of PyTorch-layout params into lane-dense kernel layout."""
    c1, c2, nout = 16, 32, 10
    # conv1: (O=16, 1, 5, 5) -> per-tap (kh, kw_pad, O_pad) = (5, 8, 128)
    w1 = jnp.transpose(p["w1"][:, 0], (1, 2, 0))                     # (5,5,16)
    w1p = jnp.zeros((KH, KPAD, CP), jnp.float32).at[:, :KW, :c1].set(w1)
    b1p = jnp.zeros((1, CP), jnp.float32).at[0, :c1].set(p["b1"])
    # conv2: (O=32, C=16, 5, 5) -> (kh, kw, C_pad, O_pad) = (5, 5, 128, 128)
    w2 = jnp.transpose(p["w2"], (2, 3, 1, 0))                        # (5,5,16,32)
    w2p = jnp.zeros((KH, KW, CP, CP), jnp.float32).at[:, :, :c1, :c2].set(w2)
    b2p = jnp.zeros((1, CP), jnp.float32).at[0, :c2].set(p["b2"])
    # fc1: (256, 512) where 512 flattens as (c, h, w) -> (h, w, C_pad, 256)
    wf1 = jnp.transpose(p["wf1"].reshape(NF1, c2, P2, P2), (2, 3, 1, 0))
    wf1p = jnp.zeros((P2, P2, CP, NF1), jnp.float32).at[:, :, :c2, :].set(wf1)
    bf1p = p["bf1"].reshape(1, NF1)
    # fc2: (10, 256) -> (256, 128) with zero-padded output lanes
    wf2p = jnp.zeros((NF1, CP), jnp.float32).at[:, :nout].set(p["wf2"].T)
    bf2p = jnp.zeros((1, CP), jnp.float32).at[0, :nout].set(p["bf2"])
    return {"w1": w1p, "b1": b1p, "w2": w2p, "b2": b2p,
            "wf1": wf1p, "bf1": bf1p, "wf2": wf2p, "bf2": bf2p}


# ------------------------------ forward pass --------------------------------

@jax.jit
def net_forward(x, packed):
    B = x.shape[0]
    assert x.shape[1:] == (1, H0, W0), x.shape
    xi = x[:, 0]                                                 # (B,28,28)
    # Pre-gather the kw taps once on the tiny raw input (one small XLA fusion);
    # everything downstream happens inside the single Pallas kernel.
    x5 = jnp.stack([xi[:, :, j:j + W1] for j in range(KW)], axis=-1)
    x5 = jnp.pad(x5, ((0, 0), (0, 0), (0, 0), (0, KPAD - KW)))  # (B,28,24,8)

    vmem = pl.BlockSpec(memory_space=pltpu.MemorySpace.VMEM)
    out = pl.pallas_call(
        _net_kernel,
        out_shape=jax.ShapeDtypeStruct((B, CP), jnp.float32),
        in_specs=[vmem] * 9,
        out_specs=vmem,
        scratch_shapes=[
            pltpu.VMEM((B, H1, W1, CP), jnp.float32),   # conv1 pre-pool
            pltpu.VMEM((B, P1, P1, CP), jnp.float32),   # pool1 / conv2 input
            pltpu.VMEM((B, H2, W2, CP), jnp.float32),   # conv2 pre-pool
            pltpu.VMEM((B, P2, P2, CP), jnp.float32),   # pool2 / fc1 input
        ],
        cost_estimate=pl.CostEstimate(flops=115_000_000, transcendentals=0,
                                      bytes_accessed=4_000_000),
    )(x5, packed["w1"], packed["b1"], packed["w2"], packed["b2"],
      packed["wf1"], packed["bf1"], packed["wf2"], packed["bf2"])
    return out[:, :10]


# ------------------------------ init & reference ----------------------------

def init_params(key):
    """Deterministic PyTorch-style uniform(-1/sqrt(fan_in), 1/sqrt(fan_in))."""
    ks = jax.random.split(key, 8)

    def u(k, shape, fan_in):
        bound = 1.0 / jnp.sqrt(jnp.float32(fan_in))
        return jax.random.uniform(k, shape, jnp.float32, -bound, bound)

    return {
        "w1": u(ks[0], (16, 1, 5, 5), 1 * 5 * 5),
        "b1": u(ks[1], (16,), 1 * 5 * 5),
        "w2": u(ks[2], (32, 16, 5, 5), 16 * 5 * 5),
        "b2": u(ks[3], (32,), 16 * 5 * 5),
        "wf1": u(ks[4], (256, 512), 512),
        "bf1": u(ks[5], (256,), 512),
        "wf2": u(ks[6], (10, 256), 256),
        "bf2": u(ks[7], (10,), 256),
    }


def reference_forward(x, params):
    """Pure-JAX reference (lax conv) for correctness checking."""
    def conv(x, w, b):
        y = jax.lax.conv_general_dilated(
            x, w, window_strides=(1, 1), padding="VALID",
            dimension_numbers=("NCHW", "OIHW", "NCHW"))
        return y + b[None, :, None, None]

    def pool_relu(h):
        B, C, H, W = h.shape
        m = jnp.max(h.reshape(B, C, H // 2, 2, W // 2, 2), axis=(3, 5))
        return jax.nn.relu(m)

    h = pool_relu(conv(x, params["w1"], params["b1"]))
    h = pool_relu(conv(h, params["w2"], params["b2"]))
    h = h.reshape(x.shape[0], -1)
    h = jax.nn.relu(h @ params["wf1"].T + params["bf1"])
    return h @ params["wf2"].T + params["bf2"]


if __name__ == "__main__":
    key = jax.random.PRNGKey(0)
    pkey, xkey = jax.random.split(key)
    params = init_params(pkey)
    packed = pack_params(params)
    # Input implied by the forward: 28x28 single-channel (32*4*4 == 512).
    x = jax.random.normal(xkey, (2, 1, 28, 28), jnp.float32)

    out = jax.block_until_ready(net_forward(x, packed))
    ref = jax.block_until_ready(reference_forward(x, params))

    assert out.shape == (2, 10), out.shape
    err = jnp.max(jnp.abs(out - ref))
    assert jnp.allclose(out, ref, atol=1e-3, rtol=1e-3), (
        f"mismatch vs reference: max abs err {err}")
    print("KERNEL_OK")
</pallas_src>

<mosaic_0001>
module attributes {stable_mosaic.version = 11 : i64} {
  func.func @_net_kernel(%arg0: memref<2x28x24x8xf32, #tpu.memory_space<vmem>>, %arg1: memref<5x8x128xf32, #tpu.memory_space<vmem>>, %arg2: memref<1x128xf32, #tpu.memory_space<vmem>>, %arg3: memref<5x5x128x128xf32, #tpu.memory_space<vmem>>, %arg4: memref<1x128xf32, #tpu.memory_space<vmem>>, %arg5: memref<4x4x128x256xf32, #tpu.memory_space<vmem>>, %arg6: memref<1x256xf32, #tpu.memory_space<vmem>>, %arg7: memref<256x128xf32, #tpu.memory_space<vmem>>, %arg8: memref<1x128xf32, #tpu.memory_space<vmem>>, %arg9: memref<2x128xf32, #tpu.memory_space<vmem>>, %arg10: memref<2x24x24x128xf32, #tpu.memory_space<vmem>>, %arg11: memref<2x12x12x128xf32, #tpu.memory_space<vmem>>, %arg12: memref<2x8x8x128xf32, #tpu.memory_space<vmem>>, %arg13: memref<2x4x4x128xf32, #tpu.memory_space<vmem>>) attributes {dimension_semantics = [], scalar_prefetch = 0 : i64, scratch_operands = 4 : i64, tpu.core_type = #tpu.core_type<tc>} {
    %c0 = arith.constant 0 : index
    %c0_0 = arith.constant 0 : index
    %c0_1 = arith.constant 0 : index
    %c0_2 = arith.constant 0 : index
    %0 = vector.load %arg0[%c0, %c0_0, %c0_1, %c0_2] : memref<2x28x24x8xf32, #tpu.memory_space<vmem>>, vector<2x24x24x8xf32>
    %1 = vector.shape_cast %0 : vector<2x24x24x8xf32> to vector<1152x8xf32>
    %c0_3 = arith.constant 0 : index
    %c0_4 = arith.constant 0 : index
    %c0_5 = arith.constant 0 : index
    %2 = vector.load %arg1[%c0_3, %c0_4, %c0_5] : memref<5x8x128xf32, #tpu.memory_space<vmem>>, vector<1x8x128xf32>
    %3 = vector.shape_cast %2 : vector<1x8x128xf32> to vector<8x128xf32>
    %cst = arith.constant dense<0.000000e+00> : vector<1152x128xf32>
    %4 = tpu.matmul %1, %3, %cst {dimension_numbers = #tpu.dot_dimension_numbers<[1], [0], [0], [1], [0, 0, 1, 1], [], []>} : vector<1152x8xf32>, vector<8x128xf32>, vector<1152x128xf32> -> vector<1152x128xf32>
    %5 = vector.shape_cast %4 : vector<1152x128xf32> to vector<2x24x24x128xf32>
    %c0_6 = arith.constant 0 : index
    %c0_7 = arith.constant 0 : index
    %c0_8 = arith.constant 0 : index
    %c0_9 = arith.constant 0 : index
    %6 = vector.load %arg10[%c0_6, %c0_7, %c0_8, %c0_9] : memref<2x24x24x128xf32, #tpu.memory_space<vmem>>, vector<2x24x24x128xf32>
    tpu.vector_store %arg10[%c0_6, %c0_7, %c0_8, %c0_9], %5 {strides = array<i32>} : memref<2x24x24x128xf32, #tpu.memory_space<vmem>>, vector<2x24x24x128xf32>,
    %c0_10 = arith.constant 0 : index
    %c1 = arith.constant 1 : index
    %c0_11 = arith.constant 0 : index
    %c0_12 = arith.constant 0 : index
    %7 = vector.load %arg0[%c0_10, %c1, %c0_11, %c0_12] : memref<2x28x24x8xf32, #tpu.memory_space<vmem>>, vector<2x24x24x8xf32>
    %8 = vector.shape_cast %7 : vector<2x24x24x8xf32> to vector<1152x8xf32>
    %c1_13 = arith.constant 1 : index
    %c0_14 = arith.constant 0 : index
    %c0_15 = arith.constant 0 : index
    %9 = vector.load %arg1[%c1_13, %c0_14, %c0_15] : memref<5x8x128xf32, #tpu.memory_space<vmem>>, vector<1x8x128xf32>
    %10 = vector.shape_cast %9 : vector<1x8x128xf32> to vector<8x128xf32>
    %cst_16 = arith.constant dense<0.000000e+00> : vector<1152x128xf32>
    %11 = tpu.matmul %8, %10, %cst_16 {dimension_numbers = #tpu.dot_dimension_numbers<[1], [0], [0], [1], [0, 0, 1, 1], [], []>} : vector<1152x8xf32>, vector<8x128xf32>, vector<1152x128xf32> -> vector<1152x128xf32>
    %12 = vector.shape_cast %11 : vector<1152x128xf32> to vector<2x24x24x128xf32>
    %c0_17 = arith.constant 0 : index
    %c0_18 = arith.constant 0 : index
    %c0_19 = arith.constant 0 : index
    %c0_20 = arith.constant 0 : index
    %13 = vector.load %arg10[%c0_17, %c0_18, %c0_19, %c0_20] : memref<2x24x24x128xf32, #tpu.memory_space<vmem>>, vector<2x24x24x128xf32>
    %14 = arith.addf %13, %12 : vector<2x24x24x128xf32>
    %c0_21 = arith.constant 0 : index
    %c0_22 = arith.constant 0 : index
    %c0_23 = arith.constant 0 : index
    %c0_24 = arith.constant 0 : index
    %15 = vector.load %arg10[%c0_21, %c0_22, %c0_23, %c0_24] : memref<2x24x24x128xf32, #tpu.memory_space<vmem>>, vector<2x24x24x128xf32>
    tpu.vector_store %arg10[%c0_21, %c0_22, %c0_23, %c0_24], %14 {strides = array<i32>} : memref<2x24x24x128xf32, #tpu.memory_space<vmem>>, vector<2x24x24x128xf32>,
    %c0_25 = arith.constant 0 : index
    %c2 = arith.constant 2 : index
    %c0_26 = arith.constant 0 : index
    %c0_27 = arith.constant 0 : index
    %16 = vector.load %arg0[%c0_25, %c2, %c0_26, %c0_27] : memref<2x28x24x8xf32, #tpu.memory_space<vmem>>, vector<2x24x24x8xf32>
    %17 = vector.shape_cast %16 : vector<2x24x24x8xf32> to vector<1152x8xf32>
    %c2_28 = arith.constant 2 : index
    %c0_29 = arith.constant 0 : index
    %c0_30 = arith.constant 0 : index
    %18 = vector.load %arg1[%c2_28, %c0_29, %c0_30] : memref<5x8x128xf32, #tpu.memory_space<vmem>>, vector<1x8x128xf32>
    %19 = vector.shape_cast %18 : vector<1x8x128xf32> to vector<8x128xf32>
    %cst_31 = arith.constant dense<0.000000e+00> : vector<1152x128xf32>
    %20 = tpu.matmul %17, %19, %cst_31 {dimension_numbers = #tpu.dot_dimension_numbers<[1], [0], [0], [1], [0, 0, 1, 1], [], []>} : vector<1152x8xf32>, vector<8x128xf32>, vector<1152x128xf32> -> vector<1152x128xf32>
    %21 = vector.shape_cast %20 : vector<1152x128xf32> to vector<2x24x24x128xf32>
    %c0_32 = arith.constant 0 : index
    %c0_33 = arith.constant 0 : index
    %c0_34 = arith.constant 0 : index
    %c0_35 = arith.constant 0 : index
    %22 = vector.load %arg10[%c0_32, %c0_33, %c0_34, %c0_35] : memref<2x24x24x128xf32, #tpu.memory_space<vmem>>, vector<2x24x24x128xf32>
    %23 = arith.addf %22, %21 : vector<2x24x24x128xf32>
    %c0_36 = arith.constant 0 : index
    %c0_37 = arith.constant 0 : index
    %c0_38 = arith.constant 0 : index
    %c0_39 = arith.constant 0 : index
    %24 = vector.load %arg10[%c0_36, %c0_37, %c0_38, %c0_39] : memref<2x24x24x128xf32, #tpu.memory_space<vmem>>, vector<2x24x24x128xf32>
    tpu.vector_store %arg10[%c0_36, %c0_37, %c0_38, %c0_39], %23 {strides = array<i32>} : memref<2x24x24x128xf32, #tpu.memory_space<vmem>>, vector<2x24x24x128xf32>,
    %c0_40 = arith.constant 0 : index
    %c3 = arith.constant 3 : index
    %c0_41 = arith.constant 0 : index
    %c0_42 = arith.constant 0 : index
    %25 = vector.load %arg0[%c0_40, %c3, %c0_41, %c0_42] : memref<2x28x24x8xf32, #tpu.memory_space<vmem>>, vector<2x24x24x8xf32>
    %26 = vector.shape_cast %25 : vector<2x24x24x8xf32> to vector<1152x8xf32>
    %c3_43 = arith.constant 3 : index
    %c0_44 = arith.constant 0 : index
    %c0_45 = arith.constant 0 : index
    %27 = vector.load %arg1[%c3_43, %c0_44, %c0_45] : memref<5x8x128xf32, #tpu.memory_space<vmem>>, vector<1x8x128xf32>
    %28 = vector.shape_cast %27 : vector<1x8x128xf32> to vector<8x128xf32>
    %cst_46 = arith.constant dense<0.000000e+00> : vector<1152x128xf32>
    %29 = tpu.matmul %26, %28, %cst_46 {dimension_numbers = #tpu.dot_dimension_numbers<[1], [0], [0], [1], [0, 0, 1, 1], [], []>} : vector<1152x8xf32>, vector<8x128xf32>, vector<1152x128xf32> -> vector<1152x128xf32>
    %30 = vector.shape_cast %29 : vector<1152x128xf32> to vector<2x24x24x128xf32>
    %c0_47 = arith.constant 0 : index
    %c0_48 = arith.constant 0 : index
    %c0_49 = arith.constant 0 : index
    %c0_50 = arith.constant 0 : index
    %31 = vector.load %arg10[%c0_47, %c0_48, %c0_49, %c0_50] : memref<2x24x24x128xf32, #tpu.memory_space<vmem>>, vector<2x24x24x128xf32>
    %32 = arith.addf %31, %30 : vector<2x24x24x128xf32>
    %c0_51 = arith.constant 0 : index
    %c0_52 = arith.constant 0 : index
    %c0_53 = arith.constant 0 : index
    %c0_54 = arith.constant 0 : index
    %33 = vector.load %arg10[%c0_51, %c0_52, %c0_53, %c0_54] : memref<2x24x24x128xf32, #tpu.memory_space<vmem>>, vector<2x24x24x128xf32>
    tpu.vector_store %arg10[%c0_51, %c0_52, %c0_53, %c0_54], %32 {strides = array<i32>} : memref<2x24x24x128xf32, #tpu.memory_space<vmem>>, vector<2x24x24x128xf32>,
    %c0_55 = arith.constant 0 : index
    %c4 = arith.constant 4 : index
    %c0_56 = arith.constant 0 : index
    %c0_57 = arith.constant 0 : index
    %34 = vector.load %arg0[%c0_55, %c4, %c0_56, %c0_57] : memref<2x28x24x8xf32, #tpu.memory_space<vmem>>, vector<2x24x24x8xf32>
    %35 = vector.shape_cast %34 : vector<2x24x24x8xf32> to vector<1152x8xf32>
    %c4_58 = arith.constant 4 : index
    %c0_59 = arith.constant 0 : index
    %c0_60 = arith.constant 0 : index
    %36 = vector.load %arg1[%c4_58, %c0_59, %c0_60] : memref<5x8x128xf32, #tpu.memory_space<vmem>>, vector<1x8x128xf32>
    %37 = vector.shape_cast %36 : vector<1x8x128xf32> to vector<8x128xf32>
    %cst_61 = arith.constant dense<0.000000e+00> : vector<1152x128xf32>
    %38 = tpu.matmul %35, %37, %cst_61 {dimension_numbers = #tpu.dot_dimension_numbers<[1], [0], [0], [1], [0, 0, 1, 1], [], []>} : vector<1152x8xf32>, vector<8x128xf32>, vector<1152x128xf32> -> vector<1152x128xf32>
    %39 = vector.shape_cast %38 : vector<1152x128xf32> to vector<2x24x24x128xf32>
    %c0_62 = arith.constant 0 : index
    %c0_63 = arith.constant 0 : index
    %c0_64 = arith.constant 0 : index
    %c0_65 = arith.constant 0 : index
    %40 = vector.load %arg10[%c0_62, %c0_63, %c0_64, %c0_65] : memref<2x24x24x128xf32, #tpu.memory_space<vmem>>, vector<2x24x24x128xf32>
    %41 = arith.addf %40, %39 : vector<2x24x24x128xf32>
    %c0_66 = arith.constant 0 : index
    %c0_67 = arith.constant 0 : index
    %c0_68 = arith.constant 0 : index
    %c0_69 = arith.constant 0 : index
    %42 = vector.load %arg10[%c0_66, %c0_67, %c0_68, %c0_69] : memref<2x24x24x128xf32, #tpu.memory_space<vmem>>, vector<2x24x24x128xf32>
    tpu.vector_store %arg10[%c0_66, %c0_67, %c0_68, %c0_69], %41 {strides = array<i32>} : memref<2x24x24x128xf32, #tpu.memory_space<vmem>>, vector<2x24x24x128xf32>,
    %c0_70 = arith.constant 0 : index
    %c0_71 = arith.constant 0 : index
    %c0_72 = arith.constant 0 : index
    %c0_73 = arith.constant 0 : index
    %43 = tpu.strided_load %arg10[%c0_70, %c0_71, %c0_72, %c0_73] {strides = array<i32: 1, 1, 2, 1>} : memref<2x24x24x128xf32, #tpu.memory_space<vmem>>, vector<2x24x12x128xf32>
    %c0_74 = arith.constant 0 : index
    %c0_75 = arith.constant 0 : index
    %c1_76 = arith.constant 1 : index
    %c0_77 = arith.constant 0 : index
    %44 = tpu.strided_load %arg10[%c0_74, %c0_75, %c1_76, %c0_77] {strides = array<i32: 1, 1, 2, 1>} : memref<2x24x24x128xf32, #tpu.memory_space<vmem>>, vector<2x24x12x128xf32>
    %45 = arith.maximumf %43, %44 : vector<2x24x12x128xf32>
    %46 = vector.shape_cast %45 : vector<2x24x12x128xf32> to vector<2x12x2x12x128xf32>
    %cst_78 = arith.constant dense<0xFF800000> : vector<2x12x12x128xf32>
    %47 = vector.multi_reduction <maximumf>, %46, %cst_78 [2] : vector<2x12x2x12x128xf32> to vector<2x12x12x128xf32>
    %c0_79 = arith.constant 0 : index
    %c0_80 = arith.constant 0 : index
    %48 = vector.load %arg2[%c0_79, %c0_80] : memref<1x128xf32, #tpu.memory_space<vmem>>, vector<1x128xf32>
    %49 = vector.shape_cast %48 : vector<1x128xf32> to vector<1x1x1x128xf32>
    %50 = vector.broadcast %49 : vector<1x1x1x128xf32> to vector<2x12x12x128xf32>
    %51 = arith.addf %47, %50 : vector<2x12x12x128xf32>
    %cst_81 = arith.constant 0.000000e+00 : f32
    %52 = vector.broadcast %cst_81 : f32 to vector<2x12x12x128xf32>
    %53 = arith.maximumf %51, %52 : vector<2x12x12x128xf32>
    %c0_82 = arith.constant 0 : index
    %c0_83 = arith.constant 0 : index
    %c0_84 = arith.constant 0 : index
    %c0_85 = arith.constant 0 : index
    %54 = vector.load %arg11[%c0_82, %c0_83, %c0_84, %c0_85] : memref<2x12x12x128xf32, #tpu.memory_space<vmem>>, vector<2x12x12x128xf32>
    tpu.vector_store %arg11[%c0_82, %c0_83, %c0_84, %c0_85], %53 {strides = array<i32>} : memref<2x12x12x128xf32, #tpu.memory_space<vmem>>, vector<2x12x12x128xf32>,
    %c0_86 = arith.constant 0 : index
    %c0_87 = arith.constant 0 : index
    %c0_88 = arith.constant 0 : index
    %c0_89 = arith.constant 0 : index
    %55 = vector.load %arg11[%c0_86, %c0_87, %c0_88, %c0_89] : memref<2x12x12x128xf32, #tpu.memory_space<vmem>>, vector<2x8x8x128xf32>
    %56 = vector.shape_cast %55 : vector<2x8x8x128xf32> to vector<128x128xf32>
    %c0_90 = arith.constant 0 : index
    %c0_91 = arith.constant 0 : index
    %c0_92 = arith.constant 0 : index
    %c0_93 = arith.constant 0 : index
    %57 = vector.load %arg3[%c0_90, %c0_91, %c0_92, %c0_93] : memref<5x5x128x128xf32, #tpu.memory_space<vmem>>, vector<1x1x128x128xf32>
    %58 = vector.shape_cast %57 : vector<1x1x128x128xf32> to vector<128x128xf32>
    %cst_94 = arith.constant dense<0.000000e+00> : vector<128x128xf32>
    %59 = tpu.matmul %56, %58, %cst_94 {dimension_numbers = #tpu.dot_dimension_numbers<[1], [0], [0], [1], [0, 0, 1, 1], [], []>} : vector<128x128xf32>, vector<128x128xf32>, vector<128x128xf32> -> vector<128x128xf32>
    %c0_95 = arith.constant 0 : index
    %c0_96 = arith.constant 0 : index
    %c1_97 = arith.constant 1 : index
    %c0_98 = arith.constant 0 : index
    %60 = vector.load %arg11[%c0_95, %c0_96, %c1_97, %c0_98] : memref<2x12x12x128xf32, #tpu.memory_space<vmem>>, vector<2x8x8x128xf32>
    %61 = vector.shape_cast %60 : vector<2x8x8x128xf32> to vector<128x128xf32>
    %c0_99 = arith.constant 0 : index
    %c1_100 = arith.constant 1 : index
    %c0_101 = arith.constant 0 : index
    %c0_102 = arith.constant 0 : index
    %62 = vector.load %arg3[%c0_99, %c1_100, %c0_101, %c0_102] : memref<5x5x128x128xf32, #tpu.memory_space<vmem>>, vector<1x1x128x128xf32>
    %63 = vector.shape_cast %62 : vector<1x1x128x128xf32> to vector<128x128xf32>
    %cst_103 = arith.constant dense<0.000000e+00> : vector<128x128xf32>
    %64 = tpu.matmul %61, %63, %cst_103 {dimension_numbers = #tpu.dot_dimension_numbers<[1], [0], [0], [1], [0, 0, 1, 1], [], []>} : vector<128x128xf32>, vector<128x128xf32>, vector<128x128xf32> -> vector<128x128xf32>
    %65 = arith.addf %59, %64 : vector<128x128xf32>
    %c0_104 = arith.constant 0 : index
    %c0_105 = arith.constant 0 : index
    %c2_106 = arith.constant 2 : index
    %c0_107 = arith.constant 0 : index
    %66 = vector.load %arg11[%c0_104, %c0_105, %c2_106, %c0_107] : memref<2x12x12x128xf32, #tpu.memory_space<vmem>>, vector<2x8x8x128xf32>
    %67 = vector.shape_cast %66 : vector<2x8x8x128xf32> to vector<128x128xf32>
    %c0_108 = arith.constant 0 : index
    %c2_109 = arith.constant 2 : index
    %c0_110 = arith.constant 0 : index
    %c0_111 = arith.constant 0 : index
    %68 = vector.load %arg3[%c0_108, %c2_109, %c0_110, %c0_111] : memref<5x5x128x128xf32, #tpu.memory_space<vmem>>, vector<1x1x128x128xf32>
    %69 = vector.shape_cast %68 : vector<1x1x128x128xf32> to vector<128x128xf32>
    %cst_112 = arith.constant dense<0.000000e+00> : vector<128x128xf32>
    %70 = tpu.matmul %67, %69, %cst_112 {dimension_numbers = #tpu.dot_dimension_numbers<[1], [0], [0], [1], [0, 0, 1, 1], [], []>} : vector<128x128xf32>, vector<128x128xf32>, vector<128x128xf32> -> vector<128x128xf32>
    %71 = arith.addf %65, %70 : vector<128x128xf32>
    %c0_113 = arith.constant 0 : index
    %c0_114 = arith.constant 0 : index
    %c3_115 = arith.constant 3 : index
    %c0_116 = arith.constant 0 : index
    %72 = vector.load %arg11[%c0_113, %c0_114, %c3_115, %c0_116] : memref<2x12x12x128xf32, #tpu.memory_space<vmem>>, vector<2x8x8x128xf32>
    %73 = vector.shape_cast %72 : vector<2x8x8x128xf32> to vector<128x128xf32>
    %c0_117 = arith.constant 0 : index
    %c3_118 = arith.constant 3 : index
    %c0_119 = arith.constant 0 : index
    %c0_120 = arith.constant 0 : index
    %74 = vector.load %arg3[%c0_117, %c3_118, %c0_119, %c0_120] : memref<5x5x128x128xf32, #tpu.memory_space<vmem>>, vector<1x1x128x128xf32>
    %75 = vector.shape_cast %74 : vector<1x1x128x128xf32> to vector<128x128xf32>
    %cst_121 = arith.constant dense<0.000000e+00> : vector<128x128xf32>
    %76 = tpu.matmul %73, %75, %cst_121 {dimension_numbers = #tpu.dot_dimension_numbers<[1], [0], [0], [1], [0, 0, 1, 1], [], []>} : vector<128x128xf32>, vector<128x128xf32>, vector<128x128xf32> -> vector<128x128xf32>
    %77 = arith.addf %71, %76 : vector<128x128xf32>
    %c0_122 = arith.constant 0 : index
    %c0_123 = arith.constant 0 : index
    %c4_124 = arith.constant 4 : index
    %c0_125 = arith.constant 0 : index
    %78 = vector.load %arg11[%c0_122, %c0_123, %c4_124, %c0_125] : memref<2x12x12x128xf32, #tpu.memory_space<vmem>>, vector<2x8x8x128xf32>
    %79 = vector.shape_cast %78 : vector<2x8x8x128xf32> to vector<128x128xf32>
    %c0_126 = arith.constant 0 : index
    %c4_127 = arith.constant 4 : index
    %c0_128 = arith.constant 0 : index
    %c0_129 = arith.constant 0 : index
    %80 = vector.load %arg3[%c0_126, %c4_127, %c0_128, %c0_129] : memref<5x5x128x128xf32, #tpu.memory_space<vmem>>, vector<1x1x128x128xf32>
    %81 = vector.shape_cast %80 : vector<1x1x128x128xf32> to vector<128x128xf32>
    %cst_130 = arith.constant dense<0.000000e+00> : vector<128x128xf32>
    %82 = tpu.matmul %79, %81, %cst_130 {dimension_numbers = #tpu.dot_dimension_numbers<[1], [0], [0], [1], [0, 0, 1, 1], [], []>} : vector<128x128xf32>, vector<128x128xf32>, vector<128x128xf32> -> vector<128x128xf32>
    %83 = arith.addf %77, %82 : vector<128x128xf32>
    %c0_131 = arith.constant 0 : index
    %c1_132 = arith.constant 1 : index
    %c0_133 = arith.constant 0 : index
    %c0_134 = arith.constant 0 : index
    %84 = vector.load %arg11[%c0_131, %c1_132, %c0_133, %c0_134] : memref<2x12x12x128xf32, #tpu.memory_space<vmem>>, vector<2x8x8x128xf32>
    %85 = vector.shape_cast %84 : vector<2x8x8x128xf32> to vector<128x128xf32>
    %c1_135 = arith.constant 1 : index
    %c0_136 = arith.constant 0 : index
    %c0_137 = arith.constant 0 : index
    %c0_138 = arith.constant 0 : index
    %86 = vector.load %arg3[%c1_135, %c0_136, %c0_137, %c0_138] : memref<5x5x128x128xf32, #tpu.memory_space<vmem>>, vector<1x1x128x128xf32>
    %87 = vector.shape_cast %86 : vector<1x1x128x128xf32> to vector<128x128xf32>
    %cst_139 = arith.constant dense<0.000000e+00> : vector<128x128xf32>
    %88 = tpu.matmul %85, %87, %cst_139 {dimension_numbers = #tpu.dot_dimension_numbers<[1], [0], [0], [1], [0, 0, 1, 1], [], []>} : vector<128x128xf32>, vector<128x128xf32>, vector<128x128xf32> -> vector<128x128xf32>
    %89 = arith.addf %83, %88 : vector<128x128xf32>
    %c0_140 = arith.constant 0 : index
    %c1_141 = arith.constant 1 : index
    %c1_142 = arith.constant 1 : index
    %c0_143 = arith.constant 0 : index
    %90 = vector.load %arg11[%c0_140, %c1_141, %c1_142, %c0_143] : memref<2x12x12x128xf32, #tpu.memory_space<vmem>>, vector<2x8x8x128xf32>
    %91 = vector.shape_cast %90 : vector<2x8x8x128xf32> to vector<128x128xf32>
    %c1_144 = arith.constant 1 : index
    %c1_145 = arith.constant 1 : index
    %c0_146 = arith.constant 0 : index
    %c0_147 = arith.constant 0 : index
    %92 = vector.load %arg3[%c1_144, %c1_145, %c0_146, %c0_147] : memref<5x5x128x128xf32, #tpu.memory_space<vmem>>, vector<1x1x128x128xf32>
    %93 = vector.shape_cast %92 : vector<1x1x128x128xf32> to vector<128x128xf32>
    %cst_148 = arith.constant dense<0.000000e+00> : vector<128x128xf32>
    %94 = tpu.matmul %91, %93, %cst_148 {dimension_numbers = #tpu.dot_dimension_numbers<[1], [0], [0], [1], [0, 0, 1, 1], [], []>} : vector<128x128xf32>, vector<128x128xf32>, vector<128x128xf32> -> vector<128x128xf32>
    %95 = arith.addf %89, %94 : vector<128x128xf32>
    %c0_149 = arith.constant 0 : index
    %c1_150 = arith.constant 1 : index
    %c2_151 = arith.constant 2 : index
    %c0_152 = arith.constant 0 : index
    %96 = vector.load %arg11[%c0_149, %c1_150, %c2_151, %c0_152] : memref<2x12x12x128xf32, #tpu.memory_space<vmem>>, vector<2x8x8x128xf32>
    %97 = vector.shape_cast %96 : vector<2x8x8x128xf32> to vector<128x128xf32>
    %c1_153 = arith.constant 1 : index
    %c2_154 = arith.constant 2 : index
    %c0_155 = arith.constant 0 : index
    %c0_156 = arith.constant 0 : index
    %98 = vector.load %arg3[%c1_153, %c2_154, %c0_155, %c0_156] : memref<5x5x128x128xf32, #tpu.memory_space<vmem>>, vector<1x1x128x128xf32>
    %99 = vector.shape_cast %98 : vector<1x1x128x128xf32> to vector<128x128xf32>
    %cst_157 = arith.constant dense<0.000000e+00> : vector<128x128xf32>
    %100 = tpu.matmul %97, %99, %cst_157 {dimension_numbers = #tpu.dot_dimension_numbers<[1], [0], [0], [1], [0, 0, 1, 1], [], []>} : vector<128x128xf32>, vector<128x128xf32>, vector<128x128xf32> -> vector<128x128xf32>
    %101 = arith.addf %95, %100 : vector<128x128xf32>
    %c0_158 = arith.constant 0 : index
    %c1_159 = arith.constant 1 : index
    %c3_160 = arith.constant 3 : index
    %c0_161 = arith.constant 0 : index
    %102 = vector.load %arg11[%c0_158, %c1_159, %c3_160, %c0_161] : memref<2x12x12x128xf32, #tpu.memory_space<vmem>>, vector<2x8x8x128xf32>
    %103 = vector.shape_cast %102 : vector<2x8x8x128xf32> to vector<128x128xf32>
    %c1_162 = arith.constant 1 : index
    %c3_163 = arith.constant 3 : index
    %c0_164 = arith.constant 0 : index
    %c0_165 = arith.constant 0 : index
    %104 = vector.load %arg3[%c1_162, %c3_163, %c0_164, %c0_165] : memref<5x5x128x128xf32, #tpu.memory_space<vmem>>, vector<1x1x128x128xf32>
    %105 = vector.shape_cast %104 : vector<1x1x128x128xf32> to vector<128x128xf32>
    %cst_166 = arith.constant dense<0.000000e+00> : vector<128x128xf32>
    %106 = tpu.matmul %103, %105, %cst_166 {dimension_numbers = #tpu.dot_dimension_numbers<[1], [0], [0], [1], [0, 0, 1, 1], [], []>} : vector<128x128xf32>, vector<128x128xf32>, vector<128x128xf32> -> vector<128x128xf32>
    %107 = arith.addf %101, %106 : vector<128x128xf32>
    %c0_167 = arith.constant 0 : index
    %c1_168 = arith.constant 1 : index
    %c4_169 = arith.constant 4 : index
    %c0_170 = arith.constant 0 : index
    %108 = vector.load %arg11[%c0_167, %c1_168, %c4_169, %c0_170] : memref<2x12x12x128xf32, #tpu.memory_space<vmem>>, vector<2x8x8x128xf32>
    %109 = vector.shape_cast %108 : vector<2x8x8x128xf32> to vector<128x128xf32>
    %c1_171 = arith.constant 1 : index
    %c4_172 = arith.constant 4 : index
    %c0_173 = arith.constant 0 : index
    %c0_174 = arith.constant 0 : index
    %110 = vector.load %arg3[%c1_171, %c4_172, %c0_173, %c0_174] : memref<5x5x128x128xf32, #tpu.memory_space<vmem>>, vector<1x1x128x128xf32>
    %111 = vector.shape_cast %110 : vector<1x1x128x128xf32> to vector<128x128xf32>
    %cst_175 = arith.constant dense<0.000000e+00> : vector<128x128xf32>
    %112 = tpu.matmul %109, %111, %cst_175 {dimension_numbers = #tpu.dot_dimension_numbers<[1], [0], [0], [1], [0, 0, 1, 1], [], []>} : vector<128x128xf32>, vector<128x128xf32>, vector<128x128xf32> -> vector<128x128xf32>
    %113 = arith.addf %107, %112 : vector<128x128xf32>
    %c0_176 = arith.constant 0 : index
    %c2_177 = arith.constant 2 : index
    %c0_178 = arith.constant 0 : index
    %c0_179 = arith.constant 0 : index
    %114 = vector.load %arg11[%c0_176, %c2_177, %c0_178, %c0_179] : memref<2x12x12x128xf32, #tpu.memory_space<vmem>>, vector<2x8x8x128xf32>
    %115 = vector.shape_cast %114 : vector<2x8x8x128xf32> to vector<128x128xf32>
    %c2_180 = arith.constant 2 : index
    %c0_181 = arith.constant 0 : index
    %c0_182 = arith.constant 0 : index
    %c0_183 = arith.constant 0 : index
    %116 = vector.load %arg3[%c2_180, %c0_181, %c0_182, %c0_183] : memref<5x5x128x128xf32, #tpu.memory_space<vmem>>, vector<1x1x128x128xf32>
    %117 = vector.shape_cast %116 : vector<1x1x128x128xf32> to vector<128x128xf32>
    %cst_184 = arith.constant dense<0.000000e+00> : vector<128x128xf32>
    %118 = tpu.matmul %115, %117, %cst_184 {dimension_numbers = #tpu.dot_dimension_numbers<[1], [0], [0], [1], [0, 0, 1, 1], [], []>} : vector<128x128xf32>, vector<128x128xf32>, vector<128x128xf32> -> vector<128x128xf32>
    %119 = arith.addf %113, %118 : vector<128x128xf32>
    %c0_185 = arith.constant 0 : index
    %c2_186 = arith.constant 2 : index
    %c1_187 = arith.constant 1 : index
    %c0_188 = arith.constant 0 : index
    %120 = vector.load %arg11[%c0_185, %c2_186, %c1_187, %c0_188] : memref<2x12x12x128xf32, #tpu.memory_space<vmem>>, vector<2x8x8x128xf32>
    %121 = vector.shape_cast %120 : vector<2x8x8x128xf32> to vector<128x128xf32>
    %c2_189 = arith.constant 2 : index
    %c1_190 = arith.constant 1 : index
    %c0_191 = arith.constant 0 : index
    %c0_192 = arith.constant 0 : index
    %122 = vector.load %arg3[%c2_189, %c1_190, %c0_191, %c0_192] : memref<5x5x128x128xf32, #tpu.memory_space<vmem>>, vector<1x1x128x128xf32>
    %123 = vector.shape_cast %122 : vector<1x1x128x128xf32> to vector<128x128xf32>
    %cst_193 = arith.constant dense<0.000000e+00> : vector<128x128xf32>
    %124 = tpu.matmul %121, %123, %cst_193 {dimension_numbers = #tpu.dot_dimension_numbers<[1], [0], [0], [1], [0, 0, 1, 1], [], []>} : vector<128x128xf32>, vector<128x128xf32>, vector<128x128xf32> -> vector<128x128xf32>
    %125 = arith.addf %119, %124 : vector<128x128xf32>
    %c0_194 = arith.constant 0 : index
    %c2_195 = arith.constant 2 : index
    %c2_196 = arith.constant 2 : index
    %c0_197 = arith.constant 0 : index
    %126 = vector.load %arg11[%c0_194, %c2_195, %c2_196, %c0_197] : memref<2x12x12x128xf32, #tpu.memory_space<vmem>>, vector<2x8x8x128xf32>
    %127 = vector.shape_cast %126 : vector<2x8x8x128xf32> to vector<128x128xf32>
    %c2_198 = arith.constant 2 : index
    %c2_199 = arith.constant 2 : index
    %c0_200 = arith.constant 0 : index
    %c0_201 = arith.constant 0 : index
    %128 = vector.load %arg3[%c2_198, %c2_199, %c0_200, %c0_201] : memref<5x5x128x128xf32, #tpu.memory_space<vmem>>, vector<1x1x128x128xf32>
    %129 = vector.shape_cast %128 : vector<1x1x128x128xf32> to vector<128x128xf32>
    %cst_202 = arith.constant dense<0.000000e+00> : vector<128x128xf32>
    %130 = tpu.matmul %127, %129, %cst_202 {dimension_numbers = #tpu.dot_dimension_numbers<[1], [0], [0], [1], [0, 0, 1, 1], [], []>} : vector<128x128xf32>, vector<128x128xf32>, vector<128x128xf32> -> vector<128x128xf32>
    %131 = arith.addf %125, %130 : vector<128x128xf32>
    %c0_203 = arith.constant 0 : index
    %c2_204 = arith.constant 2 : index
    %c3_205 = arith.constant 3 : index
    %c0_206 = arith.constant 0 : index
    %132 = vector.load %arg11[%c0_203, %c2_204, %c3_205, %c0_206] : memref<2x12x12x128xf32, #tpu.memory_space<vmem>>, vector<2x8x8x128xf32>
    %133 = vector.shape_cast %132 : vector<2x8x8x128xf32> to vector<128x128xf32>
    %c2_207 = arith.constant 2 : index
    %c3_208 = arith.constant 3 : index
    %c0_209 = arith.constant 0 : index
    %c0_210 = arith.constant 0 : index
    %134 = vector.load %arg3[%c2_207, %c3_208, %c0_209, %c0_210] : memref<5x5x128x128xf32, #tpu.memory_space<vmem>>, vector<1x1x128x128xf32>
    %135 = vector.shape_cast %134 : vector<1x1x128x128xf32> to vector<128x128xf32>
    %cst_211 = arith.constant dense<0.000000e+00> : vector<128x128xf32>
    %136 = tpu.matmul %133, %135, %cst_211 {dimension_numbers = #tpu.dot_dimension_numbers<[1], [0], [0], [1], [0, 0, 1, 1], [], []>} : vector<128x128xf32>, vector<128x128xf32>, vector<128x128xf32> -> vector<128x128xf32>
    %137 = arith.addf %131, %136 : vector<128x128xf32>
    %c0_212 = arith.constant 0 : index
    %c2_213 = arith.constant 2 : index
    %c4_214 = arith.constant 4 : index
    %c0_215 = arith.constant 0 : index
    %138 = vector.load %arg11[%c0_212, %c2_213, %c4_214, %c0_215] : memref<2x12x12x128xf32, #tpu.memory_space<vmem>>, vector<2x8x8x128xf32>
    %139 = vector.shape_cast %138 : vector<2x8x8x128xf32> to vector<128x128xf32>
    %c2_216 = arith.constant 2 : index
    %c4_217 = arith.constant 4 : index
    %c0_218 = arith.constant 0 : index
    %c0_219 = arith.constant 0 : index
    %140 = vector.load %arg3[%c2_216, %c4_217, %c0_218, %c0_219] : memref<5x5x128x128xf32, #tpu.memory_space<vmem>>, vector<1x1x128x128xf32>
    %141 = vector.shape_cast %140 : vector<1x1x128x128xf32> to vector<128x128xf32>
    %cst_220 = arith.constant dense<0.000000e+00> : vector<128x128xf32>
    %142 = tpu.matmul %139, %141, %cst_220 {dimension_numbers = #tpu.dot_dimension_numbers<[1], [0], [0], [1], [0, 0, 1, 1], [], []>} : vector<128x128xf32>, vector<128x128xf32>, vector<128x128xf32> -> vector<128x128xf32>
    %143 = arith.addf %137, %142 : vector<128x128xf32>
    %c0_221 = arith.constant 0 : index
    %c3_222 = arith.constant 3 : index
    %c0_223 = arith.constant 0 : index
    %c0_224 = arith.constant 0 : index
    %144 = vector.load %arg11[%c0_221, %c3_222, %c0_223, %c0_224] : memref<2x12x12x128xf32, #tpu.memory_space<vmem>>, vector<2x8x8x128xf32>
    %145 = vector.shape_cast %144 : vector<2x8x8x128xf32> to vector<128x128xf32>
    %c3_225 = arith.constant 3 : index
    %c0_226 = arith.constant 0 : index
    %c0_227 = arith.constant 0 : index
    %c0_228 = arith.constant 0 : index
    %146 = vector.load %arg3[%c3_225, %c0_226, %c0_227, %c0_228] : memref<5x5x128x128xf32, #tpu.memory_space<vmem>>, vector<1x1x128x128xf32>
    %147 = vector.shape_cast %146 : vector<1x1x128x128xf32> to vector<128x128xf32>
    %cst_229 = arith.constant dense<0.000000e+00> : vector<128x128xf32>
    %148 = tpu.matmul %145, %147, %cst_229 {dimension_numbers = #tpu.dot_dimension_numbers<[1], [0], [0], [1], [0, 0, 1, 1], [], []>} : vector<128x128xf32>, vector<128x128xf32>, vector<128x128xf32> -> vector<128x128xf32>
    %149 = arith.addf %143, %148 : vector<128x128xf32>
    %c0_230 = arith.constant 0 : index
    %c3_231 = arith.constant 3 : index
    %c1_232 = arith.constant 1 : index
    %c0_233 = arith.constant 0 : index
    %150 = vector.load %arg11[%c0_230, %c3_231, %c1_232, %c0_233] : memref<2x12x12x128xf32, #tpu.memory_space<vmem>>, vector<2x8x8x128xf32>
    %151 = vector.shape_cast %150 : vector<2x8x8x128xf32> to vector<128x128xf32>
    %c3_234 = arith.constant 3 : index
    %c1_235 = arith.constant 1 : index
    %c0_236 = arith.constant 0 : index
    %c0_237 = arith.constant 0 : index
    %152 = vector.load %arg3[%c3_234, %c1_235, %c0_236, %c0_237] : memref<5x5x128x128xf32, #tpu.memory_space<vmem>>, vector<1x1x128x128xf32>
    %153 = vector.shape_cast %152 : vector<1x1x128x128xf32> to vector<128x128xf32>
    %cst_238 = arith.constant dense<0.000000e+00> : vector<128x128xf32>
    %154 = tpu.matmul %151, %153, %cst_238 {dimension_numbers = #tpu.dot_dimension_numbers<[1], [0], [0], [1], [0, 0, 1, 1], [], []>} : vector<128x128xf32>, vector<128x128xf32>, vector<128x128xf32> -> vector<128x128xf32>
    %155 = arith.addf %149, %154 : vector<128x128xf32>
    %c0_239 = arith.constant 0 : index
    %c3_240 = arith.constant 3 : index
    %c2_241 = arith.constant 2 : index
    %c0_242 = arith.constant 0 : index
    %156 = vector.load %arg11[%c0_239, %c3_240, %c2_241, %c0_242] : memref<2x12x12x128xf32, #tpu.memory_space<vmem>>, vector<2x8x8x128xf32>
    %157 = vector.shape_cast %156 : vector<2x8x8x128xf32> to vector<128x128xf32>
    %c3_243 = arith.constant 3 : index
    %c2_244 = arith.constant 2 : index
    %c0_245 = arith.constant 0 : index
    %c0_246 = arith.constant 0 : index
    %158 = vector.load %arg3[%c3_243, %c2_244, %c0_245, %c0_246] : memref<5x5x128x128xf32, #tpu.memory_space<vmem>>, vector<1x1x128x128xf32>
    %159 = vector.shape_cast %158 : vector<1x1x128x128xf32> to vector<128x128xf32>
    %cst_247 = arith.constant dense<0.000000e+00> : vector<128x128xf32>
    %160 = tpu.matmul %157, %159, %cst_247 {dimension_numbers = #tpu.dot_dimension_numbers<[1], [0], [0], [1], [0, 0, 1, 1], [], []>} : vector<128x128xf32>, vector<128x128xf32>, vector<128x128xf32> -> vector<128x128xf32>
    %161 = arith.addf %155, %160 : vector<128x128xf32>
    %c0_248 = arith.constant 0 : index
    %c3_249 = arith.constant 3 : index
    %c3_250 = arith.constant 3 : index
    %c0_251 = arith.constant 0 : index
    %162 = vector.load %arg11[%c0_248, %c3_249, %c3_250, %c0_251] : memref<2x12x12x128xf32, #tpu.memory_space<vmem>>, vector<2x8x8x128xf32>
    %163 = vector.shape_cast %162 : vector<2x8x8x128xf32> to vector<128x128xf32>
    %c3_252 = arith.constant 3 : index
    %c3_253 = arith.constant 3 : index
    %c0_254 = arith.constant 0 : index
    %c0_255 = arith.constant 0 : index
    %164 = vector.load %arg3[%c3_252, %c3_253, %c0_254, %c0_255] : memref<5x5x128x128xf32, #tpu.memory_space<vmem>>, vector<1x1x128x128xf32>
    %165 = vector.shape_cast %164 : vector<1x1x128x128xf32> to vector<128x128xf32>
    %cst_256 = arith.constant dense<0.000000e+00> : vector<128x128xf32>
    %166 = tpu.matmul %163, %165, %cst_256 {dimension_numbers = #tpu.dot_dimension_numbers<[1], [0], [0], [1], [0, 0, 1, 1], [], []>} : vector<128x128xf32>, vector<128x128xf32>, vector<128x128xf32> -> vector<128x128xf32>
    %167 = arith.addf %161, %166 : vector<128x128xf32>
    %c0_257 = arith.constant 0 : index
    %c3_258 = arith.constant 3 : index
    %c4_259 = arith.constant 4 : index
    %c0_260 = arith.constant 0 : index
    %168 = vector.load %arg11[%c0_257, %c3_258, %c4_259, %c0_260] : memref<2x12x12x128xf32, #tpu.memory_space<vmem>>, vector<2x8x8x128xf32>
    %169 = vector.shape_cast %168 : vector<2x8x8x128xf32> to vector<128x128xf32>
    %c3_261 = arith.constant 3 : index
    %c4_262 = arith.constant 4 : index
    %c0_263 = arith.constant 0 : index
    %c0_264 = arith.constant 0 : index
    %170 = vector.load %arg3[%c3_261, %c4_262, %c0_263, %c0_264] : memref<5x5x128x128xf32, #tpu.memory_space<vmem>>, vector<1x1x128x128xf32>
    %171 = vector.shape_cast %170 : vector<1x1x128x128xf32> to vector<128x128xf32>
    %cst_265 = arith.constant dense<0.000000e+00> : vector<128x128xf32>
    %172 = tpu.matmul %169, %171, %cst_265 {dimension_numbers = #tpu.dot_dimension_numbers<[1], [0], [0], [1], [0, 0, 1, 1], [], []>} : vector<128x128xf32>, vector<128x128xf32>, vector<128x128xf32> -> vector<128x128xf32>
    %173 = arith.addf %167, %172 : vector<128x128xf32>
    %c0_266 = arith.constant 0 : index
    %c4_267 = arith.constant 4 : index
    %c0_268 = arith.constant 0 : index
    %c0_269 = arith.constant 0 : index
    %174 = vector.load %arg11[%c0_266, %c4_267, %c0_268, %c0_269] : memref<2x12x12x128xf32, #tpu.memory_space<vmem>>, vector<2x8x8x128xf32>
    %175 = vector.shape_cast %174 : vector<2x8x8x128xf32> to vector<128x128xf32>
    %c4_270 = arith.constant 4 : index
    %c0_271 = arith.constant 0 : index
    %c0_272 = arith.constant 0 : index
    %c0_273 = arith.constant 0 : index
    %176 = vector.load %arg3[%c4_270, %c0_271, %c0_272, %c0_273] : memref<5x5x128x128xf32, #tpu.memory_space<vmem>>, vector<1x1x128x128xf32>
    %177 = vector.shape_cast %176 : vector<1x1x128x128xf32> to vector<128x128xf32>
    %cst_274 = arith.constant dense<0.000000e+00> : vector<128x128xf32>
    %178 = tpu.matmul %175, %177, %cst_274 {dimension_numbers = #tpu.dot_dimension_numbers<[1], [0], [0], [1], [0, 0, 1, 1], [], []>} : vector<128x128xf32>, vector<128x128xf32>, vector<128x128xf32> -> vector<128x128xf32>
    %179 = arith.addf %173, %178 : vector<128x128xf32>
    %c0_275 = arith.constant 0 : index
    %c4_276 = arith.constant 4 : index
    %c1_277 = arith.constant 1 : index
    %c0_278 = arith.constant 0 : index
    %180 = vector.load %arg11[%c0_275, %c4_276, %c1_277, %c0_278] : memref<2x12x12x128xf32, #tpu.memory_space<vmem>>, vector<2x8x8x128xf32>
    %181 = vector.shape_cast %180 : vector<2x8x8x128xf32> to vector<128x128xf32>
    %c4_279 = arith.constant 4 : index
    %c1_280 = arith.constant 1 : index
    %c0_281 = arith.constant 0 : index
    %c0_282 = arith.constant 0 : index
    %182 = vector.load %arg3[%c4_279, %c1_280, %c0_281, %c0_282] : memref<5x5x128x128xf32, #tpu.memory_space<vmem>>, vector<1x1x128x128xf32>
    %183 = vector.shape_cast %182 : vector<1x1x128x128xf32> to vector<128x128xf32>
    %cst_283 = arith.constant dense<0.000000e+00> : vector<128x128xf32>
    %184 = tpu.matmul %181, %183, %cst_283 {dimension_numbers = #tpu.dot_dimension_numbers<[1], [0], [0], [1], [0, 0, 1, 1], [], []>} : vector<128x128xf32>, vector<128x128xf32>, vector<128x128xf32> -> vector<128x128xf32>
    %185 = arith.addf %179, %184 : vector<128x128xf32>
    %c0_284 = arith.constant 0 : index
    %c4_285 = arith.constant 4 : index
    %c2_286 = arith.constant 2 : index
    %c0_287 = arith.constant 0 : index
    %186 = vector.load %arg11[%c0_284, %c4_285, %c2_286, %c0_287] : memref<2x12x12x128xf32, #tpu.memory_space<vmem>>, vector<2x8x8x128xf32>
    %187 = vector.shape_cast %186 : vector<2x8x8x128xf32> to vector<128x128xf32>
    %c4_288 = arith.constant 4 : index
    %c2_289 = arith.constant 2 : index
    %c0_290 = arith.constant 0 : index
    %c0_291 = arith.constant 0 : index
    %188 = vector.load %arg3[%c4_288, %c2_289, %c0_290, %c0_291] : memref<5x5x128x128xf32, #tpu.memory_space<vmem>>, vector<1x1x128x128xf32>
    %189 = vector.shape_cast %188 : vector<1x1x128x128xf32> to vector<128x128xf32>
    %cst_292 = arith.constant dense<0.000000e+00> : vector<128x128xf32>
    %190 = tpu.matmul %187, %189, %cst_292 {dimension_numbers = #tpu.dot_dimension_numbers<[1], [0], [0], [1], [0, 0, 1, 1], [], []>} : vector<128x128xf32>, vector<128x128xf32>, vector<128x128xf32> -> vector<128x128xf32>
    %191 = arith.addf %185, %190 : vector<128x128xf32>
    %c0_293 = arith.constant 0 : index
    %c4_294 = arith.constant 4 : index
    %c3_295 = arith.constant 3 : index
    %c0_296 = arith.constant 0 : index
    %192 = vector.load %arg11[%c0_293, %c4_294, %c3_295, %c0_296] : memref<2x12x12x128xf32, #tpu.memory_space<vmem>>, vector<2x8x8x128xf32>
    %193 = vector.shape_cast %192 : vector<2x8x8x128xf32> to vector<128x128xf32>
    %c4_297 = arith.constant 4 : index
    %c3_298 = arith.constant 3 : index
    %c0_299 = arith.constant 0 : index
    %c0_300 = arith.constant 0 : index
    %194 = vector.load %arg3[%c4_297, %c3_298, %c0_299, %c0_300] : memref<5x5x128x128xf32, #tpu.memory_space<vmem>>, vector<1x1x128x128xf32>
    %195 = vector.shape_cast %194 : vector<1x1x128x128xf32> to vector<128x128xf32>
    %cst_301 = arith.constant dense<0.000000e+00> : vector<128x128xf32>
    %196 = tpu.matmul %193, %195, %cst_301 {dimension_numbers = #tpu.dot_dimension_numbers<[1], [0], [0], [1], [0, 0, 1, 1], [], []>} : vector<128x128xf32>, vector<128x128xf32>, vector<128x128xf32> -> vector<128x128xf32>
    %197 = arith.addf %191, %196 : vector<128x128xf32>
    %c0_302 = arith.constant 0 : index
    %c4_303 = arith.constant 4 : index
    %c4_304 = arith.constant 4 : index
    %c0_305 = arith.constant 0 : index
    %198 = vector.load %arg11[%c0_302, %c4_303, %c4_304, %c0_305] : memref<2x12x12x128xf32, #tpu.memory_space<vmem>>, vector<2x8x8x128xf32>
    %199 = vector.shape_cast %198 : vector<2x8x8x128xf32> to vector<128x128xf32>
    %c4_306 = arith.constant 4 : index
    %c4_307 = arith.constant 4 : index
    %c0_308 = arith.constant 0 : index
    %c0_309 = arith.constant 0 : index
    %200 = vector.load %arg3[%c4_306, %c4_307, %c0_308, %c0_309] : memref<5x5x128x128xf32, #tpu.memory_space<vmem>>, vector<1x1x128x128xf32>
    %201 = vector.shape_cast %200 : vector<1x1x128x128xf32> to vector<128x128xf32>
    %cst_310 = arith.constant dense<0.000000e+00> : vector<128x128xf32>
    %202 = tpu.matmul %199, %201, %cst_310 {dimension_numbers = #tpu.dot_dimension_numbers<[1], [0], [0], [1], [0, 0, 1, 1], [], []>} : vector<128x128xf32>, vector<128x128xf32>, vector<128x128xf32> -> vector<128x128xf32>
    %203 = arith.addf %197, %202 : vector<128x128xf32>
    %204 = vector.shape_cast %203 : vector<128x128xf32> to vector<2x8x8x128xf32>
    %c0_311 = arith.constant 0 : index
    %c0_312 = arith.constant 0 : index
    %c0_313 = arith.constant 0 : index
    %c0_314 = arith.constant 0 : index
    %205 = vector.load %arg12[%c0_311, %c0_312, %c0_313, %c0_314] : memref<2x8x8x128xf32, #tpu.memory_space<vmem>>, vector<2x8x8x128xf32>
    tpu.vector_store %arg12[%c0_311, %c0_312, %c0_313, %c0_314], %204 {strides = array<i32>} : memref<2x8x8x128xf32, #tpu.memory_space<vmem>>, vector<2x8x8x128xf32>,
    %c0_315 = arith.constant 0 : index
    %c0_316 = arith.constant 0 : index
    %c0_317 = arith.constant 0 : index
    %c0_318 = arith.constant 0 : index
    %206 = tpu.strided_load %arg12[%c0_315, %c0_316, %c0_317, %c0_318] {strides = array<i32: 1, 1, 2, 1>} : memref<2x8x8x128xf32, #tpu.memory_space<vmem>>, vector<2x8x4x128xf32>
    %c0_319 = arith.constant 0 : index
    %c0_320 = arith.constant 0 : index
    %c1_321 = arith.constant 1 : index
    %c0_322 = arith.constant 0 : index
    %207 = tpu.strided_load %arg12[%c0_319, %c0_320, %c1_321, %c0_322] {strides = array<i32: 1, 1, 2, 1>} : memref<2x8x8x128xf32, #tpu.memory_space<vmem>>, vector<2x8x4x128xf32>
    %208 = arith.maximumf %206, %207 : vector<2x8x4x128xf32>
    %209 = vector.shape_cast %208 : vector<2x8x4x128xf32> to vector<2x4x2x4x128xf32>
    %cst_323 = arith.constant dense<0xFF800000> : vector<2x4x4x128xf32>
    %210 = vector.multi_reduction <maximumf>, %209, %cst_323 [2] : vector<2x4x2x4x128xf32> to vector<2x4x4x128xf32>
    %c0_324 = arith.constant 0 : index
    %c0_325 = arith.constant 0 : index
    %211 = vector.load %arg4[%c0_324, %c0_325] : memref<1x128xf32, #tpu.memory_space<vmem>>, vector<1x128xf32>
    %212 = vector.shape_cast %211 : vector<1x128xf32> to vector<1x1x1x128xf32>
    %213 = vector.broadcast %212 : vector<1x1x1x128xf32> to vector<2x4x4x128xf32>
    %214 = arith.addf %210, %213 : vector<2x4x4x128xf32>
    %cst_326 = arith.constant 0.000000e+00 : f32
    %215 = vector.broadcast %cst_326 : f32 to vector<2x4x4x128xf32>
    %216 = arith.maximumf %214, %215 : vector<2x4x4x128xf32>
    %c0_327 = arith.constant 0 : index
    %c0_328 = arith.constant 0 : index
    %c0_329 = arith.constant 0 : index
    %c0_330 = arith.constant 0 : index
    %217 = vector.load %arg13[%c0_327, %c0_328, %c0_329, %c0_330] : memref<2x4x4x128xf32, #tpu.memory_space<vmem>>, vector<2x4x4x128xf32>
    tpu.vector_store %arg13[%c0_327, %c0_328, %c0_329, %c0_330], %216 {strides = array<i32>} : memref<2x4x4x128xf32, #tpu.memory_space<vmem>>, vector<2x4x4x128xf32>,
    %cst_331 = arith.constant 0.000000e+00 : f32
    %218 = vector.broadcast %cst_331 : f32 to vector<2x256xf32>
    %c0_332 = arith.constant 0 : index
    %c0_333 = arith.constant 0 : index
    %c0_334 = arith.constant 0 : index
    %c0_335 = arith.constant 0 : index
    %219 = vector.load %arg13[%c0_332, %c0_333, %c0_334, %c0_335] : memref<2x4x4x128xf32, #tpu.memory_space<vmem>>, vector<2x1x1x128xf32>
    %220 = vector.shape_cast %219 : vector<2x1x1x128xf32> to vector<2x128xf32>
    %c0_336 = arith.constant 0 : index
    %c0_337 = arith.constant 0 : index
    %c0_338 = arith.constant 0 : index
    %c0_339 = arith.constant 0 : index
    %221 = vector.load %arg5[%c0_336, %c0_337, %c0_338, %c0_339] : memref<4x4x128x256xf32, #tpu.memory_space<vmem>>, vector<1x1x128x256xf32>
    %222 = vector.shape_cast %221 : vector<1x1x128x256xf32> to vector<128x256xf32>
    %cst_340 = arith.constant dense<0.000000e+00> : vector<2x256xf32>
    %223 = tpu.matmul %220, %222, %cst_340 {dimension_numbers = #tpu.dot_dimension_numbers<[1], [0], [0], [1], [0, 0, 1, 1], [], []>} : vector<2x128xf32>, vector<128x256xf32>, vector<2x256xf32> -> vector<2x256xf32>
    %224 = arith.addf %218, %223 : vector<2x256xf32>
    %c0_341 = arith.constant 0 : index
    %c0_342 = arith.constant 0 : index
    %c1_343 = arith.constant 1 : index
    %c0_344 = arith.constant 0 : index
    %225 = vector.load %arg13[%c0_341, %c0_342, %c1_343, %c0_344] : memref<2x4x4x128xf32, #tpu.memory_space<vmem>>, vector<2x1x1x128xf32>
    %226 = vector.shape_cast %225 : vector<2x1x1x128xf32> to vector<2x128xf32>
    %c0_345 = arith.constant 0 : index
    %c1_346 = arith.constant 1 : index
    %c0_347 = arith.constant 0 : index
    %c0_348 = arith.constant 0 : index
    %227 = vector.load %arg5[%c0_345, %c1_346, %c0_347, %c0_348] : memref<4x4x128x256xf32, #tpu.memory_space<vmem>>, vector<1x1x128x256xf32>
    %228 = vector.shape_cast %227 : vector<1x1x128x256xf32> to vector<128x256xf32>
    %cst_349 = arith.constant dense<0.000000e+00> : vector<2x256xf32>
    %229 = tpu.matmul %226, %228, %cst_349 {dimension_numbers = #tpu.dot_dimension_numbers<[1], [0], [0], [1], [0, 0, 1, 1], [], []>} : vector<2x128xf32>, vector<128x256xf32>, vector<2x256xf32> -> vector<2x256xf32>
    %230 = arith.addf %224, %229 : vector<2x256xf32>
    %c0_350 = arith.constant 0 : index
    %c0_351 = arith.constant 0 : index
    %c2_352 = arith.constant 2 : index
    %c0_353 = arith.constant 0 : index
    %231 = vector.load %arg13[%c0_350, %c0_351, %c2_352, %c0_353] : memref<2x4x4x128xf32, #tpu.memory_space<vmem>>, vector<2x1x1x128xf32>
    %232 = vector.shape_cast %231 : vector<2x1x1x128xf32> to vector<2x128xf32>
    %c0_354 = arith.constant 0 : index
    %c2_355 = arith.constant 2 : index
    %c0_356 = arith.constant 0 : index
    %c0_357 = arith.constant 0 : index
    %233 = vector.load %arg5[%c0_354, %c2_355, %c0_356, %c0_357] : memref<4x4x128x256xf32, #tpu.memory_space<vmem>>, vector<1x1x128x256xf32>
    %234 = vector.shape_cast %233 : vector<1x1x128x256xf32> to vector<128x256xf32>
    %cst_358 = arith.constant dense<0.000000e+00> : vector<2x256xf32>
    %235 = tpu.matmul %232, %234, %cst_358 {dimension_numbers = #tpu.dot_dimension_numbers<[1], [0], [0], [1], [0, 0, 1, 1], [], []>} : vector<2x128xf32>, vector<128x256xf32>, vector<2x256xf32> -> vector<2x256xf32>
    %236 = arith.addf %230, %235 : vector<2x256xf32>
    %c0_359 = arith.constant 0 : index
    %c0_360 = arith.constant 0 : index
    %c3_361 = arith.constant 3 : index
    %c0_362 = arith.constant 0 : index
    %237 = vector.load %arg13[%c0_359, %c0_360, %c3_361, %c0_362] : memref<2x4x4x128xf32, #tpu.memory_space<vmem>>, vector<2x1x1x128xf32>
    %238 = vector.shape_cast %237 : vector<2x1x1x128xf32> to vector<2x128xf32>
    %c0_363 = arith.constant 0 : index
    %c3_364 = arith.constant 3 : index
    %c0_365 = arith.constant 0 : index
    %c0_366 = arith.constant 0 : index
    %239 = vector.load %arg5[%c0_363, %c3_364, %c0_365, %c0_366] : memref<4x4x128x256xf32, #tpu.memory_space<vmem>>, vector<1x1x128x256xf32>
    %240 = vector.shape_cast %239 : vector<1x1x128x256xf32> to vector<128x256xf32>
    %cst_367 = arith.constant dense<0.000000e+00> : vector<2x256xf32>
    %241 = tpu.matmul %238, %240, %cst_367 {dimension_numbers = #tpu.dot_dimension_numbers<[1], [0], [0], [1], [0, 0, 1, 1], [], []>} : vector<2x128xf32>, vector<128x256xf32>, vector<2x256xf32> -> vector<2x256xf32>
    %242 = arith.addf %236, %241 : vector<2x256xf32>
    %c0_368 = arith.constant 0 : index
    %c1_369 = arith.constant 1 : index
    %c0_370 = arith.constant 0 : index
    %c0_371 = arith.constant 0 : index
    %243 = vector.load %arg13[%c0_368, %c1_369, %c0_370, %c0_371] : memref<2x4x4x128xf32, #tpu.memory_space<vmem>>, vector<2x1x1x128xf32>
    %244 = vector.shape_cast %243 : vector<2x1x1x128xf32> to vector<2x128xf32>
    %c1_372 = arith.constant 1 : index
    %c0_373 = arith.constant 0 : index
    %c0_374 = arith.constant 0 : index
    %c0_375 = arith.constant 0 : index
    %245 = vector.load %arg5[%c1_372, %c0_373, %c0_374, %c0_375] : memref<4x4x128x256xf32, #tpu.memory_space<vmem>>, vector<1x1x128x256xf32>
    %246 = vector.shape_cast %245 : vector<1x1x128x256xf32> to vector<128x256xf32>
    %cst_376 = arith.constant dense<0.000000e+00> : vector<2x256xf32>
    %247 = tpu.matmul %244, %246, %cst_376 {dimension_numbers = #tpu.dot_dimension_numbers<[1], [0], [0], [1], [0, 0, 1, 1], [], []>} : vector<2x128xf32>, vector<128x256xf32>, vector<2x256xf32> -> vector<2x256xf32>
    %248 = arith.addf %242, %247 : vector<2x256xf32>
    %c0_377 = arith.constant 0 : index
    %c1_378 = arith.constant 1 : index
    %c1_379 = arith.constant 1 : index
    %c0_380 = arith.constant 0 : index
    %249 = vector.load %arg13[%c0_377, %c1_378, %c1_379, %c0_380] : memref<2x4x4x128xf32, #tpu.memory_space<vmem>>, vector<2x1x1x128xf32>
    %250 = vector.shape_cast %249 : vector<2x1x1x128xf32> to vector<2x128xf32>
    %c1_381 = arith.constant 1 : index
    %c1_382 = arith.constant 1 : index
    %c0_383 = arith.constant 0 : index
    %c0_384 = arith.constant 0 : index
    %251 = vector.load %arg5[%c1_381, %c1_382, %c0_383, %c0_384] : memref<4x4x128x256xf32, #tpu.memory_space<vmem>>, vector<1x1x128x256xf32>
    %252 = vector.shape_cast %251 : vector<1x1x128x256xf32> to vector<128x256xf32>
    %cst_385 = arith.constant dense<0.000000e+00> : vector<2x256xf32>
    %253 = tpu.matmul %250, %252, %cst_385 {dimension_numbers = #tpu.dot_dimension_numbers<[1], [0], [0], [1], [0, 0, 1, 1], [], []>} : vector<2x128xf32>, vector<128x256xf32>, vector<2x256xf32> -> vector<2x256xf32>
    %254 = arith.addf %248, %253 : vector<2x256xf32>
    %c0_386 = arith.constant 0 : index
    %c1_387 = arith.constant 1 : index
    %c2_388 = arith.constant 2 : index
    %c0_389 = arith.constant 0 : index
    %255 = vector.load %arg13[%c0_386, %c1_387, %c2_388, %c0_389] : memref<2x4x4x128xf32, #tpu.memory_space<vmem>>, vector<2x1x1x128xf32>
    %256 = vector.shape_cast %255 : vector<2x1x1x128xf32> to vector<2x128xf32>
    %c1_390 = arith.constant 1 : index
    %c2_391 = arith.constant 2 : index
    %c0_392 = arith.constant 0 : index
    %c0_393 = arith.constant 0 : index
    %257 = vector.load %arg5[%c1_390, %c2_391, %c0_392, %c0_393] : memref<4x4x128x256xf32, #tpu.memory_space<vmem>>, vector<1x1x128x256xf32>
    %258 = vector.shape_cast %257 : vector<1x1x128x256xf32> to vector<128x256xf32>
    %cst_394 = arith.constant dense<0.000000e+00> : vector<2x256xf32>
    %259 = tpu.matmul %256, %258, %cst_394 {dimension_numbers = #tpu.dot_dimension_numbers<[1], [0], [0], [1], [0, 0, 1, 1], [], []>} : vector<2x128xf32>, vector<128x256xf32>, vector<2x256xf32> -> vector<2x256xf32>
    %260 = arith.addf %254, %259 : vector<2x256xf32>
    %c0_395 = arith.constant 0 : index
    %c1_396 = arith.constant 1 : index
    %c3_397 = arith.constant 3 : index
    %c0_398 = arith.constant 0 : index
    %261 = vector.load %arg13[%c0_395, %c1_396, %c3_397, %c0_398] : memref<2x4x4x128xf32, #tpu.memory_space<vmem>>, vector<2x1x1x128xf32>
    %262 = vector.shape_cast %261 : vector<2x1x1x128xf32> to vector<2x128xf32>
    %c1_399 = arith.constant 1 : index
    %c3_400 = arith.constant 3 : index
    %c0_401 = arith.constant 0 : index
    %c0_402 = arith.constant 0 : index
    %263 = vector.load %arg5[%c1_399, %c3_400, %c0_401, %c0_402] : memref<4x4x128x256xf32, #tpu.memory_space<vmem>>, vector<1x1x128x256xf32>
    %264 = vector.shape_cast %263 : vector<1x1x128x256xf32> to vector<128x256xf32>
    %cst_403 = arith.constant dense<0.000000e+00> : vector<2x256xf32>
    %265 = tpu.matmul %262, %264, %cst_403 {dimension_numbers = #tpu.dot_dimension_numbers<[1], [0], [0], [1], [0, 0, 1, 1], [], []>} : vector<2x128xf32>, vector<128x256xf32>, vector<2x256xf32> -> vector<2x256xf32>
    %266 = arith.addf %260, %265 : vector<2x256xf32>
    %c0_404 = arith.constant 0 : index
    %c2_405 = arith.constant 2 : index
    %c0_406 = arith.constant 0 : index
    %c0_407 = arith.constant 0 : index
    %267 = vector.load %arg13[%c0_404, %c2_405, %c0_406, %c0_407] : memref<2x4x4x128xf32, #tpu.memory_space<vmem>>, vector<2x1x1x128xf32>
    %268 = vector.shape_cast %267 : vector<2x1x1x128xf32> to vector<2x128xf32>
    %c2_408 = arith.constant 2 : index
    %c0_409 = arith.constant 0 : index
    %c0_410 = arith.constant 0 : index
    %c0_411 = arith.constant 0 : index
    %269 = vector.load %arg5[%c2_408, %c0_409, %c0_410, %c0_411] : memref<4x4x128x256xf32, #tpu.memory_space<vmem>>, vector<1x1x128x256xf32>
    %270 = vector.shape_cast %269 : vector<1x1x128x256xf32> to vector<128x256xf32>
    %cst_412 = arith.constant dense<0.000000e+00> : vector<2x256xf32>
    %271 = tpu.matmul %268, %270, %cst_412 {dimension_numbers = #tpu.dot_dimension_numbers<[1], [0], [0], [1], [0, 0, 1, 1], [], []>} : vector<2x128xf32>, vector<128x256xf32>, vector<2x256xf32> -> vector<2x256xf32>
    %272 = arith.addf %266, %271 : vector<2x256xf32>
    %c0_413 = arith.constant 0 : index
    %c2_414 = arith.constant 2 : index
    %c1_415 = arith.constant 1 : index
    %c0_416 = arith.constant 0 : index
    %273 = vector.load %arg13[%c0_413, %c2_414, %c1_415, %c0_416] : memref<2x4x4x128xf32, #tpu.memory_space<vmem>>, vector<2x1x1x128xf32>
    %274 = vector.shape_cast %273 : vector<2x1x1x128xf32> to vector<2x128xf32>
    %c2_417 = arith.constant 2 : index
    %c1_418 = arith.constant 1 : index
    %c0_419 = arith.constant 0 : index
    %c0_420 = arith.constant 0 : index
    %275 = vector.load %arg5[%c2_417, %c1_418, %c0_419, %c0_420] : memref<4x4x128x256xf32, #tpu.memory_space<vmem>>, vector<1x1x128x256xf32>
    %276 = vector.shape_cast %275 : vector<1x1x128x256xf32> to vector<128x256xf32>
    %cst_421 = arith.constant dense<0.000000e+00> : vector<2x256xf32>
    %277 = tpu.matmul %274, %276, %cst_421 {dimension_numbers = #tpu.dot_dimension_numbers<[1], [0], [0], [1], [0, 0, 1, 1], [], []>} : vector<2x128xf32>, vector<128x256xf32>, vector<2x256xf32> -> vector<2x256xf32>
    %278 = arith.addf %272, %277 : vector<2x256xf32>
    %c0_422 = arith.constant 0 : index
    %c2_423 = arith.constant 2 : index
    %c2_424 = arith.constant 2 : index
    %c0_425 = arith.constant 0 : index
    %279 = vector.load %arg13[%c0_422, %c2_423, %c2_424, %c0_425] : memref<2x4x4x128xf32, #tpu.memory_space<vmem>>, vector<2x1x1x128xf32>
    %280 = vector.shape_cast %279 : vector<2x1x1x128xf32> to vector<2x128xf32>
    %c2_426 = arith.constant 2 : index
    %c2_427 = arith.constant 2 : index
    %c0_428 = arith.constant 0 : index
    %c0_429 = arith.constant 0 : index
    %281 = vector.load %arg5[%c2_426, %c2_427, %c0_428, %c0_429] : memref<4x4x128x256xf32, #tpu.memory_space<vmem>>, vector<1x1x128x256xf32>
    %282 = vector.shape_cast %281 : vector<1x1x128x256xf32> to vector<128x256xf32>
    %cst_430 = arith.constant dense<0.000000e+00> : vector<2x256xf32>
    %283 = tpu.matmul %280, %282, %cst_430 {dimension_numbers = #tpu.dot_dimension_numbers<[1], [0], [0], [1], [0, 0, 1, 1], [], []>} : vector<2x128xf32>, vector<128x256xf32>, vector<2x256xf32> -> vector<2x256xf32>
    %284 = arith.addf %278, %283 : vector<2x256xf32>
    %c0_431 = arith.constant 0 : index
    %c2_432 = arith.constant 2 : index
    %c3_433 = arith.constant 3 : index
    %c0_434 = arith.constant 0 : index
    %285 = vector.load %arg13[%c0_431, %c2_432, %c3_433, %c0_434] : memref<2x4x4x128xf32, #tpu.memory_space<vmem>>, vector<2x1x1x128xf32>
    %286 = vector.shape_cast %285 : vector<2x1x1x128xf32> to vector<2x128xf32>
    %c2_435 = arith.constant 2 : index
    %c3_436 = arith.constant 3 : index
    %c0_437 = arith.constant 0 : index
    %c0_438 = arith.constant 0 : index
    %287 = vector.load %arg5[%c2_435, %c3_436, %c0_437, %c0_438] : memref<4x4x128x256xf32, #tpu.memory_space<vmem>>, vector<1x1x128x256xf32>
    %288 = vector.shape_cast %287 : vector<1x1x128x256xf32> to vector<128x256xf32>
    %cst_439 = arith.constant dense<0.000000e+00> : vector<2x256xf32>
    %289 = tpu.matmul %286, %288, %cst_439 {dimension_numbers = #tpu.dot_dimension_numbers<[1], [0], [0], [1], [0, 0, 1, 1], [], []>} : vector<2x128xf32>, vector<128x256xf32>, vector<2x256xf32> -> vector<2x256xf32>
    %290 = arith.addf %284, %289 : vector<2x256xf32>
    %c0_440 = arith.constant 0 : index
    %c3_441 = arith.constant 3 : index
    %c0_442 = arith.constant 0 : index
    %c0_443 = arith.constant 0 : index
    %291 = vector.load %arg13[%c0_440, %c3_441, %c0_442, %c0_443] : memref<2x4x4x128xf32, #tpu.memory_space<vmem>>, vector<2x1x1x128xf32>
    %292 = vector.shape_cast %291 : vector<2x1x1x128xf32> to vector<2x128xf32>
    %c3_444 = arith.constant 3 : index
    %c0_445 = arith.constant 0 : index
    %c0_446 = arith.constant 0 : index
    %c0_447 = arith.constant 0 : index
    %293 = vector.load %arg5[%c3_444, %c0_445, %c0_446, %c0_447] : memref<4x4x128x256xf32, #tpu.memory_space<vmem>>, vector<1x1x128x256xf32>
    %294 = vector.shape_cast %293 : vector<1x1x128x256xf32> to vector<128x256xf32>
    %cst_448 = arith.constant dense<0.000000e+00> : vector<2x256xf32>
    %295 = tpu.matmul %292, %294, %cst_448 {dimension_numbers = #tpu.dot_dimension_numbers<[1], [0], [0], [1], [0, 0, 1, 1], [], []>} : vector<2x128xf32>, vector<128x256xf32>, vector<2x256xf32> -> vector<2x256xf32>
    %296 = arith.addf %290, %295 : vector<2x256xf32>
    %c0_449 = arith.constant 0 : index
    %c3_450 = arith.constant 3 : index
    %c1_451 = arith.constant 1 : index
    %c0_452 = arith.constant 0 : index
    %297 = vector.load %arg13[%c0_449, %c3_450, %c1_451, %c0_452] : memref<2x4x4x128xf32, #tpu.memory_space<vmem>>, vector<2x1x1x128xf32>
    %298 = vector.shape_cast %297 : vector<2x1x1x128xf32> to vector<2x128xf32>
    %c3_453 = arith.constant 3 : index
    %c1_454 = arith.constant 1 : index
    %c0_455 = arith.constant 0 : index
    %c0_456 = arith.constant 0 : index
    %299 = vector.load %arg5[%c3_453, %c1_454, %c0_455, %c0_456] : memref<4x4x128x256xf32, #tpu.memory_space<vmem>>, vector<1x1x128x256xf32>
    %300 = vector.shape_cast %299 : vector<1x1x128x256xf32> to vector<128x256xf32>
    %cst_457 = arith.constant dense<0.000000e+00> : vector<2x256xf32>
    %301 = tpu.matmul %298, %300, %cst_457 {dimension_numbers = #tpu.dot_dimension_numbers<[1], [0], [0], [1], [0, 0, 1, 1], [], []>} : vector<2x128xf32>, vector<128x256xf32>, vector<2x256xf32> -> vector<2x256xf32>
    %302 = arith.addf %296, %301 : vector<2x256xf32>
    %c0_458 = arith.constant 0 : index
    %c3_459 = arith.constant 3 : index
    %c2_460 = arith.constant 2 : index
    %c0_461 = arith.constant 0 : index
    %303 = vector.load %arg13[%c0_458, %c3_459, %c2_460, %c0_461] : memref<2x4x4x128xf32, #tpu.memory_space<vmem>>, vector<2x1x1x128xf32>
    %304 = vector.shape_cast %303 : vector<2x1x1x128xf32> to vector<2x128xf32>
    %c3_462 = arith.constant 3 : index
    %c2_463 = arith.constant 2 : index
    %c0_464 = arith.constant 0 : index
    %c0_465 = arith.constant 0 : index
    %305 = vector.load %arg5[%c3_462, %c2_463, %c0_464, %c0_465] : memref<4x4x128x256xf32, #tpu.memory_space<vmem>>, vector<1x1x128x256xf32>
    %306 = vector.shape_cast %305 : vector<1x1x128x256xf32> to vector<128x256xf32>
    %cst_466 = arith.constant dense<0.000000e+00> : vector<2x256xf32>
    %307 = tpu.matmul %304, %306, %cst_466 {dimension_numbers = #tpu.dot_dimension_numbers<[1], [0], [0], [1], [0, 0, 1, 1], [], []>} : vector<2x128xf32>, vector<128x256xf32>, vector<2x256xf32> -> vector<2x256xf32>
    %308 = arith.addf %302, %307 : vector<2x256xf32>
    %c0_467 = arith.constant 0 : index
    %c3_468 = arith.constant 3 : index
    %c3_469 = arith.constant 3 : index
    %c0_470 = arith.constant 0 : index
    %309 = vector.load %arg13[%c0_467, %c3_468, %c3_469, %c0_470] : memref<2x4x4x128xf32, #tpu.memory_space<vmem>>, vector<2x1x1x128xf32>
    %310 = vector.shape_cast %309 : vector<2x1x1x128xf32> to vector<2x128xf32>
    %c3_471 = arith.constant 3 : index
    %c3_472 = arith.constant 3 : index
    %c0_473 = arith.constant 0 : index
    %c0_474 = arith.constant 0 : index
    %311 = vector.load %arg5[%c3_471, %c3_472, %c0_473, %c0_474] : memref<4x4x128x256xf32, #tpu.memory_space<vmem>>, vector<1x1x128x256xf32>
    %312 = vector.shape_cast %311 : vector<1x1x128x256xf32> to vector<128x256xf32>
    %cst_475 = arith.constant dense<0.000000e+00> : vector<2x256xf32>
    %313 = tpu.matmul %310, %312, %cst_475 {dimension_numbers = #tpu.dot_dimension_numbers<[1], [0], [0], [1], [0, 0, 1, 1], [], []>} : vector<2x128xf32>, vector<128x256xf32>, vector<2x256xf32> -> vector<2x256xf32>
    %314 = arith.addf %308, %313 : vector<2x256xf32>
    %c0_476 = arith.constant 0 : index
    %c0_477 = arith.constant 0 : index
    %315 = vector.load %arg6[%c0_476, %c0_477] : memref<1x256xf32, #tpu.memory_space<vmem>>, vector<1x256xf32>
    %316 = vector.broadcast %315 : vector<1x256xf32> to vector<2x256xf32>
    %317 = arith.addf %314, %316 : vector<2x256xf32>
    %cst_478 = arith.constant 0.000000e+00 : f32
    %318 = vector.broadcast %cst_478 : f32 to vector<2x256xf32>
    %319 = arith.maximumf %317, %318 : vector<2x256xf32>
    %c0_479 = arith.constant 0 : index
    %c0_480 = arith.constant 0 : index
    %320 = vector.load %arg7[%c0_479, %c0_480] : memref<256x128xf32, #tpu.memory_space<vmem>>, vector<256x128xf32>
    %cst_481 = arith.constant dense<0.000000e+00> : vector<2x128xf32>
    %321 = tpu.matmul %319, %320, %cst_481 {dimension_numbers = #tpu.dot_dimension_numbers<[1], [0], [0], [1], [0, 0, 1, 1], [], []>} : vector<2x256xf32>, vector<256x128xf32>, vector<2x128xf32> -> vector<2x128xf32>
    %c0_482 = arith.constant 0 : index
    %c0_483 = arith.constant 0 : index
    %322 = vector.load %arg8[%c0_482, %c0_483] : memref<1x128xf32, #tpu.memory_space<vmem>>, vector<1x128xf32>
    %323 = vector.broadcast %322 : vector<1x128xf32> to vector<2x128xf32>
    %324 = arith.addf %321, %323 : vector<2x128xf32>
    %c0_484 = arith.constant 0 : index
    %c0_485 = arith.constant 0 : index
    %325 = vector.load %arg9[%c0_484, %c0_485] : memref<2x128xf32, #tpu.memory_space<vmem>>, vector<2x128xf32>
    tpu.vector_store %arg9[%c0_484, %c0_485], %324 {strides = array<i32>} : memref<2x128xf32, #tpu.memory_space<vmem>>, vector<2x128xf32>,
    return
  }
}

</mosaic_0001>

<bundles_post_ra>
// kernel: net_forward.1
= control target key start
LH: loop header
LB: loop body
LE: loop exit
PB: predicated region body
PF: predicated region fallthrough
CT: control target
= control target key end

     0   :  { %14 = vsyncpa [#allocation7], 0  ;;  %s30245_s0 = inlined_call_operand.vmem [shape: f32[2,28,24,8], index: 0, kind: input, shape index: {}]   ;;  %s30246_s1 = inlined_call_operand.vmem [shape: f32[5,8,128], index: 1, kind: input, shape index: {}]   ;;  %s30247_s2 = inlined_call_operand.vmem [shape: f32[1,128], index: 2, kind: input, shape index: {}]   ;;  %s30248_s3 = inlined_call_operand.hbm [shape: f32[5,5,128,128], index: 3, kind: input, shape index: {}]   ;;  %s30249_s4 = inlined_call_operand.vmem [shape: f32[1,128], index: 4, kind: input, shape index: {}]   ;;  %s30250_s5 = inlined_call_operand.vmem [shape: f32[4,4,128,256], index: 5, kind: input, shape index: {}]   ;;  %s30251_s6 = inlined_call_operand.vmem [shape: f32[1,256], index: 6, kind: input, shape index: {}]   ;;  %s30252_s7 = inlined_call_operand.vmem [shape: f32[256,128], index: 7, kind: input, shape index: {}]   ;;  %s30253_s8 = inlined_call_operand.vmem [shape: f32[1,128], index: 8, kind: input, shape index: {}]   ;;  %s30254_s9 = inlined_call_operand.hbm [shape: f32[2,128], index: 9, kind: output, shape index: {}]  }
   0x1   :  { %15 = vsyncpa [#allocation8], 0  ;;  %s24675_s30 = smov [#allocation6]   ;;  %s24627_s13 = scalar_lea.hbm %s30248_s3, 51200 }
   0x2   :  { %s27_s10 = sshll.u32 %s24675_s30, 4  ;;  %p24628_p0 = scmp.ne.s32.totalorder %s30248_s3, %s24627_s13  ;;  %s28_s10 = int_to_ptr.vmem [resolvable:$true] %s27_s10 }
   0x3   :  { %p24631_p1 = scmp.lt.u32.totalorder %s24627_s13, %s30248_s3 }
   0x5   :  { %p24633_p2 = pnand %p24631_p1, %p24628_p0 }
   0x7   :  { %24636 = shalt.err (!%p24633_p2)
}
   0x8   :  { %s24637_s18 = scalar_lea.vmem %s28_s10, 51200  ;;  %p24642_p4 = scmp.lt.s32.totalorder %s28_s10, %s28_s10 }
   0x9   :  { %p24638_p3 = scmp.ne.s32.totalorder %s28_s10, %s24637_s18  ;;  %p24643_p5 = scmp.lt.s32.totalorder %s24637_s18, %s24637_s18 }
   0xb   :  { %p24644_p6 = por %p24643_p5, %p24642_p4 }
   0xd   :  { %p24645_p7 = pnand %p24644_p6, %p24638_p3 }
   0xf   :  { %24648 = shalt.err (!%p24645_p7)
}
  0x10   :  { %s24676_s19 = smov 128   ;;  %s24677_s20 = smov 8  }
  0x11   :  { %33 = dma.hbm_to_vmem [thread:$0]  %s30248_s3, 51200, %s28_s10, [#allocation7], %s24676_s19, %s24676_s19, %s24677_s20  }
  0x12   :  { %24671 = dma.done.wait [#allocation7], 51200  }
  0x13   :  { %24672 = vsyncadd [#allocation7], 4294916096  ;;  %vm192_vm0 = vcmask 64512   ;;  %v191_v0 = vld [vmem:[%s30246_s1] sm:$0xff]  ;;  %v48_v2 = vld [vmem:[%s30245_s0 + $0x8] sm:$0xff]  ;;  %vm9218_vm1 = vcmask 1043456  }
  0x14   :  { %v47_v1 = vld [vmem:[%s30245_s0] sm:$0xff]  ;;  %19727 = vmatprep.subr.mxu0 %v191_v0  ;;  %v16672_v3 = vld [vmem:[%s30246_s1 + $0x8] sm:$0xff]  ;;  %v49_v4 = vld [vmem:[%s30245_s0 + $0x10] sm:$0xff]  ;;  %23561 = vmatprep.subr.mxu1 %v191_v0  ;;  %vm14508_vm2 = vcmask 1041409  }
  0x15   :  { %19729 = vmatprep.mubr.msk.f32.mxu0 %vm192_vm0, %v47_v1  ;;  %19728 = vmatpush3.msra.mxu0 %v191_v0  ;;  %v24763_v5 = vld [vmem:[%s30245_s0 + $0x18] sm:$0xff]  ;;  %v24768_v6 = vld [vmem:[%s30245_s0 + $0x20] sm:$0xff]  ;;  %v24777_v7 = vld [vmem:[%s30245_s0 + $0x28] sm:$0xff] }
  0x16   :  { %19730 = vmatmul.mubr.msk.f32.vlgmr.msra.gmra.mrb[0].mxu0 %vm192_vm0, %v48_v2  ;;  %19945 = vmatprep.subr.mxu0 %v16672_v3  ;;  %v24782_v8 = vld [vmem:[%s30245_s0 + $0x30] sm:$0xff]  ;;  %v24791_v9 = vld [vmem:[%s30245_s0 + $0x38] sm:$0xff]  ;;  %v24796_v10 = vld [vmem:[%s30245_s0 + $0x40] sm:$0xff] }
  0x17   :  { %19946 = vmatpush3.msra.mxu0 %v16672_v3  ;;  %19732 = vmatprep.mubr.msk.f32.mxu0 %vm192_vm0, %v49_v4  ;;  %v24805_v11 = vld [vmem:[%s30245_s0 + $0x48] sm:$0xff]  ;;  %v24810_v12 = vld [vmem:[%s30245_s0 + $0x50] sm:$0xff]  ;;  %v24819_v13 = vld [vmem:[%s30245_s0 + $0x58] sm:$0xff] }
  0x18   :  { %23562 = vmatpush3.msra.mxu1 %v191_v0  ;;  %v24824_v14 = vld [vmem:[%s30245_s0 + $0x60] sm:$0xff]  ;;  %v24833_v15 = vld [vmem:[%s30245_s0 + $0x68] sm:$0xff]  ;;  %v24838_v16 = vld [vmem:[%s30245_s0 + $0x70] sm:$0xff] }
  0x19   :  { %v24847_v17 = vld [vmem:[%s30245_s0 + $0x78] sm:$0xff]  ;;  %v24852_v18 = vld [vmem:[%s30245_s0 + $0x80] sm:$0xff]  ;;  %v24861_v19 = vld [vmem:[%s30245_s0 + $0x88] sm:$0xff] }
  0x1a   :  { %19733 = vmatmul.mubr.msk.f32.gmra.mrb[2].mxu0 %vm192_vm0, %v24763_v5  ;;  %v24866_v20 = vld [vmem:[%s30245_s0 + $0x90] sm:$0xff]  ;;  %v24875_v21 = vld [vmem:[%s30245_s0 + $0x98] sm:$0xff]  ;;  %v24880_v22 = vld [vmem:[%s30245_s0 + $0xa0] sm:$0xff] }
  0x1b   :  { %19735 = vmatprep.mubr.msk.f32.mxu0 %vm192_vm0, %v24768_v6  ;;  %v24889_v23 = vld [vmem:[%s30245_s0 + $0xa8] sm:$0xff]  ;;  %v24894_v24 = vld [vmem:[%s30245_s0 + $0xb0] sm:$0xff]  ;;  %v24903_v25 = vld [vmem:[%s30245_s0 + $0xb8] sm:$0xff] }
  0x1c   :  { %v24908_v26 = vld [vmem:[%s30245_s0 + $0xc0] sm:$0xff]  ;;  %v24917_v27 = vld [vmem:[%s30245_s0 + $0xc8] sm:$0xff]  ;;  %v24922_v28 = vld [vmem:[%s30245_s0 + $0xd0] sm:$0xff] }
  0x1d   :  { %v24931_v29 = vld [vmem:[%s30245_s0 + $0xd8] sm:$0xff]  ;;  %v24936_v30 = vld [vmem:[%s30245_s0 + $0xe0] sm:$0xff]  ;;  %v24945_v31 = vld [vmem:[%s30245_s0 + $0xe8] sm:$0xff] }
  0x1e   :  { %19736 = vmatmul.mubr.msk.f32.gmra.mrb[4].mxu0 %vm192_vm0, %v24777_v7  ;;  %v24950_v32 = vld [vmem:[%s30245_s0 + $0xf0] sm:$0xff]  ;;  %v24959_v33 = vld [vmem:[%s30245_s0 + $0xf8] sm:$0xff]  ;;  %v24964_v34 = vld [vmem:[%s30245_s0 + $0x100] sm:$0xff] }
  0x1f   :  { %19738 = vmatprep.mubr.msk.f32.mxu0 %vm192_vm0, %v24782_v8  ;;  %v24973_v35 = vld [vmem:[%s30245_s0 + $0x108] sm:$0xff]  ;;  %v24978_v36 = vld [vmem:[%s30245_s0 + $0x110] sm:$0xff]  ;;  %v24987_v37 = vld [vmem:[%s30245_s0 + $0x118] sm:$0xff] }
  0x20   :  { %v24992_v38 = vld [vmem:[%s30245_s0 + $0x120] sm:$0xff]  ;;  %v25001_v39 = vld [vmem:[%s30245_s0 + $0x128] sm:$0xff]  ;;  %v25006_v40 = vld [vmem:[%s30245_s0 + $0x130] sm:$0xff] }
  0x21   :  { %v25015_v41 = vld [vmem:[%s30245_s0 + $0x138] sm:$0xff]  ;;  %v25020_v42 = vld [vmem:[%s30245_s0 + $0x140] sm:$0xff]  ;;  %v25029_v43 = vld [vmem:[%s30245_s0 + $0x148] sm:$0xff] }
  0x22   :  { %19739 = vmatmul.mubr.msk.f32.gmra.mrb[6].mxu0 %vm192_vm0, %v24791_v9  ;;  %v25034_v44 = vld [vmem:[%s30245_s0 + $0x150] sm:$0xff]  ;;  %v25043_v45 = vld [vmem:[%s30245_s0 + $0x158] sm:$0xff]  ;;  %v25048_v46 = vld [vmem:[%s30245_s0 + $0x160] sm:$0xff] }
  0x23   :  { %19741 = vmatprep.mubr.msk.f32.mxu0 %vm192_vm0, %v24796_v10  ;;  %v25057_v47 = vld [vmem:[%s30245_s0 + $0x168] sm:$0xff]  ;;  %v25062_v48 = vld [vmem:[%s30245_s0 + $0x170] sm:$0xff]  ;;  %v25071_v49 = vld [vmem:[%s30245_s0 + $0x178] sm:$0xff] }
  0x24   :  { %v25076_v50 = vld [vmem:[%s30245_s0 + $0x180] sm:$0xff]  ;;  %v25085_v51 = vld [vmem:[%s30245_s0 + $0x188] sm:$0xff]  ;;  %v25090_v52 = vld [vmem:[%s30245_s0 + $0x190] sm:$0xff] }
  0x25   :  { %v25099_v53 = vld [vmem:[%s30245_s0 + $0x198] sm:$0xff]  ;;  %v25104_v54 = vld [vmem:[%s30245_s0 + $0x1a0] sm:$0xff]  ;;  %v25111_v55 = vld [vmem:[%s30246_s1 + $0x10] sm:$0xff] }
  0x26   :  { %19742 = vmatmul.mubr.msk.f32.gmra.mrb[8].mxu0 %vm192_vm0, %v24805_v11  ;;  %v25118_v56 = vld [vmem:[%s30245_s0 + $0x1a8] sm:$0xff]  ;;  %20163 = vmatprep.subr.mxu0 %v25111_v55  ;;  %v25124_v57 = vld [vmem:[%s30245_s0 + $0x1b0] sm:$0xff]  ;;  %v25133_v58 = vld [vmem:[%s30245_s0 + $0x1b8] sm:$0xff] }
  0x27   :  { %19744 = vmatprep.mubr.msk.f32.mxu0 %vm192_vm0, %v24810_v12  ;;  %v25138_v59 = vld [vmem:[%s30245_s0 + $0x1c0] sm:$0xff]  ;;  %v25147_v60 = vld [vmem:[%s30245_s0 + $0x1c8] sm:$0xff]  ;;  %v25152_v61 = vld [vmem:[%s30245_s0 + $0x1d0] sm:$0xff] }
  0x28   :  { %30460 = vst [vmem:[#allocation12_spill] sm:$0xff] %v25147_v60  ;;  %30461 = vst [vmem:[#allocation13_spill] sm:$0xff] %v25152_v61  ;;  %v25161_v62 = vld [vmem:[%s30245_s0 + $0x1d8] sm:$0xff]  ;;  %v25166_v63 = vld [vmem:[%s30245_s0 + $0x1e0] sm:$0xff] }
  0x29   :  { %30462 = vst [vmem:[#allocation14_spill] sm:$0xff] %v25161_v62  ;;  %30463 = vst [vmem:[#allocation15_spill] sm:$0xff] %v25166_v63  ;;  %v25175_v0 = vld [vmem:[%s30245_s0 + $0x1e8] sm:$0xff]  ;;  %v25180_v1 = vld [vmem:[%s30245_s0 + $0x1f0] sm:$0xff] }
  0x2a   :  { %19745 = vmatmul.mubr.msk.f32.gmra.mrb[10].mxu0 %vm192_vm0, %v24819_v13  ;;  %30464 = vst [vmem:[#allocation16_spill] sm:$0xff] %v25175_v0  ;;  %30465 = vst [vmem:[#allocation17_spill] sm:$0xff] %v25180_v1  ;;  %v25189_v2 = vld [vmem:[%s30245_s0 + $0x1f8] sm:$0xff]  ;;  %v25194_v3 = vld [vmem:[%s30245_s0 + $0x200] sm:$0xff] }
  0x2b   :  { %19747 = vmatprep.mubr.msk.f32.mxu0 %vm192_vm0, %v24824_v14  ;;  %30466 = vst [vmem:[#allocation18_spill] sm:$0xff] %v25189_v2  ;;  %30467 = vst [vmem:[#allocation19_spill] sm:$0xff] %v25194_v3  ;;  %v25203_v4 = vld [vmem:[%s30245_s0 + $0x208] sm:$0xff] }
  0x2c   :  { %30468 = vst [vmem:[#allocation20_spill] sm:$0xff] %v25203_v4 }
  0x2e   :  { %19748 = vmatmul.mubr.msk.f32.gmra.mrb[12].mxu0 %vm192_vm0, %v24833_v15 }
  0x2f   :  { %19750 = vmatprep.mubr.msk.f32.mxu0 %vm192_vm0, %v24838_v16 }
  0x32   :  { %19751 = vmatmul.mubr.msk.f32.gmra.mrb[14].mxu0 %vm192_vm0, %v24847_v17 }
  0x33   :  { %19753 = vmatprep.mubr.msk.f32.mxu0 %vm192_vm0, %v24852_v18 }
  0x36   :  { %19754 = vmatmul.mubr.msk.f32.gmra.mrb[16].mxu0 %vm192_vm0, %v24861_v19 }
  0x37   :  { %19756 = vmatprep.mubr.msk.f32.mxu0 %vm192_vm0, %v24866_v20 }
  0x3a   :  { %19757 = vmatmul.mubr.msk.f32.gmra.mrb[18].mxu0 %vm192_vm0, %v24875_v21 }
  0x3b   :  { %19759 = vmatprep.mubr.msk.f32.mxu0 %vm192_vm0, %v24880_v22 }
  0x3e   :  { %19760 = vmatmul.mubr.msk.f32.gmra.mrb[20].mxu0 %vm192_vm0, %v24889_v23 }
  0x3f   :  { %19762 = vmatprep.mubr.msk.f32.mxu0 %vm192_vm0, %v24894_v24 }
  0x42   :  { %19763 = vmatmul.mubr.msk.f32.gmra.mrb[22].mxu0 %vm192_vm0, %v24903_v25 }
  0x43   :  { %19765 = vmatprep.mubr.msk.f32.mxu0 %vm192_vm0, %v24908_v26 }
  0x46   :  { %19766 = vmatmul.mubr.msk.f32.gmra.mrb[24].mxu0 %vm192_vm0, %v24917_v27 }
  0x47   :  { %19768 = vmatprep.mubr.msk.f32.mxu0 %vm192_vm0, %v24922_v28 }
  0x4a   :  { %19769 = vmatmul.mubr.msk.f32.gmra.mrb[26].mxu0 %vm192_vm0, %v24931_v29 }
  0x4b   :  { %19771 = vmatprep.mubr.msk.f32.mxu0 %vm192_vm0, %v24936_v30 }
  0x4e   :  { %19772 = vmatmul.mubr.msk.f32.gmra.mrb[28].mxu0 %vm192_vm0, %v24945_v31 }
  0x4f   :  { %19774 = vmatprep.mubr.msk.f32.mxu0 %vm192_vm0, %v24950_v32 }
  0x52   :  { %19775 = vmatmul.mubr.msk.f32.gmra.mrb[30].mxu0 %vm192_vm0, %v24959_v33 }
  0x53   :  { %19777 = vmatprep.mubr.msk.f32.mxu0 %vm192_vm0, %v24964_v34 }
  0x56   :  { %19778 = vmatmul.mubr.msk.f32.gmra.mrb[32].mxu0 %vm192_vm0, %v24973_v35 }
  0x57   :  { %19780 = vmatprep.mubr.msk.f32.mxu0 %vm192_vm0, %v24978_v36 }
  0x5a   :  { %19781 = vmatmul.mubr.msk.f32.gmra.mrb[34].mxu0 %vm192_vm0, %v24987_v37 }
  0x5b   :  { %19783 = vmatprep.mubr.msk.f32.mxu0 %vm192_vm0, %v24992_v38 }
  0x5e   :  { %19784 = vmatmul.mubr.msk.f32.gmra.mrb[36].mxu0 %vm192_vm0, %v25001_v39 }
  0x5f   :  { %19786 = vmatprep.mubr.msk.f32.mxu0 %vm192_vm0, %v25006_v40 }
  0x62   :  { %19787 = vmatmul.mubr.msk.f32.gmra.mrb[38].mxu0 %vm192_vm0, %v25015_v41 }
  0x63   :  { %19789 = vmatprep.mubr.msk.f32.mxu0 %vm192_vm0, %v25020_v42 }
  0x66   :  { %19790 = vmatmul.mubr.msk.f32.gmra.mrb[40].mxu0 %vm192_vm0, %v25029_v43 }
  0x67   :  { %19792 = vmatprep.mubr.msk.f32.mxu0 %vm192_vm0, %v25034_v44 }
  0x6a   :  { %19793 = vmatmul.mubr.msk.f32.gmra.mrb[42].mxu0 %vm192_vm0, %v25043_v45 }
  0x6b   :  { %19795 = vmatprep.mubr.msk.f32.mxu0 %vm192_vm0, %v25048_v46 }
  0x6e   :  { %19796 = vmatmul.mubr.msk.f32.gmra.mrb[44].mxu0 %vm192_vm0, %v25057_v47 }
  0x6f   :  { %19798 = vmatprep.mubr.msk.f32.mxu0 %vm192_vm0, %v25062_v48 }
  0x72   :  { %19799 = vmatmul.mubr.msk.f32.gmra.mrb[46].mxu0 %vm192_vm0, %v25071_v49 }
  0x73   :  { %19801 = vmatprep.mubr.msk.f32.mxu0 %vm192_vm0, %v25076_v50 }
  0x76   :  { %19802 = vmatmul.mubr.msk.f32.gmra.mrb[48].mxu0 %vm192_vm0, %v25085_v51 }
  0x77   :  { %19804 = vmatprep.mubr.msk.f32.mxu0 %vm192_vm0, %v25090_v52 }
  0x7a   :  { %19805 = vmatmul.mubr.msk.f32.gmra.mrb[50].mxu0 %vm192_vm0, %v25099_v53 }
  0x7b   :  { %19807 = vmatprep.mubr.msk.f32.mxu0 %vm192_vm0, %v25104_v54 }
  0x7e   :  { %19808 = vmatmul.mubr.msk.f32.gmra.mrb[52].mxu0 %vm192_vm0, %v25118_v56 }
  0x7f   :  { %19810 = vmatprep.mubr.msk.f32.mxu0 %vm192_vm0, %v25124_v57 }
  0x82   :  { %19811 = vmatmul.mubr.msk.f32.gmra.mrb[54].mxu0 %vm192_vm0, %v25133_v58 }
  0x83   :  { %19813 = vmatprep.mubr.msk.f32.mxu0 %vm192_vm0, %v25138_v59 }
  0x86   :  { %19814 = vmatmul.mubr.msk.f32.gmra.mrb[56].mxu0 %vm192_vm0, %v25147_v60 }
  0x87   :  { %19816 = vmatprep.mubr.msk.f32.mxu0 %vm192_vm0, %v25152_v61 }
  0x8a   :  { %19817 = vmatmul.mubr.msk.f32.gmra.mrb[58].mxu0 %vm192_vm0, %v25161_v62 }
  0x8b   :  { %19819 = vmatprep.mubr.msk.f32.mxu0 %vm192_vm0, %v25166_v63 }
  0x8e   :  { %19820 = vmatmul.mubr.msk.f32.gmra.mrb[60].mxu0 %vm192_vm0, %v25175_v0  ;;  %v25264_v0 = vld [vmem:[%s30245_s0 + $0x2b8] sm:$0xff] }
  0x8f   :  { %19822 = vmatprep.mubr.msk.f32.mxu0 %vm192_vm0, %v25180_v1  ;;  %v25208_v1 = vld [vmem:[%s30245_s0 + $0x210] sm:$0xff]  ;;  %30475 = vst [vmem:[#allocation27_spill] sm:$0xff] %v25264_v0 }
  0x90   :  { %30469 = vst [vmem:[#allocation21_spill] sm:$0xff] %v25208_v1 }
  0x92   :  { %19823 = vmatmul.mubr.msk.f32.gmra.mrb[62].mxu0 %vm192_vm0, %v25189_v2  ;;  %v25222_v2 = vld [vmem:[%s30245_s0 + $0x220] sm:$0xff] }
  0x93   :  { %19825 = vmatprep.mubr.msk.f32.mxu0 %vm192_vm0, %v25194_v3  ;;  %v25217_v3 = vld [vmem:[%s30245_s0 + $0x218] sm:$0xff]  ;;  %30471 = vst [vmem:[#allocation23_spill] sm:$0xff] %v25222_v2 }
  0x94   :  { %30470 = vst [vmem:[#allocation22_spill] sm:$0xff] %v25217_v3 }
  0x96   :  { %19826 = vmatmul.mubr.msk.f32.gmra.mrb[64].mxu0 %vm192_vm0, %v25203_v4  ;;  %v25236_v4 = vld [vmem:[%s30245_s0 + $0x230] sm:$0xff] }
  0x97   :  { %19828 = vmatprep.mubr.msk.f32.mxu0 %vm192_vm0, %v25208_v1  ;;  %v25231_v1 = vld [vmem:[%s30245_s0 + $0x228] sm:$0xff]  ;;  %30473 = vst [vmem:[#allocation25_spill] sm:$0xff] %v25236_v4 }
  0x98   :  { %30472 = vst [vmem:[#allocation24_spill] sm:$0xff] %v25231_v1 }
  0x9a   :  { %19829 = vmatmul.mubr.msk.f32.gmra.mrb[66].mxu0 %vm192_vm0, %v25217_v3  ;;  %v119_v3 = vld [vmem:[%s30245_s0 + $0x2a0] sm:$0xff] }
  0x9b   :  { %19831 = vmatprep.mubr.msk.f32.mxu0 %vm192_vm0, %v25222_v2  ;;  %v25245_v2 = vld [vmem:[%s30245_s0 + $0x238] sm:$0xff] }
  0x9c   :  { %30474 = vst [vmem:[#allocation26_spill] sm:$0xff] %v25245_v2 }
  0x9e   :  { %19832 = vmatmul.mubr.msk.f32.gmra.mrb[68].mxu0 %vm192_vm0, %v25231_v1  ;;  %v120_v1 = vld [vmem:[%s30245_s0 + $0x2a8] sm:$0xff] }
  0x9f   :  { %19834 = vmatprep.mubr.msk.f32.mxu0 %vm192_vm0, %v25236_v4  ;;  %v121_v4 = vld [vmem:[%s30245_s0 + $0x2b0] sm:$0xff] }
  0xa2   :  { %19835 = vmatmul.mubr.msk.f32.gmra.mrb[70].mxu0 %vm192_vm0, %v25245_v2 }
  0xa3   :  { %19837 = vmatprep.mubr.msk.f32.mxu0 %vm192_vm0, %v119_v3  ;;  %v25269_v3 = vld [vmem:[%s30245_s0 + $0x2c0] sm:$0xff] }
  0xa4   :  { %30476 = vst [vmem:[#allocation28_spill] sm:$0xff] %v25269_v3 }
  0xa6   :  { %19838 = vmatmul.mubr.msk.f32.gmra.mrb[72].mxu0 %vm192_vm0, %v120_v1  ;;  %v25278_v1 = vld [vmem:[%s30245_s0 + $0x2c8] sm:$0xff] }
  0xa7   :  { %19840 = vmatprep.mubr.msk.f32.mxu0 %vm192_vm0, %v121_v4  ;;  %30477 = vst [vmem:[#allocation29_spill] sm:$0xff] %v25278_v1  ;;  %v25283_v4 = vld [vmem:[%s30245_s0 + $0x2d0] sm:$0xff] }
  0xa8   :  { %30478 = vst [vmem:[#allocation30_spill] sm:$0xff] %v25283_v4 }
  0xaa   :  { %19841 = vmatmul.mubr.msk.f32.gmra.mrb[74].mxu0 %vm192_vm0, %v25264_v0  ;;  %v25297_v0 = vld [vmem:[%s30245_s0 + $0x2e0] sm:$0xff] }
  0xab   :  { %19843 = vmatprep.mubr.msk.f32.mxu0 %vm192_vm0, %v25269_v3  ;;  %v25292_v3 = vld [vmem:[%s30245_s0 + $0x2d8] sm:$0xff]  ;;  %30480 = vst [vmem:[#allocation32_spill] sm:$0xff] %v25297_v0 }
  0xac   :  { %30479 = vst [vmem:[#allocation31_spill] sm:$0xff] %v25292_v3 }
  0xae   :  { %19844 = vmatmul.mubr.msk.f32.gmra.mrb[76].mxu0 %vm192_vm0, %v25278_v1  ;;  %v25311_v1 = vld [vmem:[%s30245_s0 + $0x2f0] sm:$0xff] }
  0xaf   :  { %19846 = vmatprep.mubr.msk.f32.mxu0 %vm192_vm0, %v25283_v4  ;;  %v25306_v4 = vld [vmem:[%s30245_s0 + $0x2e8] sm:$0xff]  ;;  %30482 = vst [vmem:[#allocation34_spill] sm:$0xff] %v25311_v1 }
  0xb0   :  { %30481 = vst [vmem:[#allocation33_spill] sm:$0xff] %v25306_v4 }
  0xb2   :  { %19847 = vmatmul.mubr.msk.f32.gmra.mrb[78].mxu0 %vm192_vm0, %v25292_v3  ;;  %v25325_v3 = vld [vmem:[%s30245_s0 + $0x300] sm:$0xff] }
  0xb3   :  { %19849 = vmatprep.mubr.msk.f32.mxu0 %vm192_vm0, %v25297_v0  ;;  %v25320_v0 = vld [vmem:[%s30245_s0 + $0x2f8] sm:$0xff]  ;;  %30484 = vst [vmem:[#allocation36_spill] sm:$0xff] %v25325_v3 }
  0xb4   :  { %30483 = vst [vmem:[#allocation35_spill] sm:$0xff] %v25320_v0 }
  0xb6   :  { %19850 = vmatmul.mubr.msk.f32.gmra.mrb[80].mxu0 %vm192_vm0, %v25306_v4  ;;  %v25339_v4 = vld [vmem:[%s30245_s0 + $0x310] sm:$0xff] }
  0xb7   :  { %19852 = vmatprep.mubr.msk.f32.mxu0 %vm192_vm0, %v25311_v1  ;;  %v25334_v1 = vld [vmem:[%s30245_s0 + $0x308] sm:$0xff]  ;;  %30486 = vst [vmem:[#allocation38_spill] sm:$0xff] %v25339_v4 }
  0xb8   :  { %30485 = vst [vmem:[#allocation37_spill] sm:$0xff] %v25334_v1 }
  0xba   :  { %19853 = vmatmul.mubr.msk.f32.gmra.mrb[82].mxu0 %vm192_vm0, %v25320_v0  ;;  %v25353_v0 = vld [vmem:[%s30245_s0 + $0x320] sm:$0xff] }
  0xbb   :  { %19855 = vmatprep.mubr.msk.f32.mxu0 %vm192_vm0, %v25325_v3  ;;  %v25348_v3 = vld [vmem:[%s30245_s0 + $0x318] sm:$0xff]  ;;  %30488 = vst [vmem:[#allocation40_spill] sm:$0xff] %v25353_v0 }
  0xbc   :  { %30487 = vst [vmem:[#allocation39_spill] sm:$0xff] %v25348_v3 }
  0xbe   :  { %19856 = vmatmul.mubr.msk.f32.gmra.mrb[84].mxu0 %vm192_vm0, %v25334_v1  ;;  %v25367_v1 = vld [vmem:[%s30245_s0 + $0x330] sm:$0xff] }
  0xbf   :  { %19858 = vmatprep.mubr.msk.f32.mxu0 %vm192_vm0, %v25339_v4  ;;  %v25362_v4 = vld [vmem:[%s30245_s0 + $0x328] sm:$0xff]  ;;  %30490 = vst [vmem:[#allocation42_spill] sm:$0xff] %v25367_v1 }
  0xc0   :  { %30489 = vst [vmem:[#allocation41_spill] sm:$0xff] %v25362_v4 }
  0xc2   :  { %19859 = vmatmul.mubr.msk.f32.gmra.mrb[86].mxu0 %vm192_vm0, %v25348_v3  ;;  %v25381_v3 = vld [vmem:[%s30245_s0 + $0x340] sm:$0xff] }
  0xc3   :  { %19861 = vmatprep.mubr.msk.f32.mxu0 %vm192_vm0, %v25353_v0  ;;  %v25376_v0 = vld [vmem:[%s30245_s0 + $0x338] sm:$0xff]  ;;  %30492 = vst [vmem:[#allocation44_spill] sm:$0xff] %v25381_v3 }
  0xc4   :  { %30491 = vst [vmem:[#allocation43_spill] sm:$0xff] %v25376_v0 }
  0xc6   :  { %19862 = vmatmul.mubr.msk.f32.gmra.mrb[88].mxu0 %vm192_vm0, %v25362_v4  ;;  %v25395_v4 = vld [vmem:[%s30245_s0 + $0x350] sm:$0xff] }
  0xc7   :  { %19864 = vmatprep.mubr.msk.f32.mxu0 %vm192_vm0, %v25367_v1  ;;  %v25390_v1 = vld [vmem:[%s30245_s0 + $0x348] sm:$0xff]  ;;  %30494 = vst [vmem:[#allocation46_spill] sm:$0xff] %v25395_v4 }
  0xc8   :  { %30493 = vst [vmem:[#allocation45_spill] sm:$0xff] %v25390_v1 }
  0xca   :  { %19865 = vmatmul.mubr.msk.f32.gmra.mrb[90].mxu0 %vm192_vm0, %v25376_v0  ;;  %v25409_v0 = vld [vmem:[%s30245_s0 + $0x360] sm:$0xff] }
  0xcb   :  { %19867 = vmatprep.mubr.msk.f32.mxu0 %vm192_vm0, %v25381_v3  ;;  %v25404_v3 = vld [vmem:[%s30245_s0 + $0x358] sm:$0xff]  ;;  %30496 = vst [vmem:[#allocation48_spill] sm:$0xff] %v25409_v0 }
  0xcc   :  { %30495 = vst [vmem:[#allocation47_spill] sm:$0xff] %v25404_v3 }
  0xce   :  { %19868 = vmatmul.mubr.msk.f32.gmra.mrb[92].mxu0 %vm192_vm0, %v25390_v1  ;;  %v25423_v1 = vld [vmem:[%s30245_s0 + $0x370] sm:$0xff] }
  0xcf   :  { %19870 = vmatprep.mubr.msk.f32.mxu0 %vm192_vm0, %v25395_v4  ;;  %v25418_v4 = vld [vmem:[%s30245_s0 + $0x368] sm:$0xff]  ;;  %30498 = vst [vmem:[#allocation50_spill] sm:$0xff] %v25423_v1 }
  0xd0   :  { %30497 = vst [vmem:[#allocation49_spill] sm:$0xff] %v25418_v4 }
  0xd2   :  { %19871 = vmatmul.mubr.msk.f32.gmra.mrb[94].mxu0 %vm192_vm0, %v25404_v3  ;;  %v25437_v3 = vld [vmem:[%s30245_s0 + $0x380] sm:$0xff] }
  0xd3   :  { %19873 = vmatprep.mubr.msk.f32.mxu0 %vm192_vm0, %v25409_v0  ;;  %v25432_v0 = vld [vmem:[%s30245_s0 + $0x378] sm:$0xff]  ;;  %30500 = vst [vmem:[#allocation52_spill] sm:$0xff] %v25437_v3 }
  0xd4   :  { %30499 = vst [vmem:[#allocation51_spill] sm:$0xff] %v25432_v0 }
  0xd6   :  { %19874 = vmatmul.mubr.msk.f32.gmra.mrb[96].mxu0 %vm192_vm0, %v25418_v4  ;;  %v25451_v4 = vld [vmem:[%s30245_s0 + $0x390] sm:$0xff] }
  0xd7   :  { %19876 = vmatprep.mubr.msk.f32.mxu0 %vm192_vm0, %v25423_v1  ;;  %v25446_v1 = vld [vmem:[%s30245_s0 + $0x388] sm:$0xff]  ;;  %30502 = vst [vmem:[#allocation54_spill] sm:$0xff] %v25451_v4 }
  0xd8   :  { %30501 = vst [vmem:[#allocation53_spill] sm:$0xff] %v25446_v1 }
  0xda   :  { %19877 = vmatmul.mubr.msk.f32.gmra.mrb[98].mxu0 %vm192_vm0, %v25432_v0  ;;  %v25465_v0 = vld [vmem:[%s30245_s0 + $0x3a0] sm:$0xff] }
  0xdb   :  { %19879 = vmatprep.mubr.msk.f32.mxu0 %vm192_vm0, %v25437_v3  ;;  %v25460_v3 = vld [vmem:[%s30245_s0 + $0x398] sm:$0xff]  ;;  %30504 = vst [vmem:[#allocation56_spill] sm:$0xff] %v25465_v0 }
  0xdc   :  { %30503 = vst [vmem:[#allocation55_spill] sm:$0xff] %v25460_v3 }
  0xde   :  { %19880 = vmatmul.mubr.msk.f32.gmra.mrb[100].mxu0 %vm192_vm0, %v25446_v1  ;;  %v25479_v1 = vld [vmem:[%s30245_s0 + $0x3b0] sm:$0xff] }
  0xdf   :  { %19882 = vmatprep.mubr.msk.f32.mxu0 %vm192_vm0, %v25451_v4  ;;  %v25474_v4 = vld [vmem:[%s30245_s0 + $0x3a8] sm:$0xff]  ;;  %30506 = vst [vmem:[#allocation58_spill] sm:$0xff] %v25479_v1 }
  0xe0   :  { %30505 = vst [vmem:[#allocation57_spill] sm:$0xff] %v25474_v4 }
  0xe2   :  { %19883 = vmatmul.mubr.msk.f32.gmra.mrb[102].mxu0 %vm192_vm0, %v25460_v3  ;;  %v25493_v3 = vld [vmem:[%s30245_s0 + $0x3c0] sm:$0xff] }
  0xe3   :  { %19885 = vmatprep.mubr.msk.f32.mxu0 %vm192_vm0, %v25465_v0  ;;  %v25488_v0 = vld [vmem:[%s30245_s0 + $0x3b8] sm:$0xff]  ;;  %30508 = vst [vmem:[#allocation60_spill] sm:$0xff] %v25493_v3 }
  0xe4   :  { %30507 = vst [vmem:[#allocation59_spill] sm:$0xff] %v25488_v0 }
  0xe6   :  { %19886 = vmatmul.mubr.msk.f32.gmra.mrb[104].mxu0 %vm192_vm0, %v25474_v4  ;;  %v25507_v4 = vld [vmem:[%s30245_s0 + $0x3d0] sm:$0xff] }
  0xe7   :  { %19888 = vmatprep.mubr.msk.f32.mxu0 %vm192_vm0, %v25479_v1  ;;  %v25502_v1 = vld [vmem:[%s30245_s0 + $0x3c8] sm:$0xff]  ;;  %30510 = vst [vmem:[#allocation62_spill] sm:$0xff] %v25507_v4 }
  0xe8   :  { %30509 = vst [vmem:[#allocation61_spill] sm:$0xff] %v25502_v1 }
  0xea   :  { %19889 = vmatmul.mubr.msk.f32.gmra.mrb[106].mxu0 %vm192_vm0, %v25488_v0  ;;  %v25521_v0 = vld [vmem:[%s30245_s0 + $0x3e0] sm:$0xff] }
  0xeb   :  { %19891 = vmatprep.mubr.msk.f32.mxu0 %vm192_vm0, %v25493_v3  ;;  %v25516_v3 = vld [vmem:[%s30245_s0 + $0x3d8] sm:$0xff]  ;;  %30511 = vst [vmem:[#allocation63_spill] sm:$0xff] %v25521_v0 }
  0xee   :  { %19892 = vmatmul.mubr.msk.f32.gmra.mrb[108].mxu0 %vm192_vm0, %v25502_v1 }
  0xef   :  { %19894 = vmatprep.mubr.msk.f32.mxu0 %vm192_vm0, %v25507_v4  ;;  %v25530_v4 = vld [vmem:[%s30245_s0 + $0x3e8] sm:$0xff] }
  0xf0   :  { %30512 = vst [vmem:[#allocation64_spill] sm:$0xff] %v25530_v4 }
  0xf2   :  { %19895 = vmatmul.mubr.msk.f32.gmra.mrb[110].mxu0 %vm192_vm0, %v25516_v3 }
  0xf3   :  { %19897 = vmatprep.mubr.msk.f32.mxu0 %vm192_vm0, %v25521_v0 }
  0xf6   :  { %19898 = vmatmul.mubr.msk.f32.gmra.mrb[112].mxu0 %vm192_vm0, %v25530_v4 }
  0xf7   :  { %19947 = vmatprep.mubr.msk.f32.mxu0 %vm192_vm0, %v24763_v5  ;;  %v30513_v5 = vld [vmem:[#allocation16_spill] sm:$0xff] }
  0xfa   :  { %19948 = vmatmul.mubr.msk.f32.vlgmr.msra.gmra.mrb[0].mxu0 %vm192_vm0, %v24768_v6  ;;  %v30514_v6 = vld [vmem:[#allocation17_spill] sm:$0xff] }
  0xfb   :  { %20164 = vmatpush3.msra.mxu0 %v25111_v55  ;;  %19950 = vmatprep.mubr.msk.f32.mxu0 %vm192_vm0, %v24777_v7  ;;  %v30515_v7 = vld [vmem:[#allocation18_spill] sm:$0xff]  ;;  %v30516_v55 = vld [vmem:[#allocation19_spill] sm:$0xff] }
  0xfe   :  { %19951 = vmatmul.mubr.msk.f32.gmra.mrb[2].mxu0 %vm192_vm0, %v24782_v8 }
  0xff   :  { %19953 = vmatprep.mubr.msk.f32.mxu0 %vm192_vm0, %v24791_v9 }
 0x102   :  { %19954 = vmatmul.mubr.msk.f32.gmra.mrb[4].mxu0 %vm192_vm0, %v24796_v10 }
 0x103   :  { %19956 = vmatprep.mubr.msk.f32.mxu0 %vm192_vm0, %v24805_v11 }
 0x106   :  { %19957 = vmatmul.mubr.msk.f32.gmra.mrb[6].mxu0 %vm192_vm0, %v24810_v12 }
 0x107   :  { %19959 = vmatprep.mubr.msk.f32.mxu0 %vm192_vm0, %v24819_v13 }
 0x10a   :  { %19960 = vmatmul.mubr.msk.f32.gmra.mrb[8].mxu0 %vm192_vm0, %v24824_v14 }
 0x10b   :  { %19962 = vmatprep.mubr.msk.f32.mxu0 %vm192_vm0, %v24833_v15 }
 0x10e   :  { %19963 = vmatmul.mubr.msk.f32.gmra.mrb[10].mxu0 %vm192_vm0, %v24838_v16 }
 0x10f   :  { %19965 = vmatprep.mubr.msk.f32.mxu0 %vm192_vm0, %v24847_v17 }
 0x112   :  { %19966 = vmatmul.mubr.msk.f32.gmra.mrb[12].mxu0 %vm192_vm0, %v24852_v18 }
 0x113   :  { %19968 = vmatprep.mubr.msk.f32.mxu0 %vm192_vm0, %v24861_v19 }
 0x116   :  { %19969 = vmatmul.mubr.msk.f32.gmra.mrb[14].mxu0 %vm192_vm0, %v24866_v20 }
 0x117   :  { %19971 = vmatprep.mubr.msk.f32.mxu0 %vm192_vm0, %v24875_v21 }
 0x11a   :  { %19972 = vmatmul.mubr.msk.f32.gmra.mrb[16].mxu0 %vm192_vm0, %v24880_v22 }
 0x11b   :  { %19974 = vmatprep.mubr.msk.f32.mxu0 %vm192_vm0, %v24889_v23 }
 0x11e   :  { %19975 = vmatmul.mubr.msk.f32.gmra.mrb[18].mxu0 %vm192_vm0, %v24894_v24 }
 0x11f   :  { %19977 = vmatprep.mubr.msk.f32.mxu0 %vm192_vm0, %v24903_v25 }
 0x122   :  { %19978 = vmatmul.mubr.msk.f32.gmra.mrb[20].mxu0 %vm192_vm0, %v24908_v26 }
 0x123   :  { %19980 = vmatprep.mubr.msk.f32.mxu0 %vm192_vm0, %v24917_v27 }
 0x126   :  { %19981 = vmatmul.mubr.msk.f32.gmra.mrb[22].mxu0 %vm192_vm0, %v24922_v28 }
 0x127   :  { %19983 = vmatprep.mubr.msk.f32.mxu0 %vm192_vm0, %v24931_v29 }
 0x12a   :  { %19984 = vmatmul.mubr.msk.f32.gmra.mrb[24].mxu0 %vm192_vm0, %v24936_v30 }
 0x12b   :  { %19986 = vmatprep.mubr.msk.f32.mxu0 %vm192_vm0, %v24945_v31 }
 0x12e   :  { %19987 = vmatmul.mubr.msk.f32.gmra.mrb[26].mxu0 %vm192_vm0, %v24950_v32 }
 0x12f   :  { %19989 = vmatprep.mubr.msk.f32.mxu0 %vm192_vm0, %v24959_v33 }
 0x132   :  { %19990 = vmatmul.mubr.msk.f32.gmra.mrb[28].mxu0 %vm192_vm0, %v24964_v34 }
 0x133   :  { %19992 = vmatprep.mubr.msk.f32.mxu0 %vm192_vm0, %v24973_v35 }
 0x136   :  { %19993 = vmatmul.mubr.msk.f32.gmra.mrb[30].mxu0 %vm192_vm0, %v24978_v36 }
 0x137   :  { %19995 = vmatprep.mubr.msk.f32.mxu0 %vm192_vm0, %v24987_v37 }
 0x13a   :  { %19996 = vmatmul.mubr.msk.f32.gmra.mrb[32].mxu0 %vm192_vm0, %v24992_v38 }
 0x13b   :  { %19998 = vmatprep.mubr.msk.f32.mxu0 %vm192_vm0, %v25001_v39 }
 0x13e   :  { %19999 = vmatmul.mubr.msk.f32.gmra.mrb[34].mxu0 %vm192_vm0, %v25006_v40 }
 0x13f   :  { %20001 = vmatprep.mubr.msk.f32.mxu0 %vm192_vm0, %v25015_v41 }
 0x142   :  { %20002 = vmatmul.mubr.msk.f32.gmra.mrb[36].mxu0 %vm192_vm0, %v25020_v42 }
 0x143   :  { %20004 = vmatprep.mubr.msk.f32.mxu0 %vm192_vm0, %v25029_v43 }
 0x146   :  { %20005 = vmatmul.mubr.msk.f32.gmra.mrb[38].mxu0 %vm192_vm0, %v25034_v44 }
 0x147   :  { %20007 = vmatprep.mubr.msk.f32.mxu0 %vm192_vm0, %v25043_v45 }
 0x14a   :  { %20008 = vmatmul.mubr.msk.f32.gmra.mrb[40].mxu0 %vm192_vm0, %v25048_v46 }
 0x14b   :  { %20010 = vmatprep.mubr.msk.f32.mxu0 %vm192_vm0, %v25057_v47 }
 0x14e   :  { %20011 = vmatmul.mubr.msk.f32.gmra.mrb[42].mxu0 %vm192_vm0, %v25062_v48 }
 0x14f   :  { %20013 = vmatprep.mubr.msk.f32.mxu0 %vm192_vm0, %v25071_v49 }
 0x152   :  { %20014 = vmatmul.mubr.msk.f32.gmra.mrb[44].mxu0 %vm192_vm0, %v25076_v50 }
 0x153   :  { %20016 = vmatprep.mubr.msk.f32.mxu0 %vm192_vm0, %v25085_v51 }
 0x156   :  { %20017 = vmatmul.mubr.msk.f32.gmra.mrb[46].mxu0 %vm192_vm0, %v25090_v52 }
 0x157   :  { %20019 = vmatprep.mubr.msk.f32.mxu0 %vm192_vm0, %v25099_v53 }
 0x15a   :  { %20020 = vmatmul.mubr.msk.f32.gmra.mrb[48].mxu0 %vm192_vm0, %v25104_v54 }
 0x15b   :  { %20022 = vmatprep.mubr.msk.f32.mxu0 %vm192_vm0, %v25118_v56 }
 0x15e   :  { %20023 = vmatmul.mubr.msk.f32.gmra.mrb[50].mxu0 %vm192_vm0, %v25124_v57 }
 0x15f   :  { %20025 = vmatprep.mubr.msk.f32.mxu0 %vm192_vm0, %v25133_v58 }
 0x162   :  { %20026 = vmatmul.mubr.msk.f32.gmra.mrb[52].mxu0 %vm192_vm0, %v25138_v59 }
 0x163   :  { %20028 = vmatprep.mubr.msk.f32.mxu0 %vm192_vm0, %v25147_v60  ;;  %v30517_v60 = vld [vmem:[#allocation20_spill] sm:$0xff] }
 0x166   :  { %20029 = vmatmul.mubr.msk.f32.gmra.mrb[54].mxu0 %vm192_vm0, %v25152_v61  ;;  %v30518_v61 = vld [vmem:[#allocation21_spill] sm:$0xff] }
 0x167   :  { %20031 = vmatprep.mubr.msk.f32.mxu0 %vm192_vm0, %v25161_v62  ;;  %v30519_v62 = vld [vmem:[#allocation22_spill] sm:$0xff] }
 0x16a   :  { %20032 = vmatmul.mubr.msk.f32.gmra.mrb[56].mxu0 %vm192_vm0, %v25166_v63  ;;  %v30520_v63 = vld [vmem:[#allocation23_spill] sm:$0xff] }
 0x16b   :  { %20034 = vmatprep.mubr.msk.f32.mxu0 %vm192_vm0, %v30513_v5  ;;  %v30521_v5 = vld [vmem:[#allocation24_spill] sm:$0xff] }
 0x16e   :  { %20035 = vmatmul.mubr.msk.f32.gmra.mrb[58].mxu0 %vm192_vm0, %v30514_v6  ;;  %v30522_v6 = vld [vmem:[#allocation25_spill] sm:$0xff] }
 0x16f   :  { %20037 = vmatprep.mubr.msk.f32.mxu0 %vm192_vm0, %v30515_v7  ;;  %v30544_v7 = vld [vmem:[#allocation45_spill] sm:$0xff] }
 0x172   :  { %20038 = vmatmul.mubr.msk.f32.gmra.mrb[60].mxu0 %vm192_vm0, %v30516_v55  ;;  %v30532_v55 = vld [vmem:[#allocation33_spill] sm:$0xff] }
 0x173   :  { %20040 = vmatprep.mubr.msk.f32.mxu0 %vm192_vm0, %v30517_v60  ;;  %v25676_v60 = vld [vmem:[%s30245_s0 + $0x240] sm:$0xff] }
 0x174   :  { %30523 = vst [vmem:[#allocation65_spill] sm:$0xff] %v25676_v60 }
 0x176   :  { %20041 = vmatmul.mubr.msk.f32.gmra.mrb[62].mxu0 %vm192_vm0, %v30518_v61  ;;  %v30531_v61 = vld [vmem:[#allocation32_spill] sm:$0xff] }
 0x177   :  { %20043 = vmatprep.mubr.msk.f32.mxu0 %vm192_vm0, %v30519_v62  ;;  %v25681_v62 = vld [vmem:[%s30245_s0 + $0x248] sm:$0xff] }
 0x178   :  { %30524 = vst [vmem:[#allocation66_spill] sm:$0xff] %v25681_v62 }
 0x17a   :  { %20044 = vmatmul.mubr.msk.f32.gmra.mrb[64].mxu0 %vm192_vm0, %v30520_v63  ;;  %v30528_v63 = vld [vmem:[#allocation29_spill] sm:$0xff] }
 0x17b   :  { %20046 = vmatprep.mubr.msk.f32.mxu0 %vm192_vm0, %v30521_v5  ;;  %v30527_v5 = vld [vmem:[#allocation28_spill] sm:$0xff] }
 0x17e   :  { %20047 = vmatmul.mubr.msk.f32.gmra.mrb[66].mxu0 %vm192_vm0, %v30522_v6  ;;  %v30526_v6 = vld [vmem:[#allocation27_spill] sm:$0xff] }
 0x17f   :  { %20049 = vmatprep.mubr.msk.f32.mxu0 %vm192_vm0, %v25245_v2  ;;  %v25690_v2 = vld [vmem:[%s30245_s0 + $0x250] sm:$0xff] }
 0x180   :  { %30525 = vst [vmem:[#allocation67_spill] sm:$0xff] %v25690_v2 }
 0x182   :  { %20050 = vmatmul.mubr.msk.f32.gmra.mrb[68].mxu0 %vm192_vm0, %v25676_v60  ;;  %v30529_v60 = vld [vmem:[#allocation30_spill] sm:$0xff] }
 0x183   :  { %20052 = vmatprep.mubr.msk.f32.mxu0 %vm192_vm0, %v25681_v62  ;;  %v30530_v62 = vld [vmem:[#allocation31_spill] sm:$0xff] }
 0x186   :  { %20053 = vmatmul.mubr.msk.f32.gmra.mrb[70].mxu0 %vm192_vm0, %v25690_v2  ;;  %v30533_v2 = vld [vmem:[#allocation34_spill] sm:$0xff] }
 0x187   :  { %20055 = vmatprep.mubr.msk.f32.mxu0 %vm192_vm0, %v30526_v6  ;;  %v30534_v6 = vld [vmem:[#allocation35_spill] sm:$0xff] }
 0x18a   :  { %20056 = vmatmul.mubr.msk.f32.gmra.mrb[72].mxu0 %vm192_vm0, %v30527_v5  ;;  %v30535_v5 = vld [vmem:[#allocation36_spill] sm:$0xff] }
 0x18b   :  { %20058 = vmatprep.mubr.msk.f32.mxu0 %vm192_vm0, %v30528_v63  ;;  %v25717_v63 = vld [vmem:[%s30246_s1 + $0x18] sm:$0xff] }
 0x18c   :  { %20381 = vmatprep.subr.mxu0 %v25717_v63 }
 0x18e   :  { %20059 = vmatmul.mubr.msk.f32.gmra.mrb[74].mxu0 %vm192_vm0, %v30529_v60  ;;  %v30542_v60 = vld [vmem:[#allocation43_spill] sm:$0xff] }
 0x18f   :  { %20061 = vmatprep.mubr.msk.f32.mxu0 %vm192_vm0, %v30530_v62  ;;  %v30536_v62 = vld [vmem:[#allocation37_spill] sm:$0xff] }
 0x192   :  { %20062 = vmatmul.mubr.msk.f32.gmra.mrb[76].mxu0 %vm192_vm0, %v30531_v61  ;;  %v30541_v61 = vld [vmem:[#allocation42_spill] sm:$0xff] }
 0x193   :  { %20064 = vmatprep.mubr.msk.f32.mxu0 %vm192_vm0, %v30532_v55  ;;  %v30537_v55 = vld [vmem:[#allocation38_spill] sm:$0xff] }
 0x196   :  { %20065 = vmatmul.mubr.msk.f32.gmra.mrb[78].mxu0 %vm192_vm0, %v30533_v2  ;;  %v30538_v2 = vld [vmem:[#allocation39_spill] sm:$0xff] }
 0x197   :  { %20067 = vmatprep.mubr.msk.f32.mxu0 %vm192_vm0, %v30534_v6  ;;  %v30539_v6 = vld [vmem:[#allocation40_spill] sm:$0xff] }
 0x19a   :  { %20068 = vmatmul.mubr.msk.f32.gmra.mrb[80].mxu0 %vm192_vm0, %v30535_v5  ;;  %v30540_v5 = vld [vmem:[#allocation41_spill] sm:$0xff] }
 0x19b   :  { %20070 = vmatprep.mubr.msk.f32.mxu0 %vm192_vm0, %v30536_v62  ;;  %v30543_v62 = vld [vmem:[#allocation44_spill] sm:$0xff] }
 0x19e   :  { %20071 = vmatmul.mubr.msk.f32.gmra.mrb[82].mxu0 %vm192_vm0, %v30537_v55  ;;  %v30545_v55 = vld [vmem:[#allocation46_spill] sm:$0xff] }
 0x19f   :  { %20073 = vmatprep.mubr.msk.f32.mxu0 %vm192_vm0, %v30538_v2  ;;  %v30546_v2 = vld [vmem:[#allocation47_spill] sm:$0xff] }
 0x1a2   :  { %20074 = vmatmul.mubr.msk.f32.gmra.mrb[84].mxu0 %vm192_vm0, %v30539_v6  ;;  %v30547_v6 = vld [vmem:[#allocation48_spill] sm:$0xff] }
 0x1a3   :  { %20076 = vmatprep.mubr.msk.f32.mxu0 %vm192_vm0, %v30540_v5  ;;  %v30548_v5 = vld [vmem:[#allocation49_spill] sm:$0xff] }
 0x1a6   :  { %20077 = vmatmul.mubr.msk.f32.gmra.mrb[86].mxu0 %vm192_vm0, %v30541_v61  ;;  %v30549_v61 = vld [vmem:[#allocation50_spill] sm:$0xff] }
 0x1a7   :  { %20079 = vmatprep.mubr.msk.f32.mxu0 %vm192_vm0, %v30542_v60  ;;  %v30550_v60 = vld [vmem:[#allocation51_spill] sm:$0xff] }
 0x1aa   :  { %20080 = vmatmul.mubr.msk.f32.gmra.mrb[88].mxu0 %vm192_vm0, %v30543_v62  ;;  %v30551_v62 = vld [vmem:[#allocation52_spill] sm:$0xff] }
 0x1ab   :  { %20082 = vmatprep.mubr.msk.f32.mxu0 %vm192_vm0, %v30544_v7  ;;  %v30552_v7 = vld [vmem:[#allocation53_spill] sm:$0xff] }
 0x1ae   :  { %20083 = vmatmul.mubr.msk.f32.gmra.mrb[90].mxu0 %vm192_vm0, %v30545_v55  ;;  %v30553_v55 = vld [vmem:[#allocation54_spill] sm:$0xff] }
 0x1af   :  { %20085 = vmatprep.mubr.msk.f32.mxu0 %vm192_vm0, %v30546_v2  ;;  %v30554_v2 = vld [vmem:[#allocation55_spill] sm:$0xff] }
 0x1b2   :  { %20086 = vmatmul.mubr.msk.f32.gmra.mrb[92].mxu0 %vm192_vm0, %v30547_v6  ;;  %v30555_v6 = vld [vmem:[#allocation56_spill] sm:$0xff] }
 0x1b3   :  { %20088 = vmatprep.mubr.msk.f32.mxu0 %vm192_vm0, %v30548_v5  ;;  %v30556_v5 = vld [vmem:[#allocation57_spill] sm:$0xff] }
 0x1b6   :  { %20089 = vmatmul.mubr.msk.f32.gmra.mrb[94].mxu0 %vm192_vm0, %v30549_v61  ;;  %v30557_v61 = vld [vmem:[#allocation58_spill] sm:$0xff] }
 0x1b7   :  { %20091 = vmatprep.mubr.msk.f32.mxu0 %vm192_vm0, %v30550_v60  ;;  %v30558_v60 = vld [vmem:[#allocation59_spill] sm:$0xff] }
 0x1ba   :  { %20092 = vmatmul.mubr.msk.f32.gmra.mrb[96].mxu0 %vm192_vm0, %v30551_v62  ;;  %v30559_v62 = vld [vmem:[#allocation60_spill] sm:$0xff] }
 0x1bb   :  { %20094 = vmatprep.mubr.msk.f32.mxu0 %vm192_vm0, %v30552_v7 }
 0x1be   :  { %20095 = vmatmul.mubr.msk.f32.gmra.mrb[98].mxu0 %vm192_vm0, %v30553_v55  ;;  %v30560_v55 = vld [vmem:[#allocation62_spill] sm:$0xff] }
 0x1bf   :  { %20097 = vmatprep.mubr.msk.f32.mxu0 %vm192_vm0, %v30554_v2 }
 0x1c2   :  { %20098 = vmatmul.mubr.msk.f32.gmra.mrb[100].mxu0 %vm192_vm0, %v30555_v6 }
 0x1c3   :  { %20100 = vmatprep.mubr.msk.f32.mxu0 %vm192_vm0, %v30556_v5 }
 0x1c6   :  { %20101 = vmatmul.mubr.msk.f32.gmra.mrb[102].mxu0 %vm192_vm0, %v30557_v61 }
 0x1c7   :  { %20103 = vmatprep.mubr.msk.f32.mxu0 %vm192_vm0, %v30558_v60  ;;  %v25781_v60 = vld [vmem:[%s30245_s0 + $0x3f0] sm:$0xff] }
 0x1c8   :  { %30561 = vst [vmem:[#allocation27_spill] sm:$0xff] %v25781_v60 }
 0x1ca   :  { %20104 = vmatmul.mubr.msk.f32.gmra.mrb[104].mxu0 %vm192_vm0, %v30559_v62 }
 0x1cb   :  { %20106 = vmatprep.mubr.msk.f32.mxu0 %vm192_vm0, %v25502_v1  ;;  %v25786_v1 = vld [vmem:[%s30245_s0 + $0x3f8] sm:$0xff] }
 0x1cc   :  { %30562 = vst [vmem:[#allocation28_spill] sm:$0xff] %v25786_v1 }
 0x1ce   :  { %20107 = vmatmul.mubr.msk.f32.gmra.mrb[106].mxu0 %vm192_vm0, %v30560_v55 }
 0x1cf   :  { %20109 = vmatprep.mubr.msk.f32.mxu0 %vm192_vm0, %v25516_v3 }
 0x1d2   :  { %20110 = vmatmul.mubr.msk.f32.gmra.mrb[108].mxu0 %vm192_vm0, %v25521_v0  ;;  %v25800_v0 = vld [vmem:[%s30245_s0 + $0x408] sm:$0xff] }
 0x1d3   :  { %20112 = vmatprep.mubr.msk.f32.mxu0 %vm192_vm0, %v25530_v4  ;;  %v25795_v4 = vld [vmem:[%s30245_s0 + $0x400] sm:$0xff]  ;;  %30564 = vst [vmem:[#allocation53_spill] sm:$0xff] %v25800_v0 }
 0x1d4   :  { %30563 = vst [vmem:[#allocation29_spill] sm:$0xff] %v25795_v4 }
 0x1d6   :  { %20113 = vmatmul.mubr.msk.f32.gmra.mrb[110].mxu0 %vm192_vm0, %v25781_v60  ;;  %v25814_v60 = vld [vmem:[%s30245_s0 + $0x418] sm:$0xff] }
 0x1d7   :  { %20115 = vmatprep.mubr.msk.f32.mxu0 %vm192_vm0, %v25786_v1  ;;  %v25809_v1 = vld [vmem:[%s30245_s0 + $0x410] sm:$0xff]  ;;  %30566 = vst [vmem:[#allocation56_spill] sm:$0xff] %v25814_v60 }
 0x1d8   :  { %30565 = vst [vmem:[#allocation55_spill] sm:$0xff] %v25809_v1 }
 0x1da   :  { %20116 = vmatmul.mubr.msk.f32.gmra.mrb[112].mxu0 %vm192_vm0, %v25795_v4  ;;  %v25828_v4 = vld [vmem:[%s30245_s0 + $0x428] sm:$0xff] }
 0x1db   :  { %20118 = vmatprep.mubr.msk.f32.mxu0 %vm192_vm0, %v25800_v0  ;;  %v25823_v0 = vld [vmem:[%s30245_s0 + $0x420] sm:$0xff]  ;;  %30568 = vst [vmem:[#allocation58_spill] sm:$0xff] %v25828_v4 }
 0x1dc   :  { %30567 = vst [vmem:[#allocation57_spill] sm:$0xff] %v25823_v0 }
 0x1de   :  { %20119 = vmatmul.mubr.msk.f32.gmra.mrb[114].mxu0 %vm192_vm0, %v25809_v1  ;;  %v25842_v1 = vld [vmem:[%s30245_s0 + $0x438] sm:$0xff] }
 0x1df   :  { %20121 = vmatprep.mubr.msk.f32.mxu0 %vm192_vm0, %v25814_v60  ;;  %v25837_v60 = vld [vmem:[%s30245_s0 + $0x430] sm:$0xff]  ;;  %30570 = vst [vmem:[#allocation62_spill] sm:$0xff] %v25842_v1 }
 0x1e0   :  { %30569 = vst [vmem:[#allocation60_spill] sm:$0xff] %v25837_v60 }
 0x1e2   :  { %20122 = vmatmul.mubr.msk.f32.gmra.mrb[116].mxu0 %vm192_vm0, %v25823_v0  ;;  %v25856_v0 = vld [vmem:[%s30245_s0 + $0x448] sm:$0xff] }
 0x1e3   :  { %20124 = vmatprep.mubr.msk.f32.mxu0 %vm192_vm0, %v25828_v4  ;;  %v25851_v4 = vld [vmem:[%s30245_s0 + $0x440] sm:$0xff]  ;;  %30572 = vst [vmem:[#allocation69_spill] sm:$0xff] %v25856_v0 }
 0x1e4   :  { %30571 = vst [vmem:[#allocation68_spill] sm:$0xff] %v25851_v4 }
 0x1e6   :  { %20125 = vmatmul.mubr.msk.f32.gmra.mrb[118].mxu0 %vm192_vm0, %v25837_v60  ;;  %v25870_v60 = vld [vmem:[%s30245_s0 + $0x458] sm:$0xff] }
 0x1e7   :  { %20127 = vmatprep.mubr.msk.f32.mxu0 %vm192_vm0, %v25842_v1  ;;  %v25865_v1 = vld [vmem:[%s30245_s0 + $0x450] sm:$0xff]  ;;  %30574 = vst [vmem:[#allocation71_spill] sm:$0xff] %v25870_v60 }
 0x1e8   :  { %30573 = vst [vmem:[#allocation70_spill] sm:$0xff] %v25865_v1 }
 0x1ea   :  { %20128 = vmatmul.mubr.msk.f32.gmra.mrb[120].mxu0 %vm192_vm0, %v25851_v4  ;;  %v25884_v4 = vld [vmem:[%s30245_s0 + $0x468] sm:$0xff] }
 0x1eb   :  { %20130 = vmatprep.mubr.msk.f32.mxu0 %vm192_vm0, %v25856_v0  ;;  %v25879_v0 = vld [vmem:[%s30245_s0 + $0x460] sm:$0xff]  ;;  %30576 = vst [vmem:[#allocation73_spill] sm:$0xff] %v25884_v4 }
 0x1ec   :  { %30575 = vst [vmem:[#allocation72_spill] sm:$0xff] %v25879_v0 }
 0x1ee   :  { %20131 = vmatmul.mubr.msk.f32.gmra.mrb[122].mxu0 %vm192_vm0, %v25865_v1  ;;  %v25898_v1 = vld [vmem:[%s30245_s0 + $0x478] sm:$0xff] }
 0x1ef   :  { %20133 = vmatprep.mubr.msk.f32.mxu0 %vm192_vm0, %v25870_v60  ;;  %v25893_v60 = vld [vmem:[%s30245_s0 + $0x470] sm:$0xff]  ;;  %30578 = vst [vmem:[#allocation75_spill] sm:$0xff] %v25898_v1 }
 0x1f0   :  { %30577 = vst [vmem:[#allocation74_spill] sm:$0xff] %v25893_v60 }
 0x1f2   :  { %20134 = vmatmul.mubr.msk.f32.gmra.mrb[124].mxu0 %vm192_vm0, %v25879_v0  ;;  %v25912_v0 = vld [vmem:[%s30245_s0 + $0x488] sm:$0xff] }
 0x1f3   :  { %20136 = vmatprep.mubr.msk.f32.mxu0 %vm192_vm0, %v25884_v4  ;;  %v25907_v4 = vld [vmem:[%s30245_s0 + $0x480] sm:$0xff]  ;;  %30580 = vst [vmem:[#allocation77_spill] sm:$0xff] %v25912_v0 }
 0x1f4   :  { %30579 = vst [vmem:[#allocation76_spill] sm:$0xff] %v25907_v4 }
 0x1f6   :  { %20137 = vmatmul.mubr.msk.f32.gmra.mrb[126].mxu0 %vm192_vm0, %v25893_v60  ;;  %v25926_v60 = vld [vmem:[%s30245_s0 + $0x498] sm:$0xff] }
 0x1f7   :  { %20139 = vmatprep.mubr.msk.f32.mxu0 %vm192_vm0, %v25898_v1  ;;  %v25921_v1 = vld [vmem:[%s30245_s0 + $0x490] sm:$0xff]  ;;  %30582 = vst [vmem:[#allocation79_spill] sm:$0xff] %v25926_v60 }
 0x1f8   :  { %30581 = vst [vmem:[#allocation78_spill] sm:$0xff] %v25921_v1 }
 0x1fa   :  { %20140 = vmatmul.mubr.msk.f32.gmra.mrb[128].mxu0 %vm192_vm0, %v25907_v4  ;;  %v25940_v4 = vld [vmem:[%s30245_s0 + $0x4a8] sm:$0xff] }
 0x1fb   :  { %20142 = vmatprep.mubr.msk.f32.mxu0 %vm192_vm0, %v25912_v0  ;;  %v25935_v0 = vld [vmem:[%s30245_s0 + $0x4a0] sm:$0xff]  ;;  %30584 = vst [vmem:[#allocation81_spill] sm:$0xff] %v25940_v4 }
 0x1fc   :  { %30583 = vst [vmem:[#allocation80_spill] sm:$0xff] %v25935_v0 }
 0x1fe   :  { %20143 = vmatmul.mubr.msk.f32.gmra.mrb[130].mxu0 %vm192_vm0, %v25921_v1  ;;  %v25954_v1 = vld [vmem:[%s30245_s0 + $0x4b8] sm:$0xff] }
 0x1ff   :  { %20145 = vmatprep.mubr.msk.f32.mxu0 %vm192_vm0, %v25926_v60  ;;  %v25949_v60 = vld [vmem:[%s30245_s0 + $0x4b0] sm:$0xff]  ;;  %30586 = vst [vmem:[#allocation83_spill] sm:$0xff] %v25954_v1 }
 0x200   :  { %30585 = vst [vmem:[#allocation82_spill] sm:$0xff] %v25949_v60 }
 0x202   :  { %20146 = vmatmul.mubr.msk.f32.gmra.mrb[132].mxu0 %vm192_vm0, %v25935_v0  ;;  %v25968_v0 = vld [vmem:[%s30245_s0 + $0x4c8] sm:$0xff] }
 0x203   :  { %20148 = vmatprep.mubr.msk.f32.mxu0 %vm192_vm0, %v25940_v4  ;;  %v25963_v4 = vld [vmem:[%s30245_s0 + $0x4c0] sm:$0xff]  ;;  %30588 = vst [vmem:[#allocation85_spill] sm:$0xff] %v25968_v0 }
 0x204   :  { %30587 = vst [vmem:[#allocation84_spill] sm:$0xff] %v25963_v4 }
 0x206   :  { %20149 = vmatmul.mubr.msk.f32.gmra.mrb[134].mxu0 %vm192_vm0, %v25949_v60  ;;  %v25982_v60 = vld [vmem:[%s30245_s0 + $0x4d8] sm:$0xff] }
 0x207   :  { %20151 = vmatprep.mubr.msk.f32.mxu0 %vm192_vm0, %v25954_v1  ;;  %v25977_v1 = vld [vmem:[%s30245_s0 + $0x4d0] sm:$0xff]  ;;  %30589 = vst [vmem:[#allocation86_spill] sm:$0xff] %v25982_v60 }
 0x20a   :  { %20152 = vmatmul.mubr.msk.f32.gmra.mrb[136].mxu0 %vm192_vm0, %v25963_v4  ;;  %v25996_v4 = vld [vmem:[%s30245_s0 + $0x4e8] sm:$0xff] }
 0x20b   :  { %20154 = vmatprep.mubr.msk.f32.mxu0 %vm192_vm0, %v25968_v0  ;;  %v25991_v0 = vld [vmem:[%s30245_s0 + $0x4e0] sm:$0xff] }
 0x20e   :  { %20155 = vmatmul.mubr.msk.f32.gmra.mrb[138].mxu0 %vm192_vm0, %v25977_v1 }
 0x20f   :  { %20157 = vmatprep.mubr.msk.f32.mxu0 %vm192_vm0, %v25982_v60  ;;  %v26005_v60 = vld [vmem:[%s30245_s0 + $0x4f0] sm:$0xff] }
 0x212   :  { %20158 = vmatmul.mubr.msk.f32.gmra.mrb[140].mxu0 %vm192_vm0, %v25991_v0 }
 0x213   :  { %20160 = vmatprep.mubr.msk.f32.mxu0 %vm192_vm0, %v25996_v4 }
 0x216   :  { %20161 = vmatmul.mubr.msk.f32.gmra.mrb[142].mxu0 %vm192_vm0, %v26005_v60 }
 0x217   :  { %20165 = vmatprep.mubr.msk.f32.mxu0 %vm192_vm0, %v24782_v8  ;;  %v30590_v8 = vld [vmem:[#allocation12_spill] sm:$0xff] }
 0x21a   :  { %20166 = vmatmul.mubr.msk.f32.vlgmr.msra.gmra.mrb[0].mxu0 %vm192_vm0, %v24791_v9  ;;  %v30591_v9 = vld [vmem:[#allocation13_spill] sm:$0xff] }
 0x21b   :  { %20382 = vmatpush3.msra.mxu0 %v25717_v63  ;;  %20168 = vmatprep.mubr.msk.f32.mxu0 %vm192_vm0, %v24796_v10  ;;  %v30592_v10 = vld [vmem:[#allocation14_spill] sm:$0xff] }
 0x21c   :  { %v30645_v63 = vld [vmem:[#allocation62_spill] sm:$0xff] }
 0x21e   :  { %20169 = vmatmul.mubr.msk.f32.gmra.mrb[2].mxu0 %vm192_vm0, %v24805_v11  ;;  %v30593_v11 = vld [vmem:[#allocation15_spill] sm:$0xff] }
 0x21f   :  { %20171 = vmatprep.mubr.msk.f32.mxu0 %vm192_vm0, %v24810_v12  ;;  %v30594_v12 = vld [vmem:[#allocation16_spill] sm:$0xff] }
 0x222   :  { %20172 = vmatmul.mubr.msk.f32.gmra.mrb[4].mxu0 %vm192_vm0, %v24819_v13  ;;  %v30595_v13 = vld [vmem:[#allocation17_spill] sm:$0xff] }
 0x223   :  { %20174 = vmatprep.mubr.msk.f32.mxu0 %vm192_vm0, %v24824_v14  ;;  %v30596_v14 = vld [vmem:[#allocation18_spill] sm:$0xff] }
 0x226   :  { %20175 = vmatmul.mubr.msk.f32.gmra.mrb[6].mxu0 %vm192_vm0, %v24833_v15  ;;  %v30597_v15 = vld [vmem:[#allocation19_spill] sm:$0xff] }
 0x227   :  { %20177 = vmatprep.mubr.msk.f32.mxu0 %vm192_vm0, %v24838_v16  ;;  %v30598_v16 = vld [vmem:[#allocation20_spill] sm:$0xff] }
 0x22a   :  { %20178 = vmatmul.mubr.msk.f32.gmra.mrb[8].mxu0 %vm192_vm0, %v24847_v17  ;;  %v30599_v17 = vld [vmem:[#allocation21_spill] sm:$0xff] }
 0x22b   :  { %20180 = vmatprep.mubr.msk.f32.mxu0 %vm192_vm0, %v24852_v18  ;;  %v30600_v18 = vld [vmem:[#allocation22_spill] sm:$0xff] }
 0x22e   :  { %20181 = vmatmul.mubr.msk.f32.gmra.mrb[10].mxu0 %vm192_vm0, %v24861_v19  ;;  %v30601_v19 = vld [vmem:[#allocation23_spill] sm:$0xff] }
 0x22f   :  { %20183 = vmatprep.mubr.msk.f32.mxu0 %vm192_vm0, %v24866_v20  ;;  %v30602_v20 = vld [vmem:[#allocation24_spill] sm:$0xff] }
 0x232   :  { %20184 = vmatmul.mubr.msk.f32.gmra.mrb[12].mxu0 %vm192_vm0, %v24875_v21  ;;  %v30603_v21 = vld [vmem:[#allocation25_spill] sm:$0xff] }
 0x233   :  { %20186 = vmatprep.mubr.msk.f32.mxu0 %vm192_vm0, %v24880_v22  ;;  %v30604_v22 = vld [vmem:[#allocation26_spill] sm:$0xff] }
 0x236   :  { %20187 = vmatmul.mubr.msk.f32.gmra.mrb[14].mxu0 %vm192_vm0, %v24889_v23  ;;  %v30605_v23 = vld [vmem:[#allocation65_spill] sm:$0xff] }
 0x237   :  { %20189 = vmatprep.mubr.msk.f32.mxu0 %vm192_vm0, %v24894_v24  ;;  %v30606_v24 = vld [vmem:[#allocation66_spill] sm:$0xff] }
 0x23a   :  { %20190 = vmatmul.mubr.msk.f32.gmra.mrb[16].mxu0 %vm192_vm0, %v24903_v25  ;;  %v30607_v25 = vld [vmem:[#allocation67_spill] sm:$0xff] }
 0x23b   :  { %20192 = vmatprep.mubr.msk.f32.mxu0 %vm192_vm0, %v24908_v26  ;;  %v26151_v26 = vld [vmem:[%s30245_s0 + $0x258] sm:$0xff] }
 0x23e   :  { %20193 = vmatmul.mubr.msk.f32.gmra.mrb[18].mxu0 %vm192_vm0, %v24917_v27  ;;  %v26156_v27 = vld [vmem:[%s30245_s0 + $0x260] sm:$0xff] }
 0x23f   :  { %20195 = vmatprep.mubr.msk.f32.mxu0 %vm192_vm0, %v24922_v28  ;;  %v26165_v28 = vld [vmem:[%s30245_s0 + $0x268] sm:$0xff] }
 0x242   :  { %20196 = vmatmul.mubr.msk.f32.gmra.mrb[20].mxu0 %vm192_vm0, %v24931_v29  ;;  %v30608_v29 = vld [vmem:[#allocation30_spill] sm:$0xff] }
 0x243   :  { %20198 = vmatprep.mubr.msk.f32.mxu0 %vm192_vm0, %v24936_v30  ;;  %v30609_v30 = vld [vmem:[#allocation31_spill] sm:$0xff] }
 0x246   :  { %20199 = vmatmul.mubr.msk.f32.gmra.mrb[22].mxu0 %vm192_vm0, %v24945_v31  ;;  %v30610_v31 = vld [vmem:[#allocation32_spill] sm:$0xff] }
 0x247   :  { %20201 = vmatprep.mubr.msk.f32.mxu0 %vm192_vm0, %v24950_v32  ;;  %v30611_v32 = vld [vmem:[#allocation33_spill] sm:$0xff] }
 0x24a   :  { %20202 = vmatmul.mubr.msk.f32.gmra.mrb[24].mxu0 %vm192_vm0, %v24959_v33  ;;  %v30612_v33 = vld [vmem:[#allocation34_spill] sm:$0xff] }
 0x24b   :  { %20204 = vmatprep.mubr.msk.f32.mxu0 %vm192_vm0, %v24964_v34  ;;  %v30613_v34 = vld [vmem:[#allocation35_spill] sm:$0xff] }
 0x24e   :  { %20205 = vmatmul.mubr.msk.f32.gmra.mrb[26].mxu0 %vm192_vm0, %v24973_v35  ;;  %v30614_v35 = vld [vmem:[#allocation36_spill] sm:$0xff] }
 0x24f   :  { %20207 = vmatprep.mubr.msk.f32.mxu0 %vm192_vm0, %v24978_v36  ;;  %v30615_v36 = vld [vmem:[#allocation37_spill] sm:$0xff] }
 0x252   :  { %20208 = vmatmul.mubr.msk.f32.gmra.mrb[28].mxu0 %vm192_vm0, %v24987_v37  ;;  %v30616_v37 = vld [vmem:[#allocation38_spill] sm:$0xff] }
 0x253   :  { %20210 = vmatprep.mubr.msk.f32.mxu0 %vm192_vm0, %v24992_v38  ;;  %v30617_v38 = vld [vmem:[#allocation39_spill] sm:$0xff] }
 0x256   :  { %20211 = vmatmul.mubr.msk.f32.gmra.mrb[30].mxu0 %vm192_vm0, %v25001_v39  ;;  %v26192_v39 = vld [vmem:[%s30246_s1 + $0x20] sm:$0xff] }
 0x257   :  { %20213 = vmatprep.mubr.msk.f32.mxu0 %vm192_vm0, %v25006_v40  ;;  %v30618_v40 = vld [vmem:[#allocation40_spill] sm:$0xff]  ;;  %20599 = vmatprep.subr.mxu0 %v26192_v39 }
 0x25a   :  { %20214 = vmatmul.mubr.msk.f32.gmra.mrb[32].mxu0 %vm192_vm0, %v25015_v41  ;;  %v30619_v41 = vld [vmem:[#allocation41_spill] sm:$0xff] }
 0x25b   :  { %20216 = vmatprep.mubr.msk.f32.mxu0 %vm192_vm0, %v25020_v42  ;;  %v30620_v42 = vld [vmem:[#allocation42_spill] sm:$0xff] }
 0x25e   :  { %20217 = vmatmul.mubr.msk.f32.gmra.mrb[34].mxu0 %vm192_vm0, %v25029_v43  ;;  %v30621_v43 = vld [vmem:[#allocation43_spill] sm:$0xff] }
 0x25f   :  { %20219 = vmatprep.mubr.msk.f32.mxu0 %vm192_vm0, %v25034_v44  ;;  %v30622_v44 = vld [vmem:[#allocation44_spill] sm:$0xff] }
 0x262   :  { %20220 = vmatmul.mubr.msk.f32.gmra.mrb[36].mxu0 %vm192_vm0, %v25043_v45  ;;  %v30623_v45 = vld [vmem:[#allocation45_spill] sm:$0xff] }
 0x263   :  { %20222 = vmatprep.mubr.msk.f32.mxu0 %vm192_vm0, %v25048_v46  ;;  %v30624_v46 = vld [vmem:[#allocation46_spill] sm:$0xff] }
 0x266   :  { %20223 = vmatmul.mubr.msk.f32.gmra.mrb[38].mxu0 %vm192_vm0, %v25057_v47  ;;  %v30625_v47 = vld [vmem:[#allocation47_spill] sm:$0xff] }
 0x267   :  { %20225 = vmatprep.mubr.msk.f32.mxu0 %vm192_vm0, %v25062_v48  ;;  %v30626_v48 = vld [vmem:[#allocation48_spill] sm:$0xff] }
 0x26a   :  { %20226 = vmatmul.mubr.msk.f32.gmra.mrb[40].mxu0 %vm192_vm0, %v25071_v49  ;;  %v30627_v49 = vld [vmem:[#allocation49_spill] sm:$0xff] }
 0x26b   :  { %20228 = vmatprep.mubr.msk.f32.mxu0 %vm192_vm0, %v25076_v50  ;;  %v30628_v50 = vld [vmem:[#allocation50_spill] sm:$0xff] }
 0x26e   :  { %20229 = vmatmul.mubr.msk.f32.gmra.mrb[42].mxu0 %vm192_vm0, %v25085_v51  ;;  %v30629_v51 = vld [vmem:[#allocation51_spill] sm:$0xff] }
 0x26f   :  { %20231 = vmatprep.mubr.msk.f32.mxu0 %vm192_vm0, %v25090_v52  ;;  %v30630_v52 = vld [vmem:[#allocation52_spill] sm:$0xff] }
 0x272   :  { %20232 = vmatmul.mubr.msk.f32.gmra.mrb[44].mxu0 %vm192_vm0, %v25099_v53  ;;  %v30631_v53 = vld [vmem:[#allocation54_spill] sm:$0xff] }
 0x273   :  { %20234 = vmatprep.mubr.msk.f32.mxu0 %vm192_vm0, %v25104_v54  ;;  %v30632_v54 = vld [vmem:[#allocation59_spill] sm:$0xff] }
 0x276   :  { %20235 = vmatmul.mubr.msk.f32.gmra.mrb[46].mxu0 %vm192_vm0, %v25118_v56  ;;  %v30633_v56 = vld [vmem:[#allocation61_spill] sm:$0xff] }
 0x277   :  { %20237 = vmatprep.mubr.msk.f32.mxu0 %vm192_vm0, %v25124_v57  ;;  %v30634_v57 = vld [vmem:[#allocation63_spill] sm:$0xff] }
 0x27a   :  { %20238 = vmatmul.mubr.msk.f32.gmra.mrb[48].mxu0 %vm192_vm0, %v25133_v58  ;;  %v30635_v58 = vld [vmem:[#allocation64_spill] sm:$0xff] }
 0x27b   :  { %20240 = vmatprep.mubr.msk.f32.mxu0 %vm192_vm0, %v25138_v59  ;;  %v30636_v59 = vld [vmem:[#allocation27_spill] sm:$0xff] }
 0x27e   :  { %20241 = vmatmul.mubr.msk.f32.gmra.mrb[50].mxu0 %vm192_vm0, %v30590_v8  ;;  %v30646_v8 = vld [vmem:[#allocation68_spill] sm:$0xff] }
 0x27f   :  { %20243 = vmatprep.mubr.msk.f32.mxu0 %vm192_vm0, %v30591_v9  ;;  %v30647_v9 = vld [vmem:[#allocation69_spill] sm:$0xff] }
 0x282   :  { %20244 = vmatmul.mubr.msk.f32.gmra.mrb[52].mxu0 %vm192_vm0, %v30592_v10  ;;  %v30648_v10 = vld [vmem:[#allocation70_spill] sm:$0xff] }
 0x283   :  { %20246 = vmatprep.mubr.msk.f32.mxu0 %vm192_vm0, %v30593_v11  ;;  %v30649_v11 = vld [vmem:[#allocation71_spill] sm:$0xff] }
 0x286   :  { %20247 = vmatmul.mubr.msk.f32.gmra.mrb[54].mxu0 %vm192_vm0, %v30594_v12  ;;  %v30650_v12 = vld [vmem:[#allocation72_spill] sm:$0xff] }
 0x287   :  { %20249 = vmatprep.mubr.msk.f32.mxu0 %vm192_vm0, %v30595_v13  ;;  %v30651_v13 = vld [vmem:[#allocation73_spill] sm:$0xff] }
 0x28a   :  { %20250 = vmatmul.mubr.msk.f32.gmra.mrb[56].mxu0 %vm192_vm0, %v30596_v14  ;;  %v30652_v14 = vld [vmem:[#allocation74_spill] sm:$0xff] }
 0x28b   :  { %20252 = vmatprep.mubr.msk.f32.mxu0 %vm192_vm0, %v30597_v15  ;;  %v30653_v15 = vld [vmem:[#allocation75_spill] sm:$0xff] }
 0x28e   :  { %20253 = vmatmul.mubr.msk.f32.gmra.mrb[58].mxu0 %vm192_vm0, %v30598_v16  ;;  %v30654_v16 = vld [vmem:[#allocation76_spill] sm:$0xff] }
 0x28f   :  { %20255 = vmatprep.mubr.msk.f32.mxu0 %vm192_vm0, %v30599_v17  ;;  %v30655_v17 = vld [vmem:[#allocation77_spill] sm:$0xff] }
 0x292   :  { %20256 = vmatmul.mubr.msk.f32.gmra.mrb[60].mxu0 %vm192_vm0, %v30600_v18  ;;  %v30656_v18 = vld [vmem:[#allocation78_spill] sm:$0xff] }
 0x293   :  { %20258 = vmatprep.mubr.msk.f32.mxu0 %vm192_vm0, %v30601_v19  ;;  %v30657_v19 = vld [vmem:[#allocation79_spill] sm:$0xff] }
 0x296   :  { %20259 = vmatmul.mubr.msk.f32.gmra.mrb[62].mxu0 %vm192_vm0, %v30602_v20  ;;  %v30658_v20 = vld [vmem:[#allocation80_spill] sm:$0xff] }
 0x297   :  { %20261 = vmatprep.mubr.msk.f32.mxu0 %vm192_vm0, %v30603_v21  ;;  %v30659_v21 = vld [vmem:[#allocation81_spill] sm:$0xff] }
 0x29a   :  { %20262 = vmatmul.mubr.msk.f32.gmra.mrb[64].mxu0 %vm192_vm0, %v30604_v22  ;;  %v30660_v22 = vld [vmem:[#allocation82_spill] sm:$0xff] }
 0x29b   :  { %20264 = vmatprep.mubr.msk.f32.mxu0 %vm192_vm0, %v30605_v23  ;;  %v30661_v23 = vld [vmem:[#allocation83_spill] sm:$0xff] }
 0x29e   :  { %20265 = vmatmul.mubr.msk.f32.gmra.mrb[66].mxu0 %vm192_vm0, %v30606_v24  ;;  %v30662_v24 = vld [vmem:[#allocation84_spill] sm:$0xff] }
 0x29f   :  { %20267 = vmatprep.mubr.msk.f32.mxu0 %vm192_vm0, %v30607_v25  ;;  %v30663_v25 = vld [vmem:[#allocation85_spill] sm:$0xff] }
 0x2a2   :  { %20268 = vmatmul.mubr.msk.f32.gmra.mrb[68].mxu0 %vm192_vm0, %v26151_v26 }
 0x2a3   :  { %20270 = vmatprep.mubr.msk.f32.mxu0 %vm192_vm0, %v26156_v27 }
 0x2a6   :  { %20271 = vmatmul.mubr.msk.f32.gmra.mrb[70].mxu0 %vm192_vm0, %v26165_v28 }
 0x2a7   :  { %20273 = vmatprep.mubr.msk.f32.mxu0 %vm192_vm0, %v30608_v29  ;;  %v30664_v29 = vld [vmem:[#allocation86_spill] sm:$0xff] }
 0x2aa   :  { %20274 = vmatmul.mubr.msk.f32.gmra.mrb[72].mxu0 %vm192_vm0, %v30609_v30  ;;  %v26316_v30 = vld [vmem:[%s30245_s0 + $0x4f8] sm:$0xff] }
 0x2ab   :  { %20276 = vmatprep.mubr.msk.f32.mxu0 %vm192_vm0, %v30610_v31  ;;  %v17108_v31 = vld [vmem:[%s30245_s0 + $0x58] sm:$0xff] }
 0x2ae   :  { %20277 = vmatmul.mubr.msk.f32.gmra.mrb[74].mxu0 %vm192_vm0, %v30611_v32  ;;  %v26350_v32 = vld [vmem:[%s30245_s0 + $0x60] sm:$0xff] }
 0x2af   :  { %20279 = vmatprep.mubr.msk.f32.mxu0 %vm192_vm0, %v30612_v33  ;;  %v26355_v33 = vld [vmem:[%s30245_s0 + $0x68] sm:$0xff] }
 0x2b2   :  { %20280 = vmatmul.mubr.msk.f32.gmra.mrb[76].mxu0 %vm192_vm0, %v30613_v34  ;;  %v26364_v34 = vld [vmem:[%s30245_s0 + $0x70] sm:$0xff] }
 0x2b3   :  { %20282 = vmatprep.mubr.msk.f32.mxu0 %vm192_vm0, %v30614_v35  ;;  %v26369_v35 = vld [vmem:[%s30245_s0 + $0x78] sm:$0xff] }
 0x2b6   :  { %20283 = vmatmul.mubr.msk.f32.gmra.mrb[78].mxu0 %vm192_vm0, %v30615_v36  ;;  %v26378_v36 = vld [vmem:[%s30245_s0 + $0x80] sm:$0xff] }
 0x2b7   :  { %20285 = vmatprep.mubr.msk.f32.mxu0 %vm192_vm0, %v30616_v37  ;;  %v26383_v37 = vld [vmem:[%s30245_s0 + $0x88] sm:$0xff] }
 0x2ba   :  { %20286 = vmatmul.mubr.msk.f32.gmra.mrb[80].mxu0 %vm192_vm0, %v30617_v38  ;;  %v26392_v38 = vld [vmem:[%s30245_s0 + $0x90] sm:$0xff] }
 0x2bb   :  { %20288 = vmatprep.mubr.msk.f32.mxu0 %vm192_vm0, %v30618_v40  ;;  %v26406_v40 = vld [vmem:[%s30245_s0 + $0xa0] sm:$0xff] }
 0x2be   :  { %20289 = vmatmul.mubr.msk.f32.gmra.mrb[82].mxu0 %vm192_vm0, %v30619_v41  ;;  %v26411_v41 = vld [vmem:[%s30245_s0 + $0xa8] sm:$0xff] }
 0x2bf   :  { %20291 = vmatprep.mubr.msk.f32.mxu0 %vm192_vm0, %v30620_v42  ;;  %v26420_v42 = vld [vmem:[%s30245_s0 + $0xb0] sm:$0xff] }
 0x2c2   :  { %20292 = vmatmul.mubr.msk.f32.gmra.mrb[84].mxu0 %vm192_vm0, %v30621_v43  ;;  %v26425_v43 = vld [vmem:[%s30245_s0 + $0xb8] sm:$0xff] }
 0x2c3   :  { %20294 = vmatprep.mubr.msk.f32.mxu0 %vm192_vm0, %v30622_v44  ;;  %v26434_v44 = vld [vmem:[%s30245_s0 + $0xc0] sm:$0xff] }
 0x2c6   :  { %20295 = vmatmul.mubr.msk.f32.gmra.mrb[86].mxu0 %vm192_vm0, %v30623_v45  ;;  %v26439_v45 = vld [vmem:[%s30245_s0 + $0xc8] sm:$0xff] }
 0x2c7   :  { %20297 = vmatprep.mubr.msk.f32.mxu0 %vm192_vm0, %v30624_v46  ;;  %v26448_v46 = vld [vmem:[%s30245_s0 + $0xd0] sm:$0xff] }
 0x2ca   :  { %20298 = vmatmul.mubr.msk.f32.gmra.mrb[88].mxu0 %vm192_vm0, %v30625_v47  ;;  %v26453_v47 = vld [vmem:[%s30245_s0 + $0xd8] sm:$0xff] }
 0x2cb   :  { %20300 = vmatprep.mubr.msk.f32.mxu0 %vm192_vm0, %v30626_v48  ;;  %v26462_v48 = vld [vmem:[%s30245_s0 + $0xe0] sm:$0xff] }
 0x2ce   :  { %20301 = vmatmul.mubr.msk.f32.gmra.mrb[90].mxu0 %vm192_vm0, %v30627_v49  ;;  %v26467_v49 = vld [vmem:[%s30245_s0 + $0xe8] sm:$0xff] }
 0x2cf   :  { %20303 = vmatprep.mubr.msk.f32.mxu0 %vm192_vm0, %v30628_v50  ;;  %v26476_v50 = vld [vmem:[%s30245_s0 + $0xf0] sm:$0xff] }
 0x2d2   :  { %20304 = vmatmul.mubr.msk.f32.gmra.mrb[92].mxu0 %vm192_vm0, %v30629_v51  ;;  %v26481_v51 = vld [vmem:[%s30245_s0 + $0xf8] sm:$0xff] }
 0x2d3   :  { %20306 = vmatprep.mubr.msk.f32.mxu0 %vm192_vm0, %v30630_v52  ;;  %v26490_v52 = vld [vmem:[%s30245_s0 + $0x100] sm:$0xff] }
 0x2d6   :  { %20307 = vmatmul.mubr.msk.f32.gmra.mrb[94].mxu0 %vm192_vm0, %v30552_v7  ;;  %v30640_v7 = vld [vmem:[#allocation55_spill] sm:$0xff] }
 0x2d7   :  { %20309 = vmatprep.mubr.msk.f32.mxu0 %vm192_vm0, %v30631_v53  ;;  %v26495_v53 = vld [vmem:[%s30245_s0 + $0x108] sm:$0xff] }
 0x2da   :  { %20310 = vmatmul.mubr.msk.f32.gmra.mrb[96].mxu0 %vm192_vm0, %v30554_v2  ;;  %v30639_v2 = vld [vmem:[#allocation53_spill] sm:$0xff] }
 0x2db   :  { %20312 = vmatprep.mubr.msk.f32.mxu0 %vm192_vm0, %v30555_v6  ;;  %v30643_v6 = vld [vmem:[#allocation58_spill] sm:$0xff] }
 0x2de   :  { %20313 = vmatmul.mubr.msk.f32.gmra.mrb[98].mxu0 %vm192_vm0, %v30556_v5  ;;  %v30644_v5 = vld [vmem:[#allocation60_spill] sm:$0xff] }
 0x2df   :  { %20315 = vmatprep.mubr.msk.f32.mxu0 %vm192_vm0, %v30557_v61  ;;  %v30637_v61 = vld [vmem:[#allocation28_spill] sm:$0xff] }
 0x2e2   :  { %20316 = vmatmul.mubr.msk.f32.gmra.mrb[100].mxu0 %vm192_vm0, %v30632_v54  ;;  %v26504_v54 = vld [vmem:[%s30245_s0 + $0x110] sm:$0xff] }
 0x2e3   :  { %20318 = vmatprep.mubr.msk.f32.mxu0 %vm192_vm0, %v30559_v62  ;;  %v30638_v62 = vld [vmem:[#allocation29_spill] sm:$0xff] }
 0x2e6   :  { %20319 = vmatmul.mubr.msk.f32.gmra.mrb[102].mxu0 %vm192_vm0, %v30633_v56  ;;  %v26509_v56 = vld [vmem:[%s30245_s0 + $0x118] sm:$0xff] }
 0x2e7   :  { %20321 = vmatprep.mubr.msk.f32.mxu0 %vm192_vm0, %v30560_v55  ;;  %v30642_v55 = vld [vmem:[#allocation57_spill] sm:$0xff] }
 0x2ea   :  { %20322 = vmatmul.mubr.msk.f32.gmra.mrb[104].mxu0 %vm192_vm0, %v25516_v3  ;;  %v30641_v3 = vld [vmem:[#allocation56_spill] sm:$0xff] }
 0x2eb   :  { %20324 = vmatprep.mubr.msk.f32.mxu0 %vm192_vm0, %v30634_v57  ;;  %v26518_v57 = vld [vmem:[%s30245_s0 + $0x120] sm:$0xff] }
 0x2ee   :  { %20325 = vmatmul.mubr.msk.f32.gmra.mrb[106].mxu0 %vm192_vm0, %v30635_v58  ;;  %v26523_v58 = vld [vmem:[%s30245_s0 + $0x128] sm:$0xff] }
 0x2ef   :  { %20327 = vmatprep.mubr.msk.f32.mxu0 %vm192_vm0, %v30636_v59  ;;  %v26532_v59 = vld [vmem:[%s30245_s0 + $0x130] sm:$0xff] }
 0x2f0   :  { %30665 = vst [vmem:[#allocation12_spill] sm:$0xff] %v26532_v59 }
 0x2f2   :  { %20328 = vmatmul.mubr.msk.f32.gmra.mrb[108].mxu0 %vm192_vm0, %v30637_v61  ;;  %v26537_v61 = vld [vmem:[%s30245_s0 + $0x138] sm:$0xff] }
 0x2f3   :  { %20330 = vmatprep.mubr.msk.f32.mxu0 %vm192_vm0, %v30638_v62  ;;  %30666 = vst [vmem:[#allocation13_spill] sm:$0xff] %v26537_v61  ;;  %v26546_v62 = vld [vmem:[%s30245_s0 + $0x140] sm:$0xff] }
 0x2f4   :  { %30667 = vst [vmem:[#allocation14_spill] sm:$0xff] %v26546_v62 }
 0x2f6   :  { %20331 = vmatmul.mubr.msk.f32.gmra.mrb[110].mxu0 %vm192_vm0, %v30639_v2  ;;  %v26551_v2 = vld [vmem:[%s30245_s0 + $0x148] sm:$0xff] }
 0x2f7   :  { %20333 = vmatprep.mubr.msk.f32.mxu0 %vm192_vm0, %v30640_v7  ;;  %30668 = vst [vmem:[#allocation15_spill] sm:$0xff] %v26551_v2  ;;  %v26560_v7 = vld [vmem:[%s30245_s0 + $0x150] sm:$0xff] }
 0x2f8   :  { %30669 = vst [vmem:[#allocation16_spill] sm:$0xff] %v26560_v7 }
 0x2fa   :  { %20334 = vmatmul.mubr.msk.f32.gmra.mrb[112].mxu0 %vm192_vm0, %v30641_v3  ;;  %v26565_v3 = vld [vmem:[%s30245_s0 + $0x158] sm:$0xff] }
 0x2fb   :  { %20336 = vmatprep.mubr.msk.f32.mxu0 %vm192_vm0, %v30642_v55  ;;  %30670 = vst [vmem:[#allocation17_spill] sm:$0xff] %v26565_v3  ;;  %v26574_v55 = vld [vmem:[%s30245_s0 + $0x160] sm:$0xff] }
 0x2fc   :  { %30671 = vst [vmem:[#allocation18_spill] sm:$0xff] %v26574_v55 }
 0x2fe   :  { %20337 = vmatmul.mubr.msk.f32.gmra.mrb[114].mxu0 %vm192_vm0, %v30643_v6  ;;  %v26579_v6 = vld [vmem:[%s30245_s0 + $0x168] sm:$0xff] }
 0x2ff   :  { %20339 = vmatprep.mubr.msk.f32.mxu0 %vm192_vm0, %v30644_v5  ;;  %30672 = vst [vmem:[#allocation19_spill] sm:$0xff] %v26579_v6  ;;  %v26588_v5 = vld [vmem:[%s30245_s0 + $0x170] sm:$0xff] }
 0x300   :  { %30673 = vst [vmem:[#allocation20_spill] sm:$0xff] %v26588_v5 }
 0x302   :  { %20340 = vmatmul.mubr.msk.f32.gmra.mrb[116].mxu0 %vm192_vm0, %v30645_v63  ;;  %v26593_v63 = vld [vmem:[%s30245_s0 + $0x178] sm:$0xff] }
 0x303   :  { %20342 = vmatprep.mubr.msk.f32.mxu0 %vm192_vm0, %v30646_v8  ;;  %30674 = vst [vmem:[#allocation21_spill] sm:$0xff] %v26593_v63  ;;  %v26602_v8 = vld [vmem:[%s30245_s0 + $0x180] sm:$0xff] }
 0x304   :  { %30675 = vst [vmem:[#allocation22_spill] sm:$0xff] %v26602_v8 }
 0x306   :  { %20343 = vmatmul.mubr.msk.f32.gmra.mrb[118].mxu0 %vm192_vm0, %v30647_v9  ;;  %v26607_v9 = vld [vmem:[%s30245_s0 + $0x188] sm:$0xff] }
 0x307   :  { %20345 = vmatprep.mubr.msk.f32.mxu0 %vm192_vm0, %v30648_v10  ;;  %30676 = vst [vmem:[#allocation23_spill] sm:$0xff] %v26607_v9  ;;  %v26616_v10 = vld [vmem:[%s30245_s0 + $0x190] sm:$0xff] }
 0x308   :  { %30677 = vst [vmem:[#allocation24_spill] sm:$0xff] %v26616_v10 }
 0x30a   :  { %20346 = vmatmul.mubr.msk.f32.gmra.mrb[120].mxu0 %vm192_vm0, %v30649_v11  ;;  %v26621_v11 = vld [vmem:[%s30245_s0 + $0x3f0] sm:$0xff] }
 0x30b   :  { %20348 = vmatprep.mubr.msk.f32.mxu0 %vm192_vm0, %v30650_v12  ;;  %v26626_v12 = vld [vmem:[%s30245_s0 + $0x198] sm:$0xff]  ;;  %19900 = vmatprep.mubr.msk.f32.mxu1 %vm192_vm0, %v26621_v11 }
 0x30c   :  { %30678 = vst [vmem:[#allocation25_spill] sm:$0xff] %v26626_v12 }
 0x30e   :  { %20349 = vmatmul.mubr.msk.f32.gmra.mrb[122].mxu0 %vm192_vm0, %v30651_v13  ;;  %v26635_v13 = vld [vmem:[%s30245_s0 + $0x3f8] sm:$0xff] }
 0x30f   :  { %20351 = vmatprep.mubr.msk.f32.mxu0 %vm192_vm0, %v30652_v14  ;;  %v26642_v14 = vld [vmem:[%s30245_s0 + $0x1a0] sm:$0xff]  ;;  %19901 = vmatmul.mubr.msk.f32.vlgmr.msra.gmra.mrb[0].mxu1 %vm192_vm0, %v26635_v13 }
 0x310   :  { %30679 = vst [vmem:[#allocation26_spill] sm:$0xff] %v26642_v14 }
 0x312   :  { %20352 = vmatmul.mubr.msk.f32.gmra.mrb[124].mxu0 %vm192_vm0, %v30653_v15  ;;  %v26647_v15 = vld [vmem:[%s30245_s0 + $0x400] sm:$0xff] }
 0x313   :  { %20354 = vmatprep.mubr.msk.f32.mxu0 %vm192_vm0, %v30654_v16  ;;  %v26654_v16 = vld [vmem:[%s30245_s0 + $0x1a8] sm:$0xff]  ;;  %19903 = vmatprep.mubr.msk.f32.mxu1 %vm192_vm0, %v26647_v15 }
 0x314   :  { %30680 = vst [vmem:[#allocation65_spill] sm:$0xff] %v26654_v16 }
 0x316   :  { %20355 = vmatmul.mubr.msk.f32.gmra.mrb[126].mxu0 %vm192_vm0, %v30655_v17  ;;  %v26663_v17 = vld [vmem:[%s30245_s0 + $0x408] sm:$0xff] }
 0x317   :  { %20357 = vmatprep.mubr.msk.f32.mxu0 %vm192_vm0, %v30656_v18  ;;  %v26670_v18 = vld [vmem:[%s30245_s0 + $0x1b0] sm:$0xff]  ;;  %19904 = vmatmul.mubr.msk.f32.gmra.mrb[2].mxu1 %vm192_vm0, %v26663_v17 }
 0x318   :  { %30681 = vst [vmem:[#allocation66_spill] sm:$0xff] %v26670_v18 }
 0x31a   :  { %20358 = vmatmul.mubr.msk.f32.gmra.mrb[128].mxu0 %vm192_vm0, %v30657_v19  ;;  %v26675_v19 = vld [vmem:[%s30245_s0 + $0x410] sm:$0xff] }
 0x31b   :  { %20360 = vmatprep.mubr.msk.f32.mxu0 %vm192_vm0, %v30658_v20  ;;  %v26682_v20 = vld [vmem:[%s30245_s0 + $0x1b8] sm:$0xff]  ;;  %19906 = vmatprep.mubr.msk.f32.mxu1 %vm192_vm0, %v26675_v19 }
 0x31c   :  { %30682 = vst [vmem:[#allocation67_spill] sm:$0xff] %v26682_v20 }
 0x31e   :  { %20361 = vmatmul.mubr.msk.f32.gmra.mrb[130].mxu0 %vm192_vm0, %v30659_v21  ;;  %v26691_v21 = vld [vmem:[%s30245_s0 + $0x418] sm:$0xff] }
 0x31f   :  { %20363 = vmatprep.mubr.msk.f32.mxu0 %vm192_vm0, %v30660_v22  ;;  %v26698_v22 = vld [vmem:[%s30245_s0 + $0x1c0] sm:$0xff]  ;;  %19907 = vmatmul.mubr.msk.f32.gmra.mrb[4].mxu1 %vm192_vm0, %v26691_v21 }
 0x320   :  { %30683 = vst [vmem:[#allocation30_spill] sm:$0xff] %v26698_v22 }
 0x322   :  { %20364 = vmatmul.mubr.msk.f32.gmra.mrb[132].mxu0 %vm192_vm0, %v30661_v23  ;;  %v26703_v23 = vld [vmem:[%s30245_s0 + $0x420] sm:$0xff] }
 0x323   :  { %20366 = vmatprep.mubr.msk.f32.mxu0 %vm192_vm0, %v30662_v24  ;;  %v26710_v24 = vld [vmem:[%s30245_s0 + $0x1c8] sm:$0xff]  ;;  %19909 = vmatprep.mubr.msk.f32.mxu1 %vm192_vm0, %v26703_v23 }
 0x324   :  { %30684 = vst [vmem:[#allocation31_spill] sm:$0xff] %v26710_v24 }
 0x326   :  { %20367 = vmatmul.mubr.msk.f32.gmra.mrb[134].mxu0 %vm192_vm0, %v30663_v25  ;;  %v26719_v25 = vld [vmem:[%s30245_s0 + $0x428] sm:$0xff] }
 0x327   :  { %20369 = vmatprep.mubr.msk.f32.mxu0 %vm192_vm0, %v25977_v1  ;;  %v26321_v1 = vld [vmem:[%s30245_s0 + $0x500] sm:$0xff]  ;;  %19910 = vmatmul.mubr.msk.f32.gmra.mrb[6].mxu1 %vm192_vm0, %v26719_v25 }
 0x32a   :  { %20370 = vmatmul.mubr.msk.f32.gmra.mrb[136].mxu0 %vm192_vm0, %v30664_v29  ;;  %v26726_v29 = vld [vmem:[%s30245_s0 + $0x1d0] sm:$0xff] }
 0x32b   :  { %20372 = vmatprep.mubr.msk.f32.mxu0 %vm192_vm0, %v25991_v0  ;;  %v17106_v0 = vld [vmem:[%s30245_s0 + $0x48] sm:$0xff]  ;;  %30685 = vst [vmem:[#allocation32_spill] sm:$0xff] %v26726_v29 }
 0x32e   :  { %20373 = vmatmul.mubr.msk.f32.gmra.mrb[138].mxu0 %vm192_vm0, %v25996_v4  ;;  %v17107_v4 = vld [vmem:[%s30245_s0 + $0x50] sm:$0xff] }
 0x32f   :  { %20375 = vmatprep.mubr.msk.f32.mxu0 %vm192_vm0, %v26005_v60  ;;  %v26330_v60 = vld [vmem:[%s30245_s0 + $0x508] sm:$0xff] }
 0x332   :  { %20376 = vmatmul.mubr.msk.f32.gmra.mrb[140].mxu0 %vm192_vm0, %v26316_v30 }
 0x333   :  { %20378 = vmatprep.mubr.msk.f32.mxu0 %vm192_vm0, %v26321_v1 }
 0x336   :  { %20379 = vmatmul.mubr.msk.f32.gmra.mrb[142].mxu0 %vm192_vm0, %v26330_v60 }
 0x337   :  { %20383 = vmatprep.mubr.msk.f32.mxu0 %vm192_vm0, %v17106_v0  ;;  %v26731_v0 = vld [vmem:[%s30245_s0 + $0x430] sm:$0xff] }
 0x338   :  { %19912 = vmatprep.mubr.msk.f32.mxu1 %vm192_vm0, %v26731_v0 }
 0x33a   :  { %20384 = vmatmul.mubr.msk.f32.vlgmr.msra.gmra.mrb[0].mxu0 %vm192_vm0, %v17107_v4  ;;  %v26738_v4 = vld [vmem:[%s30245_s0 + $0x1d8] sm:$0xff] }
 0x33b   :  { %20600 = vmatpush3.msra.mxu0 %v26192_v39  ;;  %20386 = vmatprep.mubr.msk.f32.mxu0 %vm192_vm0, %v17108_v31  ;;  %v26397_v39 = vld [vmem:[%s30245_s0 + $0x98] sm:$0xff]  ;;  %30686 = vst [vmem:[#allocation33_spill] sm:$0xff] %v26738_v4 }
 0x33c   :  { %v26747_v31 = vld [vmem:[%s30245_s0 + $0x438] sm:$0xff] }
 0x33d   :  { %19913 = vmatmul.mubr.msk.f32.gmra.mrb[8].mxu1 %vm192_vm0, %v26747_v31 }
 0x33e   :  { %20387 = vmatmul.mubr.msk.f32.gmra.mrb[2].mxu0 %vm192_vm0, %v26350_v32 }
 0x33f   :  { %20389 = vmatprep.mubr.msk.f32.mxu0 %vm192_vm0, %v26355_v33 }
 0x342   :  { %20390 = vmatmul.mubr.msk.f32.gmra.mrb[4].mxu0 %vm192_vm0, %v26364_v34 }
 0x343   :  { %20392 = vmatprep.mubr.msk.f32.mxu0 %vm192_vm0, %v26369_v35 }
 0x346   :  { %20393 = vmatmul.mubr.msk.f32.gmra.mrb[6].mxu0 %vm192_vm0, %v26378_v36 }
 0x347   :  { %20395 = vmatprep.mubr.msk.f32.mxu0 %vm192_vm0, %v26383_v37 }
 0x34a   :  { %20396 = vmatmul.mubr.msk.f32.gmra.mrb[8].mxu0 %vm192_vm0, %v26392_v38 }
 0x34b   :  { %20398 = vmatprep.mubr.msk.f32.mxu0 %vm192_vm0, %v26397_v39 }
 0x34e   :  { %20399 = vmatmul.mubr.msk.f32.gmra.mrb[10].mxu0 %vm192_vm0, %v26406_v40 }
 0x34f   :  { %20401 = vmatprep.mubr.msk.f32.mxu0 %vm192_vm0, %v26411_v41 }
 0x352   :  { %20402 = vmatmul.mubr.msk.f32.gmra.mrb[12].mxu0 %vm192_vm0, %v26420_v42 }
 0x353   :  { %20404 = vmatprep.mubr.msk.f32.mxu0 %vm192_vm0, %v26425_v43 }
 0x356   :  { %20405 = vmatmul.mubr.msk.f32.gmra.mrb[14].mxu0 %vm192_vm0, %v26434_v44 }
 0x357   :  { %20407 = vmatprep.mubr.msk.f32.mxu0 %vm192_vm0, %v26439_v45 }
 0x35a   :  { %20408 = vmatmul.mubr.msk.f32.gmra.mrb[16].mxu0 %vm192_vm0, %v26448_v46 }
 0x35b   :  { %20410 = vmatprep.mubr.msk.f32.mxu0 %vm192_vm0, %v26453_v47 }
 0x35e   :  { %20411 = vmatmul.mubr.msk.f32.gmra.mrb[18].mxu0 %vm192_vm0, %v26462_v48 }
 0x35f   :  { %20413 = vmatprep.mubr.msk.f32.mxu0 %vm192_vm0, %v26467_v49 }
 0x362   :  { %20414 = vmatmul.mubr.msk.f32.gmra.mrb[20].mxu0 %vm192_vm0, %v26476_v50 }
 0x363   :  { %20416 = vmatprep.mubr.msk.f32.mxu0 %vm192_vm0, %v26481_v51 }
 0x366   :  { %20417 = vmatmul.mubr.msk.f32.gmra.mrb[22].mxu0 %vm192_vm0, %v26490_v52 }
 0x367   :  { %20419 = vmatprep.mubr.msk.f32.mxu0 %vm192_vm0, %v26495_v53 }
 0x36a   :  { %20420 = vmatmul.mubr.msk.f32.gmra.mrb[24].mxu0 %vm192_vm0, %v26504_v54 }
 0x36b   :  { %20422 = vmatprep.mubr.msk.f32.mxu0 %vm192_vm0, %v26509_v56 }
 0x36e   :  { %20423 = vmatmul.mubr.msk.f32.gmra.mrb[26].mxu0 %vm192_vm0, %v26518_v57 }
 0x36f   :  { %20425 = vmatprep.mubr.msk.f32.mxu0 %vm192_vm0, %v26523_v58 }
 0x372   :  { %20426 = vmatmul.mubr.msk.f32.gmra.mrb[28].mxu0 %vm192_vm0, %v26532_v59  ;;  %v27040_v59 = vld [vmem:[%s30245_s0 + $0x300] sm:$0xff] }
 0x373   :  { %20428 = vmatprep.mubr.msk.f32.mxu0 %vm192_vm0, %v26537_v61  ;;  %v17180_v61 = vld [vmem:[%s30245_s0 + $0x2f8] sm:$0xff]  ;;  %30707 = vst [vmem:[#allocation59_spill] sm:$0xff] %v27040_v59 }
 0x376   :  { %20429 = vmatmul.mubr.msk.f32.gmra.mrb[30].mxu0 %vm192_vm0, %v26546_v62  ;;  %v27019_v62 = vld [vmem:[%s30245_s0 + $0x280] sm:$0xff] }
 0x377   :  { %20431 = vmatprep.mubr.msk.f32.mxu0 %vm192_vm0, %v26551_v2  ;;  %v26996_v2 = vld [vmem:[%s30245_s0 + $0x4d0] sm:$0xff] }
 0x37a   :  { %20432 = vmatmul.mubr.msk.f32.gmra.mrb[32].mxu0 %vm192_vm0, %v26560_v7  ;;  %v26955_v7 = vld [vmem:[%s30245_s0 + $0x4b0] sm:$0xff] }
 0x37b   :  { %20434 = vmatprep.mubr.msk.f32.mxu0 %vm192_vm0, %v26565_v3  ;;  %v26950_v3 = vld [vmem:[%s30245_s0 + $0x250] sm:$0xff] }
 0x37c   :  { %30702 = vst [vmem:[#allocation49_spill] sm:$0xff] %v26950_v3 }
 0x37e   :  { %20435 = vmatmul.mubr.msk.f32.gmra.mrb[34].mxu0 %vm192_vm0, %v26574_v55  ;;  %v26927_v55 = vld [vmem:[%s30245_s0 + $0x4a0] sm:$0xff] }
 0x37f   :  { %20437 = vmatprep.mubr.msk.f32.mxu0 %vm192_vm0, %v26579_v6  ;;  %v26922_v6 = vld [vmem:[%s30245_s0 + $0x240] sm:$0xff] }
 0x380   :  { %30699 = vst [vmem:[#allocation46_spill] sm:$0xff] %v26922_v6 }
 0x382   :  { %20438 = vmatmul.mubr.msk.f32.gmra.mrb[36].mxu0 %vm192_vm0, %v26588_v5  ;;  %v26899_v5 = vld [vmem:[%s30245_s0 + $0x490] sm:$0xff] }
 0x383   :  { %20440 = vmatprep.mubr.msk.f32.mxu0 %vm192_vm0, %v26593_v63  ;;  %v26894_v63 = vld [vmem:[%s30245_s0 + $0x230] sm:$0xff] }
 0x384   :  { %30697 = vst [vmem:[#allocation44_spill] sm:$0xff] %v26894_v63 }
 0x386   :  { %20441 = vmatmul.mubr.msk.f32.gmra.mrb[38].mxu0 %vm192_vm0, %v26602_v8  ;;  %v26871_v8 = vld [vmem:[%s30245_s0 + $0x480] sm:$0xff] }
 0x387   :  { %20443 = vmatprep.mubr.msk.f32.mxu0 %vm192_vm0, %v26607_v9  ;;  %v26866_v9 = vld [vmem:[%s30245_s0 + $0x220] sm:$0xff] }
 0x388   :  { %30695 = vst [vmem:[#allocation42_spill] sm:$0xff] %v26866_v9 }
 0x38a   :  { %20444 = vmatmul.mubr.msk.f32.gmra.mrb[40].mxu0 %vm192_vm0, %v26616_v10  ;;  %v26843_v10 = vld [vmem:[%s30245_s0 + $0x470] sm:$0xff] }
 0x38b   :  { %20446 = vmatprep.mubr.msk.f32.mxu0 %vm192_vm0, %v26626_v12  ;;  %v26838_v12 = vld [vmem:[%s30245_s0 + $0x210] sm:$0xff] }
 0x38c   :  { %30693 = vst [vmem:[#allocation40_spill] sm:$0xff] %v26838_v12 }
 0x38e   :  { %20447 = vmatmul.mubr.msk.f32.gmra.mrb[42].mxu0 %vm192_vm0, %v26642_v14  ;;  %v26815_v14 = vld [vmem:[%s30245_s0 + $0x460] sm:$0xff] }
 0x38f   :  { %20449 = vmatprep.mubr.msk.f32.mxu0 %vm192_vm0, %v26654_v16  ;;  %v26810_v16 = vld [vmem:[%s30245_s0 + $0x200] sm:$0xff] }
 0x390   :  { %30691 = vst [vmem:[#allocation38_spill] sm:$0xff] %v26810_v16 }
 0x392   :  { %20450 = vmatmul.mubr.msk.f32.gmra.mrb[44].mxu0 %vm192_vm0, %v26670_v18  ;;  %v26787_v18 = vld [vmem:[%s30245_s0 + $0x450] sm:$0xff] }
 0x393   :  { %20452 = vmatprep.mubr.msk.f32.mxu0 %vm192_vm0, %v26682_v20  ;;  %v26782_v20 = vld [vmem:[%s30245_s0 + $0x1f0] sm:$0xff] }
 0x394   :  { %30689 = vst [vmem:[#allocation36_spill] sm:$0xff] %v26782_v20 }
 0x396   :  { %20453 = vmatmul.mubr.msk.f32.gmra.mrb[46].mxu0 %vm192_vm0, %v26698_v22  ;;  %v26759_v22 = vld [vmem:[%s30245_s0 + $0x440] sm:$0xff] }
 0x397   :  { %20455 = vmatprep.mubr.msk.f32.mxu0 %vm192_vm0, %v26710_v24  ;;  %v26754_v24 = vld [vmem:[%s30245_s0 + $0x1e0] sm:$0xff]  ;;  %19915 = vmatprep.mubr.msk.f32.mxu1 %vm192_vm0, %v26759_v22 }
 0x398   :  { %30687 = vst [vmem:[#allocation34_spill] sm:$0xff] %v26754_v24 }
 0x39a   :  { %20456 = vmatmul.mubr.msk.f32.gmra.mrb[48].mxu0 %vm192_vm0, %v26726_v29  ;;  %v26766_v29 = vld [vmem:[%s30245_s0 + $0x1e8] sm:$0xff] }
 0x39b   :  { %20458 = vmatprep.mubr.msk.f32.mxu0 %vm192_vm0, %v26738_v4  ;;  %30688 = vst [vmem:[#allocation35_spill] sm:$0xff] %v26766_v29  ;;  %v26775_v4 = vld [vmem:[%s30245_s0 + $0x448] sm:$0xff] }
 0x39c   :  { %19916 = vmatmul.mubr.msk.f32.gmra.mrb[10].mxu1 %vm192_vm0, %v26775_v4 }
 0x39d   :  { %19918 = vmatprep.mubr.msk.f32.mxu1 %vm192_vm0, %v26787_v18 }
 0x39e   :  { %20459 = vmatmul.mubr.msk.f32.gmra.mrb[50].mxu0 %vm192_vm0, %v26754_v24  ;;  %v26794_v24 = vld [vmem:[%s30245_s0 + $0x1f8] sm:$0xff] }
 0x39f   :  { %20461 = vmatprep.mubr.msk.f32.mxu0 %vm192_vm0, %v26766_v29  ;;  %30690 = vst [vmem:[#allocation37_spill] sm:$0xff] %v26794_v24  ;;  %v26803_v29 = vld [vmem:[%s30245_s0 + $0x458] sm:$0xff] }
 0x3a0   :  { %19919 = vmatmul.mubr.msk.f32.gmra.mrb[12].mxu1 %vm192_vm0, %v26803_v29 }
 0x3a1   :  { %19921 = vmatprep.mubr.msk.f32.mxu1 %vm192_vm0, %v26815_v14 }
 0x3a2   :  { %20462 = vmatmul.mubr.msk.f32.gmra.mrb[52].mxu0 %vm192_vm0, %v26782_v20  ;;  %v26822_v20 = vld [vmem:[%s30245_s0 + $0x208] sm:$0xff] }
 0x3a3   :  { %20464 = vmatprep.mubr.msk.f32.mxu0 %vm192_vm0, %v26794_v24  ;;  %30692 = vst [vmem:[#allocation39_spill] sm:$0xff] %v26822_v20  ;;  %v26831_v24 = vld [vmem:[%s30245_s0 + $0x468] sm:$0xff] }
 0x3a4   :  { %19922 = vmatmul.mubr.msk.f32.gmra.mrb[14].mxu1 %vm192_vm0, %v26831_v24 }
 0x3a5   :  { %19924 = vmatprep.mubr.msk.f32.mxu1 %vm192_vm0, %v26843_v10 }
 0x3a6   :  { %20465 = vmatmul.mubr.msk.f32.gmra.mrb[54].mxu0 %vm192_vm0, %v26810_v16  ;;  %v26850_v16 = vld [vmem:[%s30245_s0 + $0x218] sm:$0xff] }
 0x3a7   :  { %20467 = vmatprep.mubr.msk.f32.mxu0 %vm192_vm0, %v26822_v20  ;;  %30694 = vst [vmem:[#allocation41_spill] sm:$0xff] %v26850_v16  ;;  %v26859_v20 = vld [vmem:[%s30245_s0 + $0x478] sm:$0xff] }
 0x3a8   :  { %19925 = vmatmul.mubr.msk.f32.gmra.mrb[16].mxu1 %vm192_vm0, %v26859_v20 }
 0x3a9   :  { %19927 = vmatprep.mubr.msk.f32.mxu1 %vm192_vm0, %v26871_v8 }
 0x3aa   :  { %20468 = vmatmul.mubr.msk.f32.gmra.mrb[56].mxu0 %vm192_vm0, %v26838_v12  ;;  %v26878_v12 = vld [vmem:[%s30245_s0 + $0x228] sm:$0xff] }
 0x3ab   :  { %20470 = vmatprep.mubr.msk.f32.mxu0 %vm192_vm0, %v26850_v16  ;;  %30696 = vst [vmem:[#allocation43_spill] sm:$0xff] %v26878_v12  ;;  %v26887_v16 = vld [vmem:[%s30245_s0 + $0x488] sm:$0xff] }
 0x3ac   :  { %19928 = vmatmul.mubr.msk.f32.gmra.mrb[18].mxu1 %vm192_vm0, %v26887_v16 }
 0x3ad   :  { %19930 = vmatprep.mubr.msk.f32.mxu1 %vm192_vm0, %v26899_v5 }
 0x3ae   :  { %20471 = vmatmul.mubr.msk.f32.gmra.mrb[58].mxu0 %vm192_vm0, %v26866_v9  ;;  %v26906_v9 = vld [vmem:[%s30245_s0 + $0x238] sm:$0xff] }
 0x3af   :  { %20473 = vmatprep.mubr.msk.f32.mxu0 %vm192_vm0, %v26878_v12  ;;  %30698 = vst [vmem:[#allocation45_spill] sm:$0xff] %v26906_v9  ;;  %v26915_v12 = vld [vmem:[%s30245_s0 + $0x498] sm:$0xff] }
 0x3b0   :  { %19931 = vmatmul.mubr.msk.f32.gmra.mrb[20].mxu1 %vm192_vm0, %v26915_v12 }
 0x3b1   :  { %19933 = vmatprep.mubr.msk.f32.mxu1 %vm192_vm0, %v26927_v55 }
 0x3b2   :  { %20474 = vmatmul.mubr.msk.f32.gmra.mrb[60].mxu0 %vm192_vm0, %v26894_v63  ;;  %v26934_v63 = vld [vmem:[%s30245_s0 + $0x248] sm:$0xff] }
 0x3b3   :  { %20476 = vmatprep.mubr.msk.f32.mxu0 %vm192_vm0, %v26906_v9  ;;  %30700 = vst [vmem:[#allocation47_spill] sm:$0xff] %v26934_v63  ;;  %v26943_v9 = vld [vmem:[%s30245_s0 + $0x4a8] sm:$0xff] }
 0x3b4   :  { %30701 = vst [vmem:[#allocation48_spill] sm:$0xff] %v26943_v9  ;;  %19934 = vmatmul.mubr.msk.f32.gmra.mrb[22].mxu1 %vm192_vm0, %v26943_v9 }
 0x3b5   :  { %19936 = vmatprep.mubr.msk.f32.mxu1 %vm192_vm0, %v26955_v7 }
 0x3b6   :  { %20477 = vmatmul.mubr.msk.f32.gmra.mrb[62].mxu0 %vm192_vm0, %v26922_v6  ;;  %v26973_v6 = vld [vmem:[%s30245_s0 + $0x4c0] sm:$0xff] }
 0x3b7   :  { %20479 = vmatprep.mubr.msk.f32.mxu0 %vm192_vm0, %v26934_v63  ;;  %v26966_v63 = vld [vmem:[%s30245_s0 + $0x4b8] sm:$0xff] }
 0x3b8   :  { %30703 = vst [vmem:[#allocation50_spill] sm:$0xff] %v26966_v63  ;;  %19937 = vmatmul.mubr.msk.f32.gmra.mrb[24].mxu1 %vm192_vm0, %v26966_v63 }
 0x3b9   :  { %19939 = vmatprep.mubr.msk.f32.mxu1 %vm192_vm0, %v26973_v6 }
 0x3ba   :  { %20480 = vmatmul.mubr.msk.f32.gmra.mrb[64].mxu0 %vm192_vm0, %v26950_v3  ;;  %v26984_v3 = vld [vmem:[%s30245_s0 + $0x4c8] sm:$0xff] }
 0x3bb   :  { %20482 = vmatprep.mubr.msk.f32.mxu0 %vm192_vm0, %v26151_v26  ;;  %30704 = vst [vmem:[#allocation51_spill] sm:$0xff] %v26984_v3  ;;  %v26991_v26 = vld [vmem:[%s30245_s0 + $0x270] sm:$0xff] }
 0x3bc   :  { %30705 = vst [vmem:[#allocation52_spill] sm:$0xff] %v26991_v26  ;;  %19940 = vmatmul.mubr.msk.f32.gmra.mrb[26].mxu1 %vm192_vm0, %v26984_v3 }
 0x3bd   :  { %19942 = vmatprep.mubr.msk.f32.mxu1 %vm192_vm0, %v26996_v2 }
 0x3be   :  { %20483 = vmatmul.mubr.msk.f32.gmra.mrb[66].mxu0 %vm192_vm0, %v26156_v27  ;;  %v27003_v27 = vld [vmem:[%s30245_s0 + $0x278] sm:$0xff] }
 0x3bf   :  { %20485 = vmatprep.mubr.msk.f32.mxu0 %vm192_vm0, %v26165_v28  ;;  %30706 = vst [vmem:[#allocation54_spill] sm:$0xff] %v27003_v27  ;;  %v27012_v28 = vld [vmem:[%s30245_s0 + $0x4d8] sm:$0xff] }
 0x3c0   :  { %19943 = vmatmul.mubr.msk.f32.gmra.mrb[28].mxu1 %vm192_vm0, %v27012_v28 }
 0x3c2   :  { %20486 = vmatmul.mubr.msk.f32.gmra.mrb[68].mxu0 %vm192_vm0, %v26991_v26  ;;  %v17178_v26 = vld [vmem:[%s30245_s0 + $0x2e8] sm:$0xff] }
 0x3c3   :  { %20488 = vmatprep.mubr.msk.f32.mxu0 %vm192_vm0, %v27003_v27  ;;  %v17179_v27 = vld [vmem:[%s30245_s0 + $0x2f0] sm:$0xff] }
 0x3c6   :  { %20489 = vmatmul.mubr.msk.f32.gmra.mrb[70].mxu0 %vm192_vm0, %v27019_v62 }
 0x3c7   :  { %20491 = vmatprep.mubr.msk.f32.mxu0 %vm192_vm0, %v17178_v26  ;;  %v27045_v26 = vld [vmem:[%s30245_s0 + $0x308] sm:$0xff] }
 0x3c8   :  { %30708 = vst [vmem:[#allocation61_spill] sm:$0xff] %v27045_v26 }
 0x3ca   :  { %20492 = vmatmul.mubr.msk.f32.gmra.mrb[72].mxu0 %vm192_vm0, %v17179_v27  ;;  %v27059_v27 = vld [vmem:[%s30245_s0 + $0x318] sm:$0xff] }
 0x3cb   :  { %20494 = vmatprep.mubr.msk.f32.mxu0 %vm192_vm0, %v17180_v61  ;;  %v27054_v61 = vld [vmem:[%s30245_s0 + $0x310] sm:$0xff]  ;;  %30710 = vst [vmem:[#allocation64_spill] sm:$0xff] %v27059_v27 }
 0x3cc   :  { %30709 = vst [vmem:[#allocation63_spill] sm:$0xff] %v27054_v61 }
 0x3ce   :  { %20495 = vmatmul.mubr.msk.f32.gmra.mrb[74].mxu0 %vm192_vm0, %v27040_v59  ;;  %v27073_v59 = vld [vmem:[%s30245_s0 + $0x328] sm:$0xff] }
 0x3cf   :  { %20497 = vmatprep.mubr.msk.f32.mxu0 %vm192_vm0, %v27045_v26  ;;  %v27068_v26 = vld [vmem:[%s30245_s0 + $0x320] sm:$0xff]  ;;  %30712 = vst [vmem:[#allocation28_spill] sm:$0xff] %v27073_v59 }
 0x3d0   :  { %30711 = vst [vmem:[#allocation27_spill] sm:$0xff] %v27068_v26 }
 0x3d2   :  { %20498 = vmatmul.mubr.msk.f32.gmra.mrb[76].mxu0 %vm192_vm0, %v27054_v61  ;;  %v27087_v61 = vld [vmem:[%s30245_s0 + $0x338] sm:$0xff] }
 0x3d3   :  { %20500 = vmatprep.mubr.msk.f32.mxu0 %vm192_vm0, %v27059_v27  ;;  %v27082_v27 = vld [vmem:[%s30245_s0 + $0x330] sm:$0xff]  ;;  %30714 = vst [vmem:[#allocation53_spill] sm:$0xff] %v27087_v61 }
 0x3d4   :  { %30713 = vst [vmem:[#allocation29_spill] sm:$0xff] %v27082_v27 }
 0x3d6   :  { %20501 = vmatmul.mubr.msk.f32.gmra.mrb[78].mxu0 %vm192_vm0, %v27068_v26  ;;  %v27101_v26 = vld [vmem:[%s30245_s0 + $0x348] sm:$0xff] }
 0x3d7   :  { %20503 = vmatprep.mubr.msk.f32.mxu0 %vm192_vm0, %v27073_v59  ;;  %v27096_v59 = vld [vmem:[%s30245_s0 + $0x340] sm:$0xff]  ;;  %30716 = vst [vmem:[#allocation56_spill] sm:$0xff] %v27101_v26 }
 0x3d8   :  { %30715 = vst [vmem:[#allocation55_spill] sm:$0xff] %v27096_v59 }
 0x3da   :  { %20504 = vmatmul.mubr.msk.f32.gmra.mrb[80].mxu0 %vm192_vm0, %v27082_v27  ;;  %v27115_v27 = vld [vmem:[%s30245_s0 + $0x358] sm:$0xff] }
 0x3db   :  { %20506 = vmatprep.mubr.msk.f32.mxu0 %vm192_vm0, %v27087_v61  ;;  %v27110_v61 = vld [vmem:[%s30245_s0 + $0x350] sm:$0xff]  ;;  %30718 = vst [vmem:[#allocation58_spill] sm:$0xff] %v27115_v27 }
 0x3dc   :  { %30717 = vst [vmem:[#allocation57_spill] sm:$0xff] %v27110_v61 }
 0x3de   :  { %20507 = vmatmul.mubr.msk.f32.gmra.mrb[82].mxu0 %vm192_vm0, %v27096_v59  ;;  %v27129_v59 = vld [vmem:[%s30245_s0 + $0x368] sm:$0xff] }
 0x3df   :  { %20509 = vmatprep.mubr.msk.f32.mxu0 %vm192_vm0, %v27101_v26  ;;  %v27124_v26 = vld [vmem:[%s30245_s0 + $0x360] sm:$0xff]  ;;  %30720 = vst [vmem:[#allocation62_spill] sm:$0xff] %v27129_v59 }
 0x3e0   :  { %30719 = vst [vmem:[#allocation60_spill] sm:$0xff] %v27124_v26 }
 0x3e2   :  { %20510 = vmatmul.mubr.msk.f32.gmra.mrb[84].mxu0 %vm192_vm0, %v27110_v61  ;;  %v27143_v61 = vld [vmem:[%s30245_s0 + $0x378] sm:$0xff] }
 0x3e3   :  { %20512 = vmatprep.mubr.msk.f32.mxu0 %vm192_vm0, %v27115_v27  ;;  %v27138_v27 = vld [vmem:[%s30245_s0 + $0x370] sm:$0xff]  ;;  %30722 = vst [vmem:[#allocation69_spill] sm:$0xff] %v27143_v61 }
 0x3e4   :  { %30721 = vst [vmem:[#allocation68_spill] sm:$0xff] %v27138_v27 }
 0x3e6   :  { %20513 = vmatmul.mubr.msk.f32.gmra.mrb[86].mxu0 %vm192_vm0, %v27124_v26  ;;  %v27157_v26 = vld [vmem:[%s30245_s0 + $0x388] sm:$0xff] }
 0x3e7   :  { %20515 = vmatprep.mubr.msk.f32.mxu0 %vm192_vm0, %v27129_v59  ;;  %v27152_v59 = vld [vmem:[%s30245_s0 + $0x380] sm:$0xff]  ;;  %30724 = vst [vmem:[#allocation71_spill] sm:$0xff] %v27157_v26 }
 0x3e8   :  { %30723 = vst [vmem:[#allocation70_spill] sm:$0xff] %v27152_v59 }
 0x3ea   :  { %20516 = vmatmul.mubr.msk.f32.gmra.mrb[88].mxu0 %vm192_vm0, %v27138_v27  ;;  %v27171_v27 = vld [vmem:[%s30245_s0 + $0x398] sm:$0xff] }
 0x3eb   :  { %20518 = vmatprep.mubr.msk.f32.mxu0 %vm192_vm0, %v27143_v61  ;;  %v27166_v61 = vld [vmem:[%s30245_s0 + $0x390] sm:$0xff]  ;;  %30726 = vst [vmem:[#allocation73_spill] sm:$0xff] %v27171_v27 }
 0x3ec   :  { %30725 = vst [vmem:[#allocation72_spill] sm:$0xff] %v27166_v61 }
 0x3ee   :  { %20519 = vmatmul.mubr.msk.f32.gmra.mrb[90].mxu0 %vm192_vm0, %v27152_v59  ;;  %v27185_v59 = vld [vmem:[%s30245_s0 + $0x3a8] sm:$0xff] }
 0x3ef   :  { %20521 = vmatprep.mubr.msk.f32.mxu0 %vm192_vm0, %v27157_v26  ;;  %v27180_v26 = vld [vmem:[%s30245_s0 + $0x3a0] sm:$0xff]  ;;  %30728 = vst [vmem:[#allocation75_spill] sm:$0xff] %v27185_v59 }
 0x3f0   :  { %30727 = vst [vmem:[#allocation74_spill] sm:$0xff] %v27180_v26 }
 0x3f2   :  { %20522 = vmatmul.mubr.msk.f32.gmra.mrb[92].mxu0 %vm192_vm0, %v27166_v61  ;;  %v27199_v61 = vld [vmem:[%s30245_s0 + $0x3b8] sm:$0xff] }
 0x3f3   :  { %20524 = vmatprep.mubr.msk.f32.mxu0 %vm192_vm0, %v27171_v27  ;;  %v27194_v27 = vld [vmem:[%s30245_s0 + $0x3b0] sm:$0xff]  ;;  %30730 = vst [vmem:[#allocation77_spill] sm:$0xff] %v27199_v61 }
 0x3f4   :  { %30729 = vst [vmem:[#allocation76_spill] sm:$0xff] %v27194_v27 }
 0x3f6   :  { %20525 = vmatmul.mubr.msk.f32.gmra.mrb[94].mxu0 %vm192_vm0, %v27180_v26  ;;  %v27213_v26 = vld [vmem:[%s30245_s0 + $0x3c8] sm:$0xff] }
 0x3f7   :  { %20527 = vmatprep.mubr.msk.f32.mxu0 %vm192_vm0, %v27185_v59  ;;  %v27208_v59 = vld [vmem:[%s30245_s0 + $0x3c0] sm:$0xff]  ;;  %30732 = vst [vmem:[#allocation79_spill] sm:$0xff] %v27213_v26 }
 0x3f8   :  { %30731 = vst [vmem:[#allocation78_spill] sm:$0xff] %v27208_v59 }
 0x3fa   :  { %20528 = vmatmul.mubr.msk.f32.gmra.mrb[96].mxu0 %vm192_vm0, %v27194_v27  ;;  %v27227_v27 = vld [vmem:[%s30245_s0 + $0x3d8] sm:$0xff] }
 0x3fb   :  { %20530 = vmatprep.mubr.msk.f32.mxu0 %vm192_vm0, %v27199_v61  ;;  %v27222_v61 = vld [vmem:[%s30245_s0 + $0x3d0] sm:$0xff] }
 0x3fe   :  { %20531 = vmatmul.mubr.msk.f32.gmra.mrb[98].mxu0 %vm192_vm0, %v27208_v59  ;;  %v27241_v59 = vld [vmem:[%s30245_s0 + $0x3e8] sm:$0xff] }
 0x3ff   :  { %20533 = vmatprep.mubr.msk.f32.mxu0 %vm192_vm0, %v27213_v26  ;;  %v27236_v26 = vld [vmem:[%s30245_s0 + $0x3e0] sm:$0xff] }
 0x402   :  { %20534 = vmatmul.mubr.msk.f32.gmra.mrb[100].mxu0 %vm192_vm0, %v27222_v61 }
 0x403   :  { %20536 = vmatprep.mubr.msk.f32.mxu0 %vm192_vm0, %v27227_v27 }
 0x406   :  { %20537 = vmatmul.mubr.msk.f32.gmra.mrb[102].mxu0 %vm192_vm0, %v27236_v26 }
 0x407   :  { %20539 = vmatprep.mubr.msk.f32.mxu0 %vm192_vm0, %v27241_v59 }
 0x40a   :  { %20540 = vmatmul.mubr.msk.f32.gmra.mrb[104].mxu0 %vm192_vm0, %v26621_v11 }
 0x40b   :  { %20542 = vmatprep.mubr.msk.f32.mxu0 %vm192_vm0, %v26635_v13 }
 0x40e   :  { %20543 = vmatmul.mubr.msk.f32.gmra.mrb[106].mxu0 %vm192_vm0, %v26647_v15 }
 0x40f   :  { %20545 = vmatprep.mubr.msk.f32.mxu0 %vm192_vm0, %v26663_v17 }
 0x412   :  { %20546 = vmatmul.mubr.msk.f32.gmra.mrb[108].mxu0 %vm192_vm0, %v26675_v19 }
 0x413   :  { %20548 = vmatprep.mubr.msk.f32.mxu0 %vm192_vm0, %v26691_v21 }
 0x416   :  { %20549 = vmatmul.mubr.msk.f32.gmra.mrb[110].mxu0 %vm192_vm0, %v26703_v23 }
 0x417   :  { %20551 = vmatprep.mubr.msk.f32.mxu0 %vm192_vm0, %v26719_v25 }
 0x41a   :  { %20552 = vmatmul.mubr.msk.f32.gmra.mrb[112].mxu0 %vm192_vm0, %v26731_v0 }
 0x41b   :  { %20554 = vmatprep.mubr.msk.f32.mxu0 %vm192_vm0, %v26747_v31 }
 0x41e   :  { %20555 = vmatmul.mubr.msk.f32.gmra.mrb[114].mxu0 %vm192_vm0, %v26759_v22 }
 0x41f   :  { %20557 = vmatprep.mubr.msk.f32.mxu0 %vm192_vm0, %v26775_v4 }
 0x422   :  { %20558 = vmatmul.mubr.msk.f32.gmra.mrb[116].mxu0 %vm192_vm0, %v26787_v18 }
 0x423   :  { %20560 = vmatprep.mubr.msk.f32.mxu0 %vm192_vm0, %v26803_v29 }
 0x426   :  { %20561 = vmatmul.mubr.msk.f32.gmra.mrb[118].mxu0 %vm192_vm0, %v26815_v14 }
 0x427   :  { %20563 = vmatprep.mubr.msk.f32.mxu0 %vm192_vm0, %v26831_v24 }
 0x42a   :  { %20564 = vmatmul.mubr.msk.f32.gmra.mrb[120].mxu0 %vm192_vm0, %v26843_v10 }
 0x42b   :  { %20566 = vmatprep.mubr.msk.f32.mxu0 %vm192_vm0, %v26859_v20 }
 0x42e   :  { %20567 = vmatmul.mubr.msk.f32.gmra.mrb[122].mxu0 %vm192_vm0, %v26871_v8 }
 0x42f   :  { %20569 = vmatprep.mubr.msk.f32.mxu0 %vm192_vm0, %v26887_v16 }
 0x432   :  { %20570 = vmatmul.mubr.msk.f32.gmra.mrb[124].mxu0 %vm192_vm0, %v26899_v5 }
 0x433   :  { %20572 = vmatprep.mubr.msk.f32.mxu0 %vm192_vm0, %v26915_v12 }
 0x436   :  { %20573 = vmatmul.mubr.msk.f32.gmra.mrb[126].mxu0 %vm192_vm0, %v26927_v55 }
 0x437   :  { %20575 = vmatprep.mubr.msk.f32.mxu0 %vm192_vm0, %v26943_v9  ;;  %v17241_v9 = vld [vmem:[%s30245_s0 + $0x4e0] sm:$0xff] }
 0x43a   :  { %20576 = vmatmul.mubr.msk.f32.gmra.mrb[128].mxu0 %vm192_vm0, %v26955_v7 }
 0x43b   :  { %20578 = vmatprep.mubr.msk.f32.mxu0 %vm192_vm0, %v26966_v63  ;;  %v17242_v63 = vld [vmem:[%s30245_s0 + $0x4e8] sm:$0xff] }
 0x43e   :  { %20579 = vmatmul.mubr.msk.f32.gmra.mrb[130].mxu0 %vm192_vm0, %v26973_v6 }
 0x43f   :  { %20581 = vmatprep.mubr.msk.f32.mxu0 %vm192_vm0, %v26984_v3  ;;  %v17243_v3 = vld [vmem:[%s30245_s0 + $0x4f0] sm:$0xff] }
 0x442   :  { %20582 = vmatmul.mubr.msk.f32.gmra.mrb[132].mxu0 %vm192_vm0, %v26996_v2  ;;  %v17247_v2 = vld [vmem:[%s30245_s0 + $0x510] sm:$0xff] }
 0x443   :  { %20584 = vmatprep.mubr.msk.f32.mxu0 %vm192_vm0, %v27012_v28  ;;  %v30758_v28 = vld [vmem:[#allocation37_spill] sm:$0xff] }
 0x446   :  { %20585 = vmatmul.mubr.msk.f32.gmra.mrb[134].mxu0 %vm192_vm0, %v17241_v9  ;;  %v9517_v9 = vld [vmem:[#allocation6 + $0x98] sm:$0xff] }
 0x447   :  { %20587 = vmatprep.mubr.msk.f32.mxu0 %vm192_vm0, %v17242_v63  ;;  %v17248_v63 = vld [vmem:[%s30245_s0 + $0x518] sm:$0xff] }
 0x44a   :  { %20588 = vmatmul.mubr.msk.f32.gmra.mrb[136].mxu0 %vm192_vm0, %v17243_v3  ;;  %v9516_v3 = vld [vmem:[#allocation6 + $0x90] sm:$0xff] }
 0x44b   :  { %20590 = vmatprep.mubr.msk.f32.mxu0 %vm192_vm0, %v26316_v30  ;;  %v17249_v30 = vld [vmem:[%s30245_s0 + $0x520] sm:$0xff] }
 0x44e   :  { %20591 = vmatmul.mubr.msk.f32.gmra.mrb[138].mxu0 %vm192_vm0, %v26321_v1  ;;  %v30733_v1 = vld [vmem:[#allocation12_spill] sm:$0xff] }
 0x44f   :  { %20593 = vmatprep.mubr.msk.f32.mxu0 %vm192_vm0, %v26330_v60  ;;  %v30734_v60 = vld [vmem:[#allocation13_spill] sm:$0xff] }
 0x452   :  { %20594 = vmatmul.mubr.msk.f32.gmra.mrb[140].mxu0 %vm192_vm0, %v17247_v2  ;;  %v22221_v2 = vpack.c.bf16 %v9517_v9, %v9516_v3  ;;  %v17460_v3 = vld [vmem:[%s30245_s0 + $0x268] sm:$0xff] }
 0x453   :  { %20596 = vmatprep.mubr.msk.f32.mxu0 %vm192_vm0, %v17248_v63  ;;  %v30759_v63 = vld [vmem:[#allocation38_spill] sm:$0xff] }
 0x456   :  { %20597 = vmatmul.mubr.msk.f32.gmra.mrb[142].mxu0 %vm192_vm0, %v17249_v30  ;;  %v9518_v30 = vld [vmem:[#allocation6 + $0xa0] sm:$0xff] }
 0x457   :  { %20601 = vmatprep.mubr.msk.f32.mxu0 %vm192_vm0, %v26350_v32  ;;  %v30735_v32 = vld [vmem:[#allocation14_spill] sm:$0xff] }
 0x45a   :  { %20602 = vmatmul.mubr.msk.f32.vlgmr.msra.gmra.mrb[0].mxu0 %vm192_vm0, %v26355_v33  ;;  %v30736_v33 = vld [vmem:[#allocation15_spill] sm:$0xff] }
 0x45b   :  { %20604 = vmatprep.mubr.msk.f32.mxu0 %vm192_vm0, %v26364_v34  ;;  %v30737_v34 = vld [vmem:[#allocation16_spill] sm:$0xff] }
 0x45e   :  { %20605 = vmatmul.mubr.msk.f32.gmra.mrb[2].mxu0 %vm192_vm0, %v26369_v35  ;;  %v30738_v35 = vld [vmem:[#allocation17_spill] sm:$0xff] }
 0x45f   :  { %20607 = vmatprep.mubr.msk.f32.mxu0 %vm192_vm0, %v26378_v36  ;;  %v30739_v36 = vld [vmem:[#allocation18_spill] sm:$0xff] }
 0x462   :  { %20608 = vmatmul.mubr.msk.f32.gmra.mrb[4].mxu0 %vm192_vm0, %v26383_v37  ;;  %v30740_v37 = vld [vmem:[#allocation19_spill] sm:$0xff] }
 0x463   :  { %20610 = vmatprep.mubr.msk.f32.mxu0 %vm192_vm0, %v26392_v38  ;;  %v30741_v38 = vld [vmem:[#allocation20_spill] sm:$0xff] }
 0x466   :  { %20611 = vmatmul.mubr.msk.f32.gmra.mrb[6].mxu0 %vm192_vm0, %v26397_v39  ;;  %v30742_v39 = vld [vmem:[#allocation21_spill] sm:$0xff] }
 0x467   :  { %20613 = vmatprep.mubr.msk.f32.mxu0 %vm192_vm0, %v26406_v40  ;;  %v30743_v40 = vld [vmem:[#allocation22_spill] sm:$0xff] }
 0x46a   :  { %20614 = vmatmul.mubr.msk.f32.gmra.mrb[8].mxu0 %vm192_vm0, %v26411_v41  ;;  %v30744_v41 = vld [vmem:[#allocation23_spill] sm:$0xff] }
 0x46b   :  { %20616 = vmatprep.mubr.msk.f32.mxu0 %vm192_vm0, %v26420_v42  ;;  %v30745_v42 = vld [vmem:[#allocation24_spill] sm:$0xff] }
 0x46e   :  { %20617 = vmatmul.mubr.msk.f32.gmra.mrb[10].mxu0 %vm192_vm0, %v26425_v43  ;;  %v30746_v43 = vld [vmem:[#allocation25_spill] sm:$0xff] }
 0x46f   :  { %20619 = vmatprep.mubr.msk.f32.mxu0 %vm192_vm0, %v26434_v44  ;;  %v30747_v44 = vld [vmem:[#allocation26_spill] sm:$0xff] }
 0x472   :  { %20620 = vmatmul.mubr.msk.f32.gmra.mrb[12].mxu0 %vm192_vm0, %v26439_v45  ;;  %v30748_v45 = vld [vmem:[#allocation65_spill] sm:$0xff] }
 0x473   :  { %20622 = vmatprep.mubr.msk.f32.mxu0 %vm192_vm0, %v26448_v46  ;;  %v30749_v46 = vld [vmem:[#allocation66_spill] sm:$0xff] }
 0x476   :  { %20623 = vmatmul.mubr.msk.f32.gmra.mrb[14].mxu0 %vm192_vm0, %v26453_v47  ;;  %v30750_v47 = vld [vmem:[#allocation67_spill] sm:$0xff] }
 0x477   :  { %20625 = vmatprep.mubr.msk.f32.mxu0 %vm192_vm0, %v26462_v48  ;;  %v30751_v48 = vld [vmem:[#allocation30_spill] sm:$0xff] }
 0x47a   :  { %20626 = vmatmul.mubr.msk.f32.gmra.mrb[16].mxu0 %vm192_vm0, %v26467_v49  ;;  %v30752_v49 = vld [vmem:[#allocation31_spill] sm:$0xff] }
 0x47b   :  { %20628 = vmatprep.mubr.msk.f32.mxu0 %vm192_vm0, %v26476_v50  ;;  %v30753_v50 = vld [vmem:[#allocation32_spill] sm:$0xff] }
 0x47e   :  { %20629 = vmatmul.mubr.msk.f32.gmra.mrb[18].mxu0 %vm192_vm0, %v26481_v51  ;;  %v30754_v51 = vld [vmem:[#allocation33_spill] sm:$0xff] }
 0x47f   :  { %20631 = vmatprep.mubr.msk.f32.mxu0 %vm192_vm0, %v26490_v52  ;;  %v30755_v52 = vld [vmem:[#allocation34_spill] sm:$0xff] }
 0x482   :  { %20632 = vmatmul.mubr.msk.f32.gmra.mrb[20].mxu0 %vm192_vm0, %v26495_v53  ;;  %v9514_v53 = vld [vmem:[#allocation6 + $0x80] sm:$0xff] }
 0x483   :  { %20634 = vmatprep.mubr.msk.f32.mxu0 %vm192_vm0, %v26504_v54  ;;  %v9515_v54 = vld [vmem:[#allocation6 + $0x88] sm:$0xff] }
 0x486   :  { %20635 = vmatmul.mubr.msk.f32.gmra.mrb[22].mxu0 %vm192_vm0, %v26509_v56  ;;  %v30756_v56 = vld [vmem:[#allocation35_spill] sm:$0xff] }
 0x487   :  { %20637 = vmatprep.mubr.msk.f32.mxu0 %vm192_vm0, %v26518_v57  ;;  %v22217_v57 = vpack.c.bf16 %v9515_v54, %v9514_v53  ;;  %v17458_v53 = vld [vmem:[%s30245_s0 + $0x258] sm:$0xff] }
 0x489   :  { %22218 = vmatprep.subr.bf16.mxu1 %v22217_v57 }
 0x48a   :  { %20638 = vmatmul.mubr.msk.f32.gmra.mrb[24].mxu0 %vm192_vm0, %v26523_v58  ;;  %v30757_v58 = vld [vmem:[#allocation36_spill] sm:$0xff]  ;;  %22220 = vmatpush3.bf16.msra.mxu1 %v22217_v57  ;;  %v9528_v57 = vld [vmem:[#allocation6 + $0xf0] sm:$0xff] }
 0x48b   :  { %20640 = vmatprep.mubr.msk.f32.mxu0 %vm192_vm0, %v30733_v1  ;;  %22222 = vmatprep.subr.bf16.mxu1 %v22221_v2  ;;  %v9519_v1 = vld [vmem:[#allocation6 + $0xa8] sm:$0xff] }
 0x48e   :  { %20641 = vmatmul.mubr.msk.f32.gmra.mrb[26].mxu0 %vm192_vm0, %v30734_v60  ;;  %22224 = vmatpush3.bf16.msra.mxu1 %v22221_v2  ;;  %v30760_v60 = vld [vmem:[#allocation39_spill] sm:$0xff]  ;;  %v30771_v2 = vld [vmem:[#allocation54_spill] sm:$0xff] }
 0x48f   :  { %20643 = vmatprep.mubr.msk.f32.mxu0 %vm192_vm0, %v30735_v32  ;;  %v22225_v32 = vpack.c.bf16 %v9519_v1, %v9518_v30  ;;  %v17465_v30 = vld [vmem:[%s30245_s0 + $0x290] sm:$0xff]  ;;  %v17466_v1 = vld [vmem:[%s30245_s0 + $0x298] sm:$0xff] }
 0x491   :  { %22226 = vmatprep.subr.bf16.mxu1 %v22225_v32 }
 0x492   :  { %20644 = vmatmul.mubr.msk.f32.gmra.mrb[28].mxu0 %vm192_vm0, %v30736_v33  ;;  %v30761_v33 = vld [vmem:[#allocation40_spill] sm:$0xff]  ;;  %22228 = vmatpush3.bf16.msra.mxu1 %v22225_v32  ;;  %v30774_v32 = vld [vmem:[#allocation63_spill] sm:$0xff] }
 0x493   :  { %20646 = vmatprep.mubr.msk.f32.mxu0 %vm192_vm0, %v30737_v34  ;;  %v9520_v34 = vld [vmem:[#allocation6 + $0xb0] sm:$0xff] }
 0x496   :  { %20647 = vmatmul.mubr.msk.f32.gmra.mrb[30].mxu0 %vm192_vm0, %v30738_v35  ;;  %v9521_v35 = vld [vmem:[#allocation6 + $0xb8] sm:$0xff] }
 0x497   :  { %20649 = vmatprep.mubr.msk.f32.mxu0 %vm192_vm0, %v30739_v36  ;;  %v30762_v36 = vld [vmem:[#allocation41_spill] sm:$0xff] }
 0x49a   :  { %20650 = vmatmul.mubr.msk.f32.gmra.mrb[32].mxu0 %vm192_vm0, %v30740_v37  ;;  %v22229_v37 = vpack.c.bf16 %v9521_v35, %v9520_v34  ;;  %v30776_v34 = vld [vmem:[#allocation27_spill] sm:$0xff]  ;;  %v30777_v35 = vld [vmem:[#allocation28_spill] sm:$0xff] }
 0x49b   :  { %20652 = vmatprep.mubr.msk.f32.mxu0 %vm192_vm0, %v30741_v38  ;;  %v30763_v38 = vld [vmem:[#allocation42_spill] sm:$0xff] }
 0x49c   :  { %22230 = vmatprep.subr.bf16.mxu1 %v22229_v37 }
 0x49d   :  { %22232 = vmatpush3.bf16.msra.mxu1 %v22229_v37  ;;  %v30779_v37 = vld [vmem:[#allocation53_spill] sm:$0xff] }
 0x49e   :  { %20653 = vmatmul.mubr.msk.f32.gmra.mrb[34].mxu0 %vm192_vm0, %v30742_v39  ;;  %v9522_v39 = vld [vmem:[#allocation6 + $0xc0] sm:$0xff] }
 0x49f   :  { %20655 = vmatprep.mubr.msk.f32.mxu0 %vm192_vm0, %v30743_v40  ;;  %v9523_v40 = vld [vmem:[#allocation6 + $0xc8] sm:$0xff] }
 0x4a2   :  { %20656 = vmatmul.mubr.msk.f32.gmra.mrb[36].mxu0 %vm192_vm0, %v30744_v41  ;;  %v30764_v41 = vld [vmem:[#allocation43_spill] sm:$0xff] }
 0x4a3   :  { %20658 = vmatprep.mubr.msk.f32.mxu0 %vm192_vm0, %v30745_v42  ;;  %v22233_v42 = vpack.c.bf16 %v9523_v40, %v9522_v39  ;;  %v30781_v39 = vld [vmem:[#allocation56_spill] sm:$0xff]  ;;  %v30782_v40 = vld [vmem:[#allocation57_spill] sm:$0xff] }
 0x4a5   :  { %22234 = vmatprep.subr.bf16.mxu1 %v22233_v42 }
 0x4a6   :  { %20659 = vmatmul.mubr.msk.f32.gmra.mrb[38].mxu0 %vm192_vm0, %v30746_v43  ;;  %v30765_v43 = vld [vmem:[#allocation44_spill] sm:$0xff]  ;;  %22236 = vmatpush3.bf16.msra.mxu1 %v22233_v42 }
 0x4a7   :  { %20661 = vmatprep.mubr.msk.f32.mxu0 %vm192_vm0, %v30747_v44  ;;  %v9524_v44 = vld [vmem:[#allocation6 + $0xd0] sm:$0xff]  ;;  %v30784_v42 = vld [vmem:[#allocation60_spill] sm:$0xff] }
 0x4aa   :  { %20662 = vmatmul.mubr.msk.f32.gmra.mrb[40].mxu0 %vm192_vm0, %v30748_v45  ;;  %v9525_v45 = vld [vmem:[#allocation6 + $0xd8] sm:$0xff] }
 0x4ab   :  { %20664 = vmatprep.mubr.msk.f32.mxu0 %vm192_vm0, %v30749_v46  ;;  %v30766_v46 = vld [vmem:[#allocation45_spill] sm:$0xff] }
 0x4ae   :  { %20665 = vmatmul.mubr.msk.f32.gmra.mrb[42].mxu0 %vm192_vm0, %v30750_v47  ;;  %v22237_v47 = vpack.c.bf16 %v9525_v45, %v9524_v44  ;;  %v30786_v44 = vld [vmem:[#allocation68_spill] sm:$0xff]  ;;  %v30787_v45 = vld [vmem:[#allocation69_spill] sm:$0xff] }
 0x4af   :  { %20667 = vmatprep.mubr.msk.f32.mxu0 %vm192_vm0, %v30751_v48  ;;  %v30767_v48 = vld [vmem:[#allocation46_spill] sm:$0xff] }
 0x4b0   :  { %22238 = vmatprep.subr.bf16.mxu1 %v22237_v47 }
 0x4b1   :  { %22240 = vmatpush3.bf16.msra.mxu1 %v22237_v47  ;;  %v30789_v47 = vld [vmem:[#allocation71_spill] sm:$0xff] }
 0x4b2   :  { %20668 = vmatmul.mubr.msk.f32.gmra.mrb[44].mxu0 %vm192_vm0, %v30752_v49  ;;  %v30768_v49 = vld [vmem:[#allocation47_spill] sm:$0xff] }
 0x4b3   :  { %20670 = vmatprep.mubr.msk.f32.mxu0 %vm192_vm0, %v30753_v50  ;;  %v9526_v50 = vld [vmem:[#allocation6 + $0xe0] sm:$0xff] }
 0x4b6   :  { %20671 = vmatmul.mubr.msk.f32.gmra.mrb[46].mxu0 %vm192_vm0, %v30754_v51  ;;  %v9527_v51 = vld [vmem:[#allocation6 + $0xe8] sm:$0xff] }
 0x4b7   :  { %20673 = vmatprep.mubr.msk.f32.mxu0 %vm192_vm0, %v30755_v52  ;;  %v30769_v52 = vld [vmem:[#allocation49_spill] sm:$0xff]  ;;  %v22241_v54 = vpack.c.bf16 %v9527_v51, %v9526_v50  ;;  %v30792_v50 = vld [vmem:[#allocation74_spill] sm:$0xff]  ;;  %v30793_v51 = vld [vmem:[#allocation75_spill] sm:$0xff] }
 0x4b9   :  { %22242 = vmatprep.subr.bf16.mxu1 %v22241_v54 }
 0x4ba   :  { %20674 = vmatmul.mubr.msk.f32.gmra.mrb[48].mxu0 %vm192_vm0, %v30756_v56  ;;  %v17459_v56 = vld [vmem:[%s30245_s0 + $0x260] sm:$0xff]  ;;  %22244 = vmatpush3.bf16.msra.mxu1 %v22241_v54  ;;  %v30796_v54 = vld [vmem:[#allocation78_spill] sm:$0xff] }
 0x4bb   :  { %20676 = vmatprep.mubr.msk.f32.mxu0 %vm192_vm0, %v30757_v58  ;;  %v9529_v58 = vld [vmem:[#allocation6 + $0xf8] sm:$0xff] }
 0x4bc   :  { %v22245_v9 = vpack.c.bf16 %v9529_v58, %v9528_v57 }
 0x4be   :  { %20677 = vmatmul.mubr.msk.f32.gmra.mrb[50].mxu0 %vm192_vm0, %v30758_v28  ;;  %22246 = vmatprep.subr.bf16.mxu1 %v22245_v9  ;;  %v30770_v28 = vld [vmem:[#allocation52_spill] sm:$0xff] }
 0x4bf   :  { %20679 = vmatprep.mubr.msk.f32.mxu0 %vm192_vm0, %v30759_v63  ;;  %22248 = vmatpush3.bf16.msra.mxu1 %v22245_v9  ;;  %v17464_v63 = vld [vmem:[%s30245_s0 + $0x288] sm:$0xff] }
 0x4c2   :  { %20680 = vmatmul.mubr.msk.f32.gmra.mrb[52].mxu0 %vm192_vm0, %v30760_v60  ;;  %v30772_v60 = vld [vmem:[#allocation59_spill] sm:$0xff] }
 0x4c3   :  { %20682 = vmatprep.mubr.msk.f32.mxu0 %vm192_vm0, %v30761_v33  ;;  %v30775_v33 = vld [vmem:[#allocation64_spill] sm:$0xff] }
 0x4c6   :  { %20683 = vmatmul.mubr.msk.f32.gmra.mrb[54].mxu0 %vm192_vm0, %v30762_v36  ;;  %v30778_v36 = vld [vmem:[#allocation29_spill] sm:$0xff] }
 0x4c7   :  { %20685 = vmatprep.mubr.msk.f32.mxu0 %vm192_vm0, %v30763_v38  ;;  %v30780_v38 = vld [vmem:[#allocation55_spill] sm:$0xff] }
 0x4ca   :  { %20686 = vmatmul.mubr.msk.f32.gmra.mrb[56].mxu0 %vm192_vm0, %v30764_v41  ;;  %v30783_v41 = vld [vmem:[#allocation58_spill] sm:$0xff] }
 0x4cb   :  { %20688 = vmatprep.mubr.msk.f32.mxu0 %vm192_vm0, %v30765_v43  ;;  %v30785_v43 = vld [vmem:[#allocation62_spill] sm:$0xff] }
 0x4ce   :  { %20689 = vmatmul.mubr.msk.f32.gmra.mrb[58].mxu0 %vm192_vm0, %v30766_v46  ;;  %v30788_v46 = vld [vmem:[#allocation70_spill] sm:$0xff] }
 0x4cf   :  { %20691 = vmatprep.mubr.msk.f32.mxu0 %vm192_vm0, %v30767_v48  ;;  %v30790_v48 = vld [vmem:[#allocation72_spill] sm:$0xff] }
 0x4d2   :  { %20692 = vmatmul.mubr.msk.f32.gmra.mrb[60].mxu0 %vm192_vm0, %v30768_v49  ;;  %v30791_v49 = vld [vmem:[#allocation73_spill] sm:$0xff] }
 0x4d3   :  { %20694 = vmatprep.mubr.msk.f32.mxu0 %vm192_vm0, %v30769_v52  ;;  %v30794_v52 = vld [vmem:[#allocation76_spill] sm:$0xff] }
 0x4d6   :  { %20695 = vmatmul.mubr.msk.f32.gmra.mrb[62].mxu0 %vm192_vm0, %v17458_v53  ;;  %v30795_v53 = vld [vmem:[#allocation77_spill] sm:$0xff] }
 0x4d7   :  { %20697 = vmatprep.mubr.msk.f32.mxu0 %vm192_vm0, %v17459_v56  ;;  %v30797_v56 = vld [vmem:[#allocation79_spill] sm:$0xff] }
 0x4da   :  { %20698 = vmatmul.mubr.msk.f32.gmra.mrb[64].mxu0 %vm192_vm0, %v17460_v3 }
 0x4db   :  { %20700 = vmatprep.mubr.msk.f32.mxu0 %vm192_vm0, %v30770_v28 }
 0x4de   :  { %20701 = vmatmul.mubr.msk.f32.gmra.mrb[66].mxu0 %vm192_vm0, %v30771_v2 }
 0x4df   :  { %20703 = vmatprep.mubr.msk.f32.mxu0 %vm192_vm0, %v27019_v62  ;;  %v30773_v62 = vld [vmem:[#allocation61_spill] sm:$0xff] }
 0x4e2   :  { %20704 = vmatmul.mubr.msk.f32.gmra.mrb[68].mxu0 %vm192_vm0, %v17464_v63 }
 0x4e3   :  { %20706 = vmatprep.mubr.msk.f32.mxu0 %vm192_vm0, %v17465_v30 }
 0x4e6   :  { %20707 = vmatmul.mubr.msk.f32.gmra.mrb[70].mxu0 %vm192_vm0, %v17466_v1  ;;  %v27588_v1 = vld [vmem:[%s30247_s2] ss:$0 sm:$0xff] }
 0x4e7   :  { %20709 = vmatprep.mubr.msk.f32.mxu0 %vm192_vm0, %v30772_v60 }
 0x4ea   :  { %20710 = vmatmul.mubr.msk.f32.gmra.mrb[72].mxu0 %vm192_vm0, %v30773_v62 }
 0x4eb   :  { %20712 = vmatprep.mubr.msk.f32.mxu0 %vm192_vm0, %v30774_v32 }
 0x4ee   :  { %20713 = vmatmul.mubr.msk.f32.gmra.mrb[74].mxu0 %vm192_vm0, %v30775_v33 }
 0x4ef   :  { %20715 = vmatprep.mubr.msk.f32.mxu0 %vm192_vm0, %v30776_v34 }
 0x4f2   :  { %20716 = vmatmul.mubr.msk.f32.gmra.mrb[76].mxu0 %vm192_vm0, %v30777_v35 }
 0x4f3   :  { %20718 = vmatprep.mubr.msk.f32.mxu0 %vm192_vm0, %v30778_v36 }
 0x4f6   :  { %20719 = vmatmul.mubr.msk.f32.gmra.mrb[78].mxu0 %vm192_vm0, %v30779_v37 }
 0x4f7   :  { %20721 = vmatprep.mubr.msk.f32.mxu0 %vm192_vm0, %v30780_v38 }
 0x4fa   :  { %20722 = vmatmul.mubr.msk.f32.gmra.mrb[80].mxu0 %vm192_vm0, %v30781_v39 }
 0x4fb   :  { %20724 = vmatprep.mubr.msk.f32.mxu0 %vm192_vm0, %v30782_v40 }
 0x4fe   :  { %20725 = vmatmul.mubr.msk.f32.gmra.mrb[82].mxu0 %vm192_vm0, %v30783_v41 }
 0x4ff   :  { %20727 = vmatprep.mubr.msk.f32.mxu0 %vm192_vm0, %v30784_v42 }
 0x502   :  { %20728 = vmatmul.mubr.msk.f32.gmra.mrb[84].mxu0 %vm192_vm0, %v30785_v43 }
 0x503   :  { %20730 = vmatprep.mubr.msk.f32.mxu0 %vm192_vm0, %v30786_v44 }
 0x506   :  { %20731 = vmatmul.mubr.msk.f32.gmra.mrb[86].mxu0 %vm192_vm0, %v30787_v45 }
 0x507   :  { %20733 = vmatprep.mubr.msk.f32.mxu0 %vm192_vm0, %v30788_v46 }
 0x50a   :  { %20734 = vmatmul.mubr.msk.f32.gmra.mrb[88].mxu0 %vm192_vm0, %v30789_v47 }
 0x50b   :  { %20736 = vmatprep.mubr.msk.f32.mxu0 %vm192_vm0, %v30790_v48 }
 0x50e   :  { %20737 = vmatmul.mubr.msk.f32.gmra.mrb[90].mxu0 %vm192_vm0, %v30791_v49 }
 0x50f   :  { %20739 = vmatprep.mubr.msk.f32.mxu0 %vm192_vm0, %v30792_v50 }
 0x512   :  { %20740 = vmatmul.mubr.msk.f32.gmra.mrb[92].mxu0 %vm192_vm0, %v30793_v51 }
 0x513   :  { %20742 = vmatprep.mubr.msk.f32.mxu0 %vm192_vm0, %v30794_v52 }
 0x516   :  { %20743 = vmatmul.mubr.msk.f32.gmra.mrb[94].mxu0 %vm192_vm0, %v30795_v53 }
 0x517   :  { %20745 = vmatprep.mubr.msk.f32.mxu0 %vm192_vm0, %v30796_v54 }
 0x51a   :  { %20746 = vmatmul.mubr.msk.f32.gmra.mrb[96].mxu0 %vm192_vm0, %v30797_v56 }
 0x51b   :  { %20748 = vmatprep.mubr.msk.f32.mxu0 %vm192_vm0, %v27222_v61 }
 0x51e   :  { %20749 = vmatmul.mubr.msk.f32.gmra.mrb[98].mxu0 %vm192_vm0, %v27227_v27 }
 0x51f   :  { %20751 = vmatprep.mubr.msk.f32.mxu0 %vm192_vm0, %v27236_v26 }
 0x522   :  { %20752 = vmatmul.mubr.msk.f32.gmra.mrb[100].mxu0 %vm192_vm0, %v27241_v59 }
 0x523   :  { %20754 = vmatprep.mubr.msk.f32.mxu0 %vm192_vm0, %v26621_v11 }
 0x526   :  { %20755 = vmatmul.mubr.msk.f32.gmra.mrb[102].mxu0 %vm192_vm0, %v26635_v13 }
 0x527   :  { %20757 = vmatprep.mubr.msk.f32.mxu0 %vm192_vm0, %v26647_v15 }
 0x52a   :  { %20758 = vmatmul.mubr.msk.f32.gmra.mrb[104].mxu0 %vm192_vm0, %v26663_v17 }
 0x52b   :  { %20760 = vmatprep.mubr.msk.f32.mxu0 %vm192_vm0, %v26675_v19 }
 0x52d   :  { %v20603_v61 = vpop.f32.mrb[0].mxu0 }
 0x52e   :  { %8595 = vst [vmem:[#allocation2 + $0x8] sm:$0xff] %v20603_v61  ;;  %v7587_v26 = vpop.f32.mrb[1].mxu0  ;;  %20761 = vmatmul.mubr.msk.f32.gmra.mrb[106].mxu0 %vm192_vm0, %v26691_v21 }
 0x52f   :  { %8594 = vst [vmem:[#allocation2] sm:$0xff] %v7587_v26  ;;  %20763 = vmatprep.mubr.msk.f32.mxu0 %vm192_vm0, %v26703_v23 }
 0x531   :  { %v20606_v59 = vpop.f32.mrb[2].mxu0 }
 0x532   :  { %8597 = vst [vmem:[#allocation2 + $0x18] sm:$0xff] %v20606_v59  ;;  %v7597_v11 = vpop.f32.mrb[3].mxu0  ;;  %20764 = vmatmul.mubr.msk.f32.gmra.mrb[108].mxu0 %vm192_vm0, %v26719_v25 }
 0x533   :  { %8596 = vst [vmem:[#allocation2 + $0x10] sm:$0xff] %v7597_v11  ;;  %20766 = vmatprep.mubr.msk.f32.mxu0 %vm192_vm0, %v26731_v0  ;;  %v30798_v11 = vld [vmem:[#allocation48_spill] sm:$0xff] }
 0x535   :  { %v20609_v13 = vpop.f32.mrb[4].mxu0 }
 0x536   :  { %8599 = vst [vmem:[#allocation2 + $0x28] sm:$0xff] %v20609_v13  ;;  %v7607_v15 = vpop.f32.mrb[5].mxu0  ;;  %20767 = vmatmul.mubr.msk.f32.gmra.mrb[110].mxu0 %vm192_vm0, %v26747_v31  ;;  %v8738_v25 = vld [vmem:[#allocation2] ss:$2 sm:$0xff]  ;;  %v8930_v0 = vld [vmem:[#allocation2 + $0x1] ss:$2 sm:$0xff] }
 0x537   :  { %8598 = vst [vmem:[#allocation2 + $0x20] sm:$0xff] %v7607_v15  ;;  %20769 = vmatprep.mubr.msk.f32.mxu0 %vm192_vm0, %v26759_v22 }
 0x539   :  { %v20612_v17 = vpop.f32.mrb[6].mxu0 }
 0x53a   :  { %v8740_v19 = vld [vmem:[#allocation2 + $0x10] ss:$2 sm:$0xf]  ;;  %v8932_v21 = vld [vmem:[#allocation2 + $0x11] ss:$2 sm:$0xf]  ;;  %20770 = vmatmul.mubr.msk.f32.gmra.mrb[112].mxu0 %vm192_vm0, %v26775_v4 }
 0x53b   :  { %8601 = vst [vmem:[#allocation2 + $0x38] sm:$0xff] %v20612_v17  ;;  %v7617_v23 = vpop.f32.mrb[7].mxu0  ;;  %20772 = vmatprep.mubr.msk.f32.mxu0 %vm192_vm0, %v26787_v18  ;;  %v9122_v31 = vmax.f32 %v8740_v19, %v8932_v21  ;;  %v9121_v18 = vmax.f32 %v8738_v25, %v8930_v0 }
 0x53c   :  { %8600 = vst [vmem:[#allocation2 + $0x30] sm:$0xff] %v7617_v23 }
 0x53d   :  { %v8744_v27 = vld [vmem:[#allocation2 + $0x28] ss:$2 sm:$0xf]  ;;  %v20615_v57 = vpop.f32.mrb[8].mxu0  ;;  %v9219_v2 = vsel %vm9218_vm1, %v9122_v31, -inf  ;;  %v30799_v31 = vld [vmem:[#allocation50_spill] sm:$0xff] }
 0x53e   :  { %v8936_v58 = vld [vmem:[#allocation2 + $0x29] ss:$2 sm:$0xf]  ;;  %v8742_v22 = vld [vmem:[#allocation2 + $0x18] ss:$2 sm:$0xff]  ;;  %8603 = vst [vmem:[#allocation2 + $0x48] sm:$0xff] %v20615_v57  ;;  %20773 = vmatmul.mubr.msk.f32.gmra.mrb[114].mxu0 %vm192_vm0, %v26803_v29 }
 0x53f   :  { %v7627_v3 = vpop.f32.mrb[9].mxu0  ;;  %v9124_v9 = vmax.f32 %v8744_v27, %v8936_v58  ;;  %v8934_v4 = vld [vmem:[#allocation2 + $0x19] ss:$2 sm:$0xff]  ;;  %20775 = vmatprep.mubr.msk.f32.mxu0 %vm192_vm0, %v26815_v14 }
 0x540   :  { %8602 = vst [vmem:[#allocation2 + $0x40] sm:$0xff] %v7627_v3  ;;  %v9123_v28 = vmax.f32 %v8742_v22, %v8934_v4  ;;  %v17525_v3 = vld [vmem:[%s30245_s0 + $0x4d0] sm:$0xff] }
 0x541   :  { %v9220_v63 = vsel %vm9218_vm1, %v9124_v9, -inf  ;;  %v20618_v30 = vpop.f32.mrb[10].mxu0 }
 0x542   :  { %v9221_v60 = vmax.f32 %v9219_v2, %v9220_v63  ;;  %v9217_v29 = vmax.f32 %v9121_v18, %v9123_v28  ;;  %8605 = vst [vmem:[#allocation2 + $0x58] sm:$0xff] %v20618_v30  ;;  %v7637_v62 = vpop.f32.mrb[11].mxu0  ;;  %20776 = vmatmul.mubr.msk.f32.gmra.mrb[116].mxu0 %vm192_vm0, %v26831_v24  ;;  %v30800_v2 = vld [vmem:[#allocation51_spill] sm:$0xff] }
 0x543   :  { %8604 = vst [vmem:[#allocation2 + $0x50] sm:$0xff] %v7637_v62  ;;  %20778 = vmatprep.mubr.msk.f32.mxu0 %vm192_vm0, %v26843_v10  ;;  %v8746_v38 = vld [vmem:[#allocation2 + $0x30] ss:$2 sm:$0xff]  ;;  %v8938_v10 = vld [vmem:[#allocation2 + $0x31] ss:$2 sm:$0xff] }
 0x544   :  { %v9321_v14 = vadd.f32 %v27588_v1, %v9217_v29  ;;  %v9322_v32 = vadd.f32 %v27588_v1, %v9221_v60  ;;  %v17527_v29 = vld [vmem:[%s30245_s0 + $0x4e0] sm:$0xff] }
 0x545   :  { %v20621_v33 = vpop.f32.mrb[12].mxu0 }
 0x546   :  { %8607 = vst [vmem:[#allocation2 + $0x68] sm:$0xff] %v20621_v33  ;;  %20779 = vmatmul.mubr.msk.f32.gmra.mrb[118].mxu0 %vm192_vm0, %v26859_v20  ;;  %v7647_v36 = vpop.f32.mrb[13].mxu0  ;;  %v9369_v24 = vmax.f32 %v9321_v14, 0.0  ;;  %v9370_v37 = vmax.f32 %v9322_v32, 0.0 }
 0x547   :  { %v8748_v34 = vld [vmem:[#allocation2 + $0x40] ss:$2 sm:$0xf]  ;;  %v8940_v35 = vld [vmem:[#allocation2 + $0x41] ss:$2 sm:$0xf]  ;;  %20781 = vmatprep.mubr.msk.f32.mxu0 %vm192_vm0, %v26871_v8  ;;  %v9125_v8 = vmax.f32 %v8746_v38, %v8938_v10 }
 0x548   :  { %8606 = vst [vmem:[#allocation2 + $0x60] sm:$0xff] %v7647_v36  ;;  %v9126_v39 = vmax.f32 %v8748_v34, %v8940_v35  ;;  %9417 = vst [vmem:[#allocation3] sm:$0xff] %v9369_v24  ;;  %v17528_v34 = vld [vmem:[%s30245_s0 + $0x4e8] sm:$0xff]  ;;  %v17529_v10 = vld [vmem:[%s30245_s0 + $0x4f0] sm:$0xff] }
 0x549   :  { %v8752_v40 = vld [vmem:[#allocation2 + $0x58] ss:$2 sm:$0xf]  ;;  %v20624_v41 = vpop.f32.mrb[14].mxu0  ;;  %9418 = vst [vmem:[#allocation3 + $0x8] sm:$0xf] %v9370_v37 }
 0x54a   :  { %v8944_v42 = vld [vmem:[#allocation2 + $0x59] ss:$2 sm:$0xf]  ;;  %v8750_v43 = vld [vmem:[#allocation2 + $0x48] ss:$2 sm:$0xff]  ;;  %8609 = vst [vmem:[#allocation2 + $0x78] sm:$0xff] %v20624_v41  ;;  %20782 = vmatmul.mubr.msk.f32.gmra.mrb[120].mxu0 %vm192_vm0, %v26887_v16 }
 0x54b   :  { %v7657_v44 = vpop.f32.mrb[15].mxu0  ;;  %v9128_v20 = vmax.f32 %v8752_v40, %v8944_v42  ;;  %v8942_v45 = vld [vmem:[#allocation2 + $0x49] ss:$2 sm:$0xff]  ;;  %20784 = vmatprep.mubr.msk.f32.mxu0 %vm192_vm0, %v26899_v5  ;;  %v9223_v47 = vsel %vm9218_vm1, %v9126_v39, -inf }
 0x54c   :  { %8608 = vst [vmem:[#allocation2 + $0x70] sm:$0xff] %v7657_v44  ;;  %v9127_v46 = vmax.f32 %v8750_v43, %v8942_v45 }
 0x54d   :  { %v9224_v48 = vsel %vm9218_vm1, %v9128_v20, -inf  ;;  %v20627_v49 = vpop.f32.mrb[16].mxu0 }
 0x54e   :  { %v9225_v50 = vmax.f32 %v9223_v47, %v9224_v48  ;;  %v9222_v51 = vmax.f32 %v9125_v8, %v9127_v46  ;;  %8611 = vst [vmem:[#allocation2 + $0x88] sm:$0xff] %v20627_v49  ;;  %v7667_v52 = vpop.f32.mrb[17].mxu0  ;;  %20785 = vmatmul.mubr.msk.f32.gmra.mrb[122].mxu0 %vm192_vm0, %v26915_v12  ;;  %v17530_v46 = vld [vmem:[%s30245_s0 + $0x4f8] sm:$0xff]  ;;  %v17531_v49 = vld [vmem:[%s30245_s0 + $0x500] sm:$0xff] }
 0x54f   :  { %8610 = vst [vmem:[#allocation2 + $0x80] sm:$0xff] %v7667_v52  ;;  %20787 = vmatprep.mubr.msk.f32.mxu0 %vm192_vm0, %v26927_v55  ;;  %v8754_v55 = vld [vmem:[#allocation2 + $0x60] ss:$2 sm:$0xff]  ;;  %v8946_v13 = vld [vmem:[#allocation2 + $0x61] ss:$2 sm:$0xff] }
 0x550   :  { %v9324_v5 = vadd.f32 %v27588_v1, %v9225_v50  ;;  %v9323_v16 = vadd.f32 %v27588_v1, %v9222_v51  ;;  %v9497_v53 = vld [vmem:[#allocation3 + $0x1] sm:$0xff]  ;;  %v9129_v27 = vmax.f32 %v8754_v55, %v8946_v13  ;;  %v17534_v55 = vld [vmem:[%s30245_s0 + $0x518] sm:$0xff] }
 0x551   :  { %20849 = vmatprep.mubr.f32.mxu1 %v9497_v53  ;;  %v20630_v54 = vpop.f32.mrb[18].mxu0  ;;  %v17532_v53 = vld [vmem:[%s30245_s0 + $0x508] sm:$0xff] }
 0x552   :  { %v9372_v56 = vmax.f32 %v9324_v5, 0.0  ;;  %v9371_v61 = vmax.f32 %v9323_v16, 0.0  ;;  %8613 = vst [vmem:[#allocation2 + $0x98] sm:$0xff] %v20630_v54  ;;  %v7677_v59 = vpop.f32.mrb[19].mxu0  ;;  %20788 = vmatmul.mubr.msk.f32.gmra.mrb[124].mxu0 %vm192_vm0, %v30798_v11 }
 0x553   :  { %v8756_v26 = vld [vmem:[#allocation2 + $0x70] ss:$2 sm:$0xf]  ;;  %v8948_v12 = vld [vmem:[#allocation2 + $0x71] ss:$2 sm:$0xf]  ;;  %20790 = vmatprep.mubr.msk.f32.mxu0 %vm192_vm0, %v26955_v7 }
 0x554   :  { %8612 = vst [vmem:[#allocation2 + $0x90] sm:$0xff] %v7677_v59  ;;  %9420 = vst [vmem:[#allocation3 + $0x18] sm:$0xf] %v9372_v56  ;;  %v9130_v15 = vmax.f32 %v8756_v26, %v8948_v12 }
 0x555   :  { %9419 = vst [vmem:[#allocation3 + $0x10] sm:$0xff] %v9371_v61  ;;  %v8760_v17 = vld [vmem:[#allocation2 + $0x88] ss:$2 sm:$0xf]  ;;  %v20633_v0 = vpop.f32.mrb[20].mxu0  ;;  %v17533_v61 = vld [vmem:[%s30245_s0 + $0x510] sm:$0xff] }
 0x556   :  { %v8952_v19 = vld [vmem:[#allocation2 + $0x89] ss:$2 sm:$0xf]  ;;  %v8758_v23 = vld [vmem:[#allocation2 + $0x78] ss:$2 sm:$0xff]  ;;  %20791 = vmatmul.mubr.msk.f32.gmra.mrb[126].mxu0 %vm192_vm0, %v30799_v31  ;;  %8615 = vst [vmem:[#allocation2 + $0xa8] sm:$0xff] %v20633_v0 }
 0x557   :  { %v9132_v21 = vmax.f32 %v8760_v17, %v8952_v19  ;;  %v8950_v25 = vld [vmem:[#allocation2 + $0x79] ss:$2 sm:$0xff]  ;;  %v7687_v58 = vpop.f32.mrb[21].mxu0  ;;  %20793 = vmatprep.mubr.msk.f32.mxu0 %vm192_vm0, %v26973_v6  ;;  %v9227_v7 = vsel %vm9218_vm1, %v9130_v15, -inf }
 0x558   :  { %v9131_v57 = vmax.f32 %v8758_v23, %v8950_v25  ;;  %8614 = vst [vmem:[#allocation2 + $0xa0] sm:$0xff] %v7687_v58  ;;  %v17526_v6 = vld [vmem:[%s30245_s0 + $0x4d8] sm:$0xff]  ;;  %v17535_v23 = vld [vmem:[%s30245_s0 + $0x520] sm:$0xff] }
 0x559   :  { %v9228_v22 = vsel %vm9218_vm1, %v9132_v21, -inf  ;;  %v20636_v18 = vpop.f32.mrb[22].mxu0 }
 0x55a   :  { %v9229_v9 = vmax.f32 %v9227_v7, %v9228_v22  ;;  %v9226_v4 = vmax.f32 %v9129_v27, %v9131_v57  ;;  %8617 = vst [vmem:[#allocation2 + $0xb8] sm:$0xff] %v20636_v18  ;;  %v7697_v28 = vpop.f32.mrb[23].mxu0  ;;  %20794 = vmatmul.mubr.msk.f32.gmra.mrb[128].mxu0 %vm192_vm0, %v30800_v2 }
 0x55b   :  { %8616 = vst [vmem:[#allocation2 + $0xb0] sm:$0xff] %v7697_v28  ;;  %20796 = vmatprep.mubr.msk.f32.mxu0 %vm192_vm0, %v17525_v3  ;;  %v8762_v24 = vld [vmem:[#allocation2 + $0x90] ss:$2 sm:$0xff]  ;;  %v8954_v37 = vld [vmem:[#allocation2 + $0x91] ss:$2 sm:$0xff] }
 0x55c   :  { %v9498_v63 = vld [vmem:[#allocation3 + $0x11] sm:$0xff]  ;;  %v9325_v30 = vadd.f32 %v27588_v1, %v9226_v4  ;;  %v9326_v60 = vadd.f32 %v27588_v1, %v9229_v9  ;;  %v9133_v20 = vmax.f32 %v8762_v24, %v8954_v37  ;;  %v17536_v9 = vld [vmem:[%s30245_s0 + $0x528] sm:$0xff] }
 0x55d   :  { %20850 = vmatmul.mubr.f32.vlgmr.msra.gmra.mrb[30].mxu1 %v9498_v63  ;;  %v20639_v62 = vpop.f32.mrb[24].mxu0  ;;  %v17537_v28 = vld [vmem:[%s30245_s0 + $0x530] sm:$0xff] }
 0x55e   :  { %v9373_v14 = vmax.f32 %v9325_v30, 0.0  ;;  %v9374_v32 = vmax.f32 %v9326_v60, 0.0  ;;  %8619 = vst [vmem:[#allocation2 + $0xc8] sm:$0xff] %v20639_v62  ;;  %v7707_v33 = vpop.f32.mrb[25].mxu0  ;;  %20797 = vmatmul.mubr.msk.f32.gmra.mrb[130].mxu0 %vm192_vm0, %v17526_v6 }
 0x55f   :  { %v8764_v35 = vld [vmem:[#allocation2 + $0xa0] ss:$2 sm:$0xf]  ;;  %v8956_v36 = vld [vmem:[#allocation2 + $0xa1] ss:$2 sm:$0xf]  ;;  %20799 = vmatprep.mubr.msk.f32.mxu0 %vm192_vm0, %v17527_v29 }
 0x560   :  { %8618 = vst [vmem:[#allocation2 + $0xc0] sm:$0xff] %v7707_v33  ;;  %9421 = vst [vmem:[#allocation3 + $0x20] sm:$0xff] %v9373_v14  ;;  %v9134_v38 = vmax.f32 %v8764_v35, %v8956_v36  ;;  %v17538_v29 = vld [vmem:[%s30245_s0 + $0x538] sm:$0xff] }
 0x561   :  { %9422 = vst [vmem:[#allocation3 + $0x28] sm:$0xf] %v9374_v32  ;;  %v8768_v39 = vld [vmem:[#allocation2 + $0xb8] ss:$2 sm:$0xf]  ;;  %v20642_v44 = vpop.f32.mrb[26].mxu0 }
 0x562   :  { %v8960_v40 = vld [vmem:[#allocation2 + $0xb9] ss:$2 sm:$0xf]  ;;  %v8766_v42 = vld [vmem:[#allocation2 + $0xa8] ss:$2 sm:$0xff]  ;;  %20800 = vmatmul.mubr.msk.f32.gmra.mrb[132].mxu0 %vm192_vm0, %v17528_v34  ;;  %8621 = vst [vmem:[#allocation2 + $0xd8] sm:$0xff] %v20642_v44 }
 0x563   :  { %v9136_v41 = vmax.f32 %v8768_v39, %v8960_v40  ;;  %v8958_v43 = vld [vmem:[#allocation2 + $0xa9] ss:$2 sm:$0xff]  ;;  %v7717_v8 = vpop.f32.mrb[27].mxu0  ;;  %20802 = vmatprep.mubr.msk.f32.mxu0 %vm192_vm0, %v17529_v10  ;;  %v9231_v47 = vsel %vm9218_vm1, %v9134_v38, -inf }
 0x564   :  { %v9135_v45 = vmax.f32 %v8766_v42, %v8958_v43  ;;  %8620 = vst [vmem:[#allocation2 + $0xd0] sm:$0xff] %v7717_v8 }
 0x565   :  { %v9232_v48 = vsel %vm9218_vm1, %v9136_v41, -inf  ;;  %v20645_v52 = vpop.f32.mrb[28].mxu0 }
 0x566   :  { %v9233_v50 = vmax.f32 %v9231_v47, %v9232_v48  ;;  %v9230_v51 = vmax.f32 %v9133_v20, %v9135_v45  ;;  %8623 = vst [vmem:[#allocation2 + $0xe8] sm:$0xff] %v20645_v52  ;;  %v7727_v5 = vpop.f32.mrb[29].mxu0  ;;  %20803 = vmatmul.mubr.msk.f32.gmra.mrb[134].mxu0 %vm192_vm0, %v17530_v46 }
 0x567   :  { %8622 = vst [vmem:[#allocation2 + $0xe0] sm:$0xff] %v7727_v5  ;;  %20805 = vmatprep.mubr.msk.f32.mxu0 %vm192_vm0, %v17531_v49  ;;  %v8770_v17 = vld [vmem:[#allocation2 + $0xc0] ss:$2 sm:$0xff]  ;;  %v8962_v19 = vld [vmem:[#allocation2 + $0xc1] ss:$2 sm:$0xff] }
 0x568   :  { %v9499_v16 = vld [vmem:[#allocation3 + $0x21] sm:$0xff]  ;;  %v9327_v54 = vadd.f32 %v27588_v1, %v9230_v51  ;;  %v9328_v56 = vadd.f32 %v27588_v1, %v9233_v50  ;;  %v9137_v7 = vmax.f32 %v8770_v17, %v8962_v19 }
 0x569   :  { %20852 = vmatprep.mubr.f32.mxu1 %v9499_v16  ;;  %v20648_v26 = vpop.f32.mrb[30].mxu0 }
 0x56a   :  { %v9375_v59 = vmax.f32 %v9327_v54, 0.0  ;;  %v9376_v11 = vmax.f32 %v9328_v56, 0.0  ;;  %8625 = vst [vmem:[#allocation2 + $0xf8] sm:$0xff] %v20648_v26  ;;  %v7737_v12 = vpop.f32.mrb[31].mxu0  ;;  %20806 = vmatmul.mubr.msk.f32.gmra.mrb[136].mxu0 %vm192_vm0, %v17532_v53 }
 0x56b   :  { %v8772_v13 = vld [vmem:[#allocation2 + $0xd0] ss:$2 sm:$0xf]  ;;  %v8964_v15 = vld [vmem:[#allocation2 + $0xd1] ss:$2 sm:$0xf]  ;;  %20808 = vmatprep.mubr.msk.f32.mxu0 %vm192_vm0, %v17533_v61 }
 0x56c   :  { %8624 = vst [vmem:[#allocation2 + $0xf0] sm:$0xff] %v7737_v12  ;;  %9423 = vst [vmem:[#allocation3 + $0x30] sm:$0xff] %v9375_v59  ;;  %v9138_v21 = vmax.f32 %v8772_v13, %v8964_v15 }
 0x56d   :  { %9424 = vst [vmem:[#allocation3 + $0x38] sm:$0xf] %v9376_v11  ;;  %v8776_v25 = vld [vmem:[#allocation2 + $0xe8] ss:$2 sm:$0xf]  ;;  %v20651_v58 = vpop.f32.mrb[32].mxu0 }
 0x56e   :  { %v8968_v0 = vld [vmem:[#allocation2 + $0xe9] ss:$2 sm:$0xf]  ;;  %v8774_v27 = vld [vmem:[#allocation2 + $0xd8] ss:$2 sm:$0xff]  ;;  %20809 = vmatmul.mubr.msk.f32.gmra.mrb[138].mxu0 %vm192_vm0, %v17534_v55  ;;  %8627 = vst [vmem:[#allocation2 + $0x108] sm:$0xff] %v20651_v58 }
 0x56f   :  { %v9140_v31 = vmax.f32 %v8776_v25, %v8968_v0  ;;  %v8966_v57 = vld [vmem:[#allocation2 + $0xd9] ss:$2 sm:$0xff]  ;;  %v7747_v3 = vpop.f32.mrb[33].mxu0  ;;  %20811 = vmatprep.mubr.msk.f32.mxu0 %vm192_vm0, %v17535_v23  ;;  %v9235_v4 = vsel %vm9218_vm1, %v9138_v21, -inf }
 0x570   :  { %v9139_v22 = vmax.f32 %v8774_v27, %v8966_v57  ;;  %8626 = vst [vmem:[#allocation2 + $0x100] sm:$0xff] %v7747_v3 }
 0x571   :  { %v9236_v18 = vsel %vm9218_vm1, %v9140_v31, -inf  ;;  %v20654_v6 = vpop.f32.mrb[34].mxu0 }
 0x572   :  { %v9237_v2 = vmax.f32 %v9235_v4, %v9236_v18  ;;  %v9234_v63 = vmax.f32 %v9137_v7, %v9139_v22  ;;  %8629 = vst [vmem:[#allocation2 + $0x118] sm:$0xff] %v20654_v6  ;;  %v7757_v30 = vpop.f32.mrb[35].mxu0  ;;  %20812 = vmatmul.mubr.msk.f32.gmra.mrb[140].mxu0 %vm192_vm0, %v17536_v9 }
 0x573   :  { %8628 = vst [vmem:[#allocation2 + $0x110] sm:$0xff] %v7757_v30  ;;  %20814 = vmatprep.mubr.msk.f32.mxu0 %vm192_vm0, %v17537_v28  ;;  %v8778_v37 = vld [vmem:[#allocation2 + $0xf0] ss:$2 sm:$0xff]  ;;  %v8970_v38 = vld [vmem:[#allocation2 + $0xf1] ss:$2 sm:$0xff] }
 0x574   :  { %v9500_v60 = vld [vmem:[#allocation3 + $0x31] sm:$0xff]  ;;  %v9329_v62 = vadd.f32 %v27588_v1, %v9234_v63  ;;  %v9330_v14 = vadd.f32 %v27588_v1, %v9237_v2  ;;  %v9141_v20 = vmax.f32 %v8778_v37, %v8970_v38 }
 0x575   :  { %20853 = vmatmul.mubr.f32.gmra.mrb[32].mxu1 %v9500_v60  ;;  %v20657_v32 = vpop.f32.mrb[36].mxu0 }
 0x576   :  { %v9377_v33 = vmax.f32 %v9329_v62, 0.0  ;;  %v9378_v34 = vmax.f32 %v9330_v14, 0.0  ;;  %8631 = vst [vmem:[#allocation2 + $0x128] sm:$0xff] %v20657_v32  ;;  %v7767_v35 = vpop.f32.mrb[37].mxu0  ;;  %20815 = vmatmul.mubr.msk.f32.gmra.mrb[142].mxu0 %vm192_vm0, %v17538_v29  ;;  %v27698_v32 = vpop.f32.mrb[0].mxu1 }
 0x577   :  { %v8780_v36 = vld [vmem:[#allocation2 + $0x100] ss:$2 sm:$0xf]  ;;  %v8972_v24 = vld [vmem:[#allocation2 + $0x101] ss:$2 sm:$0xf] }
 0x578   :  { %8630 = vst [vmem:[#allocation2 + $0x120] sm:$0xff] %v7767_v35  ;;  %9425 = vst [vmem:[#allocation3 + $0x40] sm:$0xff] %v9377_v33  ;;  %v9142_v10 = vmax.f32 %v8780_v36, %v8972_v24 }
 0x579   :  { %9426 = vst [vmem:[#allocation3 + $0x48] sm:$0xf] %v9378_v34  ;;  %v8784_v39 = vld [vmem:[#allocation2 + $0x118] ss:$2 sm:$0xf]  ;;  %v20660_v44 = vpop.f32.mrb[38].mxu0 }
 0x57a   :  { %v8976_v40 = vld [vmem:[#allocation2 + $0x119] ss:$2 sm:$0xf]  ;;  %v8782_v42 = vld [vmem:[#allocation2 + $0x108] ss:$2 sm:$0xff]  ;;  %8633 = vst [vmem:[#allocation2 + $0x138] sm:$0xff] %v20660_v44 }
 0x57b   :  { %v9144_v41 = vmax.f32 %v8784_v39, %v8976_v40  ;;  %v8974_v43 = vld [vmem:[#allocation2 + $0x109] ss:$2 sm:$0xff]  ;;  %v7777_v8 = vpop.f32.mrb[39].mxu0  ;;  %v9239_v46 = vsel %vm9218_vm1, %v9142_v10, -inf  ;;  %v27700_v40 = vpop.f32.mrb[1].mxu1 }
 0x57c   :  { %v9143_v45 = vmax.f32 %v8782_v42, %v8974_v43  ;;  %8632 = vst [vmem:[#allocation2 + $0x130] sm:$0xff] %v7777_v8 }
 0x57d   :  { %v9240_v47 = vsel %vm9218_vm1, %v9144_v41, -inf  ;;  %v20663_v50 = vpop.f32.mrb[40].mxu0 }
 0x57e   :  { %v9241_v48 = vmax.f32 %v9239_v46, %v9240_v47  ;;  %v9238_v49 = vmax.f32 %v9141_v20, %v9143_v45  ;;  %8635 = vst [vmem:[#allocation2 + $0x148] sm:$0xff] %v20663_v50  ;;  %v7787_v51 = vpop.f32.mrb[41].mxu0  ;;  %v9481_v50 = vld [vmem:[#allocation6] sm:$0xff] }
 0x57f   :  { %8634 = vst [vmem:[#allocation2 + $0x140] sm:$0xff] %v7787_v51  ;;  %v8786_v11 = vld [vmem:[#allocation2 + $0x120] ss:$2 sm:$0xff]  ;;  %v8978_v12 = vld [vmem:[#allocation2 + $0x121] ss:$2 sm:$0xff] }
 0x580   :  { %v9501_v52 = vld [vmem:[#allocation3 + $0x41] sm:$0xff]  ;;  %v9331_v5 = vadd.f32 %v27588_v1, %v9238_v49  ;;  %v9332_v16 = vadd.f32 %v27588_v1, %v9241_v48  ;;  %v9145_v25 = vmax.f32 %v8786_v11, %v8978_v12  ;;  %v27706_v48 = vpop.f32.mrb[2].mxu1 }
 0x581   :  { %20855 = vmatprep.mubr.f32.mxu1 %v9501_v52  ;;  %v20666_v53 = vpop.f32.mrb[42].mxu0  ;;  %v27708_v49 = vpop.f32.mrb[3].mxu1  ;;  %v9482_v51 = vld [vmem:[#allocation6 + $0x8] sm:$0xff] }
 0x582   :  { %v9379_v54 = vmax.f32 %v9331_v5, 0.0  ;;  %v9380_v56 = vmax.f32 %v9332_v16, 0.0  ;;  %8637 = vst [vmem:[#allocation2 + $0x158] sm:$0xff] %v20666_v53  ;;  %v7797_v61 = vpop.f32.mrb[43].mxu0  ;;  %v27710_v53 = vpop.f32.mrb[4].mxu1 }
 0x583   :  { %v8788_v26 = vld [vmem:[#allocation2 + $0x130] ss:$2 sm:$0xf]  ;;  %v8980_v59 = vld [vmem:[#allocation2 + $0x131] ss:$2 sm:$0xf] }
 0x584   :  { %8636 = vst [vmem:[#allocation2 + $0x150] sm:$0xff] %v7797_v61  ;;  %9427 = vst [vmem:[#allocation3 + $0x50] sm:$0xff] %v9379_v54  ;;  %v9146_v55 = vmax.f32 %v8788_v26, %v8980_v59  ;;  %v22249_v54 = vpack.c.bf16 %v9482_v51, %v9481_v50  ;;  %v27712_v26 = vpop.f32.mrb[5].mxu1 }
 0x585   :  { %9428 = vst [vmem:[#allocation3 + $0x58] sm:$0xf] %v9380_v56  ;;  %v8792_v13 = vld [vmem:[#allocation2 + $0x148] ss:$2 sm:$0xf]  ;;  %v20669_v23 = vpop.f32.mrb[44].mxu0 }
 0x586   :  { %v8984_v15 = vld [vmem:[#allocation2 + $0x149] ss:$2 sm:$0xf]  ;;  %v8790_v19 = vld [vmem:[#allocation2 + $0x138] ss:$2 sm:$0xff]  ;;  %8639 = vst [vmem:[#allocation2 + $0x168] sm:$0xff] %v20669_v23  ;;  %22250 = vmatprep.subr.bf16.mxu1 %v22249_v54 }
 0x587   :  { %v9148_v17 = vmax.f32 %v8792_v13, %v8984_v15  ;;  %v8982_v21 = vld [vmem:[#allocation2 + $0x139] ss:$2 sm:$0xff]  ;;  %v7807_v31 = vpop.f32.mrb[45].mxu0  ;;  %v9243_v27 = vsel %vm9218_vm1, %v9146_v55, -inf  ;;  %22252 = vmatpush3.bf16.msra.mxu1 %v22249_v54  ;;  %v9483_v13 = vld [vmem:[#allocation6 + $0x10] sm:$0xff] }
 0x588   :  { %v9147_v0 = vmax.f32 %v8790_v19, %v8982_v21  ;;  %8638 = vst [vmem:[#allocation2 + $0x160] sm:$0xff] %v7807_v31  ;;  %v9484_v15 = vld [vmem:[#allocation6 + $0x18] sm:$0xff] }
 0x589   :  { %v9244_v57 = vsel %vm9218_vm1, %v9148_v17, -inf  ;;  %v20672_v22 = vpop.f32.mrb[46].mxu0  ;;  %v22253_v21 = vpack.c.bf16 %v9484_v15, %v9483_v13  ;;  %v9491_v15 = vld [vmem:[#allocation6 + $0x50] sm:$0xff] }
 0x58a   :  { %v9245_v58 = vmax.f32 %v9243_v27, %v9244_v57  ;;  %v9242_v7 = vmax.f32 %v9145_v25, %v9147_v0  ;;  %8641 = vst [vmem:[#allocation2 + $0x178] sm:$0xff] %v20672_v22  ;;  %v7817_v3 = vpop.f32.mrb[47].mxu0 }
 0x58b   :  { %8640 = vst [vmem:[#allocation2 + $0x170] sm:$0xff] %v7817_v3  ;;  %v8794_v29 = vld [vmem:[#allocation2 + $0x150] ss:$2 sm:$0xff]  ;;  %v8986_v62 = vld [vmem:[#allocation2 + $0x151] ss:$2 sm:$0xff]  ;;  %22254 = vmatprep.subr.bf16.mxu1 %v22253_v21 }
 0x58c   :  { %v9502_v9 = vld [vmem:[#allocation3 + $0x51] sm:$0xff]  ;;  %v9333_v4 = vadd.f32 %v27588_v1, %v9242_v7  ;;  %v9334_v18 = vadd.f32 %v27588_v1, %v9245_v58  ;;  %v9149_v38 = vmax.f32 %v8794_v29, %v8986_v62  ;;  %v27714_v7 = vpop.f32.mrb[6].mxu1  ;;  %22256 = vmatpush3.bf16.msra.mxu1 %v22253_v21 }
 0x58d   :  { %20856 = vmatmul.mubr.f32.gmra.mrb[34].mxu1 %v9502_v9  ;;  %v20675_v28 = vpop.f32.mrb[48].mxu0  ;;  %v27718_v9 = vpop.f32.mrb[7].mxu1 }
 0x58e   :  { %v9381_v2 = vmax.f32 %v9333_v4, 0.0  ;;  %v9382_v63 = vmax.f32 %v9334_v18, 0.0  ;;  %8643 = vst [vmem:[#allocation2 + $0x188] sm:$0xff] %v20675_v28  ;;  %v7827_v6 = vpop.f32.mrb[49].mxu0  ;;  %v9485_v4 = vld [vmem:[#allocation6 + $0x20] sm:$0xff]  ;;  %v9486_v18 = vld [vmem:[#allocation6 + $0x28] sm:$0xff] }
 0x58f   :  { %v8796_v30 = vld [vmem:[#allocation2 + $0x160] ss:$2 sm:$0xf]  ;;  %v8988_v60 = vld [vmem:[#allocation2 + $0x161] ss:$2 sm:$0xf] }
 0x590   :  { %8642 = vst [vmem:[#allocation2 + $0x180] sm:$0xff] %v7827_v6  ;;  %9429 = vst [vmem:[#allocation3 + $0x60] sm:$0xff] %v9381_v2  ;;  %v9150_v14 = vmax.f32 %v8796_v30, %v8988_v60  ;;  %v22257_v6 = vpack.c.bf16 %v9486_v18, %v9485_v4  ;;  %v27720_v29 = vpop.f32.mrb[8].mxu1 }
 0x591   :  { %9430 = vst [vmem:[#allocation3 + $0x68] sm:$0xf] %v9382_v63  ;;  %v8800_v33 = vld [vmem:[#allocation2 + $0x178] ss:$2 sm:$0xf]  ;;  %v20678_v37 = vpop.f32.mrb[50].mxu0 }
 0x592   :  { %v8992_v34 = vld [vmem:[#allocation2 + $0x179] ss:$2 sm:$0xf]  ;;  %v8798_v36 = vld [vmem:[#allocation2 + $0x168] ss:$2 sm:$0xff]  ;;  %8645 = vst [vmem:[#allocation2 + $0x198] sm:$0xff] %v20678_v37  ;;  %22258 = vmatprep.subr.bf16.mxu1 %v22257_v6 }
 0x593   :  { %v9152_v35 = vmax.f32 %v8800_v33, %v8992_v34  ;;  %v8990_v24 = vld [vmem:[#allocation2 + $0x169] ss:$2 sm:$0xff]  ;;  %v7837_v39 = vpop.f32.mrb[51].mxu0  ;;  %v9247_v41 = vsel %vm9218_vm1, %v9150_v14, -inf  ;;  %v27724_v33 = vpop.f32.mrb[9].mxu1  ;;  %22260 = vmatpush3.bf16.msra.mxu1 %v22257_v6 }
 0x594   :  { %v9151_v10 = vmax.f32 %v8798_v36, %v8990_v24  ;;  %8644 = vst [vmem:[#allocation2 + $0x190] sm:$0xff] %v7837_v39  ;;  %v9487_v34 = vld [vmem:[#allocation6 + $0x30] sm:$0xff]  ;;  %v27726_v24 = vpop.f32.mrb[10].mxu1 }
 0x595   :  { %v9248_v42 = vsel %vm9218_vm1, %v9152_v35, -inf  ;;  %v20681_v20 = vpop.f32.mrb[52].mxu0  ;;  %v9488_v35 = vld [vmem:[#allocation6 + $0x38] sm:$0xff] }
 0x596   :  { %v9249_v43 = vmax.f32 %v9247_v41, %v9248_v42  ;;  %v9246_v44 = vmax.f32 %v9149_v38, %v9151_v10  ;;  %8647 = vst [vmem:[#allocation2 + $0x1a8] sm:$0xff] %v20681_v20  ;;  %v7847_v45 = vpop.f32.mrb[53].mxu0  ;;  %v22261_v37 = vpack.c.bf16 %v9488_v35, %v9487_v34  ;;  %v27728_v42 = vpop.f32.mrb[11].mxu1 }
 0x597   :  { %8646 = vst [vmem:[#allocation2 + $0x1a0] sm:$0xff] %v7847_v45  ;;  %v8802_v56 = vld [vmem:[#allocation2 + $0x180] ss:$2 sm:$0xff]  ;;  %v8994_v12 = vld [vmem:[#allocation2 + $0x181] ss:$2 sm:$0xff] }
 0x598   :  { %v9503_v8 = vld [vmem:[#allocation3 + $0x61] sm:$0xff]  ;;  %v9335_v46 = vadd.f32 %v27588_v1, %v9246_v44  ;;  %v9336_v47 = vadd.f32 %v27588_v1, %v9249_v43  ;;  %v9153_v27 = vmax.f32 %v8802_v56, %v8994_v12  ;;  %22262 = vmatprep.subr.bf16.mxu1 %v22261_v37 }
 0x599   :  { %20858 = vmatprep.mubr.f32.mxu1 %v9503_v8  ;;  %v20684_v52 = vpop.f32.mrb[54].mxu0  ;;  %22264 = vmatpush3.bf16.msra.mxu1 %v22261_v37  ;;  %v9489_v8 = vld [vmem:[#allocation6 + $0x40] sm:$0xff]  ;;  %v9496_v37 = vld [vmem:[#allocation6 + $0x78] sm:$0xff] }
 0x59a   :  { %v9383_v5 = vmax.f32 %v9335_v46, 0.0  ;;  %v9384_v16 = vmax.f32 %v9336_v47, 0.0  ;;  %8649 = vst [vmem:[#allocation2 + $0x1b8] sm:$0xff] %v20684_v52  ;;  %v7857_v61 = vpop.f32.mrb[55].mxu0  ;;  %v9490_v46 = vld [vmem:[#allocation6 + $0x48] sm:$0xff] }
 0x59b   :  { %v8804_v59 = vld [vmem:[#allocation2 + $0x190] ss:$2 sm:$0xf]  ;;  %v8996_v11 = vld [vmem:[#allocation2 + $0x191] ss:$2 sm:$0xf]  ;;  %v22265_v51 = vpack.c.bf16 %v9490_v46, %v9489_v8 }
 0x59c   :  { %8648 = vst [vmem:[#allocation2 + $0x1b0] sm:$0xff] %v7857_v61  ;;  %9431 = vst [vmem:[#allocation3 + $0x70] sm:$0xff] %v9383_v5  ;;  %v9154_v55 = vmax.f32 %v8804_v59, %v8996_v11  ;;  %v27730_v11 = vpop.f32.mrb[12].mxu1 }
 0x59d   :  { %9432 = vst [vmem:[#allocation3 + $0x78] sm:$0xf] %v9384_v16  ;;  %v8808_v17 = vld [vmem:[#allocation2 + $0x1a8] ss:$2 sm:$0xf]  ;;  %v20687_v31 = vpop.f32.mrb[56].mxu0  ;;  %22266 = vmatprep.subr.bf16.mxu1 %v22265_v51 }
 0x59e   :  { %v9000_v19 = vld [vmem:[#allocation2 + $0x1a9] ss:$2 sm:$0xf]  ;;  %v8806_v25 = vld [vmem:[#allocation2 + $0x198] ss:$2 sm:$0xff]  ;;  %8651 = vst [vmem:[#allocation2 + $0x1c8] sm:$0xff] %v20687_v31  ;;  %22268 = vmatpush3.bf16.msra.mxu1 %v22265_v51 }
 0x59f   :  { %v9156_v23 = vmax.f32 %v8808_v17, %v9000_v19  ;;  %v8998_v0 = vld [vmem:[#allocation2 + $0x199] ss:$2 sm:$0xff]  ;;  %v7867_v58 = vpop.f32.mrb[57].mxu0  ;;  %v9251_v22 = vsel %vm9218_vm1, %v9154_v55, -inf  ;;  %v27734_v13 = vpop.f32.mrb[13].mxu1 }
 0x5a0   :  { %v9155_v57 = vmax.f32 %v8806_v25, %v8998_v0  ;;  %8650 = vst [vmem:[#allocation2 + $0x1c0] sm:$0xff] %v7867_v58  ;;  %v9492_v17 = vld [vmem:[#allocation6 + $0x58] sm:$0xff]  ;;  %v27736_v31 = vpop.f32.mrb[14].mxu1 }
 0x5a1   :  { %v9252_v3 = vsel %vm9218_vm1, %v9156_v23, -inf  ;;  %v20690_v63 = vpop.f32.mrb[58].mxu0  ;;  %v22269_v25 = vpack.c.bf16 %v9492_v17, %v9491_v15  ;;  %v27740_v58 = vpop.f32.mrb[15].mxu1 }
 0x5a2   :  { %v9253_v28 = vmax.f32 %v9251_v22, %v9252_v3  ;;  %v9250_v2 = vmax.f32 %v9153_v27, %v9155_v57  ;;  %8653 = vst [vmem:[#allocation2 + $0x1d8] sm:$0xff] %v20690_v63  ;;  %v7877_v30 = vpop.f32.mrb[59].mxu0  ;;  %v9493_v22 = vld [vmem:[#allocation6 + $0x60] sm:$0xff]  ;;  %v9494_v3 = vld [vmem:[#allocation6 + $0x68] sm:$0xff]  ;;  %v27742_v18 = vpop.f32.mrb[16].mxu1 }
 0x5a3   :  { %8652 = vst [vmem:[#allocation2 + $0x1d0] sm:$0xff] %v7877_v30  ;;  %v8810_v39 = vld [vmem:[#allocation2 + $0x1b0] ss:$2 sm:$0xff]  ;;  %v9002_v20 = vld [vmem:[#allocation2 + $0x1b1] ss:$2 sm:$0xff]  ;;  %22270 = vmatprep.subr.bf16.mxu1 %v22269_v25 }
 0x5a4   :  { %v9504_v60 = vld [vmem:[#allocation3 + $0x71] sm:$0xff]  ;;  %v9337_v62 = vadd.f32 %v27588_v1, %v9250_v2  ;;  %v9338_v14 = vadd.f32 %v27588_v1, %v9253_v28  ;;  %v9157_v56 = vmax.f32 %v8810_v39, %v9002_v20  ;;  %22272 = vmatpush3.bf16.msra.mxu1 %v22269_v25  ;;  %v22273_v28 = vpack.c.bf16 %v9494_v3, %v9493_v22 }
 0x5a5   :  { %20859 = vmatmul.mubr.f32.gmra.mrb[36].mxu1 %v9504_v60  ;;  %v20693_v36 = vpop.f32.mrb[60].mxu0  ;;  %v27744_v60 = vpop.f32.mrb[17].mxu1 }
 0x5a6   :  { %v9385_v38 = vmax.f32 %v9337_v62, 0.0  ;;  %v9386_v10 = vmax.f32 %v9338_v14, 0.0  ;;  %8655 = vst [vmem:[#allocation2 + $0x1e8] sm:$0xff] %v20693_v36  ;;  %v7887_v41 = vpop.f32.mrb[61].mxu0  ;;  %22274 = vmatprep.subr.bf16.mxu1 %v22273_v28  ;;  %v9495_v36 = vld [vmem:[#allocation6 + $0x70] sm:$0xff] }
 0x5a7   :  { %v8812_v43 = vld [vmem:[#allocation2 + $0x1c0] ss:$2 sm:$0xf]  ;;  %v9004_v44 = vld [vmem:[#allocation2 + $0x1c1] ss:$2 sm:$0xf]  ;;  %v22277_v39 = vpack.c.bf16 %v9496_v37, %v9495_v36 }
 0x5a8   :  { %8654 = vst [vmem:[#allocation2 + $0x1e0] sm:$0xff] %v7887_v41  ;;  %9433 = vst [vmem:[#allocation3 + $0x80] sm:$0xff] %v9385_v38  ;;  %v9158_v45 = vmax.f32 %v8812_v43, %v9004_v44  ;;  %22276 = vmatpush3.bf16.msra.mxu1 %v22273_v28 }
 0x5a9   :  { %9434 = vst [vmem:[#allocation3 + $0x88] sm:$0xf] %v9386_v10  ;;  %v8816_v47 = vld [vmem:[#allocation2 + $0x1d8] ss:$2 sm:$0xf]  ;;  %v20696_v54 = vpop.f32.mrb[62].mxu0  ;;  %22278 = vmatprep.subr.bf16.mxu1 %v22277_v39 }
 0x5aa   :  { %v9008_v50 = vld [vmem:[#allocation2 + $0x1d9] ss:$2 sm:$0xf]  ;;  %v8814_v5 = vld [vmem:[#allocation2 + $0x1c8] ss:$2 sm:$0xff]  ;;  %8657 = vst [vmem:[#allocation2 + $0x1f8] sm:$0xff] %v20696_v54 }
 0x5ab   :  { %v9160_v52 = vmax.f32 %v8816_v47, %v9008_v50  ;;  %v9006_v16 = vld [vmem:[#allocation2 + $0x1c9] ss:$2 sm:$0xff]  ;;  %v7897_v59 = vpop.f32.mrb[63].mxu0  ;;  %v9255_v12 = vsel %vm9218_vm1, %v9158_v45, -inf  ;;  %v27746_v47 = vpop.f32.mrb[18].mxu1 }
 0x5ac   :  { %v9159_v61 = vmax.f32 %v8814_v5, %v9006_v16  ;;  %8656 = vst [vmem:[#allocation2 + $0x1f0] sm:$0xff] %v7897_v59  ;;  %22280 = vmatpush3.bf16.msra.mxu1 %v22277_v39  ;;  %v9837_v5 = vld [vmem:[#allocation6 + $0x100] sm:$0xff]  ;;  %v9838_v16 = vld [vmem:[#allocation6 + $0x108] sm:$0xff] }
 0x5ad   :  { %v9256_v55 = vsel %vm9218_vm1, %v9160_v52, -inf  ;;  %v20699_v23 = vpop.f32.mrb[64].mxu0  ;;  %v27750_v52 = vpop.f32.mrb[19].mxu1  ;;  %v27752_v59 = vpack.c.bf16 %v9838_v16, %v9837_v5 }
 0x5ae   :  { %v9257_v19 = vmax.f32 %v9255_v12, %v9256_v55  ;;  %v9254_v21 = vmax.f32 %v9157_v56, %v9159_v61  ;;  %8659 = vst [vmem:[#allocation2 + $0x208] sm:$0xff] %v20699_v23  ;;  %v7907_v0 = vpop.f32.mrb[65].mxu0  ;;  %v27754_v55 = vpop.f32.mrb[20].mxu1 }
 0x5af   :  { %8658 = vst [vmem:[#allocation2 + $0x200] sm:$0xff] %v7907_v0  ;;  %v8818_v6 = vld [vmem:[#allocation2 + $0x1e0] ss:$2 sm:$0xff]  ;;  %v9010_v34 = vld [vmem:[#allocation2 + $0x1e1] ss:$2 sm:$0xff]  ;;  %22282 = vmatprep.subr.bf16.mxu1 %v27752_v59 }
 0x5b0   :  { %v9339_v27 = vadd.f32 %v27588_v1, %v9254_v21  ;;  %v9340_v57 = vadd.f32 %v27588_v1, %v9257_v19  ;;  %v9161_v45 = vmax.f32 %v8818_v6, %v9010_v34  ;;  %v27759_v19 = vpop.f32.mrb[21].mxu1 }
 0x5b1   :  { %v20702_v4 = vpop.f32.mrb[66].mxu0  ;;  %v27761_v23 = vpop.f32.mrb[22].mxu1 }
 0x5b2   :  { %v9387_v2 = vmax.f32 %v9339_v27, 0.0  ;;  %v9388_v63 = vmax.f32 %v9340_v57, 0.0  ;;  %8661 = vst [vmem:[#allocation2 + $0x218] sm:$0xff] %v20702_v4  ;;  %v7917_v30 = vpop.f32.mrb[67].mxu0  ;;  %v27763_v57 = vpop.f32.mrb[23].mxu1 }
 0x5b3   :  { %v8820_v62 = vld [vmem:[#allocation2 + $0x1f0] ss:$2 sm:$0xf]  ;;  %v9012_v14 = vld [vmem:[#allocation2 + $0x1f1] ss:$2 sm:$0xf] }
 0x5b4   :  { %8660 = vst [vmem:[#allocation2 + $0x210] sm:$0xff] %v7917_v30  ;;  %9435 = vst [vmem:[#allocation3 + $0x90] sm:$0xff] %v9387_v2  ;;  %v9162_v35 = vmax.f32 %v8820_v62, %v9012_v14 }
 0x5b5   :  { %9436 = vst [vmem:[#allocation3 + $0x98] sm:$0xf] %v9388_v63  ;;  %v8824_v38 = vld [vmem:[#allocation2 + $0x208] ss:$2 sm:$0xf]  ;;  %v20705_v20 = vpop.f32.mrb[68].mxu0 }
 0x5b6   :  { %v9016_v10 = vld [vmem:[#allocation2 + $0x209] ss:$2 sm:$0xf]  ;;  %v8822_v43 = vld [vmem:[#allocation2 + $0x1f8] ss:$2 sm:$0xff]  ;;  %8663 = vst [vmem:[#allocation2 + $0x228] sm:$0xff] %v20705_v20 }
 0x5b7   :  { %v9164_v41 = vmax.f32 %v8824_v38, %v9016_v10  ;;  %v9014_v44 = vld [vmem:[#allocation2 + $0x1f9] ss:$2 sm:$0xff]  ;;  %v7927_v46 = vpop.f32.mrb[69].mxu0  ;;  %v9259_v50 = vsel %vm9218_vm1, %v9162_v35, -inf  ;;  %v27765_v38 = vpop.f32.mrb[24].mxu1 }
 0x5b8   :  { %v9163_v8 = vmax.f32 %v8822_v43, %v9014_v44  ;;  %8662 = vst [vmem:[#allocation2 + $0x220] sm:$0xff] %v7927_v46 }
 0x5b9   :  { %v9260_v51 = vsel %vm9218_vm1, %v9164_v41, -inf  ;;  %v20708_v61 = vpop.f32.mrb[70].mxu0  ;;  %v27769_v41 = vpop.f32.mrb[25].mxu1 }
 0x5ba   :  { %v9261_v54 = vmax.f32 %v9259_v50, %v9260_v51  ;;  %v9258_v56 = vmax.f32 %v9161_v45, %v9163_v8  ;;  %8665 = vst [vmem:[#allocation2 + $0x238] sm:$0xff] %v20708_v61  ;;  %v7937_v12 = vpop.f32.mrb[71].mxu0  ;;  %v27771_v8 = vpop.f32.mrb[26].mxu1 }
 0x5bb   :  { %8664 = vst [vmem:[#allocation2 + $0x230] sm:$0xff] %v7937_v12  ;;  %v8826_v4 = vld [vmem:[#allocation2 + $0x210] ss:$2 sm:$0xff]  ;;  %v9018_v28 = vld [vmem:[#allocation2 + $0x211] ss:$2 sm:$0xff]  ;;  %v27775_v51 = vpop.f32.mrb[27].mxu1 }
 0x5bc   :  { %v9341_v15 = vadd.f32 %v27588_v1, %v9258_v56  ;;  %v9342_v17 = vadd.f32 %v27588_v1, %v9261_v54  ;;  %v9165_v35 = vmax.f32 %v8826_v4, %v9018_v28  ;;  %v27777_v16 = vpop.f32.mrb[28].mxu1 }
 0x5bd   :  { %v20711_v21 = vpop.f32.mrb[72].mxu0  ;;  %v27779_v12 = vpop.f32.mrb[29].mxu1 }
 0x5be   :  { %v9389_v25 = vmax.f32 %v9341_v15, 0.0  ;;  %v9390_v0 = vmax.f32 %v9342_v17, 0.0  ;;  %8667 = vst [vmem:[#allocation2 + $0x248] sm:$0xff] %v20711_v21  ;;  %v7947_v27 = vpop.f32.mrb[73].mxu0 }
 0x5bf   :  { %v8828_v22 = vld [vmem:[#allocation2 + $0x220] ss:$2 sm:$0xf]  ;;  %v9020_v3 = vld [vmem:[#allocation2 + $0x221] ss:$2 sm:$0xf] }
 0x5c0   :  { %8666 = vst [vmem:[#allocation2 + $0x240] sm:$0xff] %v7947_v27  ;;  %9437 = vst [vmem:[#allocation3 + $0xa0] sm:$0xff] %v9389_v25  ;;  %v9166_v2 = vmax.f32 %v8828_v22, %v9020_v3 }
 0x5c1   :  { %9438 = vst [vmem:[#allocation3 + $0xa8] sm:$0xf] %v9390_v0  ;;  %v8832_v63 = vld [vmem:[#allocation2 + $0x238] ss:$2 sm:$0xf]  ;;  %v20714_v34 = vpop.f32.mrb[74].mxu0 }
 0x5c2   :  { %v9024_v6 = vld [vmem:[#allocation2 + $0x239] ss:$2 sm:$0xf]  ;;  %v8830_v62 = vld [vmem:[#allocation2 + $0x228] ss:$2 sm:$0xff]  ;;  %8669 = vst [vmem:[#allocation2 + $0x258] sm:$0xff] %v20714_v34 }
 0x5c3   :  { %v9168_v30 = vmax.f32 %v8832_v63, %v9024_v6  ;;  %v9022_v14 = vld [vmem:[#allocation2 + $0x229] ss:$2 sm:$0xff]  ;;  %v7957_v37 = vpop.f32.mrb[75].mxu0  ;;  %v9263_v10 = vsel %vm9218_vm1, %v9166_v2, -inf }
 0x5c4   :  { %v9167_v36 = vmax.f32 %v8830_v62, %v9022_v14  ;;  %8668 = vst [vmem:[#allocation2 + $0x250] sm:$0xff] %v7957_v37  ;;  %v27786_v37 = vld [vmem:[%s30247_s2] ss:$0 sm:$0xff]  ;;  %s24679_s2 = smov [#allocation9]  }
 0x5c5   :  { %v9264_v39 = vsel %vm9218_vm1, %v9168_v30, -inf  ;;  %v20717_v20 = vpop.f32.mrb[76].mxu0  ;;  %s16375_s11 = sshll.u32 %s24679_s2, 4  ;;  %s16376_s11 = int_to_ptr.vmem [resolvable:$true] %s16375_s11 }
 0x5c6   :  { %v9265_v43 = vmax.f32 %v9263_v10, %v9264_v39  ;;  %v9262_v44 = vmax.f32 %v9165_v35, %v9167_v36  ;;  %8671 = vst [vmem:[#allocation2 + $0x268] sm:$0xff] %v20717_v20  ;;  %v7967_v45 = vpop.f32.mrb[77].mxu0  ;;  %p24654_p9 = scmp.lt.s32.totalorder %s16376_s11, %s16376_s11 }
 0x5c7   :  { %8670 = vst [vmem:[#allocation2 + $0x260] sm:$0xff] %v7967_v45  ;;  %v8834_v21 = vld [vmem:[#allocation2 + $0x240] ss:$2 sm:$0xff]  ;;  %v9026_v25 = vld [vmem:[#allocation2 + $0x241] ss:$2 sm:$0xff] }
 0x5c8   :  { %v9343_v46 = vadd.f32 %v27588_v1, %v9262_v44  ;;  %v9344_v50 = vadd.f32 %v27588_v1, %v9265_v43  ;;  %v9169_v2 = vmax.f32 %v8834_v21, %v9026_v25 }
 0x5c9   :  { %v20720_v5 = vpop.f32.mrb[78].mxu0 }
 0x5ca   :  { %v9391_v54 = vmax.f32 %v9343_v46, 0.0  ;;  %v9392_v56 = vmax.f32 %v9344_v50, 0.0  ;;  %8673 = vst [vmem:[#allocation2 + $0x278] sm:$0xff] %v20720_v5  ;;  %v7977_v61 = vpop.f32.mrb[79].mxu0 }
 0x5cb   :  { %v8836_v15 = vld [vmem:[#allocation2 + $0x250] ss:$2 sm:$0xf]  ;;  %v9028_v17 = vld [vmem:[#allocation2 + $0x251] ss:$2 sm:$0xf] }
 0x5cc   :  { %8672 = vst [vmem:[#allocation2 + $0x270] sm:$0xff] %v7977_v61  ;;  %9439 = vst [vmem:[#allocation3 + $0xb0] sm:$0xff] %v9391_v54  ;;  %v9170_v0 = vmax.f32 %v8836_v15, %v9028_v17 }
 0x5cd   :  { %9440 = vst [vmem:[#allocation3 + $0xb8] sm:$0xf] %v9392_v56  ;;  %v8840_v1 = vld [vmem:[#allocation2 + $0x268] ss:$2 sm:$0xf]  ;;  %v20723_v28 = vpop.f32.mrb[80].mxu0 }
 0x5ce   :  { %v9032_v27 = vld [vmem:[#allocation2 + $0x269] ss:$2 sm:$0xf]  ;;  %v8838_v3 = vld [vmem:[#allocation2 + $0x258] ss:$2 sm:$0xff]  ;;  %8675 = vst [vmem:[#allocation2 + $0x288] sm:$0xff] %v20723_v28 }
 0x5cf   :  { %v9172_v22 = vmax.f32 %v8840_v1, %v9032_v27  ;;  %v9030_v4 = vld [vmem:[#allocation2 + $0x259] ss:$2 sm:$0xff]  ;;  %v7987_v6 = vpop.f32.mrb[81].mxu0  ;;  %v9267_v30 = vsel %vm9218_vm1, %v9170_v0, -inf }
 0x5d0   :  { %v9171_v63 = vmax.f32 %v8838_v3, %v9030_v4  ;;  %8674 = vst [vmem:[#allocation2 + $0x280] sm:$0xff] %v7987_v6 }
 0x5d1   :  { %v9268_v62 = vsel %vm9218_vm1, %v9172_v22, -inf  ;;  %v20726_v35 = vpop.f32.mrb[82].mxu0 }
 0x5d2   :  { %v9269_v14 = vmax.f32 %v9267_v30, %v9268_v62  ;;  %v9266_v34 = vmax.f32 %v9169_v2, %v9171_v63  ;;  %8677 = vst [vmem:[#allocation2 + $0x298] sm:$0xff] %v20726_v35  ;;  %v7997_v36 = vpop.f32.mrb[83].mxu0 }
 0x5d3   :  { %8676 = vst [vmem:[#allocation2 + $0x290] sm:$0xff] %v7997_v36  ;;  %v8842_v5 = vld [vmem:[#allocation2 + $0x270] ss:$2 sm:$0xff]  ;;  %v9034_v54 = vld [vmem:[#allocation2 + $0x271] ss:$2 sm:$0xff] }
 0x5d4   :  { %v27789_v10 = vadd.f32 %v27786_v37, %v9266_v34  ;;  %v9346_v39 = vadd.f32 %v27786_v37, %v9269_v14  ;;  %v9173_v1 = vmax.f32 %v8842_v5, %v9034_v54 }
 0x5d5   :  { %v20729_v43 = vpop.f32.mrb[84].mxu0 }
 0x5d6   :  { %v9393_v44 = vmax.f32 %v27789_v10, 0.0  ;;  %v9394_v20 = vmax.f32 %v9346_v39, 0.0  ;;  %8679 = vst [vmem:[#allocation2 + $0x2a8] sm:$0xff] %v20729_v43  ;;  %v8007_v45 = vpop.f32.mrb[85].mxu0 }
 0x5d7   :  { %v8844_v46 = vld [vmem:[#allocation2 + $0x280] ss:$2 sm:$0xf]  ;;  %v9036_v50 = vld [vmem:[#allocation2 + $0x281] ss:$2 sm:$0xf] }
 0x5d8   :  { %8678 = vst [vmem:[#allocation2 + $0x2a0] sm:$0xff] %v8007_v45  ;;  %9441 = vst [vmem:[#allocation3 + $0xc0] sm:$0xff] %v9393_v44  ;;  %v9174_v56 = vmax.f32 %v8844_v46, %v9036_v50 }
 0x5d9   :  { %9442 = vst [vmem:[#allocation3 + $0xc8] sm:$0xf] %v9394_v20  ;;  %v8848_v61 = vld [vmem:[#allocation2 + $0x298] ss:$2 sm:$0xf]  ;;  %v20732_v0 = vpop.f32.mrb[86].mxu0 }
 0x5da   :  { %v9040_v15 = vld [vmem:[#allocation2 + $0x299] ss:$2 sm:$0xf]  ;;  %v8846_v21 = vld [vmem:[#allocation2 + $0x288] ss:$2 sm:$0xff]  ;;  %8681 = vst [vmem:[#allocation2 + $0x2b8] sm:$0xff] %v20732_v0 }
 0x5db   :  { %v9176_v17 = vmax.f32 %v8848_v61, %v9040_v15  ;;  %v9038_v25 = vld [vmem:[#allocation2 + $0x289] ss:$2 sm:$0xff]  ;;  %v8017_v22 = vpop.f32.mrb[87].mxu0  ;;  %v9271_v3 = vsel %vm9218_vm1, %v9174_v56, -inf }
 0x5dc   :  { %v9175_v27 = vmax.f32 %v8846_v21, %v9038_v25  ;;  %8680 = vst [vmem:[#allocation2 + $0x2b0] sm:$0xff] %v8017_v22 }
 0x5dd   :  { %v9272_v4 = vsel %vm9218_vm1, %v9176_v17, -inf  ;;  %v20735_v63 = vpop.f32.mrb[88].mxu0 }
 0x5de   :  { %v9273_v28 = vmax.f32 %v9271_v3, %v9272_v4  ;;  %v9270_v2 = vmax.f32 %v9173_v1, %v9175_v27  ;;  %8683 = vst [vmem:[#allocation2 + $0x2c8] sm:$0xff] %v20735_v63  ;;  %v8027_v6 = vpop.f32.mrb[89].mxu0 }
 0x5df   :  { %8682 = vst [vmem:[#allocation2 + $0x2c0] sm:$0xff] %v8027_v6  ;;  %v8850_v45 = vld [vmem:[#allocation2 + $0x2a0] ss:$2 sm:$0xff]  ;;  %v9042_v46 = vld [vmem:[#allocation2 + $0x2a1] ss:$2 sm:$0xff] }
 0x5e0   :  { %v9505_v30 = vld [vmem:[#allocation3 + $0xc1] sm:$0xff]  ;;  %v27798_v62 = vadd.f32 %v27786_v37, %v9270_v2  ;;  %v9348_v14 = vadd.f32 %v27786_v37, %v9273_v28  ;;  %v9177_v21 = vmax.f32 %v8850_v45, %v9042_v46 }
 0x5e1   :  { %20861 = vmatprep.mubr.f32.mxu1 %v9505_v30  ;;  %v20738_v34 = vpop.f32.mrb[90].mxu0 }
 0x5e2   :  { %v9395_v35 = vmax.f32 %v27798_v62, 0.0  ;;  %v9396_v36 = vmax.f32 %v9348_v14, 0.0  ;;  %8685 = vst [vmem:[#allocation2 + $0x2d8] sm:$0xff] %v20738_v34  ;;  %v8037_v39 = vpop.f32.mrb[91].mxu0  ;;  %v9851_v62 = vld [vmem:[#allocation6 + $0x170] sm:$0xff] }
 0x5e3   :  { %v8852_v43 = vld [vmem:[#allocation2 + $0x2b0] ss:$2 sm:$0xf]  ;;  %v9044_v20 = vld [vmem:[#allocation2 + $0x2b1] ss:$2 sm:$0xf] }
 0x5e4   :  { %8684 = vst [vmem:[#allocation2 + $0x2d0] sm:$0xff] %v8037_v39  ;;  %9443 = vst [vmem:[#allocation3 + $0xd0] sm:$0xff] %v9395_v35  ;;  %v9178_v50 = vmax.f32 %v8852_v43, %v9044_v20 }
 0x5e5   :  { %9444 = vst [vmem:[#allocation3 + $0xd8] sm:$0xf] %v9396_v36  ;;  %v8856_v5 = vld [vmem:[#allocation2 + $0x2c8] ss:$2 sm:$0xf]  ;;  %v20741_v17 = vpop.f32.mrb[92].mxu0 }
 0x5e6   :  { %v9048_v54 = vld [vmem:[#allocation2 + $0x2c9] ss:$2 sm:$0xf]  ;;  %v8854_v61 = vld [vmem:[#allocation2 + $0x2b8] ss:$2 sm:$0xff]  ;;  %8687 = vst [vmem:[#allocation2 + $0x2e8] sm:$0xff] %v20741_v17 }
 0x5e7   :  { %v9180_v56 = vmax.f32 %v8856_v5, %v9048_v54  ;;  %v9046_v15 = vld [vmem:[#allocation2 + $0x2b9] ss:$2 sm:$0xff]  ;;  %v8047_v0 = vpop.f32.mrb[93].mxu0  ;;  %v9275_v1 = vsel %vm9218_vm1, %v9178_v50, -inf }
 0x5e8   :  { %v9179_v25 = vmax.f32 %v8854_v61, %v9046_v15  ;;  %8686 = vst [vmem:[#allocation2 + $0x2e0] sm:$0xff] %v8047_v0 }
 0x5e9   :  { %v9276_v27 = vsel %vm9218_vm1, %v9180_v56, -inf  ;;  %v20744_v4 = vpop.f32.mrb[94].mxu0 }
 0x5ea   :  { %v9277_v22 = vmax.f32 %v9275_v1, %v9276_v27  ;;  %v9274_v3 = vmax.f32 %v9177_v21, %v9179_v25  ;;  %8689 = vst [vmem:[#allocation2 + $0x2f8] sm:$0xff] %v20744_v4  ;;  %v8057_v28 = vpop.f32.mrb[95].mxu0 }
 0x5eb   :  { %8688 = vst [vmem:[#allocation2 + $0x2f0] sm:$0xff] %v8057_v28  ;;  %v8858_v20 = vld [vmem:[#allocation2 + $0x2d0] ss:$2 sm:$0xff]  ;;  %v9050_v45 = vld [vmem:[#allocation2 + $0x2d1] ss:$2 sm:$0xff] }
 0x5ec   :  { %v9506_v2 = vld [vmem:[#allocation3 + $0xd1] sm:$0xff]  ;;  %v27807_v63 = vadd.f32 %v27786_v37, %v9274_v3  ;;  %v9350_v6 = vadd.f32 %v27786_v37, %v9277_v22  ;;  %v9181_v17 = vmax.f32 %v8858_v20, %v9050_v45 }
 0x5ed   :  { %20862 = vmatmul.mubr.f32.gmra.mrb[38].mxu1 %v9506_v2  ;;  %v20747_v30 = vpop.f32.mrb[96].mxu0 }
 0x5ee   :  { %v9397_v14 = vmax.f32 %v27807_v63, 0.0  ;;  %v9398_v34 = vmax.f32 %v9350_v6, 0.0  ;;  %8691 = vst [vmem:[#allocation2 + $0x308] sm:$0xff] %v20747_v30  ;;  %v8067_v36 = vpop.f32.mrb[97].mxu0 }
 0x5ef   :  { %v8860_v39 = vld [vmem:[#allocation2 + $0x2e0] ss:$2 sm:$0xf]  ;;  %v9052_v43 = vld [vmem:[#allocation2 + $0x2e1] ss:$2 sm:$0xf] }
 0x5f0   :  { %8690 = vst [vmem:[#allocation2 + $0x300] sm:$0xff] %v8067_v36  ;;  %9445 = vst [vmem:[#allocation3 + $0xe0] sm:$0xff] %v9397_v14  ;;  %v9182_v46 = vmax.f32 %v8860_v39, %v9052_v43 }
 0x5f1   :  { %9446 = vst [vmem:[#allocation3 + $0xe8] sm:$0xf] %v9398_v34  ;;  %v8864_v50 = vld [vmem:[#allocation2 + $0x2f8] ss:$2 sm:$0xf]  ;;  %v20750_v15 = vpop.f32.mrb[98].mxu0 }
 0x5f2   :  { %v9056_v5 = vld [vmem:[#allocation2 + $0x2f9] ss:$2 sm:$0xf]  ;;  %v8862_v56 = vld [vmem:[#allocation2 + $0x2e8] ss:$2 sm:$0xff]  ;;  %8693 = vst [vmem:[#allocation2 + $0x318] sm:$0xff] %v20750_v15 }
 0x5f3   :  { %v9184_v54 = vmax.f32 %v8864_v50, %v9056_v5  ;;  %v9054_v61 = vld [vmem:[#allocation2 + $0x2e9] ss:$2 sm:$0xff]  ;;  %v8077_v25 = vpop.f32.mrb[99].mxu0  ;;  %v9279_v0 = vsel %vm9218_vm1, %v9182_v46, -inf }
 0x5f4   :  { %v9183_v21 = vmax.f32 %v8862_v56, %v9054_v61  ;;  %8692 = vst [vmem:[#allocation2 + $0x310] sm:$0xff] %v8077_v25 }
 0x5f5   :  { %v9280_v1 = vsel %vm9218_vm1, %v9184_v54, -inf  ;;  %v20753_v3 = vpop.f32.mrb[100].mxu0 }
 0x5f6   :  { %v9281_v27 = vmax.f32 %v9279_v0, %v9280_v1  ;;  %v9278_v22 = vmax.f32 %v9181_v17, %v9183_v21  ;;  %8695 = vst [vmem:[#allocation2 + $0x328] sm:$0xff] %v20753_v3  ;;  %v8087_v4 = vpop.f32.mrb[101].mxu0 }
 0x5f7   :  { %8694 = vst [vmem:[#allocation2 + $0x320] sm:$0xff] %v8087_v4  ;;  %v8866_v45 = vld [vmem:[#allocation2 + $0x300] ss:$2 sm:$0xff]  ;;  %v9058_v46 = vld [vmem:[#allocation2 + $0x301] ss:$2 sm:$0xff] }
 0x5f8   :  { %v9507_v28 = vld [vmem:[#allocation3 + $0xe1] sm:$0xff]  ;;  %v27816_v2 = vadd.f32 %v27786_v37, %v9278_v22  ;;  %v9352_v6 = vadd.f32 %v27786_v37, %v9281_v27  ;;  %v9185_v21 = vmax.f32 %v8866_v45, %v9058_v46 }
 0x5f9   :  { %20864 = vmatprep.mubr.f32.mxu1 %v9507_v28  ;;  %v20756_v30 = vpop.f32.mrb[102].mxu0 }
 0x5fa   :  { %v9399_v34 = vmax.f32 %v27816_v2, 0.0  ;;  %v9400_v36 = vmax.f32 %v9352_v6, 0.0  ;;  %8697 = vst [vmem:[#allocation2 + $0x338] sm:$0xff] %v20756_v30  ;;  %v8097_v39 = vpop.f32.mrb[103].mxu0 }
 0x5fb   :  { %v8868_v43 = vld [vmem:[#allocation2 + $0x310] ss:$2 sm:$0xf]  ;;  %v9060_v20 = vld [vmem:[#allocation2 + $0x311] ss:$2 sm:$0xf] }
 0x5fc   :  { %8696 = vst [vmem:[#allocation2 + $0x330] sm:$0xff] %v8097_v39  ;;  %9447 = vst [vmem:[#allocation3 + $0xf0] sm:$0xff] %v9399_v34  ;;  %v9186_v50 = vmax.f32 %v8868_v43, %v9060_v20 }
 0x5fd   :  { %9448 = vst [vmem:[#allocation3 + $0xf8] sm:$0xf] %v9400_v36  ;;  %v8872_v5 = vld [vmem:[#allocation2 + $0x328] ss:$2 sm:$0xf]  ;;  %v20759_v17 = vpop.f32.mrb[104].mxu0 }
 0x5fe   :  { %v9064_v54 = vld [vmem:[#allocation2 + $0x329] ss:$2 sm:$0xf]  ;;  %v8870_v61 = vld [vmem:[#allocation2 + $0x318] ss:$2 sm:$0xff]  ;;  %8699 = vst [vmem:[#allocation2 + $0x348] sm:$0xff] %v20759_v17 }
 0x5ff   :  { %v9188_v56 = vmax.f32 %v8872_v5, %v9064_v54  ;;  %v9062_v15 = vld [vmem:[#allocation2 + $0x319] ss:$2 sm:$0xff]  ;;  %v8107_v0 = vpop.f32.mrb[105].mxu0  ;;  %v9283_v1 = vsel %vm9218_vm1, %v9186_v50, -inf }
 0x600   :  { %v9187_v25 = vmax.f32 %v8870_v61, %v9062_v15  ;;  %8698 = vst [vmem:[#allocation2 + $0x340] sm:$0xff] %v8107_v0 }
 0x601   :  { %v9284_v27 = vsel %vm9218_vm1, %v9188_v56, -inf  ;;  %v20762_v4 = vpop.f32.mrb[106].mxu0 }
 0x602   :  { %v9285_v22 = vmax.f32 %v9283_v1, %v9284_v27  ;;  %v9282_v3 = vmax.f32 %v9185_v21, %v9187_v25  ;;  %8701 = vst [vmem:[#allocation2 + $0x358] sm:$0xff] %v20762_v4  ;;  %v8117_v28 = vpop.f32.mrb[107].mxu0 }
 0x603   :  { %8700 = vst [vmem:[#allocation2 + $0x350] sm:$0xff] %v8117_v28  ;;  %v8874_v5 = vld [vmem:[#allocation2 + $0x330] ss:$2 sm:$0xff]  ;;  %v9066_v54 = vld [vmem:[#allocation2 + $0x331] ss:$2 sm:$0xff] }
 0x604   :  { %v9508_v6 = vld [vmem:[#allocation3 + $0xf1] sm:$0xff]  ;;  %v27825_v30 = vadd.f32 %v27786_v37, %v9282_v3  ;;  %v9354_v36 = vadd.f32 %v27786_v37, %v9285_v22  ;;  %v9189_v1 = vmax.f32 %v8874_v5, %v9066_v54 }
 0x605   :  { %20865 = vmatmul.mubr.f32.gmra.mrb[40].mxu1 %v9508_v6  ;;  %v20765_v39 = vpop.f32.mrb[108].mxu0 }
 0x606   :  { %v9401_v43 = vmax.f32 %v27825_v30, 0.0  ;;  %v9402_v20 = vmax.f32 %v9354_v36, 0.0  ;;  %8703 = vst [vmem:[#allocation2 + $0x368] sm:$0xff] %v20765_v39  ;;  %v8127_v45 = vpop.f32.mrb[109].mxu0  ;;  %v10033_v30 = vld [vmem:[#allocation6 + $0x190] sm:$0xff] }
 0x607   :  { %v8876_v46 = vld [vmem:[#allocation2 + $0x340] ss:$2 sm:$0xf]  ;;  %v9068_v50 = vld [vmem:[#allocation2 + $0x341] ss:$2 sm:$0xf] }
 0x608   :  { %8702 = vst [vmem:[#allocation2 + $0x360] sm:$0xff] %v8127_v45  ;;  %9449 = vst [vmem:[#allocation3 + $0x100] sm:$0xff] %v9401_v43  ;;  %v9190_v56 = vmax.f32 %v8876_v46, %v9068_v50 }
 0x609   :  { %9450 = vst [vmem:[#allocation3 + $0x108] sm:$0xf] %v9402_v20  ;;  %v8880_v61 = vld [vmem:[#allocation2 + $0x358] ss:$2 sm:$0xf]  ;;  %v20768_v0 = vpop.f32.mrb[110].mxu0 }
 0x60a   :  { %v9072_v15 = vld [vmem:[#allocation2 + $0x359] ss:$2 sm:$0xf]  ;;  %v8878_v21 = vld [vmem:[#allocation2 + $0x348] ss:$2 sm:$0xff]  ;;  %8705 = vst [vmem:[#allocation2 + $0x378] sm:$0xff] %v20768_v0 }
 0x60b   :  { %v9192_v17 = vmax.f32 %v8880_v61, %v9072_v15  ;;  %v9070_v25 = vld [vmem:[#allocation2 + $0x349] ss:$2 sm:$0xff]  ;;  %v8137_v22 = vpop.f32.mrb[111].mxu0  ;;  %v9287_v3 = vsel %vm9218_vm1, %v9190_v56, -inf }
 0x60c   :  { %v9191_v27 = vmax.f32 %v8878_v21, %v9070_v25  ;;  %8704 = vst [vmem:[#allocation2 + $0x370] sm:$0xff] %v8137_v22 }
 0x60d   :  { %v9288_v4 = vsel %vm9218_vm1, %v9192_v17, -inf  ;;  %v20771_v36 = vpop.f32.mrb[112].mxu0 }
 0x60e   :  { %v9289_v28 = vmax.f32 %v9287_v3, %v9288_v4  ;;  %v9286_v6 = vmax.f32 %v9189_v1, %v9191_v27  ;;  %8707 = vst [vmem:[#allocation2 + $0x388] sm:$0xff] %v20771_v36  ;;  %v8147_v39 = vpop.f32.mrb[113].mxu0 }
 0x60f   :  { %8706 = vst [vmem:[#allocation2 + $0x380] sm:$0xff] %v8147_v39  ;;  %v8882_v25 = vld [vmem:[#allocation2 + $0x360] ss:$2 sm:$0xff]  ;;  %v9074_v0 = vld [vmem:[#allocation2 + $0x361] ss:$2 sm:$0xff] }
 0x610   :  { %v9509_v20 = vld [vmem:[#allocation3 + $0x101] sm:$0xff]  ;;  %v27834_v45 = vadd.f32 %v27786_v37, %v9286_v6  ;;  %v9356_v46 = vadd.f32 %v27786_v37, %v9289_v28  ;;  %v9193_v6 = vmax.f32 %v8882_v25, %v9074_v0 }
 0x611   :  { %20867 = vmatprep.mubr.f32.mxu1 %v9509_v20  ;;  %v20774_v50 = vpop.f32.mrb[114].mxu0 }
 0x612   :  { %v9403_v5 = vmax.f32 %v27834_v45, 0.0  ;;  %v9404_v54 = vmax.f32 %v9356_v46, 0.0  ;;  %v23565_v56 = vadd.f32 %v20774_v50, %v27698_v32  ;;  %v8157_v61 = vpop.f32.mrb[115].mxu0 }
 0x613   :  { %v8884_v15 = vld [vmem:[#allocation2 + $0x370] ss:$2 sm:$0xf]  ;;  %v9076_v17 = vld [vmem:[#allocation2 + $0x371] ss:$2 sm:$0xf]  ;;  %v23568_v21 = vadd.f32 %v8157_v61, %v27700_v40 }
 0x614   :  { %9451 = vst [vmem:[#allocation3 + $0x110] sm:$0xff] %v9403_v5  ;;  %9452 = vst [vmem:[#allocation3 + $0x118] sm:$0xf] %v9404_v54  ;;  %v9194_v1 = vmax.f32 %v8884_v15, %v9076_v17 }
 0x615   :  { %8709 = vst [vmem:[#allocation2 + $0x398] sm:$0xff] %v23565_v56  ;;  %v8888_v27 = vld [vmem:[#allocation2 + $0x388] ss:$2 sm:$0xf]  ;;  %8708 = vst [vmem:[#allocation2 + $0x390] sm:$0xff] %v23568_v21  ;;  %v20777_v32 = vpop.f32.mrb[116].mxu0 }
 0x616   :  { %v9080_v22 = vld [vmem:[#allocation2 + $0x389] ss:$2 sm:$0xf]  ;;  %v8886_v4 = vld [vmem:[#allocation2 + $0x378] ss:$2 sm:$0xff]  ;;  %v23571_v39 = vadd.f32 %v20777_v32, %v27706_v48  ;;  %v8167_v40 = vpop.f32.mrb[117].mxu0 }
 0x617   :  { %v9196_v3 = vmax.f32 %v8888_v27, %v9080_v22  ;;  %v9078_v28 = vld [vmem:[#allocation2 + $0x379] ss:$2 sm:$0xff]  ;;  %v9291_v20 = vsel %vm9218_vm1, %v9194_v1, -inf  ;;  %v23574_v50 = vadd.f32 %v8167_v40, %v27708_v49 }
 0x618   :  { %v9195_v36 = vmax.f32 %v8886_v4, %v9078_v28  ;;  %8711 = vst [vmem:[#allocation2 + $0x3a8] sm:$0xff] %v23571_v39 }
 0x619   :  { %v9292_v46 = vsel %vm9218_vm1, %v9196_v3, -inf  ;;  %v20780_v61 = vpop.f32.mrb[118].mxu0  ;;  %8710 = vst [vmem:[#allocation2 + $0x3a0] sm:$0xff] %v23574_v50 }
 0x61a   :  { %v9293_v54 = vmax.f32 %v9291_v20, %v9292_v46  ;;  %v9290_v56 = vmax.f32 %v9193_v6, %v9195_v36  ;;  %v23577_v15 = vadd.f32 %v20780_v61, %v27710_v53  ;;  %v8177_v17 = vpop.f32.mrb[119].mxu0 }
 0x61b   :  { %v9510_v21 = vld [vmem:[#allocation3 + $0x111] sm:$0xff]  ;;  %v23580_v25 = vadd.f32 %v8177_v17, %v27712_v26 }
 0x61c   :  { %20868 = vmatmul.mubr.f32.gmra.mrb[42].mxu1 %v9510_v21  ;;  %v27849_v48 = vadd.f32 %v27786_v37, %v9290_v56  ;;  %v9358_v0 = vadd.f32 %v27786_v37, %v9293_v54  ;;  %8713 = vst [vmem:[#allocation2 + $0x3b8] sm:$0xff] %v23577_v15  ;;  %v8890_v28 = vld [vmem:[#allocation2 + $0x390] ss:$2 sm:$0xff]  ;;  %v9082_v32 = vld [vmem:[#allocation2 + $0x391] ss:$2 sm:$0xff] }
 0x61d   :  { %8712 = vst [vmem:[#allocation2 + $0x3b0] sm:$0xff] %v23580_v25  ;;  %v20783_v49 = vpop.f32.mrb[120].mxu0  ;;  %v9197_v54 = vmax.f32 %v8890_v28, %v9082_v32 }
 0x61e   :  { %v9405_v1 = vmax.f32 %v27849_v48, 0.0  ;;  %v9406_v27 = vmax.f32 %v9358_v0, 0.0  ;;  %v23583_v22 = vadd.f32 %v20783_v49, %v27714_v7  ;;  %v8187_v3 = vpop.f32.mrb[121].mxu0 }
 0x61f   :  { %v23586_v53 = vadd.f32 %v8187_v3, %v27718_v9 }
 0x620   :  { %9453 = vst [vmem:[#allocation3 + $0x120] sm:$0xff] %v9405_v1  ;;  %9454 = vst [vmem:[#allocation3 + $0x128] sm:$0xf] %v9406_v27  ;;  %v8892_v26 = vld [vmem:[#allocation2 + $0x3a0] ss:$2 sm:$0xf] }
 0x621   :  { %8715 = vst [vmem:[#allocation2 + $0x3c8] sm:$0xff] %v23583_v22  ;;  %v9084_v4 = vld [vmem:[#allocation2 + $0x3a1] ss:$2 sm:$0xf]  ;;  %8714 = vst [vmem:[#allocation2 + $0x3c0] sm:$0xff] %v23586_v53  ;;  %v20786_v36 = vpop.f32.mrb[122].mxu0 }
 0x622   :  { %v9198_v6 = vmax.f32 %v8892_v26, %v9084_v4  ;;  %v23589_v20 = vadd.f32 %v20786_v36, %v27720_v29  ;;  %v8197_v9 = vpop.f32.mrb[123].mxu0 }
 0x623   :  { %v8896_v39 = vld [vmem:[#allocation2 + $0x3b8] ss:$2 sm:$0xf]  ;;  %v9088_v40 = vld [vmem:[#allocation2 + $0x3b9] ss:$2 sm:$0xf]  ;;  %v23592_v61 = vadd.f32 %v8197_v9, %v27724_v33 }
 0x624   :  { %v9200_v7 = vmax.f32 %v8896_v39, %v9088_v40  ;;  %v8894_v46 = vld [vmem:[#allocation2 + $0x3a8] ss:$2 sm:$0xff]  ;;  %v9086_v50 = vld [vmem:[#allocation2 + $0x3a9] ss:$2 sm:$0xff]  ;;  %8717 = vst [vmem:[#allocation2 + $0x3d8] sm:$0xff] %v23589_v20  ;;  %v9295_v0 = vsel %vm9218_vm1, %v9198_v6, -inf }
 0x625   :  { %v9199_v56 = vmax.f32 %v8894_v46, %v9086_v50  ;;  %v20789_v15 = vpop.f32.mrb[124].mxu0  ;;  %8716 = vst [vmem:[#allocation2 + $0x3d0] sm:$0xff] %v23592_v61 }
 0x626   :  { %v23595_v17 = vadd.f32 %v20789_v15, %v27726_v24  ;;  %v8207_v21 = vpop.f32.mrb[125].mxu0  ;;  %v9296_v49 = vsel %vm9218_vm1, %v9200_v7, -inf }
 0x627   :  { %v9511_v25 = vld [vmem:[#allocation3 + $0x121] sm:$0xff]  ;;  %v23598_v29 = vadd.f32 %v8207_v21, %v27728_v42  ;;  %v9294_v27 = vmax.f32 %v9197_v54, %v9199_v56  ;;  %v9297_v22 = vmax.f32 %v9295_v0, %v9296_v49 }
 0x628   :  { %20870 = vmatprep.mubr.f32.mxu1 %v9511_v25  ;;  %8719 = vst [vmem:[#allocation2 + $0x3e8] sm:$0xff] %v23595_v17  ;;  %v8898_v42 = vld [vmem:[#allocation2 + $0x3c0] ss:$2 sm:$0xff]  ;;  %v9090_v6 = vld [vmem:[#allocation2 + $0x3c1] ss:$2 sm:$0xff] }
 0x629   :  { %8718 = vst [vmem:[#allocation2 + $0x3e0] sm:$0xff] %v23598_v29  ;;  %v20792_v3 = vpop.f32.mrb[126].mxu0  ;;  %v9359_v33 = vadd.f32 %v27786_v37, %v9294_v27  ;;  %v9360_v53 = vadd.f32 %v27786_v37, %v9297_v22  ;;  %v9201_v56 = vmax.f32 %v8898_v42, %v9090_v6 }
 0x62a   :  { %v23601_v24 = vadd.f32 %v20792_v3, %v27730_v11  ;;  %v8217_v26 = vpop.f32.mrb[127].mxu0  ;;  %v9839_v3 = vld [vmem:[#allocation6 + $0x110] sm:$0xff] }
 0x62b   :  { %v23604_v4 = vadd.f32 %v8217_v26, %v27734_v13  ;;  %v27867_v28 = vmax.f32 %v9359_v33, 0.0  ;;  %v9408_v32 = vmax.f32 %v9360_v53, 0.0  ;;  %v9840_v33 = vld [vmem:[#allocation6 + $0x118] sm:$0xff] }
 0x62c   :  { %8721 = vst [vmem:[#allocation2 + $0x3f8] sm:$0xff] %v23601_v24  ;;  %v8900_v39 = vld [vmem:[#allocation2 + $0x3d0] ss:$2 sm:$0xf] }
 0x62d   :  { %8720 = vst [vmem:[#allocation2 + $0x3f0] sm:$0xff] %v23604_v4  ;;  %v20795_v36 = vpop.f32.mrb[128].mxu0  ;;  %9455 = vst [vmem:[#allocation3 + $0x130] sm:$0xff] %v27867_v28  ;;  %v9092_v40 = vld [vmem:[#allocation2 + $0x3d1] ss:$2 sm:$0xf] }
 0x62e   :  { %9456 = vst [vmem:[#allocation3 + $0x138] sm:$0xf] %v9408_v32  ;;  %v23607_v20 = vadd.f32 %v20795_v36, %v27736_v31  ;;  %v9202_v7 = vmax.f32 %v8900_v39, %v9092_v40  ;;  %v8227_v54 = vpop.f32.mrb[129].mxu0  ;;  %v22285_v32 = vpack.c.bf16 %v9840_v33, %v9839_v3  ;;  %v27883_v36 = vld [vmem:[#allocation3 + $0x10] sm:$0xff]  ;;  %v9841_v39 = vld [vmem:[#allocation6 + $0x120] sm:$0xff]  ;;  %v9842_v40 = vld [vmem:[#allocation6 + $0x128] sm:$0xff] }
 0x62f   :  { %v8904_v11 = vld [vmem:[#allocation2 + $0x3e8] ss:$2 sm:$0xf]  ;;  %v9096_v46 = vld [vmem:[#allocation2 + $0x3e9] ss:$2 sm:$0xf]  ;;  %v23610_v15 = vadd.f32 %v8227_v54, %v27740_v58 }
 0x630   :  { %v9204_v50 = vmax.f32 %v8904_v11, %v9096_v46  ;;  %v8902_v13 = vld [vmem:[#allocation2 + $0x3d8] ss:$2 sm:$0xff]  ;;  %v9094_v9 = vld [vmem:[#allocation2 + $0x3d9] ss:$2 sm:$0xff]  ;;  %8723 = vst [vmem:[#allocation2 + $0x408] sm:$0xff] %v23607_v20  ;;  %v9299_v0 = vsel %vm9218_vm1, %v9202_v7, -inf }
 0x631   :  { %v9203_v61 = vmax.f32 %v8902_v13, %v9094_v9  ;;  %v20798_v17 = vpop.f32.mrb[130].mxu0  ;;  %8722 = vst [vmem:[#allocation2 + $0x400] sm:$0xff] %v23610_v15  ;;  %v9465_v58 = vld [vmem:[#allocation3] sm:$0xff]  ;;  %v27893_v13 = vld [vmem:[#allocation3 + $0x30] sm:$0xff]  ;;  %v22289_v15 = vpack.c.bf16 %v9842_v40, %v9841_v39 }
 0x632   :  { %v23613_v21 = vadd.f32 %v20798_v17, %v27742_v18  ;;  %v8237_v25 = vpop.f32.mrb[131].mxu0  ;;  %v9300_v31 = vsel %vm9218_vm1, %v9204_v50, -inf  ;;  %v9843_v9 = vld [vmem:[#allocation6 + $0x130] sm:$0xff] }
 0x633   :  { %v23616_v49 = vadd.f32 %v8237_v25, %v27744_v60  ;;  %v9298_v29 = vmax.f32 %v9201_v56, %v9203_v61  ;;  %v9301_v27 = vmax.f32 %v9299_v0, %v9300_v31  ;;  %v9844_v31 = vld [vmem:[#allocation6 + $0x138] sm:$0xff] }
 0x634   :  { %8725 = vst [vmem:[#allocation2 + $0x418] sm:$0xff] %v23613_v21  ;;  %v8906_v20 = vld [vmem:[#allocation2 + $0x3f0] ss:$2 sm:$0xff]  ;;  %v9098_v7 = vld [vmem:[#allocation2 + $0x3f1] ss:$2 sm:$0xff] }
 0x635   :  { %v9512_v22 = vld [vmem:[#allocation3 + $0x131] sm:$0xff]  ;;  %8724 = vst [vmem:[#allocation2 + $0x410] sm:$0xff] %v23616_v49  ;;  %v20801_v53 = vpop.f32.mrb[132].mxu0  ;;  %v27877_v18 = vadd.f32 %v27786_v37, %v9298_v29  ;;  %v9362_v24 = vadd.f32 %v27786_v37, %v9301_v27  ;;  %v9205_v49 = vmax.f32 %v8906_v20, %v9098_v7 }
 0x636   :  { %20871 = vmatmul.mubr.f32.gmra.mrb[44].mxu1 %v9512_v22  ;;  %v23619_v26 = vadd.f32 %v20801_v53, %v27746_v47  ;;  %v8247_v4 = vpop.f32.mrb[133].mxu0  ;;  %v27886_v47 = vld [vmem:[#allocation3 + $0x20] sm:$0xff] }
 0x637   :  { %20905 = vmatprep.mubr.f32.mxu1 %v9465_v58  ;;  %v23622_v60 = vadd.f32 %v8247_v4, %v27750_v52  ;;  %v9409_v42 = vmax.f32 %v27877_v18, 0.0  ;;  %v9410_v6 = vmax.f32 %v9362_v24, 0.0  ;;  %v27904_v4 = vld [vmem:[#allocation3 + $0x50] sm:$0xff]  ;;  %v28104_v18 = vld [vmem:[#allocation3 + $0x41] sm:$0xff] }
 0x638   :  { %8727 = vst [vmem:[#allocation2 + $0x428] sm:$0xff] %v23619_v26  ;;  %v8908_v52 = vld [vmem:[#allocation2 + $0x400] ss:$2 sm:$0xf]  ;;  %30801 = vst [vmem:[#allocation80_spill] sm:$0xff] %v28104_v18 }
 0x639   :  { %8726 = vst [vmem:[#allocation2 + $0x420] sm:$0xff] %v23622_v60  ;;  %v20804_v11 = vpop.f32.mrb[134].mxu0  ;;  %9457 = vst [vmem:[#allocation3 + $0x140] sm:$0xff] %v9409_v42  ;;  %v9100_v46 = vld [vmem:[#allocation2 + $0x401] ss:$2 sm:$0xf] }
 0x63a   :  { %20906 = vmatmul.mubr.f32.vlgmr.msra.gmra.mrb[30].mxu1 %v27883_v36  ;;  %9458 = vst [vmem:[#allocation3 + $0x148] sm:$0xf] %v9410_v6  ;;  %v23625_v50 = vadd.f32 %v20804_v11, %v27754_v55  ;;  %v9206_v54 = vmax.f32 %v8908_v52, %v9100_v46  ;;  %v8257_v0 = vpop.f32.mrb[135].mxu0  ;;  %v9845_v60 = vld [vmem:[#allocation6 + $0x140] sm:$0xff] }
 0x63b   :  { %20908 = vmatprep.mubr.f32.mxu1 %v27886_v47  ;;  %22284 = vmatpush3.bf16.msra.mxu1 %v27752_v59  ;;  %v8912_v56 = vld [vmem:[#allocation2 + $0x418] ss:$2 sm:$0xf]  ;;  %v9104_v61 = vld [vmem:[#allocation2 + $0x419] ss:$2 sm:$0xf]  ;;  %v23628_v29 = vadd.f32 %v8257_v0, %v27759_v19  ;;  %v22293_v19 = vpack.c.bf16 %v9844_v31, %v9843_v9 }
 0x63c   :  { %22286 = vmatprep.subr.bf16.mxu1 %v22285_v32  ;;  %v9208_v17 = vmax.f32 %v8912_v56, %v9104_v61  ;;  %v8910_v21 = vld [vmem:[#allocation2 + $0x408] ss:$2 sm:$0xff]  ;;  %v9102_v25 = vld [vmem:[#allocation2 + $0x409] ss:$2 sm:$0xff]  ;;  %8729 = vst [vmem:[#allocation2 + $0x438] sm:$0xff] %v23625_v50  ;;  %v27897_v59 = vld [vmem:[#allocation3 + $0x40] sm:$0xff] }
 0x63d   :  { %v9207_v55 = vmax.f32 %v8910_v21, %v9102_v25  ;;  %v20807_v27 = vpop.f32.mrb[136].mxu0  ;;  %v9303_v33 = vsel %vm9218_vm1, %v9206_v54, -inf  ;;  %8728 = vst [vmem:[#allocation2 + $0x430] sm:$0xff] %v23628_v29  ;;  %v27914_v50 = vld [vmem:[#allocation3 + $0x70] sm:$0xff]  ;;  %v9848_v54 = vld [vmem:[#allocation6 + $0x158] sm:$0xff]  ;;  %v9849_v21 = vld [vmem:[#allocation6 + $0x160] sm:$0xff] }
 0x63e   :  { %20909 = vmatmul.mubr.f32.gmra.mrb[32].mxu1 %v27893_v13  ;;  %v23631_v22 = vadd.f32 %v20807_v27, %v27761_v23  ;;  %v8267_v3 = vpop.f32.mrb[137].mxu0  ;;  %v9304_v53 = vsel %vm9218_vm1, %v9208_v17, -inf  ;;  %v9846_v23 = vld [vmem:[#allocation6 + $0x148] sm:$0xff]  ;;  %v9847_v9 = vld [vmem:[#allocation6 + $0x150] sm:$0xff] }
 0x63f   :  { %20911 = vmatprep.mubr.f32.mxu1 %v27897_v59  ;;  %22288 = vmatpush3.bf16.msra.mxu1 %v22285_v32  ;;  %v23634_v58 = vadd.f32 %v8267_v3, %v27763_v57  ;;  %v9302_v24 = vmax.f32 %v9205_v49, %v9207_v55  ;;  %v9305_v26 = vmax.f32 %v9303_v33, %v9304_v53  ;;  %v27907_v32 = vld [vmem:[#allocation3 + $0x60] sm:$0xff]  ;;  %v9850_v3 = vld [vmem:[#allocation6 + $0x168] sm:$0xff] }
 0x640   :  { %22290 = vmatprep.subr.bf16.mxu1 %v22289_v15  ;;  %8731 = vst [vmem:[#allocation2 + $0x448] sm:$0xff] %v23631_v22  ;;  %v22297_v11 = vpack.c.bf16 %v9846_v23, %v9845_v60  ;;  %v8914_v56 = vld [vmem:[#allocation2 + $0x420] ss:$2 sm:$0xff]  ;;  %v9106_v61 = vld [vmem:[#allocation2 + $0x421] ss:$2 sm:$0xff]  ;;  %v22301_v49 = vpack.c.bf16 %v9848_v54, %v9847_v9 }
 0x641   :  { %8730 = vst [vmem:[#allocation2 + $0x440] sm:$0xff] %v23634_v58  ;;  %v20810_v6 = vpop.f32.mrb[138].mxu0  ;;  %v9363_v39 = vadd.f32 %v27786_v37, %v9302_v24  ;;  %v9364_v40 = vadd.f32 %v27786_v37, %v9305_v26  ;;  %v9209_v33 = vmax.f32 %v8914_v56, %v9106_v61  ;;  %v10034_v56 = vld [vmem:[#allocation6 + $0x198] sm:$0xff]  ;;  %v9820_v61 = vld [vmem:[#allocation3 + $0x2] sm:$0xff] }
 0x642   :  { %20912 = vmatmul.mubr.f32.gmra.mrb[34].mxu1 %v27904_v4  ;;  %v23637_v57 = vadd.f32 %v20810_v6, %v27765_v38  ;;  %v8277_v20 = vpop.f32.mrb[139].mxu0 }
 0x643   :  { %20914 = vmatprep.mubr.f32.mxu1 %v27907_v32  ;;  %22292 = vmatpush3.bf16.msra.mxu1 %v22289_v15  ;;  %v23640_v7 = vadd.f32 %v8277_v20, %v27769_v41  ;;  %v9411_v52 = vmax.f32 %v9363_v39, 0.0  ;;  %v9412_v46 = vmax.f32 %v9364_v40, 0.0  ;;  %v10031_v39 = vld [vmem:[#allocation6 + $0x180] sm:$0xff]  ;;  %v10032_v40 = vld [vmem:[#allocation6 + $0x188] sm:$0xff] }
 0x644   :  { %22294 = vmatprep.subr.bf16.mxu1 %v22293_v19  ;;  %8733 = vst [vmem:[#allocation2 + $0x458] sm:$0xff] %v23637_v57  ;;  %v8916_v38 = vld [vmem:[#allocation2 + $0x430] ss:$2 sm:$0xf] }
 0x645   :  { %8732 = vst [vmem:[#allocation2 + $0x450] sm:$0xff] %v23640_v7  ;;  %v20813_v17 = vpop.f32.mrb[140].mxu0  ;;  %9459 = vst [vmem:[#allocation3 + $0x150] sm:$0xff] %v9411_v52  ;;  %v9108_v15 = vld [vmem:[#allocation2 + $0x431] ss:$2 sm:$0xf]  ;;  %v22313_v52 = vpack.c.bf16 %v10032_v40, %v10031_v39 }
 0x646   :  { %20915 = vmatmul.mubr.f32.gmra.mrb[36].mxu1 %v27914_v50  ;;  %9460 = vst [vmem:[#allocation3 + $0x158] sm:$0xf] %v9412_v46  ;;  %v23643_v41 = vadd.f32 %v20813_v17, %v27771_v8  ;;  %v9210_v25 = vmax.f32 %v8916_v38, %v9108_v15  ;;  %v8287_v22 = vpop.f32.mrb[141].mxu0  ;;  %v22317_v17 = vpack.c.bf16 %v10034_v56, %v10033_v30  ;;  %v10046_v39 = vld [vmem:[#allocation6 + $0x1f8] sm:$0xff]  ;;  %v27974_v40 = vld [vmem:[#allocation3 + $0x102] sm:$0xff] }
 0x647   :  { %20917 = vmatprep.mubr.f32.mxu1 %v9393_v44  ;;  %22296 = vmatpush3.bf16.msra.mxu1 %v22293_v19  ;;  %v8920_v0 = vld [vmem:[#allocation2 + $0x448] ss:$2 sm:$0xf]  ;;  %v9112_v31 = vld [vmem:[#allocation2 + $0x449] ss:$2 sm:$0xf]  ;;  %v23646_v8 = vadd.f32 %v8287_v22, %v27775_v51  ;;  %v22305_v51 = vpack.c.bf16 %v9850_v3, %v9849_v21 }
 0x648   :  { %22298 = vmatprep.subr.bf16.mxu1 %v22297_v11  ;;  %v9212_v55 = vmax.f32 %v8920_v0, %v9112_v31  ;;  %v8918_v29 = vld [vmem:[#allocation2 + $0x438] ss:$2 sm:$0xff]  ;;  %v9110_v27 = vld [vmem:[#allocation2 + $0x439] ss:$2 sm:$0xff]  ;;  %8735 = vst [vmem:[#allocation2 + $0x468] sm:$0xff] %v23643_v41  ;;  %v9307_v19 = vsel %vm9218_vm1, %v9210_v25, -inf }
 0x649   :  { %v9211_v53 = vmax.f32 %v8918_v29, %v9110_v27  ;;  %v20816_v58 = vpop.f32.mrb[142].mxu0  ;;  %8734 = vst [vmem:[#allocation2 + $0x460] sm:$0xff] %v23646_v8  ;;  %v27942_v41 = vld [vmem:[#allocation3 + $0x12] sm:$0xff]  ;;  %v10035_v21 = vld [vmem:[#allocation6 + $0x1a0] sm:$0xff]  ;;  %v10036_v25 = vld [vmem:[#allocation6 + $0x1a8] sm:$0xff] }
 0x64a   :  { %20918 = vmatmul.mubr.f32.gmra.mrb[38].mxu1 %v9395_v35  ;;  %v23649_v10 = vadd.f32 %v20816_v58, %v27777_v16  ;;  %v8297_v44 = vpop.f32.mrb[143].mxu0  ;;  %v9308_v24 = vsel %vm9218_vm1, %v9212_v55, -inf  ;;  %v9852_v35 = vld [vmem:[#allocation6 + $0x178] sm:$0xff]  ;;  %v27945_v0 = vld [vmem:[#allocation3 + $0x22] sm:$0xff]  ;;  %v22321_v55 = vpack.c.bf16 %v10036_v25, %v10035_v21  ;;  %v10037_v3 = vld [vmem:[#allocation6 + $0x1b0] sm:$0xff] }
 0x64b   :  { %20920 = vmatprep.mubr.f32.mxu1 %v9397_v14  ;;  %22300 = vmatpush3.bf16.msra.mxu1 %v22297_v11  ;;  %v23652_v26 = vadd.f32 %v8297_v44, %v27779_v12  ;;  %v9306_v60 = vmax.f32 %v9209_v33, %v9211_v53  ;;  %v9309_v23 = vmax.f32 %v9307_v19, %v9308_v24  ;;  %v27950_v22 = vld [vmem:[#allocation3 + $0x32] sm:$0xff]  ;;  %v27953_v53 = vld [vmem:[#allocation3 + $0x42] sm:$0xff] }
 0x64c   :  { %22302 = vmatprep.subr.bf16.mxu1 %v22301_v49  ;;  %8737 = vst [vmem:[#allocation2 + $0x478] sm:$0xff] %v23649_v10  ;;  %v22309_v12 = vpack.c.bf16 %v9852_v35, %v9851_v62  ;;  %v8922_v57 = vld [vmem:[#allocation2 + $0x450] ss:$2 sm:$0xff]  ;;  %v9114_v20 = vld [vmem:[#allocation2 + $0x451] ss:$2 sm:$0xff]  ;;  %v10039_v58 = vld [vmem:[#allocation6 + $0x1c0] sm:$0xff] }
 0x64d   :  { %8736 = vst [vmem:[#allocation2 + $0x470] sm:$0xff] %v23652_v26  ;;  %v9365_v16 = vadd.f32 %v27786_v37, %v9306_v60  ;;  %v9366_v63 = vadd.f32 %v27786_v37, %v9309_v23  ;;  %v9213_v45 = vmax.f32 %v8922_v57, %v9114_v20  ;;  %v10038_v33 = vld [vmem:[#allocation6 + $0x1b8] sm:$0xff]  ;;  %v10040_v10 = vld [vmem:[#allocation6 + $0x1c8] sm:$0xff]  ;;  %v10041_v26 = vld [vmem:[#allocation6 + $0x1d0] sm:$0xff] }
 0x64e   :  { %20921 = vmatmul.mubr.f32.gmra.mrb[40].mxu1 %v9399_v34  ;;  %v27956_v8 = vld [vmem:[#allocation3 + $0x52] sm:$0xff]  ;;  %v27959_v44 = vld [vmem:[#allocation3 + $0x62] sm:$0xff]  ;;  %v22329_v19 = vpack.c.bf16 %v10040_v10, %v10039_v58 }
 0x64f   :  { %20923 = vmatprep.mubr.f32.mxu1 %v9401_v43  ;;  %22304 = vmatpush3.bf16.msra.mxu1 %v22301_v49  ;;  %v9413_v14 = vmax.f32 %v9365_v16, 0.0  ;;  %v9414_v6 = vmax.f32 %v9366_v63, 0.0  ;;  %v27962_v24 = vld [vmem:[#allocation3 + $0x72] sm:$0xff]  ;;  %v9828_v60 = vld [vmem:[#allocation3 + $0xc2] sm:$0xff] }
 0x650   :  { %22306 = vmatprep.subr.bf16.mxu1 %v22305_v51  ;;  %v8924_v2 = vld [vmem:[#allocation2 + $0x460] ss:$2 sm:$0xf]  ;;  %v9116_v34 = vld [vmem:[#allocation2 + $0x461] ss:$2 sm:$0xf] }
 0x651   :  { %9461 = vst [vmem:[#allocation3 + $0x160] sm:$0xff] %v9413_v14  ;;  %9462 = vst [vmem:[#allocation3 + $0x168] sm:$0xf] %v9414_v6  ;;  %v9214_v43 = vmax.f32 %v8924_v2, %v9116_v34  ;;  %v27965_v62 = vld [vmem:[#allocation3 + $0xd2] sm:$0xff]  ;;  %v10043_v35 = vld [vmem:[#allocation6 + $0x1e0] sm:$0xff] }
 0x652   :  { %20924 = vmatmul.mubr.f32.gmra.mrb[42].mxu1 %v9403_v5  ;;  %v10044_v16 = vld [vmem:[#allocation6 + $0x1e8] sm:$0xff]  ;;  %v27971_v14 = vld [vmem:[#allocation3 + $0xf2] sm:$0xff]  ;;  %v10225_v2 = vld [vmem:[#allocation6 + $0x200] sm:$0xff] }
 0x653   :  { %20926 = vmatprep.mubr.f32.mxu1 %v9405_v1  ;;  %22308 = vmatpush3.bf16.msra.mxu1 %v22305_v51  ;;  %v8928_v7 = vld [vmem:[#allocation2 + $0x478] ss:$2 sm:$0xf]  ;;  %v9120_v11 = vld [vmem:[#allocation2 + $0x479] ss:$2 sm:$0xf] }
 0x654   :  { %22310 = vmatprep.subr.bf16.mxu1 %v22309_v12  ;;  %v9216_v46 = vmax.f32 %v8928_v7, %v9120_v11  ;;  %v8926_v9 = vld [vmem:[#allocation2 + $0x468] ss:$2 sm:$0xff]  ;;  %v9118_v54 = vld [vmem:[#allocation2 + $0x469] ss:$2 sm:$0xff]  ;;  %v9311_v48 = vsel %vm9218_vm1, %v9214_v43, -inf  ;;  %v10042_v51 = vld [vmem:[#allocation6 + $0x1d8] sm:$0xff] }
 0x655   :  { %v9215_v5 = vmax.f32 %v8926_v9, %v9118_v54  ;;  %v22333_v23 = vpack.c.bf16 %v10042_v51, %v10041_v26  ;;  %v27968_v63 = vld [vmem:[#allocation3 + $0xe2] sm:$0xff]  ;;  %v10045_v6 = vld [vmem:[#allocation6 + $0x1f0] sm:$0xff] }
 0x656   :  { %20927 = vmatmul.mubr.f32.gmra.mrb[44].mxu1 %v27867_v28  ;;  %v9312_v1 = vsel %vm9218_vm1, %v9216_v46, -inf  ;;  %v22341_v57 = vpack.c.bf16 %v10046_v39, %v10045_v6  ;;  %v27977_v20 = vld [vmem:[#allocation3 + $0x112] sm:$0xff]  ;;  %v10226_v34 = vld [vmem:[#allocation6 + $0x208] sm:$0xff]  ;;  %v10229_v56 = vld [vmem:[#allocation6 + $0x220] sm:$0xff] }
 0x657   :  { %22312 = vmatpush3.bf16.msra.mxu1 %v22309_v12  ;;  %20961 = vmatprep.mubr.f32.mxu1 %v9820_v61  ;;  %v9310_v38 = vmax.f32 %v9213_v45, %v9215_v5  ;;  %v9313_v15 = vmax.f32 %v9311_v48, %v9312_v1  ;;  %v22337_v12 = vpack.c.bf16 %v10044_v16, %v10043_v35  ;;  %v27980_v30 = vld [vmem:[#allocation3 + $0x122] sm:$0xff]  ;;  %v27983_v7 = vld [vmem:[#allocation3 + $0x132] sm:$0xff] }
 0x658   :  { %22314 = vmatprep.subr.bf16.mxu1 %v22313_v52  ;;  %v22345_v43 = vpack.c.bf16 %v10226_v34, %v10225_v2  ;;  %v10227_v11 = vld [vmem:[#allocation6 + $0x210] sm:$0xff]  ;;  %v10014_v46 = vld [vmem:[#allocation3 + $0x3] sm:$0xff]  ;;  %v10240_v35 = vld [vmem:[#allocation6 + $0x278] sm:$0xff] }
 0x659   :  { %v9367_v31 = vadd.f32 %v27786_v37, %v9310_v38  ;;  %v9368_v49 = vadd.f32 %v27786_v37, %v9313_v15  ;;  %v22325_v37 = vpack.c.bf16 %v10038_v33, %v10037_v3  ;;  %v27986_v54 = vld [vmem:[#allocation3 + $0x13] sm:$0xff]  ;;  %v10230_v45 = vld [vmem:[#allocation6 + $0x228] sm:$0xff]  ;;  %v10233_v25 = vld [vmem:[#allocation6 + $0x240] sm:$0xff] }
 0x65a   :  { %20962 = vmatmul.mubr.f32.vlgmr.msra.gmra.mrb[30].mxu1 %v27942_v41  ;;  %v27989_v5 = vld [vmem:[#allocation3 + $0x23] sm:$0xff]  ;;  %v22353_v61 = vpack.c.bf16 %v10230_v45, %v10229_v56  ;;  %v27992_v48 = vld [vmem:[#allocation3 + $0x33] sm:$0xff] }
 0x65b   :  { %20964 = vmatprep.mubr.f32.mxu1 %v27945_v0  ;;  %22316 = vmatpush3.bf16.msra.mxu1 %v22313_v52  ;;  %v9415_v29 = vmax.f32 %v9367_v31, 0.0  ;;  %v9416_v27 = vmax.f32 %v9368_v49, 0.0  ;;  %v10228_v52 = vld [vmem:[#allocation6 + $0x218] sm:$0xff]  ;;  %v10231_v1 = vld [vmem:[#allocation6 + $0x230] sm:$0xff]  ;;  %v27995_v38 = vld [vmem:[#allocation3 + $0x43] sm:$0xff] }
 0x65c   :  { %22318 = vmatprep.subr.bf16.mxu1 %v22317_v17  ;;  %v22349_v9 = vpack.c.bf16 %v10228_v52, %v10227_v11  ;;  %v27998_v21 = vld [vmem:[#allocation3 + $0x53] sm:$0xff]  ;;  %v10234_v31 = vld [vmem:[#allocation6 + $0x248] sm:$0xff]  ;;  %v10237_v10 = vld [vmem:[#allocation6 + $0x260] sm:$0xff] }
 0x65d   :  { %9463 = vst [vmem:[#allocation3 + $0x170] sm:$0xff] %v9415_v29  ;;  %9464 = vst [vmem:[#allocation3 + $0x178] sm:$0xf] %v9416_v27  ;;  %v28001_v49 = vld [vmem:[#allocation3 + $0x63] sm:$0xff]  ;;  %v28004_v29 = vld [vmem:[#allocation3 + $0x73] sm:$0xff] }
 0x65e   :  { %20965 = vmatmul.mubr.f32.gmra.mrb[32].mxu1 %v27950_v22  ;;  %v10235_v27 = vld [vmem:[#allocation6 + $0x250] sm:$0xff]  ;;  %v10236_v3 = vld [vmem:[#allocation6 + $0x258] sm:$0xff]  ;;  %v10022_v33 = vld [vmem:[#allocation3 + $0xc3] sm:$0xff] }
 0x65f   :  { %20967 = vmatprep.mubr.f32.mxu1 %v27953_v53  ;;  %22320 = vmatpush3.bf16.msra.mxu1 %v22317_v17  ;;  %v10232_v17 = vld [vmem:[#allocation6 + $0x238] sm:$0xff]  ;;  %v28010_v26 = vld [vmem:[#allocation3 + $0xe3] sm:$0xff]  ;;  %v10422_v11 = vld [vmem:[#allocation6 + $0x290] sm:$0xff] }
 0x660   :  { %22322 = vmatprep.subr.bf16.mxu1 %v22321_v55  ;;  %v22357_v15 = vpack.c.bf16 %v10232_v17, %v10231_v1  ;;  %v28007_v58 = vld [vmem:[#allocation3 + $0xd3] sm:$0xff]  ;;  %v28016_v16 = vld [vmem:[#allocation3 + $0x103] sm:$0xff] }
 0x661   :  { %v28019_v6 = vld [vmem:[#allocation3 + $0x113] sm:$0xff]  ;;  %v10420_v39 = vld [vmem:[#allocation6 + $0x280] sm:$0xff] }
 0x662   :  { %20968 = vmatmul.mubr.f32.gmra.mrb[34].mxu1 %v27956_v8  ;;  %v28022_v2 = vld [vmem:[#allocation3 + $0x123] sm:$0xff]  ;;  %v10423_v52 = vld [vmem:[#allocation6 + $0x298] sm:$0xff] }
 0x663   :  { %20970 = vmatprep.mubr.f32.mxu1 %v27959_v44  ;;  %22324 = vmatpush3.bf16.msra.mxu1 %v22321_v55  ;;  %v22361_v55 = vpack.c.bf16 %v10234_v31, %v10233_v25  ;;  %v28028_v56 = vld [vmem:[#allocation3 + $0x14] sm:$0xff]  ;;  %v10424_v45 = vld [vmem:[#allocation6 + $0x2a0] sm:$0xff] }
 0x664   :  { %22326 = vmatprep.subr.bf16.mxu1 %v22325_v37  ;;  %v28031_v1 = vld [vmem:[#allocation3 + $0x24] sm:$0xff]  ;;  %v10426_v25 = vld [vmem:[#allocation6 + $0x2b0] sm:$0xff]  ;;  %v10427_v31 = vld [vmem:[#allocation6 + $0x2b8] sm:$0xff] }
 0x666   :  { %20971 = vmatmul.mubr.f32.gmra.mrb[36].mxu1 %v27962_v24 }
 0x667   :  { %20973 = vmatprep.mubr.f32.mxu1 %v9828_v60  ;;  %22328 = vmatpush3.bf16.msra.mxu1 %v22325_v37  ;;  %v22365_v37 = vpack.c.bf16 %v10236_v3, %v10235_v27  ;;  %v28013_v60 = vld [vmem:[#allocation3 + $0xf3] sm:$0xff]  ;;  %v22389_v27 = vpack.c.bf16 %v10427_v31, %v10426_v25 }
 0x668   :  { %22330 = vmatprep.subr.bf16.mxu1 %v22329_v19  ;;  %v28040_v3 = vld [vmem:[#allocation3 + $0x54] sm:$0xff] }
 0x669   :  { %v28061_v31 = vld [vmem:[#allocation3 + $0x114] sm:$0xff] }
 0x66a   :  { %20974 = vmatmul.mubr.f32.gmra.mrb[38].mxu1 %v27965_v62 }
 0x66b   :  { %20976 = vmatprep.mubr.f32.mxu1 %v27968_v63  ;;  %22332 = vmatpush3.bf16.msra.mxu1 %v22329_v19  ;;  %v10238_v19 = vld [vmem:[#allocation6 + $0x268] sm:$0xff] }
 0x66c   :  { %22334 = vmatprep.subr.bf16.mxu1 %v22333_v23  ;;  %v22369_v51 = vpack.c.bf16 %v10238_v19, %v10237_v10  ;;  %v28043_v10 = vld [vmem:[#allocation3 + $0x64] sm:$0xff] }
 0x66e   :  { %20977 = vmatmul.mubr.f32.gmra.mrb[40].mxu1 %v27971_v14 }
 0x66f   :  { %20979 = vmatprep.mubr.f32.mxu1 %v27974_v40  ;;  %22336 = vmatpush3.bf16.msra.mxu1 %v22333_v23  ;;  %v10239_v23 = vld [vmem:[#allocation6 + $0x270] sm:$0xff] }
 0x670   :  { %22338 = vmatprep.subr.bf16.mxu1 %v22337_v12 }
 0x672   :  { %20980 = vmatmul.mubr.f32.gmra.mrb[42].mxu1 %v27977_v20 }
 0x673   :  { %20982 = vmatprep.mubr.f32.mxu1 %v27980_v30  ;;  %22340 = vmatpush3.bf16.msra.mxu1 %v22337_v12  ;;  %v22373_v12 = vpack.c.bf16 %v10240_v35, %v10239_v23  ;;  %v10430_v23 = vld [vmem:[#allocation6 + $0x2d0] sm:$0xff]  ;;  %v10431_v35 = vld [vmem:[#allocation6 + $0x2d8] sm:$0xff] }
 0x674   :  { %22342 = vmatprep.subr.bf16.mxu1 %v22341_v57 }
 0x676   :  { %20983 = vmatmul.mubr.f32.gmra.mrb[44].mxu1 %v27983_v7 }
 0x677   :  { %22344 = vmatpush3.bf16.msra.mxu1 %v22341_v57  ;;  %21017 = vmatprep.mubr.f32.mxu1 %v10014_v46  ;;  %v10421_v57 = vld [vmem:[#allocation6 + $0x288] sm:$0xff] }
 0x678   :  { %22346 = vmatprep.subr.bf16.mxu1 %v22345_v43  ;;  %v22377_v34 = vpack.c.bf16 %v10421_v57, %v10420_v39  ;;  %v10208_v46 = vld [vmem:[#allocation3 + $0x4] sm:$0xff]  ;;  %v22397_v39 = vpack.c.bf16 %v10431_v35, %v10430_v23  ;;  %v28049_v57 = vld [vmem:[#allocation3 + $0xd4] sm:$0xff] }
 0x679   :  { %v28067_v23 = vld [vmem:[#allocation3 + $0x134] sm:$0xff] }
 0x67a   :  { %21018 = vmatmul.mubr.f32.vlgmr.msra.gmra.mrb[30].mxu1 %v27986_v54  ;;  %v10616_v35 = vld [vmem:[#allocation6 + $0x310] sm:$0xff] }
 0x67b   :  { %21020 = vmatprep.mubr.f32.mxu1 %v27989_v5  ;;  %22348 = vmatpush3.bf16.msra.mxu1 %v22345_v43  ;;  %v28025_v43 = vld [vmem:[#allocation3 + $0x133] sm:$0xff] }
 0x67c   :  { %22350 = vmatprep.subr.bf16.mxu1 %v22349_v9 }
 0x67e   :  { %21021 = vmatmul.mubr.f32.gmra.mrb[32].mxu1 %v27992_v48 }
 0x67f   :  { %21023 = vmatprep.mubr.f32.mxu1 %v27995_v38  ;;  %22352 = vmatpush3.bf16.msra.mxu1 %v22349_v9  ;;  %v22381_v9 = vpack.c.bf16 %v10423_v52, %v10422_v11  ;;  %v10433_v11 = vld [vmem:[#allocation6 + $0x2e8] sm:$0xff] }
 0x680   :  { %22354 = vmatprep.subr.bf16.mxu1 %v22353_v61  ;;  %v28052_v52 = vld [vmem:[#allocation3 + $0xe4] sm:$0xff] }
 0x682   :  { %21024 = vmatmul.mubr.f32.gmra.mrb[34].mxu1 %v27998_v21 }
 0x683   :  { %21026 = vmatprep.mubr.f32.mxu1 %v28001_v49  ;;  %22356 = vmatpush3.bf16.msra.mxu1 %v22353_v61  ;;  %v10425_v61 = vld [vmem:[#allocation6 + $0x2a8] sm:$0xff] }
 0x684   :  { %22358 = vmatprep.subr.bf16.mxu1 %v22357_v15  ;;  %v22385_v17 = vpack.c.bf16 %v10425_v61, %v10424_v45  ;;  %v10434_v45 = vld [vmem:[#allocation6 + $0x2f0] sm:$0xff]  ;;  %v10435_v61 = vld [vmem:[#allocation6 + $0x2f8] sm:$0xff] }
 0x685   :  { %v22405_v25 = vpack.c.bf16 %v10435_v61, %v10434_v45  ;;  %v10620_v45 = vld [vmem:[#allocation6 + $0x330] sm:$0xff]  ;;  %v10621_v61 = vld [vmem:[#allocation6 + $0x338] sm:$0xff] }
 0x686   :  { %21027 = vmatmul.mubr.f32.gmra.mrb[36].mxu1 %v28004_v29 }
 0x687   :  { %21029 = vmatprep.mubr.f32.mxu1 %v10022_v33  ;;  %22360 = vmatpush3.bf16.msra.mxu1 %v22357_v15  ;;  %v28034_v15 = vld [vmem:[#allocation3 + $0x34] sm:$0xff]  ;;  %v10428_v33 = vld [vmem:[#allocation6 + $0x2c0] sm:$0xff] }
 0x688   :  { %22362 = vmatprep.subr.bf16.mxu1 %v22361_v55 }
 0x68a   :  { %21030 = vmatmul.mubr.f32.gmra.mrb[38].mxu1 %v28007_v58 }
 0x68b   :  { %21032 = vmatprep.mubr.f32.mxu1 %v28010_v26  ;;  %22364 = vmatpush3.bf16.msra.mxu1 %v22361_v55  ;;  %v28037_v55 = vld [vmem:[#allocation3 + $0x44] sm:$0xff] }
 0x68c   :  { %22366 = vmatprep.subr.bf16.mxu1 %v22365_v37 }
 0x68e   :  { %21033 = vmatmul.mubr.f32.gmra.mrb[40].mxu1 %v28013_v60 }
 0x68f   :  { %21035 = vmatprep.mubr.f32.mxu1 %v28016_v16  ;;  %22368 = vmatpush3.bf16.msra.mxu1 %v22365_v37  ;;  %v10429_v37 = vld [vmem:[#allocation6 + $0x2c8] sm:$0xff] }
 0x690   :  { %22370 = vmatprep.subr.bf16.mxu1 %v22369_v51  ;;  %v22393_v19 = vpack.c.bf16 %v10429_v37, %v10428_v33  ;;  %v10615_v33 = vld [vmem:[#allocation6 + $0x308] sm:$0xff] }
 0x691   :  { %v28064_v37 = vld [vmem:[#allocation3 + $0x124] sm:$0xff] }
 0x692   :  { %21036 = vmatmul.mubr.f32.gmra.mrb[42].mxu1 %v28019_v6 }
 0x693   :  { %21038 = vmatprep.mubr.f32.mxu1 %v28022_v2  ;;  %22372 = vmatpush3.bf16.msra.mxu1 %v22369_v51  ;;  %v28046_v51 = vld [vmem:[#allocation3 + $0x74] sm:$0xff] }
 0x694   :  { %22374 = vmatprep.subr.bf16.mxu1 %v22373_v12 }
 0x696   :  { %21039 = vmatmul.mubr.f32.gmra.mrb[44].mxu1 %v28025_v43 }
 0x697   :  { %22376 = vmatpush3.bf16.msra.mxu1 %v22373_v12  ;;  %21073 = vmatprep.mubr.f32.mxu1 %v10208_v46  ;;  %v10216_v12 = vld [vmem:[#allocation3 + $0xc4] sm:$0xff] }
 0x698   :  { %22378 = vmatprep.subr.bf16.mxu1 %v22377_v34 }
 0x69a   :  { %21074 = vmatmul.mubr.f32.vlgmr.msra.gmra.mrb[30].mxu1 %v28028_v56 }
 0x69b   :  { %21076 = vmatprep.mubr.f32.mxu1 %v28031_v1  ;;  %22380 = vmatpush3.bf16.msra.mxu1 %v22377_v34  ;;  %v10432_v34 = vld [vmem:[#allocation6 + $0x2e0] sm:$0xff] }
 0x69c   :  { %22382 = vmatprep.subr.bf16.mxu1 %v22381_v9  ;;  %v22401_v46 = vpack.c.bf16 %v10433_v11, %v10432_v34  ;;  %v10618_v34 = vld [vmem:[#allocation6 + $0x320] sm:$0xff]  ;;  %v10619_v11 = vld [vmem:[#allocation6 + $0x328] sm:$0xff] }
 0x69e   :  { %21077 = vmatmul.mubr.f32.gmra.mrb[32].mxu1 %v28034_v15 }
 0x69f   :  { %21079 = vmatprep.mubr.f32.mxu1 %v28037_v55  ;;  %22384 = vmatpush3.bf16.msra.mxu1 %v22381_v9  ;;  %v28055_v9 = vld [vmem:[#allocation3 + $0xf4] sm:$0xff] }
 0x6a0   :  { %22386 = vmatprep.subr.bf16.mxu1 %v22385_v17 }
 0x6a2   :  { %21080 = vmatmul.mubr.f32.gmra.mrb[34].mxu1 %v28040_v3 }
 0x6a3   :  { %21082 = vmatprep.mubr.f32.mxu1 %v28043_v10  ;;  %22388 = vmatpush3.bf16.msra.mxu1 %v22385_v17  ;;  %v28058_v17 = vld [vmem:[#allocation3 + $0x104] sm:$0xff] }
 0x6a4   :  { %22390 = vmatprep.subr.bf16.mxu1 %v22389_v27 }
 0x6a6   :  { %21083 = vmatmul.mubr.f32.gmra.mrb[36].mxu1 %v28046_v51 }
 0x6a7   :  { %21085 = vmatprep.mubr.f32.mxu1 %v10216_v12  ;;  %22392 = vmatpush3.bf16.msra.mxu1 %v22389_v27  ;;  %v10614_v27 = vld [vmem:[#allocation6 + $0x300] sm:$0xff]  ;;  %v10617_v12 = vld [vmem:[#allocation6 + $0x318] sm:$0xff] }
 0x6a8   :  { %22394 = vmatprep.subr.bf16.mxu1 %v22393_v19 }
 0x6aa   :  { %21086 = vmatmul.mubr.f32.gmra.mrb[38].mxu1 %v28049_v57 }
 0x6ab   :  { %21088 = vmatprep.mubr.f32.mxu1 %v28052_v52  ;;  %22396 = vmatpush3.bf16.msra.mxu1 %v22393_v19  ;;  %v22409_v19 = vpack.c.bf16 %v10615_v33, %v10614_v27  ;;  %v10623_v27 = vld [vmem:[#allocation6 + $0x348] sm:$0xff]  ;;  %v10625_v33 = vld [vmem:[#allocation6 + $0x358] sm:$0xff] }
 0x6ac   :  { %22398 = vmatprep.subr.bf16.mxu1 %v22397_v39 }
 0x6ae   :  { %21089 = vmatmul.mubr.f32.gmra.mrb[40].mxu1 %v28055_v9 }
 0x6af   :  { %21091 = vmatprep.mubr.f32.mxu1 %v28058_v17  ;;  %22400 = vmatpush3.bf16.msra.mxu1 %v22397_v39  ;;  %v22413_v39 = vpack.c.bf16 %v10617_v12, %v10616_v35  ;;  %v28080_v35 = vld [vmem:[#allocation3 + $0xe0] sm:$0xff] }
 0x6b0   :  { %22402 = vmatprep.subr.bf16.mxu1 %v22401_v46  ;;  %v10626_v12 = vld [vmem:[#allocation6 + $0x360] sm:$0xff] }
 0x6b2   :  { %21092 = vmatmul.mubr.f32.gmra.mrb[42].mxu1 %v28061_v31 }
 0x6b3   :  { %21094 = vmatprep.mubr.f32.mxu1 %v28064_v37  ;;  %22404 = vmatpush3.bf16.msra.mxu1 %v22401_v46  ;;  %v22417_v46 = vpack.c.bf16 %v10619_v11, %v10618_v34  ;;  %v28086_v34 = vld [vmem:[#allocation3 + $0x100] sm:$0xff]  ;;  %v10628_v11 = vld [vmem:[#allocation6 + $0x370] sm:$0xff] }
 0x6b4   :  { %22406 = vmatprep.subr.bf16.mxu1 %v22405_v25 }
 0x6b6   :  { %21095 = vmatmul.mubr.f32.gmra.mrb[44].mxu1 %v28067_v23 }
 0x6b7   :  { %22408 = vmatpush3.bf16.msra.mxu1 %v22405_v25  ;;  %21129 = vmatprep.mubr.f32.mxu1 %v27883_v36  ;;  %v22421_v36 = vpack.c.bf16 %v10621_v61, %v10620_v45  ;;  %v10622_v25 = vld [vmem:[#allocation6 + $0x340] sm:$0xff]  ;;  %v28089_v45 = vld [vmem:[#allocation3 + $0x110] sm:$0xff] }
 0x6b8   :  { %22410 = vmatprep.subr.bf16.mxu1 %v22409_v19 }
 0x6ba   :  { %21130 = vmatmul.mubr.f32.vlgmr.msra.gmra.mrb[30].mxu1 %v27886_v47  ;;  %v22425_v47 = vpack.c.bf16 %v10623_v27, %v10622_v25  ;;  %v10808_v25 = vld [vmem:[#allocation6 + $0x380] sm:$0xff]  ;;  %v10809_v27 = vld [vmem:[#allocation6 + $0x388] sm:$0xff] }
 0x6bb   :  { %21132 = vmatprep.mubr.f32.mxu1 %v27893_v13  ;;  %22412 = vmatpush3.bf16.msra.mxu1 %v22409_v19  ;;  %v10624_v13 = vld [vmem:[#allocation6 + $0x350] sm:$0xff]  ;;  %v28077_v19 = vld [vmem:[#allocation3 + $0x80] sm:$0xff] }
 0x6bc   :  { %22414 = vmatprep.subr.bf16.mxu1 %v22413_v39 }
 0x6be   :  { %21133 = vmatmul.mubr.f32.gmra.mrb[32].mxu1 %v27897_v59  ;;  %v10411_v59 = vld [vmem:[#allocation3 + $0xd0] sm:$0xff] }
 0x6bf   :  { %21135 = vmatprep.mubr.f32.mxu1 %v27904_v4  ;;  %22416 = vmatpush3.bf16.msra.mxu1 %v22413_v39  ;;  %v22429_v4 = vpack.c.bf16 %v10625_v33, %v10624_v13  ;;  %v10810_v13 = vld [vmem:[#allocation6 + $0x390] sm:$0xff]  ;;  %v10811_v33 = vld [vmem:[#allocation6 + $0x398] sm:$0xff] }
 0x6c0   :  { %22418 = vmatprep.subr.bf16.mxu1 %v22417_v46 }
 0x6c2   :  { %21136 = vmatmul.mubr.f32.gmra.mrb[34].mxu1 %v27907_v32  ;;  %v10627_v32 = vld [vmem:[#allocation6 + $0x368] sm:$0xff] }
 0x6c3   :  { %21138 = vmatprep.mubr.f32.mxu1 %v27914_v50  ;;  %22420 = vmatpush3.bf16.msra.mxu1 %v22417_v46  ;;  %v28083_v50 = vld [vmem:[#allocation3 + $0xf0] sm:$0xff]  ;;  %v22433_v39 = vpack.c.bf16 %v10627_v32, %v10626_v12  ;;  %v10629_v46 = vld [vmem:[#allocation6 + $0x378] sm:$0xff]  ;;  %v28098_v12 = vld [vmem:[#allocation3 + $0x21] sm:$0xff] }
 0x6c4   :  { %22422 = vmatprep.subr.bf16.mxu1 %v22421_v36  ;;  %v22437_v61 = vpack.c.bf16 %v10629_v46, %v10628_v11  ;;  %v10812_v32 = vld [vmem:[#allocation6 + $0x3a0] sm:$0xff]  ;;  %v10813_v11 = vld [vmem:[#allocation6 + $0x3a8] sm:$0xff]  ;;  %v10815_v46 = vld [vmem:[#allocation6 + $0x3b8] sm:$0xff] }
 0x6c6   :  { %21139 = vmatmul.mubr.f32.gmra.mrb[36].mxu1 %v28077_v19 }
 0x6c7   :  { %21141 = vmatprep.mubr.f32.mxu1 %v10411_v59  ;;  %22424 = vmatpush3.bf16.msra.mxu1 %v22421_v36  ;;  %v28092_v36 = vld [vmem:[#allocation3 + $0x120] sm:$0xff]  ;;  %v10597_v59 = vld [vmem:[#allocation3 + $0x11] sm:$0xff] }
 0x6c8   :  { %22426 = vmatprep.subr.bf16.mxu1 %v22425_v47 }
 0x6ca   :  { %21142 = vmatmul.mubr.f32.gmra.mrb[38].mxu1 %v28080_v35 }
 0x6cb   :  { %21144 = vmatprep.mubr.f32.mxu1 %v28083_v50  ;;  %22428 = vmatpush3.bf16.msra.mxu1 %v22425_v47  ;;  %v22441_v47 = vpack.c.bf16 %v10809_v27, %v10808_v25  ;;  %v28110_v27 = vld [vmem:[#allocation3 + $0x61] sm:$0xff] }
 0x6cc   :  { %22430 = vmatprep.subr.bf16.mxu1 %v22429_v4  ;;  %30803 = vst [vmem:[#allocation82_spill] sm:$0xff] %v28110_v27 }
 0x6ce   :  { %21145 = vmatmul.mubr.f32.gmra.mrb[40].mxu1 %v28086_v34 }
 0x6cf   :  { %21147 = vmatprep.mubr.f32.mxu1 %v28089_v45  ;;  %22432 = vmatpush3.bf16.msra.mxu1 %v22429_v4  ;;  %v22445_v4 = vpack.c.bf16 %v10811_v33, %v10810_v13  ;;  %v10816_v13 = vld [vmem:[#allocation6 + $0x3c0] sm:$0xff]  ;;  %v10817_v33 = vld [vmem:[#allocation6 + $0x3c8] sm:$0xff] }
 0x6d0   :  { %22434 = vmatprep.subr.bf16.mxu1 %v22433_v39 }
 0x6d2   :  { %21148 = vmatmul.mubr.f32.gmra.mrb[42].mxu1 %v28092_v36 }
 0x6d3   :  { %21150 = vmatprep.mubr.f32.mxu1 %v27867_v28  ;;  %22436 = vmatpush3.bf16.msra.mxu1 %v22433_v39  ;;  %v28101_v28 = vld [vmem:[#allocation3 + $0x31] sm:$0xff]  ;;  %v22449_v39 = vpack.c.bf16 %v10813_v11, %v10812_v32  ;;  %v28116_v32 = vld [vmem:[#allocation3 + $0x81] sm:$0xff] }
 0x6d4   :  { %22438 = vmatprep.subr.bf16.mxu1 %v22437_v61  ;;  %30804 = vst [vmem:[#allocation83_spill] sm:$0xff] %v28116_v32  ;;  %v10818_v11 = vld [vmem:[#allocation6 + $0x3d0] sm:$0xff] }
 0x6d6   :  { %21151 = vmatmul.mubr.f32.gmra.mrb[44].mxu1 %v9409_v42  ;;  %v10814_v42 = vld [vmem:[#allocation6 + $0x3b0] sm:$0xff] }
 0x6d7   :  { %22440 = vmatpush3.bf16.msra.mxu1 %v22437_v61  ;;  %21185 = vmatprep.mubr.f32.mxu1 %v10597_v59  ;;  %v28107_v61 = vld [vmem:[#allocation3 + $0x51] sm:$0xff]  ;;  %v22453_v25 = vpack.c.bf16 %v10815_v46, %v10814_v42  ;;  %v22457_v59 = vpack.c.bf16 %v10817_v33, %v10816_v13  ;;  %v28119_v46 = vld [vmem:[#allocation3 + $0xe1] sm:$0xff] }
 0x6d8   :  { %22442 = vmatprep.subr.bf16.mxu1 %v22441_v47  ;;  %30802 = vst [vmem:[#allocation81_spill] sm:$0xff] %v28107_v61  ;;  %30805 = vst [vmem:[#allocation84_spill] sm:$0xff] %v28119_v46  ;;  %v28125_v33 = vld [vmem:[#allocation3 + $0x101] sm:$0xff] }
 0x6d9   :  { %30807 = vst [vmem:[#allocation86_spill] sm:$0xff] %v28125_v33 }
 0x6da   :  { %21186 = vmatmul.mubr.f32.vlgmr.msra.gmra.mrb[30].mxu1 %v28098_v12 }
 0x6db   :  { %21188 = vmatprep.mubr.f32.mxu1 %v28101_v28  ;;  %22444 = vmatpush3.bf16.msra.mxu1 %v22441_v47  ;;  %v28113_v47 = vld [vmem:[#allocation3 + $0x71] sm:$0xff] }
 0x6dc   :  { %22446 = vmatprep.subr.bf16.mxu1 %v22445_v4 }
 0x6de   :  { %21189 = vmatmul.mubr.f32.gmra.mrb[32].mxu1 %v28104_v18  ;;  %v10821_v18 = vld [vmem:[#allocation6 + $0x3e8] sm:$0xff] }
 0x6df   :  { %21191 = vmatprep.mubr.f32.mxu1 %v28107_v61  ;;  %22448 = vmatpush3.bf16.msra.mxu1 %v22445_v4  ;;  %v10819_v61 = vld [vmem:[#allocation6 + $0x3d8] sm:$0xff] }
 0x6e0   :  { %22450 = vmatprep.subr.bf16.mxu1 %v22449_v39  ;;  %v10605_v4 = vld [vmem:[#allocation3 + $0xd1] sm:$0xff]  ;;  %v22461_v42 = vpack.c.bf16 %v10819_v61, %v10818_v11  ;;  %v28131_v11 = vld [vmem:[#allocation3 + $0x121] sm:$0xff] }
 0x6e1   :  { %v28128_v61 = vld [vmem:[#allocation3 + $0x111] sm:$0xff] }
 0x6e2   :  { %21192 = vmatmul.mubr.f32.gmra.mrb[34].mxu1 %v28110_v27  ;;  %v10820_v27 = vld [vmem:[#allocation6 + $0x3e0] sm:$0xff]  ;;  %30808 = vst [vmem:[#allocation12_spill] sm:$0xff] %v28128_v61 }
 0x6e3   :  { %21194 = vmatprep.mubr.f32.mxu1 %v28113_v47  ;;  %22452 = vmatpush3.bf16.msra.mxu1 %v22449_v39  ;;  %v28122_v39 = vld [vmem:[#allocation3 + $0xf1] sm:$0xff]  ;;  %v22465_v13 = vpack.c.bf16 %v10821_v18, %v10820_v27 }
 0x6e4   :  { %22454 = vmatprep.subr.bf16.mxu1 %v22453_v25  ;;  %30806 = vst [vmem:[#allocation85_spill] sm:$0xff] %v28122_v39  ;;  %v28134_v18 = vld [vmem:[#allocation3 + $0x131] sm:$0xff] }
 0x6e6   :  { %21195 = vmatmul.mubr.f32.gmra.mrb[36].mxu1 %v28116_v32  ;;  %v10822_v32 = vld [vmem:[#allocation6 + $0x3f0] sm:$0xff] }
 0x6e7   :  { %21197 = vmatprep.mubr.f32.mxu1 %v10605_v4  ;;  %22456 = vmatpush3.bf16.msra.mxu1 %v22453_v25  ;;  %v10823_v4 = vld [vmem:[#allocation6 + $0x3f8] sm:$0xff] }
 0x6e8   :  { %22458 = vmatprep.subr.bf16.mxu1 %v22457_v59  ;;  %v22469_v25 = vpack.c.bf16 %v10823_v4, %v10822_v32  ;;  %v11007_v4 = vld [vmem:[#allocation6 + $0x428] sm:$0xff] }
 0x6ea   :  { %21198 = vmatmul.mubr.f32.gmra.mrb[38].mxu1 %v28119_v46  ;;  %v11002_v46 = vld [vmem:[#allocation6 + $0x400] sm:$0xff] }
 0x6eb   :  { %21200 = vmatprep.mubr.f32.mxu1 %v28122_v39  ;;  %22460 = vmatpush3.bf16.msra.mxu1 %v22457_v59  ;;  %v11003_v39 = vld [vmem:[#allocation6 + $0x408] sm:$0xff] }
 0x6ec   :  { %22462 = vmatprep.subr.bf16.mxu1 %v22461_v42  ;;  %v22473_v27 = vpack.c.bf16 %v11003_v39, %v11002_v46  ;;  %v28137_v59 = vld [vmem:[#allocation3 + $0x141] sm:$0xff]  ;;  %v11008_v39 = vld [vmem:[#allocation6 + $0x430] sm:$0xff] }
 0x6ee   :  { %21201 = vmatmul.mubr.f32.gmra.mrb[40].mxu1 %v28125_v33  ;;  %v11004_v33 = vld [vmem:[#allocation6 + $0x410] sm:$0xff] }
 0x6ef   :  { %21203 = vmatprep.mubr.f32.mxu1 %v28128_v61  ;;  %22464 = vmatpush3.bf16.msra.mxu1 %v22461_v42  ;;  %v11005_v61 = vld [vmem:[#allocation6 + $0x418] sm:$0xff]  ;;  %v11006_v42 = vld [vmem:[#allocation6 + $0x420] sm:$0xff] }
 0x6f0   :  { %22466 = vmatprep.subr.bf16.mxu1 %v22465_v13  ;;  %v22477_v32 = vpack.c.bf16 %v11005_v61, %v11004_v33  ;;  %v22481_v46 = vpack.c.bf16 %v11007_v4, %v11006_v42  ;;  %v11011_v33 = vld [vmem:[#allocation6 + $0x448] sm:$0xff]  ;;  %v11012_v61 = vld [vmem:[#allocation6 + $0x450] sm:$0xff]  ;;  %v11017_v42 = vld [vmem:[#allocation6 + $0x478] sm:$0xff] }
 0x6f1   :  { %v11196_v4 = vld [vmem:[#allocation6 + $0x480] sm:$0xff] }
 0x6f2   :  { %21204 = vmatmul.mubr.f32.gmra.mrb[42].mxu1 %v28131_v11 }
 0x6f3   :  { %21206 = vmatprep.mubr.f32.mxu1 %v28134_v18  ;;  %22468 = vmatpush3.bf16.msra.mxu1 %v22465_v13  ;;  %v11009_v13 = vld [vmem:[#allocation6 + $0x438] sm:$0xff] }
 0x6f4   :  { %22470 = vmatprep.subr.bf16.mxu1 %v22469_v25 }
 0x6f6   :  { %21207 = vmatmul.mubr.f32.gmra.mrb[44].mxu1 %v28137_v59 }
 0x6f7   :  { %22472 = vmatpush3.bf16.msra.mxu1 %v22469_v25  ;;  %21241 = vmatprep.mubr.f32.mxu1 %v27942_v41  ;;  %v22485_v41 = vpack.c.bf16 %v11009_v13, %v11008_v39  ;;  %v11010_v25 = vld [vmem:[#allocation6 + $0x440] sm:$0xff]  ;;  %v11198_v39 = vld [vmem:[#allocation6 + $0x490] sm:$0xff]  ;;  %v11199_v13 = vld [vmem:[#allocation6 + $0x498] sm:$0xff] }
 0x6f8   :  { %22474 = vmatprep.subr.bf16.mxu1 %v22473_v27 }
 0x6fa   :  { %21242 = vmatmul.mubr.f32.vlgmr.msra.gmra.mrb[30].mxu1 %v27945_v0  ;;  %v22489_v0 = vpack.c.bf16 %v11011_v33, %v11010_v25  ;;  %v11203_v25 = vld [vmem:[#allocation6 + $0x4b8] sm:$0xff]  ;;  %v11204_v33 = vld [vmem:[#allocation6 + $0x4c0] sm:$0xff] }
 0x6fb   :  { %21244 = vmatprep.mubr.f32.mxu1 %v27950_v22  ;;  %22476 = vmatpush3.bf16.msra.mxu1 %v22473_v27  ;;  %v28147_v22 = vld [vmem:[#allocation3 + $0x82] sm:$0xff]  ;;  %v11013_v27 = vld [vmem:[#allocation6 + $0x458] sm:$0xff] }
 0x6fc   :  { %22478 = vmatprep.subr.bf16.mxu1 %v22477_v32 }
 0x6fe   :  { %21245 = vmatmul.mubr.f32.gmra.mrb[32].mxu1 %v27953_v53  ;;  %v22493_v53 = vpack.c.bf16 %v11013_v27, %v11012_v61  ;;  %v11206_v61 = vld [vmem:[#allocation6 + $0x4d0] sm:$0xff]  ;;  %v11207_v27 = vld [vmem:[#allocation6 + $0x4d8] sm:$0xff] }
 0x6ff   :  { %21247 = vmatprep.mubr.f32.mxu1 %v27956_v8  ;;  %22480 = vmatpush3.bf16.msra.mxu1 %v22477_v32  ;;  %v11014_v8 = vld [vmem:[#allocation6 + $0x460] sm:$0xff]  ;;  %v11015_v32 = vld [vmem:[#allocation6 + $0x468] sm:$0xff] }
 0x700   :  { %22482 = vmatprep.subr.bf16.mxu1 %v22481_v46 }
 0x702   :  { %21248 = vmatmul.mubr.f32.gmra.mrb[34].mxu1 %v27959_v44  ;;  %v22497_v44 = vpack.c.bf16 %v11015_v32, %v11014_v8  ;;  %v11211_v8 = vld [vmem:[#allocation6 + $0x4f8] sm:$0xff]  ;;  %v11391_v32 = vld [vmem:[#allocation6 + $0x500] sm:$0xff] }
 0x703   :  { %21250 = vmatprep.mubr.f32.mxu1 %v27962_v24  ;;  %22484 = vmatpush3.bf16.msra.mxu1 %v22481_v46  ;;  %v11016_v24 = vld [vmem:[#allocation6 + $0x470] sm:$0xff]  ;;  %v11197_v46 = vld [vmem:[#allocation6 + $0x488] sm:$0xff] }
 0x704   :  { %22486 = vmatprep.subr.bf16.mxu1 %v22485_v41 }
 0x706   :  { %21251 = vmatmul.mubr.f32.gmra.mrb[36].mxu1 %v28147_v22 }
 0x707   :  { %21253 = vmatprep.mubr.f32.mxu1 %v27965_v62  ;;  %22488 = vmatpush3.bf16.msra.mxu1 %v22485_v41  ;;  %v22501_v62 = vpack.c.bf16 %v11017_v42, %v11016_v24  ;;  %v11201_v41 = vld [vmem:[#allocation6 + $0x4a8] sm:$0xff]  ;;  %v11393_v24 = vld [vmem:[#allocation6 + $0x510] sm:$0xff]  ;;  %v11394_v42 = vld [vmem:[#allocation6 + $0x518] sm:$0xff] }
 0x708   :  { %22490 = vmatprep.subr.bf16.mxu1 %v22489_v0 }
 0x70a   :  { %21254 = vmatmul.mubr.f32.gmra.mrb[38].mxu1 %v27968_v63  ;;  %v22505_v63 = vpack.c.bf16 %v11197_v46, %v11196_v4  ;;  %v11398_v4 = vld [vmem:[#allocation6 + $0x538] sm:$0xff]  ;;  %v11399_v46 = vld [vmem:[#allocation6 + $0x540] sm:$0xff] }
 0x70b   :  { %21256 = vmatprep.mubr.f32.mxu1 %v27971_v14  ;;  %22492 = vmatpush3.bf16.msra.mxu1 %v22489_v0  ;;  %v28157_v14 = vld [vmem:[#allocation3 + $0x142] sm:$0xff] }
 0x70c   :  { %22494 = vmatprep.subr.bf16.mxu1 %v22493_v53  ;;  %v11205_v0 = vld [vmem:[#allocation6 + $0x4c8] sm:$0xff] }
 0x70e   :  { %21257 = vmatmul.mubr.f32.gmra.mrb[40].mxu1 %v27974_v40  ;;  %v22509_v40 = vpack.c.bf16 %v11199_v13, %v11198_v39  ;;  %v11401_v39 = vld [vmem:[#allocation6 + $0x550] sm:$0xff]  ;;  %v11402_v13 = vld [vmem:[#allocation6 + $0x558] sm:$0xff] }
 0x70f   :  { %21259 = vmatprep.mubr.f32.mxu1 %v27977_v20  ;;  %22496 = vmatpush3.bf16.msra.mxu1 %v22493_v53  ;;  %v11200_v20 = vld [vmem:[#allocation6 + $0x4a0] sm:$0xff]  ;;  %v11209_v53 = vld [vmem:[#allocation6 + $0x4e8] sm:$0xff] }
 0x710   :  { %22498 = vmatprep.subr.bf16.mxu1 %v22497_v44 }
 0x712   :  { %21260 = vmatmul.mubr.f32.gmra.mrb[42].mxu1 %v27980_v30  ;;  %v22513_v30 = vpack.c.bf16 %v11201_v41, %v11200_v20  ;;  %v11406_v20 = vld [vmem:[#allocation6 + $0x578] sm:$0xff]  ;;  %v11585_v41 = vld [vmem:[#allocation6 + $0x580] sm:$0xff] }
 0x713   :  { %21262 = vmatprep.mubr.f32.mxu1 %v27983_v7  ;;  %22500 = vmatpush3.bf16.msra.mxu1 %v22497_v44  ;;  %v11202_v7 = vld [vmem:[#allocation6 + $0x4b0] sm:$0xff]  ;;  %v11392_v44 = vld [vmem:[#allocation6 + $0x508] sm:$0xff] }
 0x714   :  { %22502 = vmatprep.subr.bf16.mxu1 %v22501_v62 }
 0x716   :  { %21263 = vmatmul.mubr.f32.gmra.mrb[44].mxu1 %v28157_v14 }
 0x717   :  { %22504 = vmatpush3.bf16.msra.mxu1 %v22501_v62  ;;  %21297 = vmatprep.mubr.f32.mxu1 %v27986_v54  ;;  %v22517_v54 = vpack.c.bf16 %v11203_v25, %v11202_v7  ;;  %v11396_v62 = vld [vmem:[#allocation6 + $0x528] sm:$0xff]  ;;  %v11587_v7 = vld [vmem:[#allocation6 + $0x590] sm:$0xff]  ;;  %v11588_v25 = vld [vmem:[#allocation6 + $0x598] sm:$0xff] }
 0x718   :  { %22506 = vmatprep.subr.bf16.mxu1 %v22505_v63 }
 0x71a   :  { %21298 = vmatmul.mubr.f32.vlgmr.msra.gmra.mrb[30].mxu1 %v27989_v5  ;;  %v22521_v5 = vpack.c.bf16 %v11205_v0, %v11204_v33  ;;  %v11589_v33 = vld [vmem:[#allocation6 + $0x5a0] sm:$0xff] }
 0x71b   :  { %21300 = vmatprep.mubr.f32.mxu1 %v27992_v48  ;;  %22508 = vmatpush3.bf16.msra.mxu1 %v22505_v63  ;;  %v28167_v48 = vld [vmem:[#allocation3 + $0x83] sm:$0xff] }
 0x71c   :  { %22510 = vmatprep.subr.bf16.mxu1 %v22509_v40  ;;  %v11400_v63 = vld [vmem:[#allocation6 + $0x548] sm:$0xff] }
 0x71e   :  { %21301 = vmatmul.mubr.f32.gmra.mrb[32].mxu1 %v27995_v38  ;;  %v22525_v38 = vpack.c.bf16 %v11207_v27, %v11206_v61  ;;  %v11591_v61 = vld [vmem:[#allocation6 + $0x5b0] sm:$0xff]  ;;  %v11592_v27 = vld [vmem:[#allocation6 + $0x5b8] sm:$0xff] }
 0x71f   :  { %21303 = vmatprep.mubr.f32.mxu1 %v27998_v21  ;;  %22512 = vmatpush3.bf16.msra.mxu1 %v22509_v40  ;;  %v11208_v21 = vld [vmem:[#allocation6 + $0x4e0] sm:$0xff]  ;;  %v11404_v40 = vld [vmem:[#allocation6 + $0x568] sm:$0xff] }
 0x720   :  { %22514 = vmatprep.subr.bf16.mxu1 %v22513_v30 }
 0x722   :  { %21304 = vmatmul.mubr.f32.gmra.mrb[34].mxu1 %v28001_v49  ;;  %v22529_v49 = vpack.c.bf16 %v11209_v53, %v11208_v21  ;;  %v22581_v21 = vpack.c.bf16 %v11592_v27, %v11591_v61  ;;  %v28212_v53 = vld [vmem:[#allocation3 + $0x70] sm:$0xff]  ;;  %v30816_v61 = vld [vmem:[#allocation12_spill] sm:$0xff] }
 0x723   :  { %21306 = vmatprep.mubr.f32.mxu1 %v28004_v29  ;;  %22516 = vmatpush3.bf16.msra.mxu1 %v22513_v30  ;;  %v11210_v29 = vld [vmem:[#allocation6 + $0x4f0] sm:$0xff]  ;;  %v11586_v30 = vld [vmem:[#allocation6 + $0x588] sm:$0xff] }
 0x724   :  { %22518 = vmatprep.subr.bf16.mxu1 %v22517_v54 }
 0x726   :  { %21307 = vmatmul.mubr.f32.gmra.mrb[36].mxu1 %v28167_v48 }
 0x727   :  { %21309 = vmatprep.mubr.f32.mxu1 %v28007_v58  ;;  %22520 = vmatpush3.bf16.msra.mxu1 %v22517_v54  ;;  %v22533_v58 = vpack.c.bf16 %v11211_v8, %v11210_v29  ;;  %v28200_v54 = vld [vmem:[#allocation3 + $0x30] sm:$0xff]  ;;  %v11594_v29 = vld [vmem:[#allocation6 + $0x5c8] sm:$0xff] }
 0x728   :  { %22522 = vmatprep.subr.bf16.mxu1 %v22521_v5 }
 0x72a   :  { %21310 = vmatmul.mubr.f32.gmra.mrb[38].mxu1 %v28010_v26  ;;  %v22537_v26 = vpack.c.bf16 %v11392_v44, %v11391_v32  ;;  %v11596_v32 = vld [vmem:[#allocation6 + $0x5d8] sm:$0xff]  ;;  %v28216_v44 = vld [vmem:[#allocation3 + $0x90] sm:$0xff] }
 0x72b   :  { %21312 = vmatprep.mubr.f32.mxu1 %v28013_v60  ;;  %22524 = vmatpush3.bf16.msra.mxu1 %v22521_v5  ;;  %v28177_v60 = vld [vmem:[#allocation3 + $0x143] sm:$0xff]  ;;  %v28206_v5 = vld [vmem:[#allocation3 + $0x50] sm:$0xff] }
 0x72c   :  { %22526 = vmatprep.subr.bf16.mxu1 %v22525_v38 }
 0x72e   :  { %21313 = vmatmul.mubr.f32.gmra.mrb[40].mxu1 %v28016_v16  ;;  %v22541_v16 = vpack.c.bf16 %v11394_v42, %v11393_v24  ;;  %v11597_v24 = vld [vmem:[#allocation6 + $0x5e0] sm:$0xff]  ;;  %v11598_v42 = vld [vmem:[#allocation6 + $0x5e8] sm:$0xff] }
 0x72f   :  { %21315 = vmatprep.mubr.f32.mxu1 %v28019_v6  ;;  %22528 = vmatpush3.bf16.msra.mxu1 %v22525_v38  ;;  %v11395_v6 = vld [vmem:[#allocation6 + $0x520] sm:$0xff] }
 0x730   :  { %22530 = vmatprep.subr.bf16.mxu1 %v22529_v49  ;;  %v28209_v38 = vld [vmem:[#allocation3 + $0x60] sm:$0xff] }
 0x732   :  { %21316 = vmatmul.mubr.f32.gmra.mrb[42].mxu1 %v28022_v2  ;;  %v22545_v2 = vpack.c.bf16 %v11396_v62, %v11395_v6  ;;  %v11600_v6 = vld [vmem:[#allocation6 + $0x5f8] sm:$0xff]  ;;  %v28224_v62 = vld [vmem:[#allocation3 + $0x130] sm:$0xff] }
 0x733   :  { %21318 = vmatprep.mubr.f32.mxu1 %v28025_v43  ;;  %22532 = vmatpush3.bf16.msra.mxu1 %v22529_v49  ;;  %v11397_v43 = vld [vmem:[#allocation6 + $0x530] sm:$0xff]  ;;  %v11593_v49 = vld [vmem:[#allocation6 + $0x5c0] sm:$0xff] }
 0x734   :  { %22534 = vmatprep.subr.bf16.mxu1 %v22533_v58  ;;  %v22585_v8 = vpack.c.bf16 %v11594_v29, %v11593_v49  ;;  %v11974_v49 = vld [vmem:[#allocation6 + $0x688] sm:$0xff] }
 0x736   :  { %21319 = vmatmul.mubr.f32.gmra.mrb[44].mxu1 %v28177_v60 }
 0x737   :  { %22536 = vmatpush3.bf16.msra.mxu1 %v22533_v58  ;;  %21353 = vmatprep.mubr.f32.mxu1 %v28028_v56  ;;  %v22549_v56 = vpack.c.bf16 %v11398_v4, %v11397_v43  ;;  %v11595_v58 = vld [vmem:[#allocation6 + $0x5d0] sm:$0xff]  ;;  %v11780_v43 = vld [vmem:[#allocation6 + $0x608] sm:$0xff] }
 0x738   :  { %22538 = vmatprep.subr.bf16.mxu1 %v22537_v26  ;;  %v11781_v4 = vld [vmem:[#allocation6 + $0x610] sm:$0xff] }
 0x73a   :  { %21354 = vmatmul.mubr.f32.vlgmr.msra.gmra.mrb[30].mxu1 %v28031_v1  ;;  %v22553_v1 = vpack.c.bf16 %v11400_v63, %v11399_v46  ;;  %v28227_v46 = vld [vmem:[#allocation3 + $0x150] sm:$0xff]  ;;  %v11784_v63 = vld [vmem:[#allocation6 + $0x628] sm:$0xff] }
 0x73b   :  { %21356 = vmatprep.mubr.f32.mxu1 %v28034_v15  ;;  %22540 = vmatpush3.bf16.msra.mxu1 %v22537_v26  ;;  %v28187_v15 = vld [vmem:[#allocation3 + $0x84] sm:$0xff]  ;;  %v22589_v26 = vpack.c.bf16 %v11596_v32, %v11595_v58  ;;  %v11975_v58 = vld [vmem:[#allocation6 + $0x690] sm:$0xff]  ;;  %v11976_v32 = vld [vmem:[#allocation6 + $0x698] sm:$0xff] }
 0x73c   :  { %22542 = vmatprep.subr.bf16.mxu1 %v22541_v16 }
 0x73e   :  { %21357 = vmatmul.mubr.f32.gmra.mrb[32].mxu1 %v28037_v55  ;;  %v22557_v55 = vpack.c.bf16 %v11402_v13, %v11401_v39  ;;  %v11785_v13 = vld [vmem:[#allocation6 + $0x630] sm:$0xff] }
 0x73f   :  { %21359 = vmatprep.mubr.f32.mxu1 %v28040_v3  ;;  %22544 = vmatpush3.bf16.msra.mxu1 %v22541_v16  ;;  %v11403_v3 = vld [vmem:[#allocation6 + $0x560] sm:$0xff]  ;;  %v11599_v16 = vld [vmem:[#allocation6 + $0x5f0] sm:$0xff] }
 0x740   :  { %22546 = vmatprep.subr.bf16.mxu1 %v22545_v2 }
 0x742   :  { %21360 = vmatmul.mubr.f32.gmra.mrb[34].mxu1 %v28043_v10  ;;  %v22561_v10 = vpack.c.bf16 %v11404_v40, %v11403_v3  ;;  %v30810_v3 = vld [vmem:[#allocation81_spill] sm:$0xff]  ;;  %v30811_v40 = vld [vmem:[#allocation82_spill] sm:$0xff] }
 0x743   :  { %21362 = vmatprep.mubr.f32.mxu1 %v28046_v51  ;;  %22548 = vmatpush3.bf16.msra.mxu1 %v22545_v2  ;;  %v11405_v51 = vld [vmem:[#allocation6 + $0x570] sm:$0xff]  ;;  %v11779_v2 = vld [vmem:[#allocation6 + $0x600] sm:$0xff] }
 0x744   :  { %22550 = vmatprep.subr.bf16.mxu1 %v22549_v56 }
 0x746   :  { %21363 = vmatmul.mubr.f32.gmra.mrb[36].mxu1 %v28187_v15 }
 0x747   :  { %21365 = vmatprep.mubr.f32.mxu1 %v28049_v57  ;;  %22552 = vmatpush3.bf16.msra.mxu1 %v22549_v56  ;;  %v22565_v57 = vpack.c.bf16 %v11406_v20, %v11405_v51  ;;  %v11782_v56 = vld [vmem:[#allocation6 + $0x618] sm:$0xff]  ;;  %v11788_v51 = vld [vmem:[#allocation6 + $0x648] sm:$0xff] }
 0x748   :  { %22554 = vmatprep.subr.bf16.mxu1 %v22553_v1  ;;  %v30812_v20 = vld [vmem:[#allocation83_spill] sm:$0xff] }
 0x74a   :  { %21366 = vmatmul.mubr.f32.gmra.mrb[38].mxu1 %v28052_v52  ;;  %v22569_v52 = vpack.c.bf16 %v11586_v30, %v11585_v41  ;;  %v11789_v41 = vld [vmem:[#allocation6 + $0x650] sm:$0xff]  ;;  %v11790_v30 = vld [vmem:[#allocation6 + $0x658] sm:$0xff] }
 0x74b   :  { %21368 = vmatprep.mubr.f32.mxu1 %v28055_v9  ;;  %22556 = vmatpush3.bf16.msra.mxu1 %v22553_v1  ;;  %v28197_v9 = vld [vmem:[#allocation3 + $0x144] sm:$0xff] }
 0x74c   :  { %22558 = vmatprep.subr.bf16.mxu1 %v22557_v55  ;;  %v30809_v1 = vld [vmem:[#allocation80_spill] sm:$0xff] }
 0x74e   :  { %21369 = vmatmul.mubr.f32.gmra.mrb[40].mxu1 %v28058_v17  ;;  %v11374_v17 = vld [vmem:[#allocation3 + $0x20] sm:$0xff] }
 0x74f   :  { %21371 = vmatprep.mubr.f32.mxu1 %v28061_v31  ;;  %22560 = vmatpush3.bf16.msra.mxu1 %v22557_v55  ;;  %v22573_v31 = vpack.c.bf16 %v11588_v25, %v11587_v7  ;;  %v11786_v55 = vld [vmem:[#allocation6 + $0x638] sm:$0xff]  ;;  %v22621_v7 = vpack.c.bf16 %v11790_v30, %v11789_v41  ;;  %v11791_v25 = vld [vmem:[#allocation6 + $0x660] sm:$0xff] }
 0x750   :  { %22562 = vmatprep.subr.bf16.mxu1 %v22561_v10  ;;  %v28281_v41 = vld [vmem:[#allocation3 + $0x132] sm:$0xff]  ;;  %v12167_v30 = vld [vmem:[#allocation6 + $0x700] sm:$0xff] }
 0x752   :  { %21372 = vmatmul.mubr.f32.gmra.mrb[42].mxu1 %v28064_v37  ;;  %v11590_v37 = vld [vmem:[#allocation6 + $0x5a8] sm:$0xff] }
 0x753   :  { %21374 = vmatprep.mubr.f32.mxu1 %v28067_v23  ;;  %22564 = vmatpush3.bf16.msra.mxu1 %v22561_v10  ;;  %v28203_v23 = vld [vmem:[#allocation3 + $0x40] sm:$0xff]  ;;  %v22577_v0 = vpack.c.bf16 %v11590_v37, %v11589_v33  ;;  %v11793_v37 = vld [vmem:[#allocation6 + $0x670] sm:$0xff] }
 0x754   :  { %22566 = vmatprep.subr.bf16.mxu1 %v22565_v57  ;;  %v11787_v10 = vld [vmem:[#allocation6 + $0x640] sm:$0xff] }
 0x756   :  { %21375 = vmatmul.mubr.f32.gmra.mrb[44].mxu1 %v28197_v9 }
 0x757   :  { %22568 = vmatpush3.bf16.msra.mxu1 %v22565_v57  ;;  %21409 = vmatprep.mubr.f32.mxu1 %v11374_v17  ;;  %v28237_v57 = vld [vmem:[#allocation3 + $0x91] sm:$0xff]  ;;  %v11792_v17 = vld [vmem:[#allocation6 + $0x668] sm:$0xff] }
 0x758   :  { %22570 = vmatprep.subr.bf16.mxu1 %v22569_v52  ;;  %v22625_v33 = vpack.c.bf16 %v11792_v17, %v11791_v25  ;;  %v28285_v25 = vld [vmem:[#allocation3 + $0x152] sm:$0xff] }
 0x759   :  { %v12169_v17 = vld [vmem:[#allocation6 + $0x710] sm:$0xff] }
 0x75a   :  { %21410 = vmatmul.mubr.f32.vlgmr.msra.gmra.mrb[30].mxu1 %v28200_v54 }
 0x75b   :  { %21412 = vmatprep.mubr.f32.mxu1 %v28203_v23  ;;  %22572 = vmatpush3.bf16.msra.mxu1 %v22569_v52  ;;  %v30813_v52 = vld [vmem:[#allocation84_spill] sm:$0xff] }
 0x75c   :  { %22574 = vmatprep.subr.bf16.mxu1 %v22573_v31 }
 0x75e   :  { %21413 = vmatmul.mubr.f32.gmra.mrb[32].mxu1 %v28206_v5 }
 0x75f   :  { %21415 = vmatprep.mubr.f32.mxu1 %v28209_v38  ;;  %22576 = vmatpush3.bf16.msra.mxu1 %v22573_v31  ;;  %v30814_v31 = vld [vmem:[#allocation85_spill] sm:$0xff] }
 0x760   :  { %22578 = vmatprep.subr.bf16.mxu1 %v22577_v0 }
 0x762   :  { %21416 = vmatmul.mubr.f32.gmra.mrb[34].mxu1 %v28212_v53 }
 0x763   :  { %21418 = vmatprep.mubr.f32.mxu1 %v28077_v19  ;;  %22580 = vmatpush3.bf16.msra.mxu1 %v22577_v0  ;;  %v22593_v19 = vpack.c.bf16 %v11598_v42, %v11597_v24  ;;  %v11794_v0 = vld [vmem:[#allocation6 + $0x678] sm:$0xff]  ;;  %v11977_v42 = vld [vmem:[#allocation6 + $0x6a0] sm:$0xff] }
 0x764   :  { %22582 = vmatprep.subr.bf16.mxu1 %v22581_v21  ;;  %v22629_v27 = vpack.c.bf16 %v11794_v0, %v11793_v37  ;;  %v28250_v24 = vld [vmem:[#allocation3 + $0x32] sm:$0xff]  ;;  %v12171_v0 = vld [vmem:[#allocation6 + $0x720] sm:$0xff] }
 0x765   :  { %v28288_v37 = vld [vmem:[#allocation3 + $0x33] sm:$0xff] }
 0x766   :  { %21419 = vmatmul.mubr.f32.gmra.mrb[36].mxu1 %v28216_v44 }
 0x767   :  { %21421 = vmatprep.mubr.f32.mxu1 %v28080_v35  ;;  %22584 = vmatpush3.bf16.msra.mxu1 %v22581_v21  ;;  %v22597_v35 = vpack.c.bf16 %v11600_v6, %v11599_v16  ;;  %v11973_v21 = vld [vmem:[#allocation6 + $0x680] sm:$0xff]  ;;  %v28256_v16 = vld [vmem:[#allocation3 + $0x52] sm:$0xff] }
 0x768   :  { %22586 = vmatprep.subr.bf16.mxu1 %v22585_v8  ;;  %v22633_v29 = vpack.c.bf16 %v11974_v49, %v11973_v21  ;;  %v11979_v6 = vld [vmem:[#allocation6 + $0x6b0] sm:$0xff] }
 0x769   :  { %v28294_v21 = vld [vmem:[#allocation3 + $0x53] sm:$0xff] }
 0x76a   :  { %21422 = vmatmul.mubr.f32.gmra.mrb[38].mxu1 %v28083_v50  ;;  %v24621_v50 = vld [vmem:[#allocation3 + $0x140] sm:$0xff]  ;;  %v12173_v49 = vld [vmem:[#allocation6 + $0x730] sm:$0xff] }
 0x76b   :  { %21424 = vmatprep.mubr.f32.mxu1 %v28086_v34  ;;  %22588 = vmatpush3.bf16.msra.mxu1 %v22585_v8  ;;  %v22601_v34 = vpack.c.bf16 %v11780_v43, %v11779_v2  ;;  %v28247_v8 = vld [vmem:[#allocation3 + $0x151] sm:$0xff]  ;;  %v28259_v2 = vld [vmem:[#allocation3 + $0x62] sm:$0xff] }
 0x76c   :  { %22590 = vmatprep.subr.bf16.mxu1 %v22589_v26 }
 0x76e   :  { %21425 = vmatmul.mubr.f32.gmra.mrb[40].mxu1 %v28089_v45  ;;  %v22605_v45 = vpack.c.bf16 %v11782_v56, %v11781_v4  ;;  %v11982_v4 = vld [vmem:[#allocation6 + $0x6c8] sm:$0xff] }
 0x76f   :  { %21427 = vmatprep.mubr.f32.mxu1 %v28092_v36  ;;  %22592 = vmatpush3.bf16.msra.mxu1 %v22589_v26  ;;  %v11783_v36 = vld [vmem:[#allocation6 + $0x620] sm:$0xff] }
 0x770   :  { %22594 = vmatprep.subr.bf16.mxu1 %v22593_v19  ;;  %v22609_v39 = vpack.c.bf16 %v11784_v63, %v11783_v36  ;;  %v11762_v26 = vld [vmem:[#allocation3 + $0x22] sm:$0xff]  ;;  %v11983_v36 = vld [vmem:[#allocation6 + $0x6d0] sm:$0xff]  ;;  %v11984_v63 = vld [vmem:[#allocation6 + $0x6d8] sm:$0xff] }
 0x772   :  { %21428 = vmatmul.mubr.f32.gmra.mrb[42].mxu1 %v28224_v62 }
 0x773   :  { %21430 = vmatprep.mubr.f32.mxu1 %v24621_v50  ;;  %22596 = vmatpush3.bf16.msra.mxu1 %v22593_v19  ;;  %v28262_v50 = vld [vmem:[#allocation3 + $0x72] sm:$0xff] }
 0x774   :  { %22598 = vmatprep.subr.bf16.mxu1 %v22597_v35 }
 0x776   :  { %21431 = vmatmul.mubr.f32.gmra.mrb[44].mxu1 %v28227_v46 }
 0x777   :  { %22600 = vmatpush3.bf16.msra.mxu1 %v22597_v35  ;;  %21465 = vmatprep.mubr.f32.mxu1 %v28098_v12  ;;  %v22613_v12 = vpack.c.bf16 %v11786_v55, %v11785_v13  ;;  %v11980_v35 = vld [vmem:[#allocation6 + $0x6b8] sm:$0xff]  ;;  %v11985_v55 = vld [vmem:[#allocation6 + $0x6e0] sm:$0xff] }
 0x778   :  { %22602 = vmatprep.subr.bf16.mxu1 %v22601_v34  ;;  %v22645_v43 = vpack.c.bf16 %v11980_v35, %v11979_v6  ;;  %v28269_v13 = vld [vmem:[#allocation3 + $0xf2] sm:$0xff] }
 0x779   :  { %v12177_v6 = vld [vmem:[#allocation6 + $0x750] sm:$0xff]  ;;  %v12178_v35 = vld [vmem:[#allocation6 + $0x758] sm:$0xff] }
 0x77a   :  { %21466 = vmatmul.mubr.f32.vlgmr.msra.gmra.mrb[30].mxu1 %v28101_v28  ;;  %v22617_v28 = vpack.c.bf16 %v11788_v51, %v11787_v10  ;;  %v11987_v10 = vld [vmem:[#allocation6 + $0x6f0] sm:$0xff]  ;;  %v11988_v51 = vld [vmem:[#allocation6 + $0x6f8] sm:$0xff] }
 0x77b   :  { %21468 = vmatprep.mubr.f32.mxu1 %v30809_v1  ;;  %22604 = vmatpush3.bf16.msra.mxu1 %v22601_v34  ;;  %v11981_v34 = vld [vmem:[#allocation6 + $0x6c0] sm:$0xff] }
 0x77c   :  { %22606 = vmatprep.subr.bf16.mxu1 %v22605_v45  ;;  %v22649_v56 = vpack.c.bf16 %v11982_v4, %v11981_v34  ;;  %v11770_v1 = vld [vmem:[#allocation3 + $0xe2] sm:$0xff]  ;;  %v22685_v34 = vpack.c.bf16 %v12178_v35, %v12177_v6  ;;  %v28307_v4 = vld [vmem:[#allocation3 + $0xf3] sm:$0xff] }
 0x77d   :  { %v12370_v6 = vld [vmem:[#allocation6 + $0x7c0] sm:$0xff]  ;;  %v12371_v35 = vld [vmem:[#allocation6 + $0x7c8] sm:$0xff] }
 0x77e   :  { %21469 = vmatmul.mubr.f32.gmra.mrb[32].mxu1 %v30810_v3  ;;  %v11986_v3 = vld [vmem:[#allocation6 + $0x6e8] sm:$0xff] }
 0x77f   :  { %21471 = vmatprep.mubr.f32.mxu1 %v30811_v40  ;;  %22608 = vmatpush3.bf16.msra.mxu1 %v22605_v45  ;;  %v28266_v45 = vld [vmem:[#allocation3 + $0x92] sm:$0xff]  ;;  %v22657_v40 = vpack.c.bf16 %v11986_v3, %v11985_v55  ;;  %v28316_v3 = vld [vmem:[#allocation3 + $0x123] sm:$0xff] }
 0x780   :  { %22610 = vmatprep.subr.bf16.mxu1 %v22609_v39  ;;  %v12182_v55 = vld [vmem:[#allocation6 + $0x778] sm:$0xff] }
 0x782   :  { %21472 = vmatmul.mubr.f32.gmra.mrb[34].mxu1 %v28113_v47  ;;  %v30815_v47 = vld [vmem:[#allocation86_spill] sm:$0xff] }
 0x783   :  { %21474 = vmatprep.mubr.f32.mxu1 %v30812_v20  ;;  %22612 = vmatpush3.bf16.msra.mxu1 %v22609_v39  ;;  %v22653_v39 = vpack.c.bf16 %v11984_v63, %v11983_v36  ;;  %v28278_v20 = vld [vmem:[#allocation3 + $0x122] sm:$0xff] }
 0x784   :  { %22614 = vmatprep.subr.bf16.mxu1 %v22613_v12  ;;  %v12180_v36 = vld [vmem:[#allocation6 + $0x768] sm:$0xff] }
 0x786   :  { %21475 = vmatmul.mubr.f32.gmra.mrb[36].mxu1 %v28237_v57 }
 0x787   :  { %21477 = vmatprep.mubr.f32.mxu1 %v30813_v52  ;;  %22616 = vmatpush3.bf16.msra.mxu1 %v22613_v12  ;;  %v28275_v12 = vld [vmem:[#allocation3 + $0x112] sm:$0xff]  ;;  %v12168_v52 = vld [vmem:[#allocation6 + $0x708] sm:$0xff] }
 0x788   :  { %22618 = vmatprep.subr.bf16.mxu1 %v22617_v28 }
 0x78a   :  { %21478 = vmatmul.mubr.f32.gmra.mrb[38].mxu1 %v30814_v31  ;;  %v12170_v31 = vld [vmem:[#allocation6 + $0x718] sm:$0xff] }
 0x78b   :  { %21480 = vmatprep.mubr.f32.mxu1 %v30815_v47  ;;  %22620 = vmatpush3.bf16.msra.mxu1 %v22617_v28  ;;  %v22661_v28 = vpack.c.bf16 %v11988_v51, %v11987_v10  ;;  %v11956_v47 = vld [vmem:[#allocation3 + $0x23] sm:$0xff]  ;;  %v28319_v10 = vld [vmem:[#allocation3 + $0x133] sm:$0xff] }
 0x78c   :  { %22622 = vmatprep.subr.bf16.mxu1 %v22621_v7  ;;  %v12362_v51 = vld [vmem:[#allocation6 + $0x780] sm:$0xff] }
 0x78e   :  { %21481 = vmatmul.mubr.f32.gmra.mrb[40].mxu1 %v30816_v61  ;;  %v12172_v61 = vld [vmem:[#allocation6 + $0x728] sm:$0xff] }
 0x78f   :  { %21483 = vmatprep.mubr.f32.mxu1 %v28131_v11  ;;  %22624 = vmatpush3.bf16.msra.mxu1 %v22621_v7  ;;  %v22637_v11 = vpack.c.bf16 %v11976_v32, %v11975_v58  ;;  %v22665_v7 = vpack.c.bf16 %v12168_v52, %v12167_v30  ;;  %v28297_v58 = vld [vmem:[#allocation3 + $0x63] sm:$0xff]  ;;  %v28323_v52 = vld [vmem:[#allocation3 + $0x153] sm:$0xff] }
 0x790   :  { %22626 = vmatprep.subr.bf16.mxu1 %v22625_v33 }
 0x792   :  { %21484 = vmatmul.mubr.f32.gmra.mrb[42].mxu1 %v28134_v18  ;;  %v11978_v18 = vld [vmem:[#allocation6 + $0x6a8] sm:$0xff] }
 0x793   :  { %21486 = vmatprep.mubr.f32.mxu1 %v28137_v59  ;;  %22628 = vmatpush3.bf16.msra.mxu1 %v22625_v33  ;;  %v28253_v59 = vld [vmem:[#allocation3 + $0x42] sm:$0xff]  ;;  %v22641_v19 = vpack.c.bf16 %v11978_v18, %v11977_v42  ;;  %v22669_v33 = vpack.c.bf16 %v12170_v31, %v12169_v17  ;;  %v12365_v17 = vld [vmem:[#allocation6 + $0x798] sm:$0xff] }
 0x794   :  { %22630 = vmatprep.subr.bf16.mxu1 %v22629_v27  ;;  %v12176_v42 = vld [vmem:[#allocation6 + $0x748] sm:$0xff] }
 0x795   :  { %v12150_v31 = vld [vmem:[#allocation3 + $0x24] sm:$0xff] }
 0x796   :  { %21487 = vmatmul.mubr.f32.gmra.mrb[44].mxu1 %v28247_v8 }
 0x797   :  { %22632 = vmatpush3.bf16.msra.mxu1 %v22629_v27  ;;  %21521 = vmatprep.mubr.f32.mxu1 %v11762_v26  ;;  %v22673_v27 = vpack.c.bf16 %v12172_v61, %v12171_v0  ;;  %v28300_v26 = vld [vmem:[#allocation3 + $0x73] sm:$0xff]  ;;  %v12366_v0 = vld [vmem:[#allocation6 + $0x7a0] sm:$0xff]  ;;  %v12367_v61 = vld [vmem:[#allocation6 + $0x7a8] sm:$0xff] }
 0x798   :  { %22634 = vmatprep.subr.bf16.mxu1 %v22633_v29 }
 0x79a   :  { %21522 = vmatmul.mubr.f32.vlgmr.msra.gmra.mrb[30].mxu1 %v28250_v24 }
 0x79b   :  { %21524 = vmatprep.mubr.f32.mxu1 %v28253_v59  ;;  %22636 = vmatpush3.bf16.msra.mxu1 %v22633_v29  ;;  %v12174_v29 = vld [vmem:[#allocation6 + $0x738] sm:$0xff] }
 0x79c   :  { %22638 = vmatprep.subr.bf16.mxu1 %v22637_v11  ;;  %v22677_v32 = vpack.c.bf16 %v12174_v29, %v12173_v49  ;;  %v28332_v49 = vld [vmem:[#allocation3 + $0x54] sm:$0xff] }
 0x79d   :  { %v12368_v29 = vld [vmem:[#allocation6 + $0x7b0] sm:$0xff] }
 0x79e   :  { %21525 = vmatmul.mubr.f32.gmra.mrb[32].mxu1 %v28256_v16 }
 0x79f   :  { %21527 = vmatprep.mubr.f32.mxu1 %v28259_v2  ;;  %22640 = vmatpush3.bf16.msra.mxu1 %v22637_v11  ;;  %v12175_v11 = vld [vmem:[#allocation6 + $0x740] sm:$0xff] }
 0x7a0   :  { %22642 = vmatprep.subr.bf16.mxu1 %v22641_v19  ;;  %v22681_v18 = vpack.c.bf16 %v12176_v42, %v12175_v11  ;;  %v28335_v11 = vld [vmem:[#allocation3 + $0x64] sm:$0xff] }
 0x7a2   :  { %21528 = vmatmul.mubr.f32.gmra.mrb[34].mxu1 %v28262_v50 }
 0x7a3   :  { %21530 = vmatprep.mubr.f32.mxu1 %v28147_v22  ;;  %22644 = vmatpush3.bf16.msra.mxu1 %v22641_v19  ;;  %v28272_v22 = vld [vmem:[#allocation3 + $0x102] sm:$0xff]  ;;  %v28304_v19 = vld [vmem:[#allocation3 + $0x93] sm:$0xff] }
 0x7a4   :  { %22646 = vmatprep.subr.bf16.mxu1 %v22645_v43 }
 0x7a6   :  { %21531 = vmatmul.mubr.f32.gmra.mrb[36].mxu1 %v28266_v45 }
 0x7a7   :  { %21533 = vmatprep.mubr.f32.mxu1 %v11770_v1  ;;  %22648 = vmatpush3.bf16.msra.mxu1 %v22645_v43  ;;  %v11964_v43 = vld [vmem:[#allocation3 + $0xe3] sm:$0xff]  ;;  %v28313_v1 = vld [vmem:[#allocation3 + $0x113] sm:$0xff] }
 0x7a8   :  { %22650 = vmatprep.subr.bf16.mxu1 %v22649_v56 }
 0x7aa   :  { %21534 = vmatmul.mubr.f32.gmra.mrb[38].mxu1 %v28269_v13 }
 0x7ab   :  { %21536 = vmatprep.mubr.f32.mxu1 %v28272_v22  ;;  %22652 = vmatpush3.bf16.msra.mxu1 %v22649_v56  ;;  %v12179_v56 = vld [vmem:[#allocation6 + $0x760] sm:$0xff] }
 0x7ac   :  { %22654 = vmatprep.subr.bf16.mxu1 %v22653_v39  ;;  %v22689_v63 = vpack.c.bf16 %v12180_v36, %v12179_v56  ;;  %v12372_v56 = vld [vmem:[#allocation6 + $0x7d0] sm:$0xff]  ;;  %v12373_v36 = vld [vmem:[#allocation6 + $0x7d8] sm:$0xff] }
 0x7ae   :  { %21537 = vmatmul.mubr.f32.gmra.mrb[40].mxu1 %v28275_v12 }
 0x7af   :  { %21539 = vmatprep.mubr.f32.mxu1 %v28278_v20  ;;  %22656 = vmatpush3.bf16.msra.mxu1 %v22653_v39  ;;  %v12181_v39 = vld [vmem:[#allocation6 + $0x770] sm:$0xff] }
 0x7b0   :  { %22658 = vmatprep.subr.bf16.mxu1 %v22657_v40 }
 0x7b2   :  { %21540 = vmatmul.mubr.f32.gmra.mrb[42].mxu1 %v28281_v41 }
 0x7b3   :  { %21542 = vmatprep.mubr.f32.mxu1 %v28157_v14  ;;  %22660 = vmatpush3.bf16.msra.mxu1 %v22657_v40  ;;  %v28291_v14 = vld [vmem:[#allocation3 + $0x43] sm:$0xff]  ;;  %v22693_v40 = vpack.c.bf16 %v12182_v55, %v12181_v39  ;;  %v22717_v39 = vpack.c.bf16 %v12373_v36, %v12372_v56  ;;  %v28345_v55 = vld [vmem:[#allocation3 + $0xf4] sm:$0xff] }
 0x7b4   :  { %22662 = vmatprep.subr.bf16.mxu1 %v22661_v28  ;;  %v12561_v56 = vld [vmem:[#allocation6 + $0x828] sm:$0xff]  ;;  %v12562_v36 = vld [vmem:[#allocation6 + $0x830] sm:$0xff] }
 0x7b6   :  { %21543 = vmatmul.mubr.f32.gmra.mrb[44].mxu1 %v28285_v25 }
 0x7b7   :  { %22664 = vmatpush3.bf16.msra.mxu1 %v22661_v28  ;;  %21577 = vmatprep.mubr.f32.mxu1 %v11956_v47  ;;  %v12363_v28 = vld [vmem:[#allocation6 + $0x788] sm:$0xff] }
 0x7b8   :  { %22666 = vmatprep.subr.bf16.mxu1 %v22665_v7  ;;  %v22697_v30 = vpack.c.bf16 %v12363_v28, %v12362_v51  ;;  %v12375_v51 = vld [vmem:[#allocation6 + $0x7e8] sm:$0xff] }
 0x7ba   :  { %21578 = vmatmul.mubr.f32.vlgmr.msra.gmra.mrb[30].mxu1 %v28288_v37 }
 0x7bb   :  { %21580 = vmatprep.mubr.f32.mxu1 %v28291_v14  ;;  %22668 = vmatpush3.bf16.msra.mxu1 %v22665_v7  ;;  %v12364_v7 = vld [vmem:[#allocation6 + $0x790] sm:$0xff] }
 0x7bc   :  { %22670 = vmatprep.subr.bf16.mxu1 %v22669_v33  ;;  %v22701_v47 = vpack.c.bf16 %v12365_v17, %v12364_v7  ;;  %v12376_v7 = vld [vmem:[#allocation6 + $0x7f0] sm:$0xff]  ;;  %v12377_v17 = vld [vmem:[#allocation6 + $0x7f8] sm:$0xff] }
 0x7be   :  { %21581 = vmatmul.mubr.f32.gmra.mrb[32].mxu1 %v28294_v21 }
 0x7bf   :  { %21583 = vmatprep.mubr.f32.mxu1 %v28297_v58  ;;  %22672 = vmatpush3.bf16.msra.mxu1 %v22669_v33  ;;  %v28326_v33 = vld [vmem:[#allocation3 + $0x34] sm:$0xff] }
 0x7c0   :  { %22674 = vmatprep.subr.bf16.mxu1 %v22673_v27 }
 0x7c2   :  { %21584 = vmatmul.mubr.f32.gmra.mrb[34].mxu1 %v28300_v26 }
 0x7c3   :  { %21586 = vmatprep.mubr.f32.mxu1 %v28167_v48  ;;  %22676 = vmatpush3.bf16.msra.mxu1 %v22673_v27  ;;  %v28310_v48 = vld [vmem:[#allocation3 + $0x103] sm:$0xff]  ;;  %v22705_v27 = vpack.c.bf16 %v12367_v61, %v12366_v0  ;;  %v28357_v0 = vld [vmem:[#allocation3 + $0x134] sm:$0xff] }
 0x7c4   :  { %22678 = vmatprep.subr.bf16.mxu1 %v22677_v32  ;;  %v12556_v61 = vld [vmem:[#allocation6 + $0x800] sm:$0xff] }
 0x7c6   :  { %21587 = vmatmul.mubr.f32.gmra.mrb[36].mxu1 %v28304_v19 }
 0x7c7   :  { %21589 = vmatprep.mubr.f32.mxu1 %v11964_v43  ;;  %22680 = vmatpush3.bf16.msra.mxu1 %v22677_v32  ;;  %v12369_v32 = vld [vmem:[#allocation6 + $0x7b8] sm:$0xff]  ;;  %v22713_v43 = vpack.c.bf16 %v12371_v35, %v12370_v6 }
 0x7c8   :  { %22682 = vmatprep.subr.bf16.mxu1 %v22681_v18  ;;  %v22709_v42 = vpack.c.bf16 %v12369_v32, %v12368_v29  ;;  %v28361_v32 = vld [vmem:[#allocation3 + $0x154] sm:$0xff] }
 0x7c9   :  { %v12559_v6 = vld [vmem:[#allocation6 + $0x818] sm:$0xff] }
 0x7ca   :  { %21590 = vmatmul.mubr.f32.gmra.mrb[38].mxu1 %v28307_v4 }
 0x7cb   :  { %21592 = vmatprep.mubr.f32.mxu1 %v28310_v48  ;;  %22684 = vmatpush3.bf16.msra.mxu1 %v22681_v18  ;;  %v28338_v18 = vld [vmem:[#allocation3 + $0x74] sm:$0xff] }
 0x7cc   :  { %22686 = vmatprep.subr.bf16.mxu1 %v22685_v34 }
 0x7ce   :  { %21593 = vmatmul.mubr.f32.gmra.mrb[40].mxu1 %v28313_v1 }
 0x7cf   :  { %21595 = vmatprep.mubr.f32.mxu1 %v28316_v3  ;;  %22688 = vmatpush3.bf16.msra.mxu1 %v22685_v34  ;;  %v28342_v34 = vld [vmem:[#allocation3 + $0x94] sm:$0xff] }
 0x7d0   :  { %22690 = vmatprep.subr.bf16.mxu1 %v22689_v63 }
 0x7d2   :  { %21596 = vmatmul.mubr.f32.gmra.mrb[42].mxu1 %v28319_v10 }
 0x7d3   :  { %21598 = vmatprep.mubr.f32.mxu1 %v28177_v60  ;;  %22692 = vmatpush3.bf16.msra.mxu1 %v22689_v63  ;;  %v28329_v60 = vld [vmem:[#allocation3 + $0x44] sm:$0xff] }
 0x7d4   :  { %22694 = vmatprep.subr.bf16.mxu1 %v22693_v40  ;;  %v12158_v63 = vld [vmem:[#allocation3 + $0xe4] sm:$0xff] }
 0x7d6   :  { %21599 = vmatmul.mubr.f32.gmra.mrb[44].mxu1 %v28323_v52 }
 0x7d7   :  { %22696 = vmatpush3.bf16.msra.mxu1 %v22693_v40  ;;  %21633 = vmatprep.mubr.f32.mxu1 %v12150_v31  ;;  %v12374_v40 = vld [vmem:[#allocation6 + $0x7e0] sm:$0xff] }
 0x7d8   :  { %22698 = vmatprep.subr.bf16.mxu1 %v22697_v30  ;;  %v22721_v28 = vpack.c.bf16 %v12375_v51, %v12374_v40  ;;  %v28354_v31 = vld [vmem:[#allocation3 + $0x124] sm:$0xff] }
 0x7d9   :  { %v12564_v40 = vld [vmem:[#allocation6 + $0x840] sm:$0xff]  ;;  %v12565_v51 = vld [vmem:[#allocation6 + $0x848] sm:$0xff] }
 0x7da   :  { %21634 = vmatmul.mubr.f32.vlgmr.msra.gmra.mrb[30].mxu1 %v28326_v33 }
 0x7db   :  { %21636 = vmatprep.mubr.f32.mxu1 %v28329_v60  ;;  %22700 = vmatpush3.bf16.msra.mxu1 %v22697_v30  ;;  %v28351_v30 = vld [vmem:[#allocation3 + $0x114] sm:$0xff] }
 0x7dc   :  { %22702 = vmatprep.subr.bf16.mxu1 %v22701_v47 }
 0x7de   :  { %21637 = vmatmul.mubr.f32.gmra.mrb[32].mxu1 %v28332_v49 }
 0x7df   :  { %21639 = vmatprep.mubr.f32.mxu1 %v28335_v11  ;;  %22704 = vmatpush3.bf16.msra.mxu1 %v22701_v47  ;;  %v22725_v47 = vpack.c.bf16 %v12377_v17, %v12376_v7  ;;  %v28373_v7 = vld [vmem:[#allocation3 + $0xa0] sm:$0xff] }
 0x7e0   :  { %22706 = vmatprep.subr.bf16.mxu1 %v22705_v27  ;;  %v28376_v17 = vld [vmem:[#allocation3 + $0x100] sm:$0xff] }
 0x7e2   :  { %21640 = vmatmul.mubr.f32.gmra.mrb[34].mxu1 %v28338_v18 }
 0x7e3   :  { %21642 = vmatprep.mubr.f32.mxu1 %v28187_v15  ;;  %22708 = vmatpush3.bf16.msra.mxu1 %v22705_v27  ;;  %v28348_v15 = vld [vmem:[#allocation3 + $0x104] sm:$0xff] }
 0x7e4   :  { %22710 = vmatprep.subr.bf16.mxu1 %v22709_v42  ;;  %v12557_v27 = vld [vmem:[#allocation6 + $0x808] sm:$0xff] }
 0x7e5   :  { %v22729_v29 = vpack.c.bf16 %v12557_v27, %v12556_v61  ;;  %v12569_v61 = vld [vmem:[#allocation6 + $0x868] sm:$0xff] }
 0x7e6   :  { %21643 = vmatmul.mubr.f32.gmra.mrb[36].mxu1 %v28342_v34 }
 0x7e7   :  { %21645 = vmatprep.mubr.f32.mxu1 %v12158_v63  ;;  %22712 = vmatpush3.bf16.msra.mxu1 %v22709_v42  ;;  %v12558_v42 = vld [vmem:[#allocation6 + $0x810] sm:$0xff]  ;;  %v12563_v63 = vld [vmem:[#allocation6 + $0x838] sm:$0xff] }
 0x7e8   :  { %22714 = vmatprep.subr.bf16.mxu1 %v22713_v43  ;;  %v22733_v35 = vpack.c.bf16 %v12559_v6, %v12558_v42  ;;  %v12570_v42 = vld [vmem:[#allocation6 + $0x870] sm:$0xff]  ;;  %v12571_v6 = vld [vmem:[#allocation6 + $0x878] sm:$0xff] }
 0x7ea   :  { %21646 = vmatmul.mubr.f32.gmra.mrb[38].mxu1 %v28345_v55 }
 0x7eb   :  { %21648 = vmatprep.mubr.f32.mxu1 %v28348_v15  ;;  %22716 = vmatpush3.bf16.msra.mxu1 %v22713_v43  ;;  %v12560_v43 = vld [vmem:[#allocation6 + $0x820] sm:$0xff] }
 0x7ec   :  { %22718 = vmatprep.subr.bf16.mxu1 %v22717_v39 }
 0x7ee   :  { %21649 = vmatmul.mubr.f32.gmra.mrb[40].mxu1 %v28351_v30 }
 0x7ef   :  { %21651 = vmatprep.mubr.f32.mxu1 %v28354_v31  ;;  %22720 = vmatpush3.bf16.msra.mxu1 %v22717_v39  ;;  %v28369_v39 = vld [vmem:[#allocation3 + $0x80] sm:$0xff] }
 0x7f0   :  { %22722 = vmatprep.subr.bf16.mxu1 %v22721_v28 }
 0x7f2   :  { %21652 = vmatmul.mubr.f32.gmra.mrb[42].mxu1 %v28357_v0 }
 0x7f3   :  { %21654 = vmatprep.mubr.f32.mxu1 %v28197_v9  ;;  %22724 = vmatpush3.bf16.msra.mxu1 %v22721_v28  ;;  %v22737_v9 = vpack.c.bf16 %v12561_v56, %v12560_v43  ;;  %v12567_v28 = vld [vmem:[#allocation6 + $0x858] sm:$0xff]  ;;  %v28386_v43 = vld [vmem:[#allocation3 + $0x140] sm:$0xff] }
 0x7f4   :  { %22726 = vmatprep.subr.bf16.mxu1 %v22725_v47  ;;  %v12750_v56 = vld [vmem:[#allocation6 + $0x880] sm:$0xff] }
 0x7f6   :  { %21655 = vmatmul.mubr.f32.gmra.mrb[44].mxu1 %v28361_v32 }
 0x7f7   :  { %22728 = vmatpush3.bf16.msra.mxu1 %v22725_v47  ;;  %21689 = vmatprep.mubr.f32.mxu1 %v28200_v54  ;;  %v22741_v54 = vpack.c.bf16 %v12563_v63, %v12562_v36  ;;  %v12568_v47 = vld [vmem:[#allocation6 + $0x860] sm:$0xff]  ;;  %v12752_v63 = vld [vmem:[#allocation6 + $0x890] sm:$0xff] }
 0x7f8   :  { %22730 = vmatprep.subr.bf16.mxu1 %v22729_v29  ;;  %v22753_v27 = vpack.c.bf16 %v12569_v61, %v12568_v47  ;;  %v12756_v47 = vld [vmem:[#allocation6 + $0x8b0] sm:$0xff]  ;;  %v12757_v61 = vld [vmem:[#allocation6 + $0x8b8] sm:$0xff] }
 0x7fa   :  { %21690 = vmatmul.mubr.f32.vlgmr.msra.gmra.mrb[30].mxu1 %v28203_v23  ;;  %v22745_v23 = vpack.c.bf16 %v12565_v51, %v12564_v40  ;;  %v28390_v40 = vld [vmem:[#allocation3 + $0x160] sm:$0xff] }
 0x7fb   :  { %21692 = vmatprep.mubr.f32.mxu1 %v28206_v5  ;;  %22732 = vmatpush3.bf16.msra.mxu1 %v22729_v29  ;;  %v12566_v5 = vld [vmem:[#allocation6 + $0x850] sm:$0xff]  ;;  %v28382_v29 = vld [vmem:[#allocation3 + $0x120] sm:$0xff] }
 0x7fc   :  { %22734 = vmatprep.subr.bf16.mxu1 %v22733_v35 }
 0x7fe   :  { %21693 = vmatmul.mubr.f32.gmra.mrb[32].mxu1 %v28209_v38  ;;  %v12353_v38 = vld [vmem:[#allocation3 + $0xf0] sm:$0xff] }
 0x7ff   :  { %21695 = vmatprep.mubr.f32.mxu1 %v28212_v53  ;;  %22736 = vmatpush3.bf16.msra.mxu1 %v22733_v35  ;;  %v22749_v53 = vpack.c.bf16 %v12567_v28, %v12566_v5  ;;  %v22757_v35 = vpack.c.bf16 %v12571_v6, %v12570_v42  ;;  %v12754_v5 = vld [vmem:[#allocation6 + $0x8a0] sm:$0xff]  ;;  %v12755_v28 = vld [vmem:[#allocation6 + $0x8a8] sm:$0xff]  ;;  %v22773_v42 = vpack.c.bf16 %v12757_v61, %v12756_v47 }
 0x800   :  { %22738 = vmatprep.subr.bf16.mxu1 %v22737_v9  ;;  %v28405_v6 = vld [vmem:[#allocation3 + $0x81] sm:$0xff] }
 0x801   :  { %v12763_v47 = vld [vmem:[#allocation6 + $0x8e8] sm:$0xff] }
 0x802   :  { %21696 = vmatmul.mubr.f32.gmra.mrb[34].mxu1 %v28369_v39  ;;  %v28418_v61 = vld [vmem:[#allocation3 + $0x121] sm:$0xff] }
 0x803   :  { %21698 = vmatprep.mubr.f32.mxu1 %v28216_v44  ;;  %22740 = vmatpush3.bf16.msra.mxu1 %v22737_v9  ;;  %v28379_v44 = vld [vmem:[#allocation3 + $0x110] sm:$0xff]  ;;  %v12751_v9 = vld [vmem:[#allocation6 + $0x888] sm:$0xff]  ;;  %30818 = vst [vmem:[#allocation14_spill] sm:$0xff] %v28418_v61 }
 0x804   :  { %22742 = vmatprep.subr.bf16.mxu1 %v22741_v54  ;;  %v22761_v36 = vpack.c.bf16 %v12751_v9, %v12750_v56  ;;  %v12759_v56 = vld [vmem:[#allocation6 + $0x8c8] sm:$0xff] }
 0x806   :  { %21699 = vmatmul.mubr.f32.gmra.mrb[36].mxu1 %v28373_v7 }
 0x807   :  { %21701 = vmatprep.mubr.f32.mxu1 %v12353_v38  ;;  %22744 = vmatpush3.bf16.msra.mxu1 %v22741_v54  ;;  %v12753_v54 = vld [vmem:[#allocation6 + $0x898] sm:$0xff]  ;;  %v22769_v38 = vpack.c.bf16 %v12755_v28, %v12754_v5  ;;  %v28412_v5 = vld [vmem:[#allocation3 + $0x101] sm:$0xff] }
 0x808   :  { %22746 = vmatprep.subr.bf16.mxu1 %v22745_v23  ;;  %v22765_v51 = vpack.c.bf16 %v12753_v54, %v12752_v63  ;;  %v12760_v63 = vld [vmem:[#allocation6 + $0x8d0] sm:$0xff]  ;;  %v12761_v54 = vld [vmem:[#allocation6 + $0x8d8] sm:$0xff]  ;;  %v12762_v28 = vld [vmem:[#allocation6 + $0x8e0] sm:$0xff] }
 0x80a   :  { %21702 = vmatmul.mubr.f32.gmra.mrb[38].mxu1 %v28376_v17 }
 0x80b   :  { %21704 = vmatprep.mubr.f32.mxu1 %v28379_v44  ;;  %22748 = vmatpush3.bf16.msra.mxu1 %v22745_v23  ;;  %v28393_v23 = vld [vmem:[#allocation3 + $0x41] sm:$0xff] }
 0x80c   :  { %22750 = vmatprep.subr.bf16.mxu1 %v22749_v53 }
 0x80e   :  { %21705 = vmatmul.mubr.f32.gmra.mrb[40].mxu1 %v28382_v29 }
 0x80f   :  { %21707 = vmatprep.mubr.f32.mxu1 %v28224_v62  ;;  %22752 = vmatpush3.bf16.msra.mxu1 %v22749_v53  ;;  %v12539_v62 = vld [vmem:[#allocation3 + $0x31] sm:$0xff]  ;;  %v28399_v53 = vld [vmem:[#allocation3 + $0x61] sm:$0xff] }
 0x810   :  { %22754 = vmatprep.subr.bf16.mxu1 %v22753_v27 }
 0x812   :  { %21708 = vmatmul.mubr.f32.gmra.mrb[42].mxu1 %v28386_v43 }
 0x813   :  { %21710 = vmatprep.mubr.f32.mxu1 %v28227_v46  ;;  %22756 = vmatpush3.bf16.msra.mxu1 %v22753_v27  ;;  %v28396_v46 = vld [vmem:[#allocation3 + $0x51] sm:$0xff] }
 0x814   :  { %22758 = vmatprep.subr.bf16.mxu1 %v22757_v35  ;;  %v28402_v27 = vld [vmem:[#allocation3 + $0x71] sm:$0xff] }
 0x816   :  { %21711 = vmatmul.mubr.f32.gmra.mrb[44].mxu1 %v28390_v40 }
 0x817   :  { %22760 = vmatpush3.bf16.msra.mxu1 %v22757_v35  ;;  %21745 = vmatprep.mubr.f32.mxu1 %v12539_v62  ;;  %v12758_v35 = vld [vmem:[#allocation6 + $0x8c0] sm:$0xff]  ;;  %v12547_v62 = vld [vmem:[#allocation3 + $0xf1] sm:$0xff] }
 0x818   :  { %22762 = vmatprep.subr.bf16.mxu1 %v22761_v36  ;;  %v22777_v9 = vpack.c.bf16 %v12759_v56, %v12758_v35  ;;  %v12764_v35 = vld [vmem:[#allocation6 + $0x8f0] sm:$0xff]  ;;  %v12765_v56 = vld [vmem:[#allocation6 + $0x8f8] sm:$0xff] }
 0x81a   :  { %21746 = vmatmul.mubr.f32.vlgmr.msra.gmra.mrb[30].mxu1 %v28393_v23 }
 0x81b   :  { %21748 = vmatprep.mubr.f32.mxu1 %v28396_v46  ;;  %22764 = vmatpush3.bf16.msra.mxu1 %v22761_v36  ;;  %v28409_v36 = vld [vmem:[#allocation3 + $0xa1] sm:$0xff] }
 0x81c   :  { %22766 = vmatprep.subr.bf16.mxu1 %v22765_v51 }
 0x81e   :  { %21749 = vmatmul.mubr.f32.gmra.mrb[32].mxu1 %v28399_v53 }
 0x81f   :  { %21751 = vmatprep.mubr.f32.mxu1 %v28402_v27  ;;  %22768 = vmatpush3.bf16.msra.mxu1 %v22765_v51  ;;  %v22781_v51 = vpack.c.bf16 %v12761_v54, %v12760_v63  ;;  %v22789_v63 = vpack.c.bf16 %v12765_v56, %v12764_v35  ;;  %v28424_v54 = vld [vmem:[#allocation3 + $0x141] sm:$0xff] }
 0x820   :  { %22770 = vmatprep.subr.bf16.mxu1 %v22769_v38  ;;  %v12948_v35 = vld [vmem:[#allocation6 + $0x920] sm:$0xff]  ;;  %v12949_v56 = vld [vmem:[#allocation6 + $0x928] sm:$0xff] }
 0x822   :  { %21752 = vmatmul.mubr.f32.gmra.mrb[34].mxu1 %v28405_v6 }
 0x823   :  { %21754 = vmatprep.mubr.f32.mxu1 %v28237_v57  ;;  %22772 = vmatpush3.bf16.msra.mxu1 %v22769_v38  ;;  %v28415_v57 = vld [vmem:[#allocation3 + $0x111] sm:$0xff]  ;;  %v22785_v38 = vpack.c.bf16 %v12763_v47, %v12762_v28  ;;  %v28428_v28 = vld [vmem:[#allocation3 + $0x161] sm:$0xff] }
 0x824   :  { %22774 = vmatprep.subr.bf16.mxu1 %v22773_v42  ;;  %30817 = vst [vmem:[#allocation13_spill] sm:$0xff] %v28415_v57  ;;  %v12946_v47 = vld [vmem:[#allocation6 + $0x910] sm:$0xff] }
 0x826   :  { %21755 = vmatmul.mubr.f32.gmra.mrb[36].mxu1 %v28409_v36 }
 0x827   :  { %21757 = vmatprep.mubr.f32.mxu1 %v12547_v62  ;;  %22776 = vmatpush3.bf16.msra.mxu1 %v22773_v42  ;;  %v28421_v42 = vld [vmem:[#allocation3 + $0x131] sm:$0xff]  ;;  %v12944_v62 = vld [vmem:[#allocation6 + $0x900] sm:$0xff] }
 0x828   :  { %22778 = vmatprep.subr.bf16.mxu1 %v22777_v9 }
 0x82a   :  { %21758 = vmatmul.mubr.f32.gmra.mrb[38].mxu1 %v28412_v5 }
 0x82b   :  { %21760 = vmatprep.mubr.f32.mxu1 %v28415_v57  ;;  %22780 = vmatpush3.bf16.msra.mxu1 %v22777_v9  ;;  %v12945_v57 = vld [vmem:[#allocation6 + $0x908] sm:$0xff] }
 0x82c   :  { %22782 = vmatprep.subr.bf16.mxu1 %v22781_v51  ;;  %v22793_v9 = vpack.c.bf16 %v12945_v57, %v12944_v62  ;;  %v12950_v57 = vld [vmem:[#allocation6 + $0x930] sm:$0xff]  ;;  %v12953_v62 = vld [vmem:[#allocation6 + $0x948] sm:$0xff] }
 0x82e   :  { %21761 = vmatmul.mubr.f32.gmra.mrb[40].mxu1 %v28418_v61  ;;  %v12947_v61 = vld [vmem:[#allocation6 + $0x918] sm:$0xff] }
 0x82f   :  { %21763 = vmatprep.mubr.f32.mxu1 %v28421_v42  ;;  %22784 = vmatpush3.bf16.msra.mxu1 %v22781_v51  ;;  %v22797_v51 = vpack.c.bf16 %v12947_v61, %v12946_v47  ;;  %v12952_v61 = vld [vmem:[#allocation6 + $0x940] sm:$0xff] }
 0x830   :  { %22786 = vmatprep.subr.bf16.mxu1 %v22785_v38  ;;  %v12956_v47 = vld [vmem:[#allocation6 + $0x960] sm:$0xff] }
 0x832   :  { %21764 = vmatmul.mubr.f32.gmra.mrb[42].mxu1 %v28424_v54 }
 0x833   :  { %21766 = vmatprep.mubr.f32.mxu1 %v28247_v8  ;;  %22788 = vmatpush3.bf16.msra.mxu1 %v22785_v38  ;;  %v22801_v8 = vpack.c.bf16 %v12949_v56, %v12948_v35  ;;  %v12951_v38 = vld [vmem:[#allocation6 + $0x938] sm:$0xff]  ;;  %v12958_v35 = vld [vmem:[#allocation6 + $0x970] sm:$0xff] }
 0x834   :  { %22790 = vmatprep.subr.bf16.mxu1 %v22789_v63  ;;  %v12959_v56 = vld [vmem:[#allocation6 + $0x978] sm:$0xff] }
 0x836   :  { %21767 = vmatmul.mubr.f32.gmra.mrb[44].mxu1 %v28428_v28 }
 0x837   :  { %22792 = vmatpush3.bf16.msra.mxu1 %v22789_v63  ;;  %21801 = vmatprep.mubr.f32.mxu1 %v28250_v24  ;;  %v22805_v24 = vpack.c.bf16 %v12951_v38, %v12950_v57  ;;  %v28436_v63 = vld [vmem:[#allocation3 + $0x82] sm:$0xff] }
 0x838   :  { %22794 = vmatprep.subr.bf16.mxu1 %v22793_v9  ;;  %v13138_v57 = vld [vmem:[#allocation6 + $0x980] sm:$0xff]  ;;  %v13139_v38 = vld [vmem:[#allocation6 + $0x988] sm:$0xff] }
 0x83a   :  { %21802 = vmatmul.mubr.f32.vlgmr.msra.gmra.mrb[30].mxu1 %v28253_v59  ;;  %v22809_v59 = vpack.c.bf16 %v12953_v62, %v12952_v61  ;;  %v13142_v61 = vld [vmem:[#allocation6 + $0x9a0] sm:$0xff]  ;;  %v13143_v62 = vld [vmem:[#allocation6 + $0x9a8] sm:$0xff] }
 0x83b   :  { %21804 = vmatprep.mubr.f32.mxu1 %v28256_v16  ;;  %22796 = vmatpush3.bf16.msra.mxu1 %v22793_v9  ;;  %v28440_v16 = vld [vmem:[#allocation3 + $0xa2] sm:$0xff]  ;;  %v12954_v9 = vld [vmem:[#allocation6 + $0x950] sm:$0xff] }
 0x83c   :  { %22798 = vmatprep.subr.bf16.mxu1 %v22797_v51 }
 0x83e   :  { %21805 = vmatmul.mubr.f32.gmra.mrb[32].mxu1 %v28259_v2  ;;  %v12955_v2 = vld [vmem:[#allocation6 + $0x958] sm:$0xff] }
 0x83f   :  { %21807 = vmatprep.mubr.f32.mxu1 %v28262_v50  ;;  %22800 = vmatpush3.bf16.msra.mxu1 %v22797_v51  ;;  %v22813_v50 = vpack.c.bf16 %v12955_v2, %v12954_v9  ;;  %v12957_v51 = vld [vmem:[#allocation6 + $0x968] sm:$0xff]  ;;  %v13145_v9 = vld [vmem:[#allocation6 + $0x9b8] sm:$0xff] }
 0x840   :  { %22802 = vmatprep.subr.bf16.mxu1 %v22801_v8  ;;  %v28460_v2 = vld [vmem:[#allocation3 + $0x83] sm:$0xff] }
 0x842   :  { %21808 = vmatmul.mubr.f32.gmra.mrb[34].mxu1 %v28436_v63 }
 0x843   :  { %21810 = vmatprep.mubr.f32.mxu1 %v28266_v45  ;;  %22804 = vmatpush3.bf16.msra.mxu1 %v22801_v8  ;;  %v22817_v45 = vpack.c.bf16 %v12957_v51, %v12956_v47  ;;  %v28448_v8 = vld [vmem:[#allocation3 + $0x142] sm:$0xff]  ;;  %v13148_v51 = vld [vmem:[#allocation6 + $0x9d0] sm:$0xff] }
 0x844   :  { %22806 = vmatprep.subr.bf16.mxu1 %v22805_v24  ;;  %v13147_v47 = vld [vmem:[#allocation6 + $0x9c8] sm:$0xff] }
 0x846   :  { %21811 = vmatmul.mubr.f32.gmra.mrb[36].mxu1 %v28440_v16 }
 0x847   :  { %21813 = vmatprep.mubr.f32.mxu1 %v28269_v13  ;;  %22808 = vmatpush3.bf16.msra.mxu1 %v22805_v24  ;;  %v22821_v13 = vpack.c.bf16 %v12959_v56, %v12958_v35  ;;  %v13140_v24 = vld [vmem:[#allocation6 + $0x990] sm:$0xff]  ;;  %v13151_v35 = vld [vmem:[#allocation6 + $0x9e8] sm:$0xff] }
 0x848   :  { %22810 = vmatprep.subr.bf16.mxu1 %v22809_v59  ;;  %v13152_v56 = vld [vmem:[#allocation6 + $0x9f0] sm:$0xff] }
 0x84a   :  { %21814 = vmatmul.mubr.f32.gmra.mrb[38].mxu1 %v28272_v22  ;;  %v22825_v22 = vpack.c.bf16 %v13139_v38, %v13138_v57  ;;  %v28472_v57 = vld [vmem:[#allocation3 + $0x143] sm:$0xff] }
 0x84b   :  { %21816 = vmatprep.mubr.f32.mxu1 %v28275_v12  ;;  %22812 = vmatpush3.bf16.msra.mxu1 %v22809_v59  ;;  %v28452_v12 = vld [vmem:[#allocation3 + $0x162] sm:$0xff]  ;;  %v13144_v59 = vld [vmem:[#allocation6 + $0x9b0] sm:$0xff] }
 0x84c   :  { %22814 = vmatprep.subr.bf16.mxu1 %v22813_v50  ;;  %v13333_v38 = vld [vmem:[#allocation6 + $0xa00] sm:$0xff] }
 0x84e   :  { %21817 = vmatmul.mubr.f32.gmra.mrb[40].mxu1 %v28278_v20  ;;  %v13141_v20 = vld [vmem:[#allocation6 + $0x998] sm:$0xff] }
 0x84f   :  { %21819 = vmatprep.mubr.f32.mxu1 %v28281_v41  ;;  %22816 = vmatpush3.bf16.msra.mxu1 %v22813_v50  ;;  %v22829_v41 = vpack.c.bf16 %v13141_v20, %v13140_v24  ;;  %v13146_v50 = vld [vmem:[#allocation6 + $0x9c0] sm:$0xff]  ;;  %v13335_v24 = vld [vmem:[#allocation6 + $0xa10] sm:$0xff] }
 0x850   :  { %22818 = vmatprep.subr.bf16.mxu1 %v22817_v45  ;;  %v13337_v20 = vld [vmem:[#allocation6 + $0xa20] sm:$0xff] }
 0x852   :  { %21820 = vmatmul.mubr.f32.gmra.mrb[42].mxu1 %v28448_v8 }
 0x853   :  { %21822 = vmatprep.mubr.f32.mxu1 %v28285_v25  ;;  %22820 = vmatpush3.bf16.msra.mxu1 %v22817_v45  ;;  %v22833_v25 = vpack.c.bf16 %v13143_v62, %v13142_v61  ;;  %v13150_v45 = vld [vmem:[#allocation6 + $0x9e0] sm:$0xff]  ;;  %v13339_v61 = vld [vmem:[#allocation6 + $0xa30] sm:$0xff]  ;;  %v13340_v62 = vld [vmem:[#allocation6 + $0xa38] sm:$0xff] }
 0x854   :  { %22822 = vmatprep.subr.bf16.mxu1 %v22821_v13 }
 0x856   :  { %21823 = vmatmul.mubr.f32.gmra.mrb[44].mxu1 %v28452_v12 }
 0x857   :  { %22824 = vmatpush3.bf16.msra.mxu1 %v22821_v13  ;;  %21857 = vmatprep.mubr.f32.mxu1 %v28288_v37  ;;  %v22837_v37 = vpack.c.bf16 %v13145_v9, %v13144_v59  ;;  %v13153_v13 = vld [vmem:[#allocation6 + $0x9f8] sm:$0xff]  ;;  %v13341_v59 = vld [vmem:[#allocation6 + $0xa40] sm:$0xff]  ;;  %v13342_v9 = vld [vmem:[#allocation6 + $0xa48] sm:$0xff] }
 0x858   :  { %22826 = vmatprep.subr.bf16.mxu1 %v22825_v22 }
 0x85a   :  { %21858 = vmatmul.mubr.f32.vlgmr.msra.gmra.mrb[30].mxu1 %v28291_v14  ;;  %v22841_v14 = vpack.c.bf16 %v13147_v47, %v13146_v50  ;;  %v13345_v50 = vld [vmem:[#allocation6 + $0xa60] sm:$0xff]  ;;  %v13346_v47 = vld [vmem:[#allocation6 + $0xa68] sm:$0xff] }
 0x85b   :  { %21860 = vmatprep.mubr.f32.mxu1 %v28294_v21  ;;  %22828 = vmatpush3.bf16.msra.mxu1 %v22825_v22  ;;  %v28464_v21 = vld [vmem:[#allocation3 + $0xa3] sm:$0xff] }
 0x85c   :  { %22830 = vmatprep.subr.bf16.mxu1 %v22829_v41  ;;  %v13334_v22 = vld [vmem:[#allocation6 + $0xa08] sm:$0xff] }
 0x85e   :  { %21861 = vmatmul.mubr.f32.gmra.mrb[32].mxu1 %v28297_v58  ;;  %v13149_v58 = vld [vmem:[#allocation6 + $0x9d8] sm:$0xff] }
 0x85f   :  { %21863 = vmatprep.mubr.f32.mxu1 %v28300_v26  ;;  %22832 = vmatpush3.bf16.msra.mxu1 %v22829_v41  ;;  %v22845_v26 = vpack.c.bf16 %v13149_v58, %v13148_v51  ;;  %v13338_v41 = vld [vmem:[#allocation6 + $0xa28] sm:$0xff]  ;;  %v13348_v51 = vld [vmem:[#allocation6 + $0xa78] sm:$0xff] }
 0x860   :  { %22834 = vmatprep.subr.bf16.mxu1 %v22833_v25  ;;  %v28496_v58 = vld [vmem:[#allocation3 + $0x144] sm:$0xff] }
 0x862   :  { %21864 = vmatmul.mubr.f32.gmra.mrb[34].mxu1 %v28460_v2 }
 0x863   :  { %21866 = vmatprep.mubr.f32.mxu1 %v28304_v19  ;;  %22836 = vmatpush3.bf16.msra.mxu1 %v22833_v25  ;;  %v22849_v19 = vpack.c.bf16 %v13151_v35, %v13150_v45  ;;  %v28484_v25 = vld [vmem:[#allocation3 + $0x84] sm:$0xff]  ;;  %v13529_v35 = vld [vmem:[#allocation6 + $0xa90] sm:$0xff] }
 0x864   :  { %22838 = vmatprep.subr.bf16.mxu1 %v22837_v37  ;;  %v13528_v45 = vld [vmem:[#allocation6 + $0xa88] sm:$0xff] }
 0x866   :  { %21867 = vmatmul.mubr.f32.gmra.mrb[36].mxu1 %v28464_v21 }
 0x867   :  { %21869 = vmatprep.mubr.f32.mxu1 %v28307_v4  ;;  %22840 = vmatpush3.bf16.msra.mxu1 %v22837_v37  ;;  %v22853_v4 = vpack.c.bf16 %v13153_v13, %v13152_v56  ;;  %v13343_v37 = vld [vmem:[#allocation6 + $0xa50] sm:$0xff]  ;;  %v13531_v13 = vld [vmem:[#allocation6 + $0xaa0] sm:$0xff] }
 0x868   :  { %22842 = vmatprep.subr.bf16.mxu1 %v22841_v14  ;;  %v13317_v56 = vld [vmem:[#allocation3 + $0x50] sm:$0xff] }
 0x86a   :  { %21870 = vmatmul.mubr.f32.gmra.mrb[38].mxu1 %v28310_v48  ;;  %v22857_v48 = vpack.c.bf16 %v13334_v22, %v13333_v38  ;;  %v13318_v38 = vld [vmem:[#allocation3 + $0x60] sm:$0xff]  ;;  %v13319_v22 = vld [vmem:[#allocation3 + $0x70] sm:$0xff] }
 0x86b   :  { %21872 = vmatprep.mubr.f32.mxu1 %v28313_v1  ;;  %22844 = vmatpush3.bf16.msra.mxu1 %v22841_v14  ;;  %v28476_v1 = vld [vmem:[#allocation3 + $0x163] sm:$0xff]  ;;  %v13347_v14 = vld [vmem:[#allocation6 + $0xa70] sm:$0xff] }
 0x86c   :  { %22846 = vmatprep.subr.bf16.mxu1 %v22845_v26 }
 0x86e   :  { %21873 = vmatmul.mubr.f32.gmra.mrb[40].mxu1 %v28316_v3  ;;  %v13336_v3 = vld [vmem:[#allocation6 + $0xa18] sm:$0xff] }
 0x86f   :  { %21875 = vmatprep.mubr.f32.mxu1 %v28319_v10  ;;  %22848 = vmatpush3.bf16.msra.mxu1 %v22845_v26  ;;  %v22861_v10 = vpack.c.bf16 %v13336_v3, %v13335_v24  ;;  %v13527_v26 = vld [vmem:[#allocation6 + $0xa80] sm:$0xff]  ;;  %v13534_v24 = vld [vmem:[#allocation6 + $0xab8] sm:$0xff] }
 0x870   :  { %22850 = vmatprep.subr.bf16.mxu1 %v22849_v19 }
 0x872   :  { %21876 = vmatmul.mubr.f32.gmra.mrb[42].mxu1 %v28472_v57 }
 0x873   :  { %21878 = vmatprep.mubr.f32.mxu1 %v28323_v52  ;;  %22852 = vmatpush3.bf16.msra.mxu1 %v22849_v19  ;;  %v22865_v52 = vpack.c.bf16 %v13338_v41, %v13337_v20  ;;  %v13535_v20 = vld [vmem:[#allocation6 + $0xac0] sm:$0xff]  ;;  %v13536_v41 = vld [vmem:[#allocation6 + $0xac8] sm:$0xff] }
 0x874   :  { %22854 = vmatprep.subr.bf16.mxu1 %v22853_v4 }
 0x876   :  { %21879 = vmatmul.mubr.f32.gmra.mrb[44].mxu1 %v28476_v1 }
 0x877   :  { %22856 = vmatpush3.bf16.msra.mxu1 %v22853_v4  ;;  %21913 = vmatprep.mubr.f32.mxu1 %v28326_v33  ;;  %v22869_v33 = vpack.c.bf16 %v13340_v62, %v13339_v61  ;;  %v13532_v4 = vld [vmem:[#allocation6 + $0xaa8] sm:$0xff]  ;;  %v13537_v61 = vld [vmem:[#allocation6 + $0xad0] sm:$0xff]  ;;  %v13538_v62 = vld [vmem:[#allocation6 + $0xad8] sm:$0xff] }
 0x878   :  { %22858 = vmatprep.subr.bf16.mxu1 %v22857_v48 }
 0x87a   :  { %21914 = vmatmul.mubr.f32.vlgmr.msra.gmra.mrb[30].mxu1 %v28329_v60  ;;  %v22873_v60 = vpack.c.bf16 %v13342_v9, %v13341_v59  ;;  %v13539_v59 = vld [vmem:[#allocation6 + $0xae0] sm:$0xff]  ;;  %v13540_v9 = vld [vmem:[#allocation6 + $0xae8] sm:$0xff] }
 0x87b   :  { %21916 = vmatprep.mubr.f32.mxu1 %v28332_v49  ;;  %22860 = vmatpush3.bf16.msra.mxu1 %v22857_v48  ;;  %v28488_v49 = vld [vmem:[#allocation3 + $0xa4] sm:$0xff]  ;;  %v13533_v48 = vld [vmem:[#allocation6 + $0xab0] sm:$0xff] }
 0x87c   :  { %22862 = vmatprep.subr.bf16.mxu1 %v22861_v10  ;;  %v22901_v3 = vpack.c.bf16 %v13534_v24, %v13533_v48  ;;  %v13915_v48 = vld [vmem:[#allocation6 + $0xb80] sm:$0xff]  ;;  %v13916_v24 = vld [vmem:[#allocation6 + $0xb88] sm:$0xff] }
 0x87e   :  { %21917 = vmatmul.mubr.f32.gmra.mrb[32].mxu1 %v28335_v11  ;;  %v13344_v11 = vld [vmem:[#allocation6 + $0xa58] sm:$0xff] }
 0x87f   :  { %21919 = vmatprep.mubr.f32.mxu1 %v28338_v18  ;;  %22864 = vmatpush3.bf16.msra.mxu1 %v22861_v10  ;;  %v22877_v18 = vpack.c.bf16 %v13344_v11, %v13343_v37  ;;  %v13321_v10 = vld [vmem:[#allocation3 + $0x90] sm:$0xff]  ;;  %v13542_v11 = vld [vmem:[#allocation6 + $0xaf8] sm:$0xff] }
 0x880   :  { %22866 = vmatprep.subr.bf16.mxu1 %v22865_v52  ;;  %v13541_v37 = vld [vmem:[#allocation6 + $0xaf0] sm:$0xff] }
 0x882   :  { %21920 = vmatmul.mubr.f32.gmra.mrb[34].mxu1 %v28484_v25 }
 0x883   :  { %21922 = vmatprep.mubr.f32.mxu1 %v28342_v34  ;;  %22868 = vmatpush3.bf16.msra.mxu1 %v22865_v52  ;;  %v22881_v34 = vpack.c.bf16 %v13346_v47, %v13345_v50  ;;  %v22905_v52 = vpack.c.bf16 %v13536_v41, %v13535_v20  ;;  %v13721_v50 = vld [vmem:[#allocation6 + $0xb00] sm:$0xff]  ;;  %v13722_v47 = vld [vmem:[#allocation6 + $0xb08] sm:$0xff]  ;;  %v13917_v20 = vld [vmem:[#allocation6 + $0xb90] sm:$0xff] }
 0x884   :  { %22870 = vmatprep.subr.bf16.mxu1 %v22869_v33  ;;  %v13918_v41 = vld [vmem:[#allocation6 + $0xb98] sm:$0xff] }
 0x886   :  { %21923 = vmatmul.mubr.f32.gmra.mrb[36].mxu1 %v28488_v49 }
 0x887   :  { %21925 = vmatprep.mubr.f32.mxu1 %v28345_v55  ;;  %22872 = vmatpush3.bf16.msra.mxu1 %v22869_v33  ;;  %v22885_v55 = vpack.c.bf16 %v13348_v51, %v13347_v14  ;;  %v24625_v33 = vld [vmem:[#allocation3 + $0xb0] sm:$0xff]  ;;  %v13725_v51 = vld [vmem:[#allocation6 + $0xb20] sm:$0xff] }
 0x888   :  { %22874 = vmatprep.subr.bf16.mxu1 %v22873_v60  ;;  %v24626_v14 = vld [vmem:[#allocation3 + $0x170] sm:$0xff] }
 0x88a   :  { %21926 = vmatmul.mubr.f32.gmra.mrb[38].mxu1 %v28348_v15  ;;  %v22889_v15 = vpack.c.bf16 %v13528_v45, %v13527_v26  ;;  %v13727_v26 = vld [vmem:[#allocation6 + $0xb30] sm:$0xff]  ;;  %v13728_v45 = vld [vmem:[#allocation6 + $0xb38] sm:$0xff] }
 0x88b   :  { %21928 = vmatprep.mubr.f32.mxu1 %v28351_v30  ;;  %22876 = vmatpush3.bf16.msra.mxu1 %v22873_v60  ;;  %v28500_v30 = vld [vmem:[#allocation3 + $0x164] sm:$0xff]  ;;  %v13327_v60 = vld [vmem:[#allocation3 + $0x130] sm:$0xff] }
 0x88c   :  { %22878 = vmatprep.subr.bf16.mxu1 %v22877_v18 }
 0x88e   :  { %21929 = vmatmul.mubr.f32.gmra.mrb[40].mxu1 %v28354_v31  ;;  %v13530_v31 = vld [vmem:[#allocation6 + $0xa98] sm:$0xff] }
 0x88f   :  { %21931 = vmatprep.mubr.f32.mxu1 %v28357_v0  ;;  %22880 = vmatpush3.bf16.msra.mxu1 %v22877_v18  ;;  %v13316_v0 = vld [vmem:[#allocation3 + $0x40] sm:$0xff]  ;;  %v22893_v19 = vpack.c.bf16 %v13530_v31, %v13529_v35  ;;  %v13329_v18 = vld [vmem:[#allocation3 + $0x150] sm:$0xff]  ;;  %v13730_v31 = vld [vmem:[#allocation6 + $0xb48] sm:$0xff] }
 0x890   :  { %22882 = vmatprep.subr.bf16.mxu1 %v22881_v34  ;;  %v13729_v35 = vld [vmem:[#allocation6 + $0xb40] sm:$0xff] }
 0x892   :  { %21932 = vmatmul.mubr.f32.gmra.mrb[42].mxu1 %v28496_v58 }
 0x893   :  { %21934 = vmatprep.mubr.f32.mxu1 %v28361_v32  ;;  %22884 = vmatpush3.bf16.msra.mxu1 %v22881_v34  ;;  %v22897_v32 = vpack.c.bf16 %v13532_v4, %v13531_v13  ;;  %v13724_v34 = vld [vmem:[#allocation6 + $0xb18] sm:$0xff]  ;;  %v30819_v13 = vld [vmem:[#allocation13_spill] sm:$0xff] }
 0x894   :  { %22886 = vmatprep.subr.bf16.mxu1 %v22885_v55  ;;  %v30820_v4 = vld [vmem:[#allocation14_spill] sm:$0xff] }
 0x896   :  { %21935 = vmatmul.mubr.f32.gmra.mrb[44].mxu1 %v28500_v30 }
 0x897   :  { %22888 = vmatpush3.bf16.msra.mxu1 %v22885_v55  ;;  %21969 = vmatprep.mubr.f32.mxu1 %v13316_v0  ;;  %v13726_v55 = vld [vmem:[#allocation6 + $0xb28] sm:$0xff]  ;;  %v13731_v0 = vld [vmem:[#allocation6 + $0xb50] sm:$0xff] }
 0x898   :  { %22890 = vmatprep.subr.bf16.mxu1 %v22889_v15 }
 0x89a   :  { %21970 = vmatmul.mubr.f32.vlgmr.msra.gmra.mrb[30].mxu1 %v13317_v56  ;;  %v13734_v56 = vld [vmem:[#allocation6 + $0xb68] sm:$0xff] }
 0x89b   :  { %21972 = vmatprep.mubr.f32.mxu1 %v13318_v38  ;;  %22892 = vmatpush3.bf16.msra.mxu1 %v22889_v15  ;;  %v13515_v15 = vld [vmem:[#allocation3 + $0x91] sm:$0xff] }
 0x89c   :  { %22894 = vmatprep.subr.bf16.mxu1 %v22893_v19  ;;  %v13735_v38 = vld [vmem:[#allocation6 + $0xb70] sm:$0xff] }
 0x89e   :  { %21973 = vmatmul.mubr.f32.gmra.mrb[32].mxu1 %v13319_v22  ;;  %v13523_v22 = vld [vmem:[#allocation3 + $0x151] sm:$0xff] }
 0x89f   :  { %21975 = vmatprep.mubr.f32.mxu1 %v28369_v39  ;;  %22896 = vmatpush3.bf16.msra.mxu1 %v22893_v19  ;;  %v22909_v39 = vpack.c.bf16 %v13538_v62, %v13537_v61  ;;  %v13732_v19 = vld [vmem:[#allocation6 + $0xb58] sm:$0xff]  ;;  %v13919_v61 = vld [vmem:[#allocation6 + $0xba0] sm:$0xff]  ;;  %v13920_v62 = vld [vmem:[#allocation6 + $0xba8] sm:$0xff] }
 0x8a0   :  { %22898 = vmatprep.subr.bf16.mxu1 %v22897_v32 }
 0x8a2   :  { %21976 = vmatmul.mubr.f32.gmra.mrb[34].mxu1 %v13321_v10  ;;  %v13525_v10 = vld [vmem:[#allocation3 + $0x171] sm:$0xff] }
 0x8a3   :  { %21978 = vmatprep.mubr.f32.mxu1 %v28373_v7  ;;  %22900 = vmatpush3.bf16.msra.mxu1 %v22897_v32  ;;  %v22913_v7 = vpack.c.bf16 %v13540_v9, %v13539_v59  ;;  %v13736_v32 = vld [vmem:[#allocation6 + $0xb78] sm:$0xff]  ;;  %v13921_v59 = vld [vmem:[#allocation6 + $0xbb0] sm:$0xff] }
 0x8a4   :  { %22902 = vmatprep.subr.bf16.mxu1 %v22901_v3  ;;  %v13922_v9 = vld [vmem:[#allocation6 + $0xbb8] sm:$0xff] }
 0x8a6   :  { %21979 = vmatmul.mubr.f32.gmra.mrb[36].mxu1 %v24625_v33  ;;  %v13706_v33 = vld [vmem:[#allocation3 + $0x62] sm:$0xff] }
 0x8a7   :  { %21981 = vmatprep.mubr.f32.mxu1 %v28376_v17  ;;  %22904 = vmatpush3.bf16.msra.mxu1 %v22901_v3  ;;  %v22917_v17 = vpack.c.bf16 %v13542_v11, %v13541_v37  ;;  %v22953_v3 = vpack.c.bf16 %v13916_v24, %v13915_v48  ;;  %v13923_v37 = vld [vmem:[#allocation6 + $0xbc0] sm:$0xff]  ;;  %v13924_v11 = vld [vmem:[#allocation6 + $0xbc8] sm:$0xff]  ;;  %v13905_v24 = vld [vmem:[#allocation3 + $0xb3] sm:$0xff] }
 0x8a8   :  { %22906 = vmatprep.subr.bf16.mxu1 %v22905_v52 }
 0x8aa   :  { %21982 = vmatmul.mubr.f32.gmra.mrb[38].mxu1 %v28379_v44  ;;  %v22921_v44 = vpack.c.bf16 %v13722_v47, %v13721_v50  ;;  %v13925_v50 = vld [vmem:[#allocation6 + $0xbd0] sm:$0xff]  ;;  %v13926_v47 = vld [vmem:[#allocation6 + $0xbd8] sm:$0xff] }
 0x8ab   :  { %21984 = vmatprep.mubr.f32.mxu1 %v28382_v29  ;;  %22908 = vmatpush3.bf16.msra.mxu1 %v22905_v52  ;;  %v13723_v29 = vld [vmem:[#allocation6 + $0xb10] sm:$0xff]  ;;  %v13704_v52 = vld [vmem:[#allocation3 + $0x42] sm:$0xff] }
 0x8ac   :  { %22910 = vmatprep.subr.bf16.mxu1 %v22909_v39 }
 0x8ae   :  { %21985 = vmatmul.mubr.f32.gmra.mrb[40].mxu1 %v13327_v60  ;;  %v13709_v60 = vld [vmem:[#allocation3 + $0x92] sm:$0xff] }
 0x8af   :  { %21987 = vmatprep.mubr.f32.mxu1 %v28386_v43  ;;  %22912 = vmatpush3.bf16.msra.mxu1 %v22909_v39  ;;  %v22925_v43 = vpack.c.bf16 %v13724_v34, %v13723_v29  ;;  %v13707_v39 = vld [vmem:[#allocation3 + $0x72] sm:$0xff]  ;;  %v13927_v34 = vld [vmem:[#allocation6 + $0xbe0] sm:$0xff] }
 0x8b0   :  { %22914 = vmatprep.subr.bf16.mxu1 %v22913_v7  ;;  %v13713_v29 = vld [vmem:[#allocation3 + $0x112] sm:$0xff] }
 0x8b2   :  { %21988 = vmatmul.mubr.f32.gmra.mrb[42].mxu1 %v13329_v18  ;;  %v13711_v18 = vld [vmem:[#allocation3 + $0xb2] sm:$0xff] }
 0x8b3   :  { %21990 = vmatprep.mubr.f32.mxu1 %v28390_v40  ;;  %22916 = vmatpush3.bf16.msra.mxu1 %v22913_v7  ;;  %v22929_v40 = vpack.c.bf16 %v13726_v55, %v13725_v51  ;;  %v22965_v7 = vpack.c.bf16 %v13922_v9, %v13921_v59  ;;  %v13715_v51 = vld [vmem:[#allocation3 + $0x132] sm:$0xff]  ;;  %v14092_v9 = vld [vmem:[#allocation3 + $0x44] sm:$0xff] }
 0x8b4   :  { %22918 = vmatprep.subr.bf16.mxu1 %v22917_v17  ;;  %v13929_v55 = vld [vmem:[#allocation6 + $0xbf0] sm:$0xff] }
 0x8b5   :  { %v13913_v59 = vld [vmem:[#allocation3 + $0x173] sm:$0xff] }
 0x8b6   :  { %21991 = vmatmul.mubr.f32.gmra.mrb[44].mxu1 %v24626_v14  ;;  %v13928_v14 = vld [vmem:[#allocation6 + $0xbe8] sm:$0xff] }
 0x8b7   :  { %22920 = vmatpush3.bf16.msra.mxu1 %v22917_v17  ;;  %22025 = vmatprep.mubr.f32.mxu1 %v28393_v23  ;;  %v22933_v23 = vpack.c.bf16 %v13728_v45, %v13727_v26  ;;  %v22969_v17 = vpack.c.bf16 %v13924_v11, %v13923_v37  ;;  %v13717_v45 = vld [vmem:[#allocation3 + $0x152] sm:$0xff]  ;;  %v14100_v11 = vld [vmem:[#allocation3 + $0x104] sm:$0xff] }
 0x8b8   :  { %22922 = vmatprep.subr.bf16.mxu1 %v22921_v44  ;;  %v14095_v37 = vld [vmem:[#allocation3 + $0x74] sm:$0xff] }
 0x8ba   :  { %22026 = vmatmul.mubr.f32.vlgmr.msra.gmra.mrb[30].mxu1 %v28396_v46  ;;  %v22937_v46 = vpack.c.bf16 %v13730_v31, %v13729_v35  ;;  %v13719_v31 = vld [vmem:[#allocation3 + $0x172] sm:$0xff] }
 0x8bb   :  { %22028 = vmatprep.mubr.f32.mxu1 %v28399_v53  ;;  %22924 = vmatpush3.bf16.msra.mxu1 %v22921_v44  ;;  %v13517_v53 = vld [vmem:[#allocation3 + $0xb1] sm:$0xff]  ;;  %v13712_v44 = vld [vmem:[#allocation3 + $0x102] sm:$0xff] }
 0x8bc   :  { %22926 = vmatprep.subr.bf16.mxu1 %v22925_v43 }
 0x8be   :  { %22029 = vmatmul.mubr.f32.gmra.mrb[32].mxu1 %v28402_v27  ;;  %v22941_v27 = vpack.c.bf16 %v13732_v19, %v13731_v0  ;;  %v13898_v0 = vld [vmem:[#allocation3 + $0x43] sm:$0xff]  ;;  %v13899_v19 = vld [vmem:[#allocation3 + $0x53] sm:$0xff] }
 0x8bf   :  { %22031 = vmatprep.mubr.f32.mxu1 %v28405_v6  ;;  %22928 = vmatpush3.bf16.msra.mxu1 %v22925_v43  ;;  %v13733_v6 = vld [vmem:[#allocation6 + $0xb60] sm:$0xff] }
 0x8c0   :  { %22930 = vmatprep.subr.bf16.mxu1 %v22929_v40  ;;  %v13714_v43 = vld [vmem:[#allocation3 + $0x122] sm:$0xff] }
 0x8c2   :  { %22032 = vmatmul.mubr.f32.gmra.mrb[34].mxu1 %v13515_v15  ;;  %v14110_v15 = vld [vmem:[#allocation6 + $0xc08] sm:$0xff] }
 0x8c3   :  { %22034 = vmatprep.mubr.f32.mxu1 %v28409_v36  ;;  %22932 = vmatpush3.bf16.msra.mxu1 %v22929_v40  ;;  %v22945_v36 = vpack.c.bf16 %v13734_v56, %v13733_v6  ;;  %v13930_v40 = vld [vmem:[#allocation6 + $0xbf8] sm:$0xff]  ;;  %v14114_v6 = vld [vmem:[#allocation6 + $0xc28] sm:$0xff] }
 0x8c4   :  { %22934 = vmatprep.subr.bf16.mxu1 %v22933_v23  ;;  %v22981_v26 = vpack.c.bf16 %v13930_v40, %v13929_v55  ;;  %v13900_v56 = vld [vmem:[#allocation3 + $0x63] sm:$0xff] }
 0x8c5   :  { %v17695_v40 = vld [vmem:[%s30250_s5 + $0x148] sm:$0xff] }
 0x8c6   :  { %22035 = vmatmul.mubr.f32.gmra.mrb[36].mxu1 %v13517_v53  ;;  %v14112_v53 = vld [vmem:[#allocation6 + $0xc18] sm:$0xff] }
 0x8c7   :  { %22037 = vmatprep.mubr.f32.mxu1 %v28412_v5  ;;  %22936 = vmatpush3.bf16.msra.mxu1 %v22933_v23  ;;  %v22949_v5 = vpack.c.bf16 %v13736_v32, %v13735_v38  ;;  %v14109_v23 = vld [vmem:[#allocation6 + $0xc00] sm:$0xff]  ;;  %v13903_v32 = vld [vmem:[#allocation3 + $0x93] sm:$0xff] }
 0x8c8   :  { %22938 = vmatprep.subr.bf16.mxu1 %v22937_v46  ;;  %v22985_v35 = vpack.c.bf16 %v14110_v15, %v14109_v23  ;;  %v17694_v23 = vld [vmem:[%s30250_s5 + $0x140] sm:$0xff]  ;;  %v17696_v15 = vld [vmem:[%s30250_s5 + $0x150] sm:$0xff] }
 0x8ca   :  { %22038 = vmatmul.mubr.f32.gmra.mrb[38].mxu1 %v30819_v13  ;;  %v13901_v13 = vld [vmem:[#allocation3 + $0x73] sm:$0xff] }
 0x8cb   :  { %22040 = vmatprep.mubr.f32.mxu1 %v30820_v4  ;;  %22940 = vmatpush3.bf16.msra.mxu1 %v22937_v46  ;;  %v14111_v46 = vld [vmem:[#allocation6 + $0xc10] sm:$0xff] }
 0x8cc   :  { %22942 = vmatprep.subr.bf16.mxu1 %v22941_v27  ;;  %v14115_v4 = vld [vmem:[#allocation6 + $0xc30] sm:$0xff] }
 0x8ce   :  { %22041 = vmatmul.mubr.f32.gmra.mrb[40].mxu1 %v28421_v42  ;;  %v22957_v42 = vpack.c.bf16 %v13918_v41, %v13917_v20  ;;  %v13906_v20 = vld [vmem:[#allocation3 + $0x103] sm:$0xff]  ;;  %v13907_v41 = vld [vmem:[#allocation3 + $0x113] sm:$0xff] }
 0x8cf   :  { %22043 = vmatprep.mubr.f32.mxu1 %v28424_v54  ;;  %22944 = vmatpush3.bf16.msra.mxu1 %v22941_v27  ;;  %v13705_v54 = vld [vmem:[#allocation3 + $0x52] sm:$0xff]  ;;  %v14113_v27 = vld [vmem:[#allocation6 + $0xc20] sm:$0xff] }
 0x8d0   :  { %22946 = vmatprep.subr.bf16.mxu1 %v22945_v36 }
 0x8d2   :  { %22044 = vmatmul.mubr.f32.gmra.mrb[42].mxu1 %v13523_v22  ;;  %v14118_v22 = vld [vmem:[#allocation6 + $0xc48] sm:$0xff] }
 0x8d3   :  { %22046 = vmatprep.mubr.f32.mxu1 %v28428_v28  ;;  %22948 = vmatpush3.bf16.msra.mxu1 %v22945_v36  ;;  %v22961_v28 = vpack.c.bf16 %v13920_v62, %v13919_v61  ;;  %v14116_v36 = vld [vmem:[#allocation6 + $0xc38] sm:$0xff]  ;;  %v14123_v62 = vld [vmem:[#allocation6 + $0xc70] sm:$0xff] }
 0x8d4   :  { %22950 = vmatprep.subr.bf16.mxu1 %v22949_v5  ;;  %v22997_v38 = vpack.c.bf16 %v14116_v36, %v14115_v4  ;;  %v13909_v61 = vld [vmem:[#allocation3 + $0x133] sm:$0xff]  ;;  %v17707_v36 = vld [vmem:[%s30250_s5 + $0x1a8] sm:$0xff] }
 0x8d6   :  { %22047 = vmatmul.mubr.f32.gmra.mrb[44].mxu1 %v13525_v10  ;;  %v14120_v10 = vld [vmem:[#allocation6 + $0xc58] sm:$0xff] }
 0x8d7   :  { %22952 = vmatpush3.bf16.msra.mxu1 %v22949_v5  ;;  %22081 = vmatprep.mubr.f32.mxu1 %v13704_v52  ;;  %v14117_v5 = vld [vmem:[#allocation6 + $0xc40] sm:$0xff] }
 0x8d8   :  { %22954 = vmatprep.subr.bf16.mxu1 %v22953_v3  ;;  %v23001_v48 = vpack.c.bf16 %v14118_v22, %v14117_v5  ;;  %v14121_v52 = vld [vmem:[#allocation6 + $0xc60] sm:$0xff]  ;;  %v17708_v22 = vld [vmem:[%s30250_s5 + $0x1b0] sm:$0xff] }
 0x8d9   :  { %v17706_v5 = vld [vmem:[%s30250_s5 + $0x1a0] sm:$0xff] }
 0x8da   :  { %22082 = vmatmul.mubr.f32.vlgmr.msra.gmra.mrb[30].mxu1 %v13705_v54  ;;  %v13908_v54 = vld [vmem:[#allocation3 + $0x123] sm:$0xff] }
 0x8db   :  { %22084 = vmatprep.mubr.f32.mxu1 %v13706_v33  ;;  %22956 = vmatpush3.bf16.msra.mxu1 %v22953_v3  ;;  %v14119_v3 = vld [vmem:[#allocation6 + $0xc50] sm:$0xff]  ;;  %v14124_v33 = vld [vmem:[#allocation6 + $0xc78] sm:$0xff] }
 0x8dc   :  { %22958 = vmatprep.subr.bf16.mxu1 %v22957_v42 }
 0x8de   :  { %22085 = vmatmul.mubr.f32.gmra.mrb[32].mxu1 %v13707_v39  ;;  %v13911_v39 = vld [vmem:[#allocation3 + $0x153] sm:$0xff] }
 0x8df   :  { %22087 = vmatprep.mubr.f32.mxu1 %v28436_v63  ;;  %22960 = vmatpush3.bf16.msra.mxu1 %v22957_v42  ;;  %v22973_v63 = vpack.c.bf16 %v13926_v47, %v13925_v50  ;;  %v14122_v42 = vld [vmem:[#allocation6 + $0xc68] sm:$0xff]  ;;  %v14103_v50 = vld [vmem:[#allocation3 + $0x134] sm:$0xff] }
 0x8e0   :  { %22962 = vmatprep.subr.bf16.mxu1 %v22961_v28  ;;  %v14105_v47 = vld [vmem:[#allocation3 + $0x154] sm:$0xff] }
 0x8e2   :  { %22088 = vmatmul.mubr.f32.gmra.mrb[34].mxu1 %v13709_v60  ;;  %v14094_v60 = vld [vmem:[#allocation3 + $0x64] sm:$0xff] }
 0x8e3   :  { %22090 = vmatprep.mubr.f32.mxu1 %v28440_v16  ;;  %22964 = vmatpush3.bf16.msra.mxu1 %v22961_v28  ;;  %v22977_v16 = vpack.c.bf16 %v13928_v14, %v13927_v34  ;;  %v23013_v28 = vpack.c.bf16 %v14124_v33, %v14123_v62  ;;  %v17691_v34 = vld [vmem:[%s30250_s5 + $0x128] sm:$0xff]  ;;  %v17693_v14 = vld [vmem:[%s30250_s5 + $0x138] sm:$0xff] }
 0x8e4   :  { %22966 = vmatprep.subr.bf16.mxu1 %v22965_v7  ;;  %v14439_v33 = vld [vmem:[%s30250_s5 + $0x8] sm:$0xff] }
 0x8e6   :  { %22091 = vmatmul.mubr.f32.gmra.mrb[36].mxu1 %v13711_v18  ;;  %v14102_v18 = vld [vmem:[#allocation3 + $0x124] sm:$0xff] }
 0x8e7   :  { %22093 = vmatprep.mubr.f32.mxu1 %v13712_v44  ;;  %22968 = vmatpush3.bf16.msra.mxu1 %v22965_v7  ;;  %v14093_v7 = vld [vmem:[#allocation3 + $0x54] sm:$0xff] }
 0x8e8   :  { %22970 = vmatprep.subr.bf16.mxu1 %v22969_v17  ;;  %v17689_v44 = vld [vmem:[%s30250_s5 + $0x118] sm:$0xff] }
 0x8ea   :  { %22094 = vmatmul.mubr.f32.gmra.mrb[38].mxu1 %v13713_v29  ;;  %v17686_v29 = vld [vmem:[%s30250_s5 + $0x100] sm:$0xff] }
 0x8eb   :  { %22096 = vmatprep.mubr.f32.mxu1 %v13714_v43  ;;  %22972 = vmatpush3.bf16.msra.mxu1 %v22969_v17  ;;  %v14101_v17 = vld [vmem:[#allocation3 + $0x114] sm:$0xff]  ;;  %v23021_v43 = vpack.c.bf16 %v17693_v14, %v17691_v34 }
 0x8ec   :  { %22974 = vmatprep.subr.bf16.mxu1 %v22973_v63 }
 0x8ee   :  { %22097 = vmatmul.mubr.f32.gmra.mrb[40].mxu1 %v13715_v51  ;;  %v17692_v51 = vld [vmem:[%s30250_s5 + $0x130] sm:$0xff] }
 0x8ef   :  { %22099 = vmatprep.mubr.f32.mxu1 %v28448_v8  ;;  %22976 = vmatpush3.bf16.msra.mxu1 %v22973_v63  ;;  %v22989_v8 = vpack.c.bf16 %v14112_v53, %v14111_v46  ;;  %v17701_v46 = vld [vmem:[%s30250_s5 + $0x178] sm:$0xff] }
 0x8f0   :  { %22978 = vmatprep.subr.bf16.mxu1 %v22977_v16 }
 0x8f2   :  { %22100 = vmatmul.mubr.f32.gmra.mrb[42].mxu1 %v13717_v45 }
 0x8f3   :  { %22102 = vmatprep.mubr.f32.mxu1 %v28452_v12  ;;  %22980 = vmatpush3.bf16.msra.mxu1 %v22977_v16  ;;  %v22993_v12 = vpack.c.bf16 %v14114_v6, %v14113_v27  ;;  %v17690_v16 = vld [vmem:[%s30250_s5 + $0x120] sm:$0xff]  ;;  %v17703_v27 = vld [vmem:[%s30250_s5 + $0x188] sm:$0xff]  ;;  %v17705_v6 = vld [vmem:[%s30250_s5 + $0x198] sm:$0xff] }
 0x8f4   :  { %22982 = vmatprep.subr.bf16.mxu1 %v22981_v26  ;;  %v23023_v55 = vpack.c.bf16 %v17692_v51, %v17690_v16 }
 0x8f6   :  { %22103 = vmatmul.mubr.f32.gmra.mrb[44].mxu1 %v13719_v31  ;;  %v17699_v31 = vld [vmem:[%s30250_s5 + $0x168] sm:$0xff] }
 0x8f7   :  { %22984 = vmatpush3.bf16.msra.mxu1 %v22981_v26  ;;  %22137 = vmatprep.mubr.f32.mxu1 %v13898_v0  ;;  %v17697_v26 = vld [vmem:[%s30250_s5 + $0x158] sm:$0xff]  ;;  %v23029_v53 = vpack.c.bf16 %v17701_v46, %v17699_v31  ;;  %v17698_v0 = vld [vmem:[%s30250_s5 + $0x160] sm:$0xff] }
 0x8f8   :  { %22986 = vmatprep.subr.bf16.mxu1 %v22985_v35  ;;  %v23025_v45 = vpack.c.bf16 %v17697_v26, %v17695_v40 }
 0x8fa   :  { %22138 = vmatmul.mubr.f32.vlgmr.msra.gmra.mrb[30].mxu1 %v13899_v19 }
 0x8fb   :  { %22140 = vmatprep.mubr.f32.mxu1 %v13900_v56  ;;  %22988 = vmatpush3.bf16.msra.mxu1 %v22985_v35  ;;  %v23027_v35 = vpack.c.bf16 %v17696_v15, %v17694_v23  ;;  %v23033_v56 = vpack.c.bf16 %v17705_v6, %v17703_v27 }
 0x8fc   :  { %22990 = vmatprep.subr.bf16.mxu1 %v22989_v8 }
 0x8fe   :  { %22141 = vmatmul.mubr.f32.gmra.mrb[32].mxu1 %v13901_v13  ;;  %v17704_v13 = vld [vmem:[%s30250_s5 + $0x190] sm:$0xff] }
 0x8ff   :  { %22143 = vmatprep.mubr.f32.mxu1 %v28460_v2  ;;  %22992 = vmatpush3.bf16.msra.mxu1 %v22989_v8  ;;  %v23005_v2 = vpack.c.bf16 %v14120_v10, %v14119_v3  ;;  %v17700_v8 = vld [vmem:[%s30250_s5 + $0x170] sm:$0xff]  ;;  %v17713_v3 = vld [vmem:[%s30250_s5 + $0x1d8] sm:$0xff] }
 0x900   :  { %22994 = vmatprep.subr.bf16.mxu1 %v22993_v12  ;;  %v23031_v19 = vpack.c.bf16 %v17700_v8, %v17698_v0 }
 0x902   :  { %22144 = vmatmul.mubr.f32.gmra.mrb[34].mxu1 %v13903_v32 }
 0x903   :  { %22146 = vmatprep.mubr.f32.mxu1 %v28464_v21  ;;  %22996 = vmatpush3.bf16.msra.mxu1 %v22993_v12  ;;  %v23009_v21 = vpack.c.bf16 %v14122_v42, %v14121_v52  ;;  %v17702_v12 = vld [vmem:[%s30250_s5 + $0x180] sm:$0xff]  ;;  %v17715_v52 = vld [vmem:[%s30250_s5 + $0x1e8] sm:$0xff]  ;;  %v17717_v42 = vld [vmem:[%s30250_s5 + $0x1f8] sm:$0xff] }
 0x904   :  { %22998 = vmatprep.subr.bf16.mxu1 %v22997_v38  ;;  %v23035_v4 = vpack.c.bf16 %v17704_v13, %v17702_v12 }
 0x906   :  { %22147 = vmatmul.mubr.f32.gmra.mrb[36].mxu1 %v13905_v24  ;;  %v17711_v24 = vld [vmem:[%s30250_s5 + $0x1c8] sm:$0xff] }
 0x907   :  { %22149 = vmatprep.mubr.f32.mxu1 %v13906_v20  ;;  %23000 = vmatpush3.bf16.msra.mxu1 %v22997_v38  ;;  %v17709_v38 = vld [vmem:[%s30250_s5 + $0x1b8] sm:$0xff]  ;;  %v23041_v10 = vpack.c.bf16 %v17713_v3, %v17711_v24  ;;  %v17710_v20 = vld [vmem:[%s30250_s5 + $0x1c0] sm:$0xff] }
 0x908   :  { %23002 = vmatprep.subr.bf16.mxu1 %v23001_v48  ;;  %v23037_v32 = vpack.c.bf16 %v17709_v38, %v17707_v36 }
 0x90a   :  { %22150 = vmatmul.mubr.f32.gmra.mrb[38].mxu1 %v13907_v41 }
 0x90b   :  { %22152 = vmatprep.mubr.f32.mxu1 %v13908_v54  ;;  %23004 = vmatpush3.bf16.msra.mxu1 %v23001_v48  ;;  %v23039_v48 = vpack.c.bf16 %v17708_v22, %v17706_v5  ;;  %v23045_v54 = vpack.c.bf16 %v17717_v42, %v17715_v52 }
 0x90c   :  { %23006 = vmatprep.subr.bf16.mxu1 %v23005_v2 }
 0x90e   :  { %22153 = vmatmul.mubr.f32.gmra.mrb[40].mxu1 %v13909_v61  ;;  %v17716_v61 = vld [vmem:[%s30250_s5 + $0x1f0] sm:$0xff] }
 0x90f   :  { %22155 = vmatprep.mubr.f32.mxu1 %v28472_v57  ;;  %23008 = vmatpush3.bf16.msra.mxu1 %v23005_v2  ;;  %v14097_v57 = vld [vmem:[#allocation3 + $0x94] sm:$0xff] }
 0x910   :  { %23010 = vmatprep.subr.bf16.mxu1 %v23009_v21  ;;  %v17712_v2 = vld [vmem:[%s30250_s5 + $0x1d0] sm:$0xff] }
 0x911   :  { %v23043_v41 = vpack.c.bf16 %v17712_v2, %v17710_v20 }
 0x912   :  { %22156 = vmatmul.mubr.f32.gmra.mrb[42].mxu1 %v13911_v39  ;;  %v24678_v39 = vmov 0.0  }
 0x913   :  { %22158 = vmatprep.mubr.f32.mxu1 %v28476_v1  ;;  %23012 = vmatpush3.bf16.msra.mxu1 %v23009_v21  ;;  %v14099_v1 = vld [vmem:[#allocation3 + $0xb4] sm:$0xff]  ;;  %v17714_v21 = vld [vmem:[%s30250_s5 + $0x1e0] sm:$0xff] }
 0x914   :  { %23014 = vmatprep.subr.bf16.mxu1 %v23013_v28  ;;  %v23047_v62 = vpack.c.bf16 %v17716_v61, %v17714_v21 }
 0x916   :  { %22159 = vmatmul.mubr.f32.gmra.mrb[44].mxu1 %v13913_v59 }
 0x917   :  { %23016 = vmatpush3.bf16.msra.mxu1 %v23013_v28  ;;  %22193 = vmatprep.mubr.f32.mxu1 %v14092_v9  ;;  %v14441_v28 = vld [vmem:[%s30250_s5 + $0x18] sm:$0xff] }
 0x918   :  { %v23049_v59 = vpack.c.bf16 %v14441_v28, %v14439_v33 }
 0x91a   :  { %22194 = vmatmul.mubr.f32.vlgmr.msra.gmra.mrb[30].mxu1 %v14093_v7 }
 0x91b   :  { %22196 = vmatprep.mubr.f32.mxu1 %v14094_v60 }
 0x91e   :  { %22197 = vmatmul.mubr.f32.gmra.mrb[32].mxu1 %v14095_v37 }
 0x91f   :  { %22199 = vmatprep.mubr.f32.mxu1 %v28484_v25  ;;  %v14107_v25 = vld [vmem:[#allocation3 + $0x174] sm:$0xff] }
 0x922   :  { %22200 = vmatmul.mubr.f32.gmra.mrb[34].mxu1 %v14097_v57 }
 0x923   :  { %22202 = vmatprep.mubr.f32.mxu1 %v28488_v49  ;;  %v17687_v49 = vld [vmem:[%s30250_s5 + $0x108] sm:$0xff] }
 0x924   :  { %v23017_v63 = vpack.c.bf16 %v17689_v44, %v17687_v49  ;;  %v28641_v49 = vld [vmem:[%s30249_s4] ss:$0 sm:$0xff] }
 0x926   :  { %22203 = vmatmul.mubr.f32.gmra.mrb[36].mxu1 %v14099_v1  ;;  %23018 = vmatprep.subr.bf16.mxu1 %v23017_v63 }
 0x927   :  { %22205 = vmatprep.mubr.f32.mxu1 %v14100_v11 }
 0x92a   :  { %22206 = vmatmul.mubr.f32.gmra.mrb[38].mxu1 %v14101_v17 }
 0x92b   :  { %22208 = vmatprep.mubr.f32.mxu1 %v14102_v18 }
 0x92e   :  { %22209 = vmatmul.mubr.f32.gmra.mrb[40].mxu1 %v14103_v50 }
 0x92f   :  { %22211 = vmatprep.mubr.f32.mxu1 %v28496_v58  ;;  %v17688_v58 = vld [vmem:[%s30250_s5 + $0x110] sm:$0xff] }
 0x932   :  { %22212 = vmatmul.mubr.f32.gmra.mrb[42].mxu1 %v14105_v47 }
 0x933   :  { %22214 = vmatprep.mubr.f32.mxu1 %v28500_v30  ;;  %v23019_v30 = vpack.c.bf16 %v17688_v58, %v17686_v29 }
 0x935   :  { %23020 = vmatpush1.bf16.msra.mxu1 %v23019_v30 }
 0x936   :  { %22215 = vmatmul.mubr.f32.gmra.mrb[44].mxu1 %v14107_v25  ;;  %23022 = vmatprep.subr.bf16.mxu1 %v23021_v43 }
 0x937   :  { %14575 = vmatprep.mubr.f32.mxu1 %v24678_v39 }
 0x939   :  { %23024 = vmatpush1.bf16.msra.mxu1 %v23023_v55 }
 0x93a   :  { %23026 = vmatprep.subr.bf16.mxu1 %v23025_v45 }
 0x93d   :  { %23028 = vmatpush1.bf16.msra.mxu1 %v23027_v35 }
 0x93e   :  { %23030 = vmatprep.subr.bf16.mxu1 %v23029_v53 }
 0x941   :  { %23032 = vmatpush1.bf16.msra.mxu1 %v23031_v19 }
 0x942   :  { %23034 = vmatprep.subr.bf16.mxu1 %v23033_v56 }
 0x945   :  { %23036 = vmatpush1.bf16.msra.mxu1 %v23035_v4 }
 0x946   :  { %23038 = vmatprep.subr.bf16.mxu1 %v23037_v32 }
 0x949   :  { %23040 = vmatpush1.bf16.msra.mxu1 %v23039_v48 }
 0x94a   :  { %23042 = vmatprep.subr.bf16.mxu1 %v23041_v10 }
 0x94d   :  { %23044 = vmatpush1.bf16.msra.mxu1 %v23043_v41 }
 0x94e   :  { %23046 = vmatprep.subr.bf16.mxu1 %v23045_v54 }
 0x951   :  { %23048 = vmatpush1.bf16.msra.mxu1 %v23047_v62 }
 0x952   :  { %23050 = vmatprep.subr.bf16.mxu1 %v23049_v59 }
 0x9ed   :  { %v22195_v9 = vpop.f32.mrb[30].mxu1 }
 0x9ee   :  { %14287 = vst [vmem:[#allocation4 + $0x8] sm:$0xff] %v22195_v9  ;;  %v14191_v7 = vpop.f32.mrb[31].mxu1 }
 0x9ef   :  { %14286 = vst [vmem:[#allocation4] sm:$0xff] %v14191_v7 }
 0x9f1   :  { %v22198_v60 = vpop.f32.mrb[32].mxu1 }
 0x9f2   :  { %14289 = vst [vmem:[#allocation4 + $0x18] sm:$0xff] %v22198_v60  ;;  %v14201_v37 = vpop.f32.mrb[33].mxu1 }
 0x9f3   :  { %14288 = vst [vmem:[#allocation4 + $0x10] sm:$0xff] %v14201_v37 }
 0x9f5   :  { %v14304_v57 = vld [vmem:[#allocation4 + $0x8] ss:$2 sm:$0xf]  ;;  %v14336_v1 = vld [vmem:[#allocation4 + $0x9] ss:$2 sm:$0xf] }
 0x9f6   :  { %v14366_v11 = vmax.f32 %v14304_v57, %v14336_v1  ;;  %v14302_v17 = vld [vmem:[#allocation4] ss:$2 sm:$0xf]  ;;  %v14334_v18 = vld [vmem:[#allocation4 + $0x1] ss:$2 sm:$0xf] }
 0x9f7   :  { %v14365_v50 = vmax.f32 %v14302_v17, %v14334_v18  ;;  %v22201_v47 = vpop.f32.mrb[34].mxu1 }
 0x9f8   :  { %v14382_v25 = vsel %vm9218_vm1, %v14366_v11, -inf  ;;  %14291 = vst [vmem:[#allocation4 + $0x28] sm:$0xff] %v22201_v47  ;;  %v14211_v44 = vpop.f32.mrb[35].mxu1 }
 0x9f9   :  { %v14381_v63 = vsel %vm9218_vm1, %v14365_v50, -inf  ;;  %v14308_v29 = vld [vmem:[#allocation4 + $0x18] ss:$2 sm:$0xf]  ;;  %14290 = vst [vmem:[#allocation4 + $0x20] sm:$0xff] %v14211_v44  ;;  %v22204_v58 = vpop.f32.mrb[36].mxu1 }
 0x9fa   :  { %v14383_v30 = vmax.f32 %v14381_v63, %v14382_v25  ;;  %v14340_v34 = vld [vmem:[#allocation4 + $0x19] ss:$2 sm:$0xf]  ;;  %v14306_v14 = vld [vmem:[#allocation4 + $0x10] ss:$2 sm:$0xf] }
 0x9fb   :  { %14293 = vst [vmem:[#allocation4 + $0x38] sm:$0xff] %v22204_v58  ;;  %v14368_v43 = vmax.f32 %v14308_v29, %v14340_v34  ;;  %v14338_v16 = vld [vmem:[#allocation4 + $0x11] ss:$2 sm:$0xf]  ;;  %v14221_v51 = vpop.f32.mrb[37].mxu1 }
 0x9fc   :  { %v14412_v55 = vadd.f32 %v28641_v49, %v14383_v30  ;;  %v14367_v40 = vmax.f32 %v14306_v14, %v14338_v16  ;;  %14292 = vst [vmem:[#allocation4 + $0x30] sm:$0xff] %v14221_v51 }
 0x9fd   :  { %v14385_v26 = vsel %vm9218_vm1, %v14368_v43, -inf  ;;  %v22207_v45 = vpop.f32.mrb[38].mxu1 }
 0x9fe   :  { %v14420_v23 = vmax.f32 %v14412_v55, 0.0  ;;  %v14384_v15 = vsel %vm9218_vm1, %v14367_v40, -inf  ;;  %14295 = vst [vmem:[#allocation4 + $0x48] sm:$0xff] %v22207_v45  ;;  %v14231_v35 = vpop.f32.mrb[39].mxu1 }
 0x9ff   :  { %v14386_v31 = vmax.f32 %v14384_v15, %v14385_v26  ;;  %v14312_v46 = vld [vmem:[#allocation4 + $0x28] ss:$2 sm:$0xf]  ;;  %v14344_v53 = vld [vmem:[#allocation4 + $0x29] ss:$2 sm:$0xf] }
 0xa00   :  { %14294 = vst [vmem:[#allocation4 + $0x40] sm:$0xff] %v14231_v35  ;;  %14428 = vst [vmem:[#allocation5] sm:$0xf] %v14420_v23  ;;  %v14370_v0 = vmax.f32 %v14312_v46, %v14344_v53  ;;  %v14310_v8 = vld [vmem:[#allocation4 + $0x20] ss:$2 sm:$0xf] }
 0xa01   :  { %v14342_v19 = vld [vmem:[#allocation4 + $0x21] ss:$2 sm:$0xf]  ;;  %v14413_v27 = vadd.f32 %v28641_v49, %v14386_v31  ;;  %v22210_v36 = vpop.f32.mrb[40].mxu1 }
 0xa02   :  { %v14369_v6 = vmax.f32 %v14310_v8, %v14342_v19  ;;  %v14316_v56 = vld [vmem:[#allocation4 + $0x38] ss:$2 sm:$0xf]  ;;  %v14348_v12 = vld [vmem:[#allocation4 + $0x39] ss:$2 sm:$0xf] }
 0xa03   :  { %v14388_v13 = vsel %vm9218_vm1, %v14370_v0, -inf  ;;  %v14372_v4 = vmax.f32 %v14316_v56, %v14348_v12  ;;  %v14421_v38 = vmax.f32 %v14413_v27, 0.0  ;;  %v14314_v5 = vld [vmem:[#allocation4 + $0x30] ss:$2 sm:$0xf]  ;;  %14297 = vst [vmem:[#allocation4 + $0x58] sm:$0xff] %v22210_v36 }
 0xa04   :  { %v14387_v32 = vsel %vm9218_vm1, %v14369_v6, -inf  ;;  %v14241_v22 = vpop.f32.mrb[41].mxu1  ;;  %v14346_v3 = vld [vmem:[#allocation4 + $0x31] ss:$2 sm:$0xf]  ;;  %v14438_v19 = vld [vmem:[%s30250_s5] sm:$0xff] }
 0xa05   :  { %v14389_v48 = vmax.f32 %v14387_v32, %v14388_v13  ;;  %v14391_v24 = vsel %vm9218_vm1, %v14372_v4, -inf  ;;  %14296 = vst [vmem:[#allocation4 + $0x50] sm:$0xff] %v14241_v22  ;;  %14429 = vst [vmem:[#allocation5 + $0x4] sm:$0xf] %v14421_v38  ;;  %v14371_v10 = vmax.f32 %v14314_v5, %v14346_v3  ;;  %v22213_v62 = vpop.f32.mrb[42].mxu1  ;;  %v14440_v27 = vld [vmem:[%s30250_s5 + $0x10] sm:$0xff] }
 0xa06   :  { %v14320_v20 = vld [vmem:[#allocation4 + $0x48] ss:$2 sm:$0xf]  ;;  %v14352_v2 = vld [vmem:[#allocation4 + $0x49] ss:$2 sm:$0xf]  ;;  %v23051_v22 = vpack.c.bf16 %v14440_v27, %v14438_v19 }
 0xa07   :  { %v14414_v41 = vadd.f32 %v28641_v49, %v14389_v48  ;;  %v14374_v52 = vmax.f32 %v14320_v20, %v14352_v2  ;;  %v14318_v42 = vld [vmem:[#allocation4 + $0x40] ss:$2 sm:$0xf]  ;;  %v14350_v54 = vld [vmem:[#allocation4 + $0x41] ss:$2 sm:$0xf] }
 0xa08   :  { %v14390_v21 = vsel %vm9218_vm1, %v14371_v10, -inf  ;;  %v14373_v61 = vmax.f32 %v14318_v42, %v14350_v54  ;;  %14299 = vst [vmem:[#allocation4 + $0x68] sm:$0xff] %v22213_v62  ;;  %v14251_v9 = vpop.f32.mrb[43].mxu1  ;;  %v14443_v13 = vld [vmem:[%s30250_s5 + $0x28] sm:$0xff]  ;;  %v14445_v4 = vld [vmem:[%s30250_s5 + $0x38] sm:$0xff]  ;;  %v14442_v10 = vld [vmem:[%s30250_s5 + $0x20] sm:$0xff] }
 0xa09   :  { %v14422_v33 = vmax.f32 %v14414_v41, 0.0  ;;  %v14392_v28 = vmax.f32 %v14390_v21, %v14391_v24  ;;  %v14394_v59 = vsel %vm9218_vm1, %v14374_v52, -inf  ;;  %14298 = vst [vmem:[#allocation4 + $0x60] sm:$0xff] %v14251_v9  ;;  %v22216_v60 = vpop.f32.mrb[44].mxu1  ;;  %v14470_v24 = vld [vmem:[#allocation5 + $0x1] sm:$0x1]  ;;  %v23053_v3 = vpack.c.bf16 %v14445_v4, %v14443_v13 }
 0xa0a   :  { %v14393_v7 = vsel %vm9218_vm1, %v14373_v61, -inf  ;;  %v14324_v1 = vld [vmem:[#allocation4 + $0x58] ss:$2 sm:$0xf]  ;;  %14301 = vst [vmem:[#allocation4 + $0x78] sm:$0xff] %v22216_v60  ;;  %v14261_v63 = vpop.f32.mrb[45].mxu1 }
 0xa0b   :  { %14430 = vst [vmem:[#allocation5 + $0x8] sm:$0xf] %v14422_v33  ;;  %v14415_v37 = vadd.f32 %v28641_v49, %v14392_v28  ;;  %v14395_v57 = vmax.f32 %v14393_v7, %v14394_v59  ;;  %v14356_v11 = vld [vmem:[#allocation4 + $0x59] ss:$2 sm:$0xf]  ;;  %14300 = vst [vmem:[#allocation4 + $0x70] sm:$0xff] %v14261_v63 }
 0xa0c   :  { %v14376_v17 = vmax.f32 %v14324_v1, %v14356_v11  ;;  %v14322_v18 = vld [vmem:[#allocation4 + $0x50] ss:$2 sm:$0xf]  ;;  %v14354_v50 = vld [vmem:[#allocation4 + $0x51] ss:$2 sm:$0xf] }
 0xa0d   :  { %v14423_v47 = vmax.f32 %v14415_v37, 0.0  ;;  %v14416_v25 = vadd.f32 %v28641_v49, %v14395_v57  ;;  %v14375_v44 = vmax.f32 %v14322_v18, %v14354_v50  ;;  %v14444_v20 = vld [vmem:[%s30250_s5 + $0x30] sm:$0xff]  ;;  %v14447_v41 = vld [vmem:[%s30250_s5 + $0x48] sm:$0xff]  ;;  %v14449_v52 = vld [vmem:[%s30250_s5 + $0x58] sm:$0xff] }
 0xa0e   :  { %v14397_v29 = vsel %vm9218_vm1, %v14376_v17, -inf  ;;  %v23055_v54 = vpack.c.bf16 %v14444_v20, %v14442_v10  ;;  %v23057_v61 = vpack.c.bf16 %v14449_v52, %v14447_v41  ;;  %v14446_v62 = vld [vmem:[%s30250_s5 + $0x40] sm:$0xff]  ;;  %v14448_v33 = vld [vmem:[%s30250_s5 + $0x50] sm:$0xff]  ;;  %v14453_v28 = vld [vmem:[%s30250_s5 + $0x78] sm:$0xff] }
 0xa0f   :  { %14431 = vst [vmem:[#allocation5 + $0xc] sm:$0xf] %v14423_v47  ;;  %v14424_v58 = vmax.f32 %v14416_v25, 0.0  ;;  %v14396_v30 = vsel %vm9218_vm1, %v14375_v44, -inf  ;;  %v23059_v59 = vpack.c.bf16 %v14448_v33, %v14446_v62  ;;  %v14450_v7 = vld [vmem:[%s30250_s5 + $0x60] sm:$0xff]  ;;  %v14452_v60 = vld [vmem:[%s30250_s5 + $0x70] sm:$0xff] }
 0xa10   :  { %v14398_v34 = vmax.f32 %v14396_v30, %v14397_v29  ;;  %v14328_v14 = vld [vmem:[#allocation4 + $0x68] ss:$2 sm:$0xf]  ;;  %v14360_v43 = vld [vmem:[#allocation4 + $0x69] ss:$2 sm:$0xf]  ;;  %v23063_v1 = vpack.c.bf16 %v14452_v60, %v14450_v7 }
 0xa11   :  { %14432 = vst [vmem:[#allocation5 + $0x10] sm:$0xf] %v14424_v58  ;;  %v14378_v16 = vmax.f32 %v14328_v14, %v14360_v43  ;;  %v14326_v51 = vld [vmem:[#allocation4 + $0x60] ss:$2 sm:$0xf]  ;;  %v14455_v37 = vld [vmem:[%s30250_s5 + $0x88] sm:$0xff] }
 0xa12   :  { %v14358_v55 = vld [vmem:[#allocation4 + $0x61] ss:$2 sm:$0xf]  ;;  %v14417_v40 = vadd.f32 %v28641_v49, %v14398_v34  ;;  %v14332_v45 = vld [vmem:[#allocation4 + $0x78] ss:$2 sm:$0xf] }
 0xa13   :  { %v14377_v26 = vmax.f32 %v14326_v51, %v14358_v55  ;;  %v14364_v23 = vld [vmem:[#allocation4 + $0x79] ss:$2 sm:$0xf]  ;;  %v14400_v15 = vsel %vm9218_vm1, %v14378_v16, -inf  ;;  %v14454_v17 = vld [vmem:[%s30250_s5 + $0x80] sm:$0xff]  ;;  %v14456_v18 = vld [vmem:[%s30250_s5 + $0x90] sm:$0xff] }
 0xa14   :  { %v14380_v35 = vmax.f32 %v14332_v45, %v14364_v23  ;;  %v14425_v31 = vmax.f32 %v14417_v40, 0.0  ;;  %v14330_v0 = vld [vmem:[#allocation4 + $0x70] ss:$2 sm:$0xf]  ;;  %v14457_v57 = vld [vmem:[%s30250_s5 + $0x98] sm:$0xff]  ;;  %v14459_v50 = vld [vmem:[%s30250_s5 + $0xa8] sm:$0xff]  ;;  %v23067_v25 = vpack.c.bf16 %v14456_v18, %v14454_v17 }
 0xa15   :  { %v14399_v46 = vsel %vm9218_vm1, %v14377_v26, -inf  ;;  %v14362_v8 = vld [vmem:[#allocation4 + $0x71] ss:$2 sm:$0xf]  ;;  %v23065_v11 = vpack.c.bf16 %v14457_v57, %v14455_v37  ;;  %v14461_v47 = vld [vmem:[%s30250_s5 + $0xb8] sm:$0xff]  ;;  %v14458_v63 = vld [vmem:[%s30250_s5 + $0xa0] sm:$0xff] }
 0xa16   :  { %v14401_v53 = vmax.f32 %v14399_v46, %v14400_v15  ;;  %14433 = vst [vmem:[#allocation5 + $0x14] sm:$0xf] %v14425_v31  ;;  %v14403_v56 = vsel %vm9218_vm1, %v14380_v35, -inf  ;;  %v14379_v12 = vmax.f32 %v14330_v0, %v14362_v8  ;;  %v23069_v44 = vpack.c.bf16 %v14461_v47, %v14459_v50  ;;  %v14460_v29 = vld [vmem:[%s30250_s5 + $0xb0] sm:$0xff]  ;;  %v14463_v58 = vld [vmem:[%s30250_s5 + $0xc8] sm:$0xff]  ;;  %v14465_v30 = vld [vmem:[%s30250_s5 + $0xd8] sm:$0xff] }
 0xa17   :  { %v23071_v34 = vpack.c.bf16 %v14460_v29, %v14458_v63  ;;  %v23073_v14 = vpack.c.bf16 %v14465_v30, %v14463_v58  ;;  %v14462_v43 = vld [vmem:[%s30250_s5 + $0xc0] sm:$0xff]  ;;  %v14464_v16 = vld [vmem:[%s30250_s5 + $0xd0] sm:$0xff]  ;;  %v14467_v51 = vld [vmem:[%s30250_s5 + $0xe8] sm:$0xff] }
 0xa18   :  { %v14418_v6 = vadd.f32 %v28641_v49, %v14401_v53  ;;  %v14471_v36 = vld [vmem:[#allocation5 + $0x11] sm:$0x1]  ;;  %v14402_v32 = vsel %vm9218_vm1, %v14379_v12, -inf  ;;  %v14469_v55 = vld [vmem:[%s30250_s5 + $0xf8] sm:$0xff]  ;;  %v23075_v40 = vpack.c.bf16 %v14464_v16, %v14462_v43  ;;  %v14466_v45 = vld [vmem:[%s30250_s5 + $0xe0] sm:$0xff] }
 0xa19   :  { %v14507_v5 = vrot.slane %v14471_v36, 7  ;;  %v14404_v48 = vmax.f32 %v14402_v32, %v14403_v56  ;;  %v23077_v26 = vpack.c.bf16 %v14469_v55, %v14467_v51  ;;  %v14468_v23 = vld [vmem:[%s30250_s5 + $0xf0] sm:$0xff]  ;;  %v17719_v15 = vld [vmem:[%s30250_s5 + $0x208] sm:$0xff]  ;;  %v17721_v35 = vld [vmem:[%s30250_s5 + $0x218] sm:$0xff] }
 0xa1a   :  { %v14426_v38 = vmax.f32 %v14418_v6, 0.0  ;;  %v14437_v31 = vld [vmem:[#allocation5 + $0x10] sm:$0x1]  ;;  %v23079_v46 = vpack.c.bf16 %v14468_v23, %v14466_v45  ;;  %v23081_v53 = vpack.c.bf16 %v17721_v35, %v17719_v15  ;;  %v17718_v0 = vld [vmem:[%s30250_s5 + $0x200] sm:$0xff]  ;;  %v17723_v27 = vld [vmem:[%s30250_s5 + $0x228] sm:$0xff] }
 0xa1b   :  { %v14509_v2 = vsel %vm14508_vm2, %v14507_v5, %v14470_v24  ;;  %v14419_v42 = vadd.f32 %v28641_v49, %v14404_v48  ;;  %v14451_v49 = vld [vmem:[%s30250_s5 + $0x68] sm:$0xff]  ;;  %v17720_v8 = vld [vmem:[%s30250_s5 + $0x210] sm:$0xff]  ;;  %v14584_v19 = vrot.slane %v14437_v31, 7  ;;  %v17725_v6 = vld [vmem:[%s30250_s5 + $0x238] sm:$0xff] }
 0xa1c   :  { %14434 = vst [vmem:[#allocation5 + $0x18] sm:$0xf] %v14426_v38  ;;  %14576 = vmatmul.mubr.f32.vlgmr.msra.gmra.mrb[46].mxu1 %v14509_v2  ;;  %v23061_v9 = vpack.c.bf16 %v14453_v28, %v14451_v49  ;;  %v23083_v56 = vpack.c.bf16 %v17720_v8, %v17718_v0  ;;  %v14436_v12 = vld [vmem:[#allocation5] sm:$0x1]  ;;  %v23085_v13 = vpack.c.bf16 %v17725_v6, %v17723_v27  ;;  %v17724_v36 = vld [vmem:[%s30250_s5 + $0x230] sm:$0xff]  ;;  %v17727_v32 = vld [vmem:[%s30250_s5 + $0x248] sm:$0xff] }
 0xa1d   :  { %23052 = vmatpush1.bf16.msra.mxu1 %v23051_v22  ;;  %14651 = vmatprep.mubr.f32.mxu1 %v24678_v39  ;;  %v14427_v21 = vmax.f32 %v14419_v42, 0.0  ;;  %v17722_v4 = vld [vmem:[%s30250_s5 + $0x220] sm:$0xff]  ;;  %v14585_v38 = vsel %vm14508_vm2, %v14584_v19, %v14436_v12  ;;  %v17729_v5 = vld [vmem:[%s30250_s5 + $0x258] sm:$0xff]  ;;  %v17731_v10 = vld [vmem:[%s30250_s5 + $0x268] sm:$0xff] }
 0xa1e   :  { %23054 = vmatprep.subr.bf16.mxu1 %v23053_v3  ;;  %v23087_v22 = vpack.c.bf16 %v17724_v36, %v17722_v4  ;;  %v23089_v48 = vpack.c.bf16 %v17729_v5, %v17727_v32  ;;  %v17726_v24 = vld [vmem:[%s30250_s5 + $0x240] sm:$0xff]  ;;  %v17728_v3 = vld [vmem:[%s30250_s5 + $0x250] sm:$0xff]  ;;  %v17733_v20 = vld [vmem:[%s30250_s5 + $0x278] sm:$0xff] }
 0xa1f   :  { %14435 = vst [vmem:[#allocation5 + $0x1c] sm:$0xf] %v14427_v21  ;;  %v23091_v2 = vpack.c.bf16 %v17728_v3, %v17726_v24  ;;  %v23093_v41 = vpack.c.bf16 %v17733_v20, %v17731_v10  ;;  %v17730_v52 = vld [vmem:[%s30250_s5 + $0x260] sm:$0xff]  ;;  %v17732_v42 = vld [vmem:[%s30250_s5 + $0x270] sm:$0xff]  ;;  %v17737_v21 = vld [vmem:[%s30250_s5 + $0x298] sm:$0xff] }
 0xa20   :  { %v17734_v33 = vld [vmem:[%s30250_s5 + $0x280] sm:$0xff]  ;;  %v17736_v49 = vld [vmem:[%s30250_s5 + $0x290] sm:$0xff]  ;;  %v17739_v28 = vld [vmem:[%s30250_s5 + $0x2a8] sm:$0xff] }
 0xa21   :  { %23056 = vmatpush1.bf16.msra.mxu1 %v23055_v54  ;;  %v17735_v54 = vld [vmem:[%s30250_s5 + $0x288] sm:$0xff]  ;;  %v17738_v60 = vld [vmem:[%s30250_s5 + $0x2a0] sm:$0xff]  ;;  %v17740_v37 = vld [vmem:[%s30250_s5 + $0x2b0] sm:$0xff] }
 0xa22   :  { %23058 = vmatprep.subr.bf16.mxu1 %v23057_v61  ;;  %v23095_v61 = vpack.c.bf16 %v17732_v42, %v17730_v52  ;;  %v23097_v62 = vpack.c.bf16 %v17737_v21, %v17735_v54  ;;  %v17743_v57 = vld [vmem:[%s30250_s5 + $0x2c8] sm:$0xff]  ;;  %v17742_v18 = vld [vmem:[%s30250_s5 + $0x2c0] sm:$0xff]  ;;  %v17744_v50 = vld [vmem:[%s30250_s5 + $0x2d0] sm:$0xff] }
 0xa23   :  { %v17747_v47 = vld [vmem:[%s30250_s5 + $0x2e8] sm:$0xff]  ;;  %v17746_v29 = vld [vmem:[%s30250_s5 + $0x2e0] sm:$0xff]  ;;  %v17748_v58 = vld [vmem:[%s30250_s5 + $0x2f0] sm:$0xff] }
 0xa24   :  { %v17751_v30 = vld [vmem:[%s30250_s5 + $0x308] sm:$0xff]  ;;  %v23111_v43 = vpack.c.bf16 %v17748_v58, %v17746_v29  ;;  %v17750_v51 = vld [vmem:[%s30250_s5 + $0x300] sm:$0xff]  ;;  %v17752_v55 = vld [vmem:[%s30250_s5 + $0x310] sm:$0xff] }
 0xa25   :  { %23060 = vmatpush1.bf16.msra.mxu1 %v23059_v59  ;;  %v17741_v59 = vld [vmem:[%s30250_s5 + $0x2b8] sm:$0xff]  ;;  %v23115_v23 = vpack.c.bf16 %v17752_v55, %v17750_v51  ;;  %v14658_v15 = vld [vmem:[#allocation5 + $0x2] sm:$0x1]  ;;  %v17759_v0 = vld [vmem:[%s30250_s5 + $0x348] sm:$0xff] }
 0xa26   :  { %23062 = vmatprep.subr.bf16.mxu1 %v23061_v9  ;;  %v23099_v9 = vpack.c.bf16 %v17736_v49, %v17734_v33  ;;  %v23101_v7 = vpack.c.bf16 %v17741_v59, %v17739_v28  ;;  %v17757_v45 = vld [vmem:[%s30250_s5 + $0x338] sm:$0xff]  ;;  %v17754_v31 = vld [vmem:[%s30250_s5 + $0x320] sm:$0xff]  ;;  %v17763_v12 = vld [vmem:[%s30250_s5 + $0x368] sm:$0xff] }
 0xa27   :  { %v17761_v8 = vld [vmem:[%s30250_s5 + $0x358] sm:$0xff]  ;;  %v17758_v6 = vld [vmem:[%s30250_s5 + $0x340] sm:$0xff]  ;;  %v17764_v32 = vld [vmem:[%s30250_s5 + $0x370] sm:$0xff] }
 0xa28   :  { %v23121_v27 = vpack.c.bf16 %v17761_v8, %v17759_v0  ;;  %v17767_v5 = vld [vmem:[%s30250_s5 + $0x388] sm:$0xff]  ;;  %v17766_v3 = vld [vmem:[%s30250_s5 + $0x380] sm:$0xff]  ;;  %v17768_v10 = vld [vmem:[%s30250_s5 + $0x390] sm:$0xff] }
 0xa29   :  { %23064 = vmatpush1.bf16.msra.mxu1 %v23063_v1  ;;  %v17745_v1 = vld [vmem:[%s30250_s5 + $0x2d8] sm:$0xff]  ;;  %v17771_v20 = vld [vmem:[%s30250_s5 + $0x3a8] sm:$0xff]  ;;  %v17770_v42 = vld [vmem:[%s30250_s5 + $0x3a0] sm:$0xff] }
 0xa2a   :  { %23066 = vmatprep.subr.bf16.mxu1 %v23065_v11  ;;  %v23103_v11 = vpack.c.bf16 %v17740_v37, %v17738_v60  ;;  %v23105_v17 = vpack.c.bf16 %v17745_v1, %v17743_v57  ;;  %v17772_v54 = vld [vmem:[%s30250_s5 + $0x3b0] sm:$0xff]  ;;  %v17775_v21 = vld [vmem:[%s30250_s5 + $0x3c8] sm:$0xff]  ;;  %v17774_v49 = vld [vmem:[%s30250_s5 + $0x3c0] sm:$0xff] }
 0xa2b   :  { %v17776_v28 = vld [vmem:[%s30250_s5 + $0x3d0] sm:$0xff]  ;;  %v17779_v59 = vld [vmem:[%s30250_s5 + $0x3e8] sm:$0xff]  ;;  %v17778_v37 = vld [vmem:[%s30250_s5 + $0x3e0] sm:$0xff] }
 0xa2c   :  { %v17780_v57 = vld [vmem:[%s30250_s5 + $0x3f0] sm:$0xff]  ;;  %v17783_v1 = vld [vmem:[%s30250_s5 + $0x408] sm:$0xff]  ;;  %v17789_v29 = vld [vmem:[%s30250_s5 + $0x438] sm:$0xff] }
 0xa2d   :  { %23068 = vmatpush1.bf16.msra.mxu1 %v23067_v25  ;;  %v17749_v25 = vld [vmem:[%s30250_s5 + $0x2f8] sm:$0xff]  ;;  %v17791_v51 = vld [vmem:[%s30250_s5 + $0x448] sm:$0xff]  ;;  %v17796_v0 = vld [vmem:[%s30250_s5 + $0x470] sm:$0xff] }
 0xa2e   :  { %23070 = vmatprep.subr.bf16.mxu1 %v23069_v44  ;;  %v23107_v44 = vpack.c.bf16 %v17744_v50, %v17742_v18  ;;  %v23109_v63 = vpack.c.bf16 %v17749_v25, %v17747_v47  ;;  %v23143_v18 = vpack.c.bf16 %v17780_v57, %v17778_v37  ;;  %v17782_v47 = vld [vmem:[%s30250_s5 + $0x400] sm:$0xff]  ;;  %v17784_v25 = vld [vmem:[%s30250_s5 + $0x410] sm:$0xff]  ;;  %v17793_v55 = vld [vmem:[%s30250_s5 + $0x458] sm:$0xff] }
 0xa2f   :  { %v23147_v58 = vpack.c.bf16 %v17784_v25, %v17782_v47  ;;  %v17799_v8 = vld [vmem:[%s30250_s5 + $0x488] sm:$0xff]  ;;  %v17821_v37 = vld [vmem:[%s30250_s5 + $0x538] sm:$0xff] }
 0xa30   :  { %v17823_v47 = vld [vmem:[%s30250_s5 + $0x548] sm:$0xff]  ;;  %v17825_v25 = vld [vmem:[%s30250_s5 + $0x558] sm:$0xff] }
 0xa31   :  { %23072 = vmatpush1.bf16.msra.mxu1 %v23071_v34  ;;  %v17753_v34 = vld [vmem:[%s30250_s5 + $0x318] sm:$0xff] }
 0xa32   :  { %23074 = vmatprep.subr.bf16.mxu1 %v23073_v14  ;;  %v14659_v14 = vld [vmem:[#allocation5 + $0x12] sm:$0x1]  ;;  %v23113_v16 = vpack.c.bf16 %v17753_v34, %v17751_v30  ;;  %v14771_v30 = vld [vmem:[#allocation5 + $0x3] sm:$0x1] }
 0xa35   :  { %23076 = vmatpush1.bf16.msra.mxu1 %v23075_v40  ;;  %v14695_v40 = vrot.slane %v14659_v14, 7  ;;  %v17786_v14 = vld [vmem:[%s30250_s5 + $0x420] sm:$0xff] }
 0xa36   :  { %23078 = vmatprep.subr.bf16.mxu1 %v23077_v26  ;;  %v17755_v26 = vld [vmem:[%s30250_s5 + $0x328] sm:$0xff] }
 0xa37   :  { %v23117_v35 = vpack.c.bf16 %v17757_v45, %v17755_v26  ;;  %v23153_v26 = vpack.c.bf16 %v17793_v55, %v17791_v51  ;;  %v17790_v45 = vld [vmem:[%s30250_s5 + $0x440] sm:$0xff]  ;;  %v17828_v51 = vld [vmem:[%s30250_s5 + $0x570] sm:$0xff]  ;;  %v17831_v55 = vld [vmem:[%s30250_s5 + $0x588] sm:$0xff] }
 0xa39   :  { %23080 = vmatpush1.bf16.msra.mxu1 %v23079_v46  ;;  %v17756_v46 = vld [vmem:[%s30250_s5 + $0x330] sm:$0xff] }
 0xa3a   :  { %23082 = vmatprep.subr.bf16.mxu1 %v23081_v53  ;;  %v14696_v53 = vsel %vm14508_vm2, %v14695_v40, %v14658_v15  ;;  %v23119_v19 = vpack.c.bf16 %v17756_v46, %v17754_v31  ;;  %v17795_v15 = vld [vmem:[%s30250_s5 + $0x468] sm:$0xff] }
 0xa3c   :  { %14652 = vmatmul.mubr.f32.vlgmr.msra.gmra.mrb[46].mxu1 %v14585_v38  ;;  %v17762_v38 = vld [vmem:[%s30250_s5 + $0x360] sm:$0xff] }
 0xa3d   :  { %23084 = vmatpush1.bf16.msra.mxu1 %v23083_v56  ;;  %14762 = vmatprep.mubr.f32.mxu1 %v24678_v39  ;;  %v17760_v56 = vld [vmem:[%s30250_s5 + $0x350] sm:$0xff] }
 0xa3e   :  { %23086 = vmatprep.subr.bf16.mxu1 %v23085_v13  ;;  %v17765_v13 = vld [vmem:[%s30250_s5 + $0x378] sm:$0xff]  ;;  %v23123_v4 = vpack.c.bf16 %v17760_v56, %v17758_v6  ;;  %v17798_v56 = vld [vmem:[%s30250_s5 + $0x480] sm:$0xff] }
 0xa3f   :  { %v23125_v36 = vpack.c.bf16 %v17765_v13, %v17763_v12  ;;  %v17800_v12 = vld [vmem:[%s30250_s5 + $0x490] sm:$0xff]  ;;  %v17803_v13 = vld [vmem:[%s30250_s5 + $0x4a8] sm:$0xff] }
 0xa41   :  { %23088 = vmatpush1.bf16.msra.mxu1 %v23087_v22  ;;  %v17769_v22 = vld [vmem:[%s30250_s5 + $0x398] sm:$0xff] }
 0xa42   :  { %23090 = vmatprep.subr.bf16.mxu1 %v23089_v48  ;;  %v23127_v48 = vpack.c.bf16 %v17764_v32, %v17762_v38  ;;  %v23129_v24 = vpack.c.bf16 %v17769_v22, %v17767_v5  ;;  %v17802_v32 = vld [vmem:[%s30250_s5 + $0x4a0] sm:$0xff]  ;;  %v17804_v5 = vld [vmem:[%s30250_s5 + $0x4b0] sm:$0xff]  ;;  %v17807_v22 = vld [vmem:[%s30250_s5 + $0x4c8] sm:$0xff] }
 0xa45   :  { %23092 = vmatpush1.bf16.msra.mxu1 %v23091_v2  ;;  %v17773_v2 = vld [vmem:[%s30250_s5 + $0x3b8] sm:$0xff] }
 0xa46   :  { %23094 = vmatprep.subr.bf16.mxu1 %v23093_v41  ;;  %v23131_v41 = vpack.c.bf16 %v17768_v10, %v17766_v3  ;;  %v23133_v52 = vpack.c.bf16 %v17773_v2, %v17771_v20  ;;  %v17806_v10 = vld [vmem:[%s30250_s5 + $0x4c0] sm:$0xff]  ;;  %v17808_v20 = vld [vmem:[%s30250_s5 + $0x4d0] sm:$0xff]  ;;  %v17811_v2 = vld [vmem:[%s30250_s5 + $0x4e8] sm:$0xff] }
 0xa49   :  { %23096 = vmatpush1.bf16.msra.mxu1 %v23095_v61  ;;  %v17777_v61 = vld [vmem:[%s30250_s5 + $0x3d8] sm:$0xff] }
 0xa4a   :  { %23098 = vmatprep.subr.bf16.mxu1 %v23097_v62  ;;  %v23135_v62 = vpack.c.bf16 %v17772_v54, %v17770_v42  ;;  %v23137_v33 = vpack.c.bf16 %v17777_v61, %v17775_v21  ;;  %v17810_v54 = vld [vmem:[%s30250_s5 + $0x4e0] sm:$0xff]  ;;  %v17812_v21 = vld [vmem:[%s30250_s5 + $0x4f0] sm:$0xff]  ;;  %v17815_v61 = vld [vmem:[%s30250_s5 + $0x508] sm:$0xff] }
 0xa4d   :  { %23100 = vmatpush1.bf16.msra.mxu1 %v23099_v9  ;;  %v17781_v9 = vld [vmem:[%s30250_s5 + $0x3f8] sm:$0xff] }
 0xa4e   :  { %23102 = vmatprep.subr.bf16.mxu1 %v23101_v7  ;;  %v23139_v7 = vpack.c.bf16 %v17776_v28, %v17774_v49  ;;  %v23141_v60 = vpack.c.bf16 %v17781_v9, %v17779_v59  ;;  %v23175_v49 = vpack.c.bf16 %v17812_v21, %v17810_v54  ;;  %v17814_v59 = vld [vmem:[%s30250_s5 + $0x500] sm:$0xff]  ;;  %v17816_v9 = vld [vmem:[%s30250_s5 + $0x510] sm:$0xff]  ;;  %v17853_v54 = vld [vmem:[%s30250_s5 + $0x638] sm:$0xff] }
 0xa4f   :  { %v23179_v57 = vpack.c.bf16 %v17816_v9, %v17814_v59  ;;  %v17855_v59 = vld [vmem:[%s30250_s5 + $0x648] sm:$0xff]  ;;  %v17857_v9 = vld [vmem:[%s30250_s5 + $0x658] sm:$0xff] }
 0xa51   :  { %23104 = vmatpush1.bf16.msra.mxu1 %v23103_v11  ;;  %v17785_v11 = vld [vmem:[%s30250_s5 + $0x418] sm:$0xff] }
 0xa52   :  { %23106 = vmatprep.subr.bf16.mxu1 %v23105_v17  ;;  %v14772_v17 = vld [vmem:[#allocation5 + $0x13] sm:$0x1]  ;;  %v23145_v50 = vpack.c.bf16 %v17785_v11, %v17783_v1  ;;  %v14885_v1 = vld [vmem:[#allocation5 + $0x4] sm:$0x1] }
 0xa55   :  { %23108 = vmatpush1.bf16.msra.mxu1 %v23107_v44  ;;  %v14808_v44 = vrot.slane %v14772_v17, 7  ;;  %v17818_v17 = vld [vmem:[%s30250_s5 + $0x520] sm:$0xff] }
 0xa56   :  { %23110 = vmatprep.subr.bf16.mxu1 %v23109_v63  ;;  %v17787_v63 = vld [vmem:[%s30250_s5 + $0x428] sm:$0xff] }
 0xa57   :  { %v23149_v34 = vpack.c.bf16 %v17789_v29, %v17787_v63  ;;  %v23185_v63 = vpack.c.bf16 %v17825_v25, %v17823_v47  ;;  %v17822_v29 = vld [vmem:[%s30250_s5 + $0x540] sm:$0xff]  ;;  %v17860_v47 = vld [vmem:[%s30250_s5 + $0x670] sm:$0xff]  ;;  %v17863_v25 = vld [vmem:[%s30250_s5 + $0x688] sm:$0xff] }
 0xa59   :  { %23112 = vmatpush1.bf16.msra.mxu1 %v23111_v43  ;;  %v17788_v43 = vld [vmem:[%s30250_s5 + $0x430] sm:$0xff] }
 0xa5a   :  { %23114 = vmatprep.subr.bf16.mxu1 %v23113_v16  ;;  %v14809_v16 = vsel %vm14508_vm2, %v14808_v44, %v14771_v30  ;;  %v23151_v40 = vpack.c.bf16 %v17788_v43, %v17786_v14  ;;  %v17827_v30 = vld [vmem:[%s30250_s5 + $0x568] sm:$0xff] }
 0xa5c   :  { %14763 = vmatmul.mubr.f32.vlgmr.msra.gmra.mrb[46].mxu1 %v14696_v53  ;;  %v17794_v53 = vld [vmem:[%s30250_s5 + $0x460] sm:$0xff] }
 0xa5d   :  { %23116 = vmatpush1.bf16.msra.mxu1 %v23115_v23  ;;  %14875 = vmatprep.mubr.f32.mxu1 %v24678_v39  ;;  %v17792_v23 = vld [vmem:[%s30250_s5 + $0x450] sm:$0xff] }
 0xa5e   :  { %23118 = vmatprep.subr.bf16.mxu1 %v23117_v35  ;;  %v17797_v35 = vld [vmem:[%s30250_s5 + $0x478] sm:$0xff]  ;;  %v23155_v31 = vpack.c.bf16 %v17792_v23, %v17790_v45  ;;  %v17830_v23 = vld [vmem:[%s30250_s5 + $0x580] sm:$0xff] }
 0xa5f   :  { %v23157_v46 = vpack.c.bf16 %v17797_v35, %v17795_v15  ;;  %v17832_v15 = vld [vmem:[%s30250_s5 + $0x590] sm:$0xff]  ;;  %v17835_v35 = vld [vmem:[%s30250_s5 + $0x5a8] sm:$0xff] }
 0xa61   :  { %23120 = vmatpush1.bf16.msra.mxu1 %v23119_v19  ;;  %v17801_v19 = vld [vmem:[%s30250_s5 + $0x498] sm:$0xff] }
 0xa62   :  { %23122 = vmatprep.subr.bf16.mxu1 %v23121_v27  ;;  %v23159_v27 = vpack.c.bf16 %v17796_v0, %v17794_v53  ;;  %v23161_v6 = vpack.c.bf16 %v17801_v19, %v17799_v8  ;;  %v17834_v0 = vld [vmem:[%s30250_s5 + $0x5a0] sm:$0xff]  ;;  %v17836_v8 = vld [vmem:[%s30250_s5 + $0x5b0] sm:$0xff]  ;;  %v17839_v19 = vld [vmem:[%s30250_s5 + $0x5c8] sm:$0xff] }
 0xa65   :  { %23124 = vmatpush1.bf16.msra.mxu1 %v23123_v4  ;;  %v17805_v4 = vld [vmem:[%s30250_s5 + $0x4b8] sm:$0xff] }
 0xa66   :  { %23126 = vmatprep.subr.bf16.mxu1 %v23125_v36  ;;  %v23163_v36 = vpack.c.bf16 %v17800_v12, %v17798_v56  ;;  %v23165_v38 = vpack.c.bf16 %v17805_v4, %v17803_v13  ;;  %v17838_v12 = vld [vmem:[%s30250_s5 + $0x5c0] sm:$0xff]  ;;  %v17840_v13 = vld [vmem:[%s30250_s5 + $0x5d0] sm:$0xff]  ;;  %v17843_v4 = vld [vmem:[%s30250_s5 + $0x5e8] sm:$0xff] }
 0xa69   :  { %23128 = vmatpush1.bf16.msra.mxu1 %v23127_v48  ;;  %v17809_v48 = vld [vmem:[%s30250_s5 + $0x4d8] sm:$0xff] }
 0xa6a   :  { %23130 = vmatprep.subr.bf16.mxu1 %v23129_v24  ;;  %v23167_v24 = vpack.c.bf16 %v17804_v5, %v17802_v32  ;;  %v23169_v3 = vpack.c.bf16 %v17809_v48, %v17807_v22  ;;  %v17842_v5 = vld [vmem:[%s30250_s5 + $0x5e0] sm:$0xff]  ;;  %v17844_v22 = vld [vmem:[%s30250_s5 + $0x5f0] sm:$0xff]  ;;  %v17847_v48 = vld [vmem:[%s30250_s5 + $0x608] sm:$0xff] }
 0xa6d   :  { %23132 = vmatpush1.bf16.msra.mxu1 %v23131_v41  ;;  %v17813_v41 = vld [vmem:[%s30250_s5 + $0x4f8] sm:$0xff] }
 0xa6e   :  { %23134 = vmatprep.subr.bf16.mxu1 %v23133_v52  ;;  %v23171_v52 = vpack.c.bf16 %v17808_v20, %v17806_v10  ;;  %v23173_v42 = vpack.c.bf16 %v17813_v41, %v17811_v2  ;;  %v23207_v10 = vpack.c.bf16 %v17844_v22, %v17842_v5  ;;  %v17846_v2 = vld [vmem:[%s30250_s5 + $0x600] sm:$0xff]  ;;  %v17848_v41 = vld [vmem:[%s30250_s5 + $0x610] sm:$0xff]  ;;  %v17885_v5 = vld [vmem:[%s30250_s5 + $0x738] sm:$0xff] }
 0xa6f   :  { %v23211_v21 = vpack.c.bf16 %v17848_v41, %v17846_v2  ;;  %v17887_v2 = vld [vmem:[%s30250_s5 + $0x748] sm:$0xff]  ;;  %v17889_v41 = vld [vmem:[%s30250_s5 + $0x758] sm:$0xff] }
 0xa71   :  { %23136 = vmatpush1.bf16.msra.mxu1 %v23135_v62  ;;  %v17817_v62 = vld [vmem:[%s30250_s5 + $0x518] sm:$0xff] }
 0xa72   :  { %23138 = vmatprep.subr.bf16.mxu1 %v23137_v33  ;;  %v14886_v33 = vld [vmem:[#allocation5 + $0x14] sm:$0x1]  ;;  %v23177_v28 = vpack.c.bf16 %v17817_v62, %v17815_v61  ;;  %v14998_v61 = vld [vmem:[#allocation5 + $0x5] sm:$0x1] }
 0xa75   :  { %23140 = vmatpush1.bf16.msra.mxu1 %v23139_v7  ;;  %v14922_v7 = vrot.slane %v14886_v33, 7  ;;  %v17850_v33 = vld [vmem:[%s30250_s5 + $0x620] sm:$0xff] }
 0xa76   :  { %23142 = vmatprep.subr.bf16.mxu1 %v23141_v60  ;;  %v17819_v60 = vld [vmem:[%s30250_s5 + $0x528] sm:$0xff] }
 0xa77   :  { %v23181_v11 = vpack.c.bf16 %v17821_v37, %v17819_v60  ;;  %v23217_v60 = vpack.c.bf16 %v17857_v9, %v17855_v59  ;;  %v17854_v37 = vld [vmem:[%s30250_s5 + $0x640] sm:$0xff]  ;;  %v17892_v59 = vld [vmem:[%s30250_s5 + $0x770] sm:$0xff]  ;;  %v17895_v9 = vld [vmem:[%s30250_s5 + $0x788] sm:$0xff] }
 0xa79   :  { %23144 = vmatpush1.bf16.msra.mxu1 %v23143_v18  ;;  %v17820_v18 = vld [vmem:[%s30250_s5 + $0x530] sm:$0xff] }
 0xa7a   :  { %23146 = vmatprep.subr.bf16.mxu1 %v23145_v50  ;;  %v14923_v50 = vsel %vm14508_vm2, %v14922_v7, %v14885_v1  ;;  %v23183_v44 = vpack.c.bf16 %v17820_v18, %v17818_v17  ;;  %v17859_v1 = vld [vmem:[%s30250_s5 + $0x668] sm:$0xff] }
 0xa7c   :  { %14876 = vmatmul.mubr.f32.vlgmr.msra.gmra.mrb[46].mxu1 %v14809_v16  ;;  %v17826_v16 = vld [vmem:[%s30250_s5 + $0x560] sm:$0xff] }
 0xa7d   :  { %23148 = vmatpush1.bf16.msra.mxu1 %v23147_v58  ;;  %14989 = vmatprep.mubr.f32.mxu1 %v24678_v39  ;;  %v17824_v58 = vld [vmem:[%s30250_s5 + $0x550] sm:$0xff] }
 0xa7e   :  { %23150 = vmatprep.subr.bf16.mxu1 %v23149_v34  ;;  %v17829_v34 = vld [vmem:[%s30250_s5 + $0x578] sm:$0xff]  ;;  %v23187_v14 = vpack.c.bf16 %v17824_v58, %v17822_v29  ;;  %v17862_v58 = vld [vmem:[%s30250_s5 + $0x680] sm:$0xff] }
 0xa7f   :  { %v23189_v43 = vpack.c.bf16 %v17829_v34, %v17827_v30  ;;  %v17864_v30 = vld [vmem:[%s30250_s5 + $0x690] sm:$0xff]  ;;  %v17867_v34 = vld [vmem:[%s30250_s5 + $0x6a8] sm:$0xff] }
 0xa81   :  { %23152 = vmatpush1.bf16.msra.mxu1 %v23151_v40  ;;  %v17833_v40 = vld [vmem:[%s30250_s5 + $0x598] sm:$0xff] }
 0xa82   :  { %23154 = vmatprep.subr.bf16.mxu1 %v23153_v26  ;;  %v23191_v26 = vpack.c.bf16 %v17828_v51, %v17826_v16  ;;  %v23193_v45 = vpack.c.bf16 %v17833_v40, %v17831_v55  ;;  %v17866_v51 = vld [vmem:[%s30250_s5 + $0x6a0] sm:$0xff]  ;;  %v17868_v55 = vld [vmem:[%s30250_s5 + $0x6b0] sm:$0xff]  ;;  %v17871_v40 = vld [vmem:[%s30250_s5 + $0x6c8] sm:$0xff] }
 0xa85   :  { %23156 = vmatpush1.bf16.msra.mxu1 %v23155_v31  ;;  %v17837_v31 = vld [vmem:[%s30250_s5 + $0x5b8] sm:$0xff] }
 0xa86   :  { %23158 = vmatprep.subr.bf16.mxu1 %v23157_v46  ;;  %v23195_v46 = vpack.c.bf16 %v17832_v15, %v17830_v23  ;;  %v23197_v53 = vpack.c.bf16 %v17837_v31, %v17835_v35  ;;  %v17870_v15 = vld [vmem:[%s30250_s5 + $0x6c0] sm:$0xff]  ;;  %v17872_v35 = vld [vmem:[%s30250_s5 + $0x6d0] sm:$0xff]  ;;  %v17875_v31 = vld [vmem:[%s30250_s5 + $0x6e8] sm:$0xff] }
 0xa89   :  { %23160 = vmatpush1.bf16.msra.mxu1 %v23159_v27  ;;  %v17841_v27 = vld [vmem:[%s30250_s5 + $0x5d8] sm:$0xff] }
 0xa8a   :  { %23162 = vmatprep.subr.bf16.mxu1 %v23161_v6  ;;  %v23199_v6 = vpack.c.bf16 %v17836_v8, %v17834_v0  ;;  %v23201_v56 = vpack.c.bf16 %v17841_v27, %v17839_v19  ;;  %v17874_v8 = vld [vmem:[%s30250_s5 + $0x6e0] sm:$0xff]  ;;  %v17876_v19 = vld [vmem:[%s30250_s5 + $0x6f0] sm:$0xff]  ;;  %v17879_v27 = vld [vmem:[%s30250_s5 + $0x708] sm:$0xff] }
 0xa8d   :  { %23164 = vmatpush1.bf16.msra.mxu1 %v23163_v36  ;;  %v17845_v36 = vld [vmem:[%s30250_s5 + $0x5f8] sm:$0xff] }
 0xa8e   :  { %23166 = vmatprep.subr.bf16.mxu1 %v23165_v38  ;;  %v23203_v38 = vpack.c.bf16 %v17840_v13, %v17838_v12  ;;  %v23205_v32 = vpack.c.bf16 %v17845_v36, %v17843_v4  ;;  %v23239_v12 = vpack.c.bf16 %v17876_v19, %v17874_v8  ;;  %v17878_v4 = vld [vmem:[%s30250_s5 + $0x700] sm:$0xff]  ;;  %v17880_v36 = vld [vmem:[%s30250_s5 + $0x710] sm:$0xff]  ;;  %v17917_v8 = vld [vmem:[%s30250_s5 + $0x838] sm:$0xff] }
 0xa8f   :  { %v23243_v22 = vpack.c.bf16 %v17880_v36, %v17878_v4  ;;  %v17919_v4 = vld [vmem:[%s30250_s5 + $0x848] sm:$0xff]  ;;  %v17921_v36 = vld [vmem:[%s30250_s5 + $0x858] sm:$0xff] }
 0xa91   :  { %23168 = vmatpush1.bf16.msra.mxu1 %v23167_v24  ;;  %v17849_v24 = vld [vmem:[%s30250_s5 + $0x618] sm:$0xff] }
 0xa92   :  { %23170 = vmatprep.subr.bf16.mxu1 %v23169_v3  ;;  %v14999_v3 = vld [vmem:[#allocation5 + $0x15] sm:$0x1]  ;;  %v23209_v20 = vpack.c.bf16 %v17849_v24, %v17847_v48  ;;  %v15111_v48 = vld [vmem:[#allocation5 + $0x6] sm:$0x1] }
 0xa95   :  { %23172 = vmatpush1.bf16.msra.mxu1 %v23171_v52  ;;  %v15035_v52 = vrot.slane %v14999_v3, 7  ;;  %v17882_v3 = vld [vmem:[%s30250_s5 + $0x720] sm:$0xff] }
 0xa96   :  { %23174 = vmatprep.subr.bf16.mxu1 %v23173_v42  ;;  %v17851_v42 = vld [vmem:[%s30250_s5 + $0x628] sm:$0xff] }
 0xa97   :  { %v23213_v62 = vpack.c.bf16 %v17853_v54, %v17851_v42  ;;  %v23249_v42 = vpack.c.bf16 %v17889_v41, %v17887_v2  ;;  %v17886_v54 = vld [vmem:[%s30250_s5 + $0x740] sm:$0xff]  ;;  %v17924_v2 = vld [vmem:[%s30250_s5 + $0x870] sm:$0xff]  ;;  %v17927_v41 = vld [vmem:[%s30250_s5 + $0x888] sm:$0xff] }
 0xa99   :  { %23176 = vmatpush1.bf16.msra.mxu1 %v23175_v49  ;;  %v17852_v49 = vld [vmem:[%s30250_s5 + $0x630] sm:$0xff] }
 0xa9a   :  { %23178 = vmatprep.subr.bf16.mxu1 %v23177_v28  ;;  %v15036_v28 = vsel %vm14508_vm2, %v15035_v52, %v14998_v61  ;;  %v23215_v7 = vpack.c.bf16 %v17852_v49, %v17850_v33  ;;  %v17891_v61 = vld [vmem:[%s30250_s5 + $0x768] sm:$0xff] }
 0xa9c   :  { %14990 = vmatmul.mubr.f32.vlgmr.msra.gmra.mrb[46].mxu1 %v14923_v50  ;;  %v17858_v50 = vld [vmem:[%s30250_s5 + $0x660] sm:$0xff] }
 0xa9d   :  { %23180 = vmatpush1.bf16.msra.mxu1 %v23179_v57  ;;  %15102 = vmatprep.mubr.f32.mxu1 %v24678_v39  ;;  %v17856_v57 = vld [vmem:[%s30250_s5 + $0x650] sm:$0xff] }
 0xa9e   :  { %23182 = vmatprep.subr.bf16.mxu1 %v23181_v11  ;;  %v17861_v11 = vld [vmem:[%s30250_s5 + $0x678] sm:$0xff]  ;;  %v23219_v17 = vpack.c.bf16 %v17856_v57, %v17854_v37  ;;  %v17894_v57 = vld [vmem:[%s30250_s5 + $0x780] sm:$0xff] }
 0xa9f   :  { %v23221_v18 = vpack.c.bf16 %v17861_v11, %v17859_v1  ;;  %v17896_v1 = vld [vmem:[%s30250_s5 + $0x790] sm:$0xff]  ;;  %v17899_v11 = vld [vmem:[%s30250_s5 + $0x7a8] sm:$0xff] }
 0xaa1   :  { %23184 = vmatpush1.bf16.msra.mxu1 %v23183_v44  ;;  %v17865_v44 = vld [vmem:[%s30250_s5 + $0x698] sm:$0xff] }
 0xaa2   :  { %23186 = vmatprep.subr.bf16.mxu1 %v23185_v63  ;;  %v23223_v63 = vpack.c.bf16 %v17860_v47, %v17858_v50  ;;  %v23225_v29 = vpack.c.bf16 %v17865_v44, %v17863_v25  ;;  %v17898_v47 = vld [vmem:[%s30250_s5 + $0x7a0] sm:$0xff]  ;;  %v17900_v25 = vld [vmem:[%s30250_s5 + $0x7b0] sm:$0xff]  ;;  %v17903_v44 = vld [vmem:[%s30250_s5 + $0x7c8] sm:$0xff] }
 0xaa5   :  { %23188 = vmatpush1.bf16.msra.mxu1 %v23187_v14  ;;  %v17869_v14 = vld [vmem:[%s30250_s5 + $0x6b8] sm:$0xff] }
 0xaa6   :  { %23190 = vmatprep.subr.bf16.mxu1 %v23189_v43  ;;  %v23227_v43 = vpack.c.bf16 %v17864_v30, %v17862_v58  ;;  %v23229_v16 = vpack.c.bf16 %v17869_v14, %v17867_v34  ;;  %v17902_v30 = vld [vmem:[%s30250_s5 + $0x7c0] sm:$0xff]  ;;  %v17904_v34 = vld [vmem:[%s30250_s5 + $0x7d0] sm:$0xff]  ;;  %v17907_v14 = vld [vmem:[%s30250_s5 + $0x7e8] sm:$0xff] }
 0xaa9   :  { %23192 = vmatpush1.bf16.msra.mxu1 %v23191_v26  ;;  %v17873_v26 = vld [vmem:[%s30250_s5 + $0x6d8] sm:$0xff] }
 0xaaa   :  { %23194 = vmatprep.subr.bf16.mxu1 %v23193_v45  ;;  %v23231_v45 = vpack.c.bf16 %v17868_v55, %v17866_v51  ;;  %v23233_v23 = vpack.c.bf16 %v17873_v26, %v17871_v40  ;;  %v17906_v55 = vld [vmem:[%s30250_s5 + $0x7e0] sm:$0xff]  ;;  %v17908_v40 = vld [vmem:[%s30250_s5 + $0x7f0] sm:$0xff]  ;;  %v17911_v26 = vld [vmem:[%s30250_s5 + $0x808] sm:$0xff] }
 0xaad   :  { %23196 = vmatpush1.bf16.msra.mxu1 %v23195_v46  ;;  %v17877_v46 = vld [vmem:[%s30250_s5 + $0x6f8] sm:$0xff] }
 0xaae   :  { %23198 = vmatprep.subr.bf16.mxu1 %v23197_v53  ;;  %v23235_v53 = vpack.c.bf16 %v17872_v35, %v17870_v15  ;;  %v23237_v0 = vpack.c.bf16 %v17877_v46, %v17875_v31  ;;  %v23271_v15 = vpack.c.bf16 %v17908_v40, %v17906_v55  ;;  %v17910_v31 = vld [vmem:[%s30250_s5 + $0x800] sm:$0xff]  ;;  %v17912_v46 = vld [vmem:[%s30250_s5 + $0x810] sm:$0xff]  ;;  %v17949_v55 = vld [vmem:[%s30250_s5 + $0x938] sm:$0xff] }
 0xaaf   :  { %v23275_v19 = vpack.c.bf16 %v17912_v46, %v17910_v31  ;;  %v17951_v31 = vld [vmem:[%s30250_s5 + $0x948] sm:$0xff]  ;;  %v17953_v46 = vld [vmem:[%s30250_s5 + $0x958] sm:$0xff] }
 0xab1   :  { %23200 = vmatpush1.bf16.msra.mxu1 %v23199_v6  ;;  %v17881_v6 = vld [vmem:[%s30250_s5 + $0x718] sm:$0xff] }
 0xab2   :  { %23202 = vmatprep.subr.bf16.mxu1 %v23201_v56  ;;  %v15112_v56 = vld [vmem:[#allocation5 + $0x16] sm:$0x1]  ;;  %v23241_v13 = vpack.c.bf16 %v17881_v6, %v17879_v27  ;;  %v15224_v27 = vld [vmem:[#allocation5 + $0x7] sm:$0x1] }
 0xab5   :  { %23204 = vmatpush1.bf16.msra.mxu1 %v23203_v38  ;;  %v15148_v38 = vrot.slane %v15112_v56, 7  ;;  %v17914_v56 = vld [vmem:[%s30250_s5 + $0x820] sm:$0xff] }
 0xab6   :  { %23206 = vmatprep.subr.bf16.mxu1 %v23205_v32  ;;  %v17883_v32 = vld [vmem:[%s30250_s5 + $0x728] sm:$0xff] }
 0xab7   :  { %v23245_v24 = vpack.c.bf16 %v17885_v5, %v17883_v32  ;;  %v23281_v32 = vpack.c.bf16 %v17921_v36, %v17919_v4  ;;  %v17918_v5 = vld [vmem:[%s30250_s5 + $0x840] sm:$0xff]  ;;  %v17956_v4 = vld [vmem:[%s30250_s5 + $0x970] sm:$0xff]  ;;  %v17959_v36 = vld [vmem:[%s30250_s5 + $0x988] sm:$0xff] }
 0xab9   :  { %23208 = vmatpush1.bf16.msra.mxu1 %v23207_v10  ;;  %v17884_v10 = vld [vmem:[%s30250_s5 + $0x730] sm:$0xff] }
 0xaba   :  { %23210 = vmatprep.subr.bf16.mxu1 %v23209_v20  ;;  %v15149_v20 = vsel %vm14508_vm2, %v15148_v38, %v15111_v48  ;;  %v23247_v52 = vpack.c.bf16 %v17884_v10, %v17882_v3  ;;  %v17923_v48 = vld [vmem:[%s30250_s5 + $0x868] sm:$0xff] }
 0xabc   :  { %15103 = vmatmul.mubr.f32.vlgmr.msra.gmra.mrb[46].mxu1 %v15036_v28  ;;  %v17890_v28 = vld [vmem:[%s30250_s5 + $0x760] sm:$0xff] }
 0xabd   :  { %23212 = vmatpush1.bf16.msra.mxu1 %v23211_v21  ;;  %15215 = vmatprep.mubr.f32.mxu1 %v24678_v39  ;;  %v17888_v21 = vld [vmem:[%s30250_s5 + $0x750] sm:$0xff] }
 0xabe   :  { %23214 = vmatprep.subr.bf16.mxu1 %v23213_v62  ;;  %v17893_v62 = vld [vmem:[%s30250_s5 + $0x778] sm:$0xff]  ;;  %v23251_v33 = vpack.c.bf16 %v17888_v21, %v17886_v54  ;;  %v17926_v21 = vld [vmem:[%s30250_s5 + $0x880] sm:$0xff] }
 0xabf   :  { %v23253_v49 = vpack.c.bf16 %v17893_v62, %v17891_v61  ;;  %v17928_v61 = vld [vmem:[%s30250_s5 + $0x890] sm:$0xff]  ;;  %v17931_v62 = vld [vmem:[%s30250_s5 + $0x8a8] sm:$0xff] }
 0xac1   :  { %23216 = vmatpush1.bf16.msra.mxu1 %v23215_v7  ;;  %v17897_v7 = vld [vmem:[%s30250_s5 + $0x798] sm:$0xff] }
 0xac2   :  { %23218 = vmatprep.subr.bf16.mxu1 %v23217_v60  ;;  %v23255_v60 = vpack.c.bf16 %v17892_v59, %v17890_v28  ;;  %v23257_v37 = vpack.c.bf16 %v17897_v7, %v17895_v9  ;;  %v17930_v59 = vld [vmem:[%s30250_s5 + $0x8a0] sm:$0xff]  ;;  %v17932_v9 = vld [vmem:[%s30250_s5 + $0x8b0] sm:$0xff]  ;;  %v17935_v7 = vld [vmem:[%s30250_s5 + $0x8c8] sm:$0xff] }
 0xac5   :  { %23220 = vmatpush1.bf16.msra.mxu1 %v23219_v17  ;;  %v17901_v17 = vld [vmem:[%s30250_s5 + $0x7b8] sm:$0xff] }
 0xac6   :  { %23222 = vmatprep.subr.bf16.mxu1 %v23221_v18  ;;  %v23259_v18 = vpack.c.bf16 %v17896_v1, %v17894_v57  ;;  %v23261_v50 = vpack.c.bf16 %v17901_v17, %v17899_v11  ;;  %v17934_v1 = vld [vmem:[%s30250_s5 + $0x8c0] sm:$0xff]  ;;  %v17936_v11 = vld [vmem:[%s30250_s5 + $0x8d0] sm:$0xff]  ;;  %v17939_v17 = vld [vmem:[%s30250_s5 + $0x8e8] sm:$0xff] }
 0xac9   :  { %23224 = vmatpush1.bf16.msra.mxu1 %v23223_v63  ;;  %v17905_v63 = vld [vmem:[%s30250_s5 + $0x7d8] sm:$0xff] }
 0xaca   :  { %23226 = vmatprep.subr.bf16.mxu1 %v23225_v29  ;;  %v23263_v29 = vpack.c.bf16 %v17900_v25, %v17898_v47  ;;  %v23265_v58 = vpack.c.bf16 %v17905_v63, %v17903_v44  ;;  %v17938_v25 = vld [vmem:[%s30250_s5 + $0x8e0] sm:$0xff]  ;;  %v17940_v44 = vld [vmem:[%s30250_s5 + $0x8f0] sm:$0xff]  ;;  %v17943_v63 = vld [vmem:[%s30250_s5 + $0x908] sm:$0xff] }
 0xacd   :  { %23228 = vmatpush1.bf16.msra.mxu1 %v23227_v43  ;;  %v17909_v43 = vld [vmem:[%s30250_s5 + $0x7f8] sm:$0xff] }
 0xace   :  { %23230 = vmatprep.subr.bf16.mxu1 %v23229_v16  ;;  %v23267_v16 = vpack.c.bf16 %v17904_v34, %v17902_v30  ;;  %v23269_v51 = vpack.c.bf16 %v17909_v43, %v17907_v14  ;;  %v23303_v30 = vpack.c.bf16 %v17940_v44, %v17938_v25  ;;  %v17942_v14 = vld [vmem:[%s30250_s5 + $0x900] sm:$0xff]  ;;  %v17944_v43 = vld [vmem:[%s30250_s5 + $0x910] sm:$0xff]  ;;  %v17981_v25 = vld [vmem:[%s30250_s5 + $0xa38] sm:$0xff] }
 0xacf   :  { %v23307_v40 = vpack.c.bf16 %v17944_v43, %v17942_v14  ;;  %v17983_v14 = vld [vmem:[%s30250_s5 + $0xa48] sm:$0xff]  ;;  %v17985_v43 = vld [vmem:[%s30250_s5 + $0xa58] sm:$0xff] }
 0xad1   :  { %23232 = vmatpush1.bf16.msra.mxu1 %v23231_v45  ;;  %v17913_v45 = vld [vmem:[%s30250_s5 + $0x818] sm:$0xff] }
 0xad2   :  { %23234 = vmatprep.subr.bf16.mxu1 %v23233_v23  ;;  %v15225_v23 = vld [vmem:[#allocation5 + $0x17] sm:$0x1]  ;;  %v23273_v35 = vpack.c.bf16 %v17913_v45, %v17911_v26  ;;  %v15338_v26 = vld [vmem:[#allocation5 + $0x8] sm:$0x1] }
 0xad5   :  { %23236 = vmatpush1.bf16.msra.mxu1 %v23235_v53  ;;  %v15261_v53 = vrot.slane %v15225_v23, 7  ;;  %v17946_v23 = vld [vmem:[%s30250_s5 + $0x920] sm:$0xff] }
 0xad6   :  { %23238 = vmatprep.subr.bf16.mxu1 %v23237_v0  ;;  %v17915_v0 = vld [vmem:[%s30250_s5 + $0x828] sm:$0xff] }
 0xad7   :  { %v23277_v6 = vpack.c.bf16 %v17917_v8, %v17915_v0  ;;  %v23313_v0 = vpack.c.bf16 %v17953_v46, %v17951_v31  ;;  %v17950_v8 = vld [vmem:[%s30250_s5 + $0x940] sm:$0xff]  ;;  %v17988_v31 = vld [vmem:[%s30250_s5 + $0xa70] sm:$0xff]  ;;  %v17991_v46 = vld [vmem:[%s30250_s5 + $0xa88] sm:$0xff] }
 0xad9   :  { %23240 = vmatpush1.bf16.msra.mxu1 %v23239_v12  ;;  %v17916_v12 = vld [vmem:[%s30250_s5 + $0x830] sm:$0xff] }
 0xada   :  { %23242 = vmatprep.subr.bf16.mxu1 %v23241_v13  ;;  %v15262_v13 = vsel %vm14508_vm2, %v15261_v53, %v15224_v27  ;;  %v23279_v38 = vpack.c.bf16 %v17916_v12, %v17914_v56  ;;  %v17955_v27 = vld [vmem:[%s30250_s5 + $0x968] sm:$0xff] }
 0xadc   :  { %15216 = vmatmul.mubr.f32.vlgmr.msra.gmra.mrb[46].mxu1 %v15149_v20  ;;  %v17922_v20 = vld [vmem:[%s30250_s5 + $0x860] sm:$0xff] }
 0xadd   :  { %23244 = vmatpush1.bf16.msra.mxu1 %v23243_v22  ;;  %15328 = vmatprep.mubr.f32.mxu1 %v24678_v39  ;;  %v17920_v22 = vld [vmem:[%s30250_s5 + $0x850] sm:$0xff] }
 0xade   :  { %23246 = vmatprep.subr.bf16.mxu1 %v23245_v24  ;;  %v17925_v24 = vld [vmem:[%s30250_s5 + $0x878] sm:$0xff]  ;;  %v23283_v3 = vpack.c.bf16 %v17920_v22, %v17918_v5  ;;  %v17958_v22 = vld [vmem:[%s30250_s5 + $0x980] sm:$0xff] }
 0xadf   :  { %v23285_v10 = vpack.c.bf16 %v17925_v24, %v17923_v48  ;;  %v17960_v48 = vld [vmem:[%s30250_s5 + $0x990] sm:$0xff]  ;;  %v17963_v24 = vld [vmem:[%s30250_s5 + $0x9a8] sm:$0xff] }
 0xae1   :  { %23248 = vmatpush1.bf16.msra.mxu1 %v23247_v52  ;;  %v17929_v52 = vld [vmem:[%s30250_s5 + $0x898] sm:$0xff] }
 0xae2   :  { %23250 = vmatprep.subr.bf16.mxu1 %v23249_v42  ;;  %v23287_v42 = vpack.c.bf16 %v17924_v2, %v17922_v20  ;;  %v23289_v54 = vpack.c.bf16 %v17929_v52, %v17927_v41  ;;  %v17962_v2 = vld [vmem:[%s30250_s5 + $0x9a0] sm:$0xff]  ;;  %v17964_v41 = vld [vmem:[%s30250_s5 + $0x9b0] sm:$0xff]  ;;  %v17967_v52 = vld [vmem:[%s30250_s5 + $0x9c8] sm:$0xff] }
 0xae5   :  { %23252 = vmatpush1.bf16.msra.mxu1 %v23251_v33  ;;  %v17933_v33 = vld [vmem:[%s30250_s5 + $0x8b8] sm:$0xff] }
 0xae6   :  { %23254 = vmatprep.subr.bf16.mxu1 %v23253_v49  ;;  %v23291_v49 = vpack.c.bf16 %v17928_v61, %v17926_v21  ;;  %v23293_v28 = vpack.c.bf16 %v17933_v33, %v17931_v62  ;;  %v17966_v61 = vld [vmem:[%s30250_s5 + $0x9c0] sm:$0xff]  ;;  %v17968_v62 = vld [vmem:[%s30250_s5 + $0x9d0] sm:$0xff]  ;;  %v17971_v33 = vld [vmem:[%s30250_s5 + $0x9e8] sm:$0xff] }
 0xae9   :  { %23256 = vmatpush1.bf16.msra.mxu1 %v23255_v60  ;;  %v17937_v60 = vld [vmem:[%s30250_s5 + $0x8d8] sm:$0xff] }
 0xaea   :  { %23258 = vmatprep.subr.bf16.mxu1 %v23257_v37  ;;  %v23295_v37 = vpack.c.bf16 %v17932_v9, %v17930_v59  ;;  %v23297_v57 = vpack.c.bf16 %v17937_v60, %v17935_v7  ;;  %v17970_v9 = vld [vmem:[%s30250_s5 + $0x9e0] sm:$0xff]  ;;  %v17972_v7 = vld [vmem:[%s30250_s5 + $0x9f0] sm:$0xff]  ;;  %v17975_v60 = vld [vmem:[%s30250_s5 + $0xa08] sm:$0xff] }
 0xaed   :  { %23260 = vmatpush1.bf16.msra.mxu1 %v23259_v18  ;;  %v17941_v18 = vld [vmem:[%s30250_s5 + $0x8f8] sm:$0xff] }
 0xaee   :  { %23262 = vmatprep.subr.bf16.mxu1 %v23261_v50  ;;  %v23299_v50 = vpack.c.bf16 %v17936_v11, %v17934_v1  ;;  %v23301_v47 = vpack.c.bf16 %v17941_v18, %v17939_v17  ;;  %v23335_v1 = vpack.c.bf16 %v17972_v7, %v17970_v9  ;;  %v17974_v17 = vld [vmem:[%s30250_s5 + $0xa00] sm:$0xff]  ;;  %v17976_v18 = vld [vmem:[%s30250_s5 + $0xa10] sm:$0xff]  ;;  %v18013_v9 = vld [vmem:[%s30250_s5 + $0xb38] sm:$0xff] }
 0xaef   :  { %v23339_v44 = vpack.c.bf16 %v17976_v18, %v17974_v17  ;;  %v18015_v17 = vld [vmem:[%s30250_s5 + $0xb48] sm:$0xff]  ;;  %v18017_v18 = vld [vmem:[%s30250_s5 + $0xb58] sm:$0xff] }
 0xaf1   :  { %23264 = vmatpush1.bf16.msra.mxu1 %v23263_v29  ;;  %v17945_v29 = vld [vmem:[%s30250_s5 + $0x918] sm:$0xff] }
 0xaf2   :  { %23266 = vmatprep.subr.bf16.mxu1 %v23265_v58  ;;  %v15339_v58 = vld [vmem:[#allocation5 + $0x18] sm:$0x1]  ;;  %v23305_v34 = vpack.c.bf16 %v17945_v29, %v17943_v63  ;;  %v15451_v63 = vld [vmem:[#allocation5 + $0x9] sm:$0x1] }
 0xaf5   :  { %23268 = vmatpush1.bf16.msra.mxu1 %v23267_v16  ;;  %v15375_v16 = vrot.slane %v15339_v58, 7  ;;  %v17978_v58 = vld [vmem:[%s30250_s5 + $0xa20] sm:$0xff] }
 0xaf6   :  { %23270 = vmatprep.subr.bf16.mxu1 %v23269_v51  ;;  %v17947_v51 = vld [vmem:[%s30250_s5 + $0x928] sm:$0xff] }
 0xaf7   :  { %v23309_v45 = vpack.c.bf16 %v17949_v55, %v17947_v51  ;;  %v23345_v51 = vpack.c.bf16 %v17985_v43, %v17983_v14  ;;  %v17982_v55 = vld [vmem:[%s30250_s5 + $0xa40] sm:$0xff]  ;;  %v18020_v14 = vld [vmem:[%s30250_s5 + $0xb70] sm:$0xff]  ;;  %v18023_v43 = vld [vmem:[%s30250_s5 + $0xb88] sm:$0xff] }
 0xaf9   :  { %23272 = vmatpush1.bf16.msra.mxu1 %v23271_v15  ;;  %v17948_v15 = vld [vmem:[%s30250_s5 + $0x930] sm:$0xff] }
 0xafa   :  { %23274 = vmatprep.subr.bf16.mxu1 %v23273_v35  ;;  %v15376_v35 = vsel %vm14508_vm2, %v15375_v16, %v15338_v26  ;;  %v23311_v53 = vpack.c.bf16 %v17948_v15, %v17946_v23  ;;  %v17987_v26 = vld [vmem:[%s30250_s5 + $0xa68] sm:$0xff] }
 0xafc   :  { %15329 = vmatmul.mubr.f32.vlgmr.msra.gmra.mrb[46].mxu1 %v15262_v13  ;;  %v17954_v13 = vld [vmem:[%s30250_s5 + $0x960] sm:$0xff] }
 0xafd   :  { %23276 = vmatpush1.bf16.msra.mxu1 %v23275_v19  ;;  %15442 = vmatprep.mubr.f32.mxu1 %v24678_v39  ;;  %v17952_v19 = vld [vmem:[%s30250_s5 + $0x950] sm:$0xff] }
 0xafe   :  { %23278 = vmatprep.subr.bf16.mxu1 %v23277_v6  ;;  %v17957_v6 = vld [vmem:[%s30250_s5 + $0x978] sm:$0xff]  ;;  %v23315_v56 = vpack.c.bf16 %v17952_v19, %v17950_v8  ;;  %v17990_v19 = vld [vmem:[%s30250_s5 + $0xa80] sm:$0xff] }
 0xaff   :  { %v23317_v12 = vpack.c.bf16 %v17957_v6, %v17955_v27  ;;  %v17992_v27 = vld [vmem:[%s30250_s5 + $0xa90] sm:$0xff]  ;;  %v17995_v6 = vld [vmem:[%s30250_s5 + $0xaa8] sm:$0xff] }
 0xb01   :  { %23280 = vmatpush1.bf16.msra.mxu1 %v23279_v38  ;;  %v17961_v38 = vld [vmem:[%s30250_s5 + $0x998] sm:$0xff] }
 0xb02   :  { %23282 = vmatprep.subr.bf16.mxu1 %v23281_v32  ;;  %v23319_v32 = vpack.c.bf16 %v17956_v4, %v17954_v13  ;;  %v23321_v5 = vpack.c.bf16 %v17961_v38, %v17959_v36  ;;  %v17994_v4 = vld [vmem:[%s30250_s5 + $0xaa0] sm:$0xff]  ;;  %v17996_v36 = vld [vmem:[%s30250_s5 + $0xab0] sm:$0xff]  ;;  %v17999_v38 = vld [vmem:[%s30250_s5 + $0xac8] sm:$0xff] }
 0xb05   :  { %23284 = vmatpush1.bf16.msra.mxu1 %v23283_v3  ;;  %v17965_v3 = vld [vmem:[%s30250_s5 + $0x9b8] sm:$0xff] }
 0xb06   :  { %23286 = vmatprep.subr.bf16.mxu1 %v23285_v10  ;;  %v23323_v10 = vpack.c.bf16 %v17960_v48, %v17958_v22  ;;  %v23325_v20 = vpack.c.bf16 %v17965_v3, %v17963_v24  ;;  %v17998_v48 = vld [vmem:[%s30250_s5 + $0xac0] sm:$0xff]  ;;  %v18000_v24 = vld [vmem:[%s30250_s5 + $0xad0] sm:$0xff]  ;;  %v18003_v3 = vld [vmem:[%s30250_s5 + $0xae8] sm:$0xff] }
 0xb09   :  { %23288 = vmatpush1.bf16.msra.mxu1 %v23287_v42  ;;  %v17969_v42 = vld [vmem:[%s30250_s5 + $0x9d8] sm:$0xff] }
 0xb0a   :  { %23290 = vmatprep.subr.bf16.mxu1 %v23289_v54  ;;  %v23327_v54 = vpack.c.bf16 %v17964_v41, %v17962_v2  ;;  %v23329_v21 = vpack.c.bf16 %v17969_v42, %v17967_v52  ;;  %v18002_v41 = vld [vmem:[%s30250_s5 + $0xae0] sm:$0xff]  ;;  %v18004_v52 = vld [vmem:[%s30250_s5 + $0xaf0] sm:$0xff]  ;;  %v18007_v42 = vld [vmem:[%s30250_s5 + $0xb08] sm:$0xff] }
 0xb0d   :  { %23292 = vmatpush1.bf16.msra.mxu1 %v23291_v49  ;;  %v17973_v49 = vld [vmem:[%s30250_s5 + $0x9f8] sm:$0xff] }
 0xb0e   :  { %23294 = vmatprep.subr.bf16.mxu1 %v23293_v28  ;;  %v23331_v28 = vpack.c.bf16 %v17968_v62, %v17966_v61  ;;  %v23333_v59 = vpack.c.bf16 %v17973_v49, %v17971_v33  ;;  %v23367_v61 = vpack.c.bf16 %v18004_v52, %v18002_v41  ;;  %v18006_v33 = vld [vmem:[%s30250_s5 + $0xb00] sm:$0xff]  ;;  %v18008_v49 = vld [vmem:[%s30250_s5 + $0xb10] sm:$0xff]  ;;  %v18045_v41 = vld [vmem:[%s30250_s5 + $0xc38] sm:$0xff] }
 0xb0f   :  { %v23371_v7 = vpack.c.bf16 %v18008_v49, %v18006_v33  ;;  %v18047_v33 = vld [vmem:[%s30250_s5 + $0xc48] sm:$0xff]  ;;  %v18049_v49 = vld [vmem:[%s30250_s5 + $0xc58] sm:$0xff] }
 0xb11   :  { %23296 = vmatpush1.bf16.msra.mxu1 %v23295_v37  ;;  %v17977_v37 = vld [vmem:[%s30250_s5 + $0xa18] sm:$0xff] }
 0xb12   :  { %23298 = vmatprep.subr.bf16.mxu1 %v23297_v57  ;;  %v15452_v57 = vld [vmem:[#allocation5 + $0x19] sm:$0x1]  ;;  %v23337_v11 = vpack.c.bf16 %v17977_v37, %v17975_v60  ;;  %v15564_v60 = vld [vmem:[#allocation5 + $0xa] sm:$0x1] }
 0xb15   :  { %23300 = vmatpush1.bf16.msra.mxu1 %v23299_v50  ;;  %v15488_v50 = vrot.slane %v15452_v57, 7  ;;  %v18010_v57 = vld [vmem:[%s30250_s5 + $0xb20] sm:$0xff] }
 0xb16   :  { %23302 = vmatprep.subr.bf16.mxu1 %v23301_v47  ;;  %v17979_v47 = vld [vmem:[%s30250_s5 + $0xa28] sm:$0xff] }
 0xb17   :  { %v23341_v29 = vpack.c.bf16 %v17981_v25, %v17979_v47  ;;  %v23377_v47 = vpack.c.bf16 %v18017_v18, %v18015_v17  ;;  %v18014_v25 = vld [vmem:[%s30250_s5 + $0xb40] sm:$0xff]  ;;  %v18052_v17 = vld [vmem:[%s30250_s5 + $0xc70] sm:$0xff]  ;;  %v18055_v18 = vld [vmem:[%s30250_s5 + $0xc88] sm:$0xff] }
 0xb19   :  { %23304 = vmatpush1.bf16.msra.mxu1 %v23303_v30  ;;  %v17980_v30 = vld [vmem:[%s30250_s5 + $0xa30] sm:$0xff] }
 0xb1a   :  { %23306 = vmatprep.subr.bf16.mxu1 %v23305_v34  ;;  %v15489_v34 = vsel %vm14508_vm2, %v15488_v50, %v15451_v63  ;;  %v23343_v16 = vpack.c.bf16 %v17980_v30, %v17978_v58  ;;  %v18019_v63 = vld [vmem:[%s30250_s5 + $0xb68] sm:$0xff] }
 0xb1c   :  { %15443 = vmatmul.mubr.f32.vlgmr.msra.gmra.mrb[46].mxu1 %v15376_v35  ;;  %v17986_v35 = vld [vmem:[%s30250_s5 + $0xa60] sm:$0xff] }
 0xb1d   :  { %23308 = vmatpush1.bf16.msra.mxu1 %v23307_v40  ;;  %15555 = vmatprep.mubr.f32.mxu1 %v24678_v39  ;;  %v17984_v40 = vld [vmem:[%s30250_s5 + $0xa50] sm:$0xff] }
 0xb1e   :  { %23310 = vmatprep.subr.bf16.mxu1 %v23309_v45  ;;  %v17989_v45 = vld [vmem:[%s30250_s5 + $0xa78] sm:$0xff]  ;;  %v23347_v23 = vpack.c.bf16 %v17984_v40, %v17982_v55  ;;  %v18022_v40 = vld [vmem:[%s30250_s5 + $0xb80] sm:$0xff] }
 0xb1f   :  { %v23349_v15 = vpack.c.bf16 %v17989_v45, %v17987_v26  ;;  %v18024_v26 = vld [vmem:[%s30250_s5 + $0xb90] sm:$0xff]  ;;  %v18027_v45 = vld [vmem:[%s30250_s5 + $0xba8] sm:$0xff] }
 0xb21   :  { %23312 = vmatpush1.bf16.msra.mxu1 %v23311_v53  ;;  %v17993_v53 = vld [vmem:[%s30250_s5 + $0xa98] sm:$0xff] }
 0xb22   :  { %23314 = vmatprep.subr.bf16.mxu1 %v23313_v0  ;;  %v23351_v0 = vpack.c.bf16 %v17988_v31, %v17986_v35  ;;  %v23353_v8 = vpack.c.bf16 %v17993_v53, %v17991_v46  ;;  %v18026_v31 = vld [vmem:[%s30250_s5 + $0xba0] sm:$0xff]  ;;  %v18028_v46 = vld [vmem:[%s30250_s5 + $0xbb0] sm:$0xff]  ;;  %v18031_v53 = vld [vmem:[%s30250_s5 + $0xbc8] sm:$0xff] }
 0xb25   :  { %23316 = vmatpush1.bf16.msra.mxu1 %v23315_v56  ;;  %v17997_v56 = vld [vmem:[%s30250_s5 + $0xab8] sm:$0xff] }
 0xb26   :  { %23318 = vmatprep.subr.bf16.mxu1 %v23317_v12  ;;  %v23355_v12 = vpack.c.bf16 %v17992_v27, %v17990_v19  ;;  %v23357_v13 = vpack.c.bf16 %v17997_v56, %v17995_v6  ;;  %v18030_v27 = vld [vmem:[%s30250_s5 + $0xbc0] sm:$0xff]  ;;  %v18032_v6 = vld [vmem:[%s30250_s5 + $0xbd0] sm:$0xff]  ;;  %v18035_v56 = vld [vmem:[%s30250_s5 + $0xbe8] sm:$0xff] }
 0xb29   :  { %23320 = vmatpush1.bf16.msra.mxu1 %v23319_v32  ;;  %v18001_v32 = vld [vmem:[%s30250_s5 + $0xad8] sm:$0xff] }
 0xb2a   :  { %23322 = vmatprep.subr.bf16.mxu1 %v23321_v5  ;;  %v23359_v5 = vpack.c.bf16 %v17996_v36, %v17994_v4  ;;  %v23361_v22 = vpack.c.bf16 %v18001_v32, %v17999_v38  ;;  %v18034_v36 = vld [vmem:[%s30250_s5 + $0xbe0] sm:$0xff]  ;;  %v18036_v38 = vld [vmem:[%s30250_s5 + $0xbf0] sm:$0xff]  ;;  %v18039_v32 = vld [vmem:[%s30250_s5 + $0xc08] sm:$0xff] }
 0xb2d   :  { %23324 = vmatpush1.bf16.msra.mxu1 %v23323_v10  ;;  %v18005_v10 = vld [vmem:[%s30250_s5 + $0xaf8] sm:$0xff] }
 0xb2e   :  { %23326 = vmatprep.subr.bf16.mxu1 %v23325_v20  ;;  %v23363_v20 = vpack.c.bf16 %v18000_v24, %v17998_v48  ;;  %v23365_v2 = vpack.c.bf16 %v18005_v10, %v18003_v3  ;;  %v23399_v48 = vpack.c.bf16 %v18036_v38, %v18034_v36  ;;  %v18038_v3 = vld [vmem:[%s30250_s5 + $0xc00] sm:$0xff]  ;;  %v18040_v10 = vld [vmem:[%s30250_s5 + $0xc10] sm:$0xff]  ;;  %v18077_v36 = vld [vmem:[%s30250_s5 + $0xd38] sm:$0xff] }
 0xb2f   :  { %v23403_v52 = vpack.c.bf16 %v18040_v10, %v18038_v3  ;;  %v18079_v3 = vld [vmem:[%s30250_s5 + $0xd48] sm:$0xff]  ;;  %v18081_v10 = vld [vmem:[%s30250_s5 + $0xd58] sm:$0xff] }
 0xb31   :  { %23328 = vmatpush1.bf16.msra.mxu1 %v23327_v54  ;;  %v18009_v54 = vld [vmem:[%s30250_s5 + $0xb18] sm:$0xff] }
 0xb32   :  { %23330 = vmatprep.subr.bf16.mxu1 %v23329_v21  ;;  %v15565_v21 = vld [vmem:[#allocation5 + $0x1a] sm:$0x1]  ;;  %v23369_v62 = vpack.c.bf16 %v18009_v54, %v18007_v42  ;;  %v15677_v42 = vld [vmem:[#allocation5 + $0xb] sm:$0x1] }
 0xb35   :  { %23332 = vmatpush1.bf16.msra.mxu1 %v23331_v28  ;;  %v15601_v28 = vrot.slane %v15565_v21, 7  ;;  %v18042_v21 = vld [vmem:[%s30250_s5 + $0xc20] sm:$0xff] }
 0xb36   :  { %23334 = vmatprep.subr.bf16.mxu1 %v23333_v59  ;;  %v18011_v59 = vld [vmem:[%s30250_s5 + $0xb28] sm:$0xff] }
 0xb37   :  { %v23373_v37 = vpack.c.bf16 %v18013_v9, %v18011_v59  ;;  %v23409_v59 = vpack.c.bf16 %v18049_v49, %v18047_v33  ;;  %v18046_v9 = vld [vmem:[%s30250_s5 + $0xc40] sm:$0xff]  ;;  %v18084_v33 = vld [vmem:[%s30250_s5 + $0xd70] sm:$0xff]  ;;  %v18087_v49 = vld [vmem:[%s30250_s5 + $0xd88] sm:$0xff] }
 0xb39   :  { %23336 = vmatpush1.bf16.msra.mxu1 %v23335_v1  ;;  %v18012_v1 = vld [vmem:[%s30250_s5 + $0xb30] sm:$0xff] }
 0xb3a   :  { %23338 = vmatprep.subr.bf16.mxu1 %v23337_v11  ;;  %v15602_v11 = vsel %vm14508_vm2, %v15601_v28, %v15564_v60  ;;  %v23375_v50 = vpack.c.bf16 %v18012_v1, %v18010_v57  ;;  %v18051_v60 = vld [vmem:[%s30250_s5 + $0xc68] sm:$0xff] }
 0xb3c   :  { %15556 = vmatmul.mubr.f32.vlgmr.msra.gmra.mrb[46].mxu1 %v15489_v34  ;;  %v18018_v34 = vld [vmem:[%s30250_s5 + $0xb60] sm:$0xff] }
 0xb3d   :  { %23340 = vmatpush1.bf16.msra.mxu1 %v23339_v44  ;;  %15668 = vmatprep.mubr.f32.mxu1 %v24678_v39  ;;  %v18016_v44 = vld [vmem:[%s30250_s5 + $0xb50] sm:$0xff] }
 0xb3e   :  { %23342 = vmatprep.subr.bf16.mxu1 %v23341_v29  ;;  %v18021_v29 = vld [vmem:[%s30250_s5 + $0xb78] sm:$0xff]  ;;  %v23379_v58 = vpack.c.bf16 %v18016_v44, %v18014_v25  ;;  %v18054_v44 = vld [vmem:[%s30250_s5 + $0xc80] sm:$0xff] }
 0xb3f   :  { %v23381_v30 = vpack.c.bf16 %v18021_v29, %v18019_v63  ;;  %v18056_v63 = vld [vmem:[%s30250_s5 + $0xc90] sm:$0xff]  ;;  %v18059_v29 = vld [vmem:[%s30250_s5 + $0xca8] sm:$0xff] }
 0xb41   :  { %23344 = vmatpush1.bf16.msra.mxu1 %v23343_v16  ;;  %v18025_v16 = vld [vmem:[%s30250_s5 + $0xb98] sm:$0xff] }
 0xb42   :  { %23346 = vmatprep.subr.bf16.mxu1 %v23345_v51  ;;  %v23383_v51 = vpack.c.bf16 %v18020_v14, %v18018_v34  ;;  %v23385_v55 = vpack.c.bf16 %v18025_v16, %v18023_v43  ;;  %v18058_v14 = vld [vmem:[%s30250_s5 + $0xca0] sm:$0xff]  ;;  %v18060_v43 = vld [vmem:[%s30250_s5 + $0xcb0] sm:$0xff]  ;;  %v18063_v16 = vld [vmem:[%s30250_s5 + $0xcc8] sm:$0xff] }
 0xb45   :  { %23348 = vmatpush1.bf16.msra.mxu1 %v23347_v23  ;;  %v18029_v23 = vld [vmem:[%s30250_s5 + $0xbb8] sm:$0xff] }
 0xb46   :  { %23350 = vmatprep.subr.bf16.mxu1 %v23349_v15  ;;  %v23387_v15 = vpack.c.bf16 %v18024_v26, %v18022_v40  ;;  %v23389_v35 = vpack.c.bf16 %v18029_v23, %v18027_v45  ;;  %v18062_v26 = vld [vmem:[%s30250_s5 + $0xcc0] sm:$0xff]  ;;  %v18064_v45 = vld [vmem:[%s30250_s5 + $0xcd0] sm:$0xff]  ;;  %v18067_v23 = vld [vmem:[%s30250_s5 + $0xce8] sm:$0xff] }
 0xb49   :  { %23352 = vmatpush1.bf16.msra.mxu1 %v23351_v0  ;;  %v18033_v0 = vld [vmem:[%s30250_s5 + $0xbd8] sm:$0xff] }
 0xb4a   :  { %23354 = vmatprep.subr.bf16.mxu1 %v23353_v8  ;;  %v23391_v8 = vpack.c.bf16 %v18028_v46, %v18026_v31  ;;  %v23393_v19 = vpack.c.bf16 %v18033_v0, %v18031_v53  ;;  %v18066_v46 = vld [vmem:[%s30250_s5 + $0xce0] sm:$0xff]  ;;  %v18068_v53 = vld [vmem:[%s30250_s5 + $0xcf0] sm:$0xff]  ;;  %v18071_v0 = vld [vmem:[%s30250_s5 + $0xd08] sm:$0xff] }
 0xb4d   :  { %23356 = vmatpush1.bf16.msra.mxu1 %v23355_v12  ;;  %v18037_v12 = vld [vmem:[%s30250_s5 + $0xbf8] sm:$0xff] }
 0xb4e   :  { %23358 = vmatprep.subr.bf16.mxu1 %v23357_v13  ;;  %v23395_v13 = vpack.c.bf16 %v18032_v6, %v18030_v27  ;;  %v23397_v4 = vpack.c.bf16 %v18037_v12, %v18035_v56  ;;  %v23431_v27 = vpack.c.bf16 %v18068_v53, %v18066_v46  ;;  %v18070_v56 = vld [vmem:[%s30250_s5 + $0xd00] sm:$0xff]  ;;  %v18072_v12 = vld [vmem:[%s30250_s5 + $0xd10] sm:$0xff]  ;;  %v18109_v46 = vld [vmem:[%s30250_s5 + $0xe38] sm:$0xff] }
 0xb4f   :  { %v23435_v38 = vpack.c.bf16 %v18072_v12, %v18070_v56  ;;  %v18111_v56 = vld [vmem:[%s30250_s5 + $0xe48] sm:$0xff]  ;;  %v18113_v12 = vld [vmem:[%s30250_s5 + $0xe58] sm:$0xff] }
 0xb51   :  { %23360 = vmatpush1.bf16.msra.mxu1 %v23359_v5  ;;  %v18041_v5 = vld [vmem:[%s30250_s5 + $0xc18] sm:$0xff] }
 0xb52   :  { %23362 = vmatprep.subr.bf16.mxu1 %v23361_v22  ;;  %v15678_v22 = vld [vmem:[#allocation5 + $0x1b] sm:$0x1]  ;;  %v23401_v24 = vpack.c.bf16 %v18041_v5, %v18039_v32  ;;  %v15791_v32 = vld [vmem:[#allocation5 + $0xc] sm:$0x1] }
 0xb55   :  { %23364 = vmatpush1.bf16.msra.mxu1 %v23363_v20  ;;  %v15714_v20 = vrot.slane %v15678_v22, 7  ;;  %v18074_v22 = vld [vmem:[%s30250_s5 + $0xd20] sm:$0xff] }
 0xb56   :  { %23366 = vmatprep.subr.bf16.mxu1 %v23365_v2  ;;  %v18043_v2 = vld [vmem:[%s30250_s5 + $0xc28] sm:$0xff] }
 0xb57   :  { %v23405_v54 = vpack.c.bf16 %v18045_v41, %v18043_v2  ;;  %v23441_v2 = vpack.c.bf16 %v18081_v10, %v18079_v3  ;;  %v18078_v41 = vld [vmem:[%s30250_s5 + $0xd40] sm:$0xff]  ;;  %v18116_v3 = vld [vmem:[%s30250_s5 + $0xe70] sm:$0xff]  ;;  %v18119_v10 = vld [vmem:[%s30250_s5 + $0xe88] sm:$0xff] }
 0xb59   :  { %23368 = vmatpush1.bf16.msra.mxu1 %v23367_v61  ;;  %v18044_v61 = vld [vmem:[%s30250_s5 + $0xc30] sm:$0xff] }
 0xb5a   :  { %23370 = vmatprep.subr.bf16.mxu1 %v23369_v62  ;;  %v15715_v62 = vsel %vm14508_vm2, %v15714_v20, %v15677_v42  ;;  %v23407_v28 = vpack.c.bf16 %v18044_v61, %v18042_v21  ;;  %v18083_v42 = vld [vmem:[%s30250_s5 + $0xd68] sm:$0xff] }
 0xb5c   :  { %15669 = vmatmul.mubr.f32.vlgmr.msra.gmra.mrb[46].mxu1 %v15602_v11  ;;  %v18050_v11 = vld [vmem:[%s30250_s5 + $0xc60] sm:$0xff] }
 0xb5d   :  { %23372 = vmatpush1.bf16.msra.mxu1 %v23371_v7  ;;  %15781 = vmatprep.mubr.f32.mxu1 %v24678_v39  ;;  %v18048_v7 = vld [vmem:[%s30250_s5 + $0xc50] sm:$0xff] }
 0xb5e   :  { %23374 = vmatprep.subr.bf16.mxu1 %v23373_v37  ;;  %v18053_v37 = vld [vmem:[%s30250_s5 + $0xc78] sm:$0xff]  ;;  %v23411_v57 = vpack.c.bf16 %v18048_v7, %v18046_v9  ;;  %v18086_v7 = vld [vmem:[%s30250_s5 + $0xd80] sm:$0xff] }
 0xb5f   :  { %v23413_v1 = vpack.c.bf16 %v18053_v37, %v18051_v60  ;;  %v18088_v60 = vld [vmem:[%s30250_s5 + $0xd90] sm:$0xff]  ;;  %v18091_v37 = vld [vmem:[%s30250_s5 + $0xda8] sm:$0xff] }
 0xb61   :  { %23376 = vmatpush1.bf16.msra.mxu1 %v23375_v50  ;;  %v18057_v50 = vld [vmem:[%s30250_s5 + $0xc98] sm:$0xff] }
 0xb62   :  { %23378 = vmatprep.subr.bf16.mxu1 %v23377_v47  ;;  %v23415_v47 = vpack.c.bf16 %v18052_v17, %v18050_v11  ;;  %v23417_v25 = vpack.c.bf16 %v18057_v50, %v18055_v18  ;;  %v18090_v17 = vld [vmem:[%s30250_s5 + $0xda0] sm:$0xff]  ;;  %v18092_v18 = vld [vmem:[%s30250_s5 + $0xdb0] sm:$0xff]  ;;  %v18095_v50 = vld [vmem:[%s30250_s5 + $0xdc8] sm:$0xff] }
 0xb65   :  { %23380 = vmatpush1.bf16.msra.mxu1 %v23379_v58  ;;  %v18061_v58 = vld [vmem:[%s30250_s5 + $0xcb8] sm:$0xff] }
 0xb66   :  { %23382 = vmatprep.subr.bf16.mxu1 %v23381_v30  ;;  %v23419_v30 = vpack.c.bf16 %v18056_v63, %v18054_v44  ;;  %v23421_v34 = vpack.c.bf16 %v18061_v58, %v18059_v29  ;;  %v18094_v63 = vld [vmem:[%s30250_s5 + $0xdc0] sm:$0xff]  ;;  %v18096_v29 = vld [vmem:[%s30250_s5 + $0xdd0] sm:$0xff]  ;;  %v18099_v58 = vld [vmem:[%s30250_s5 + $0xde8] sm:$0xff] }
 0xb69   :  { %23384 = vmatpush1.bf16.msra.mxu1 %v23383_v51  ;;  %v18065_v51 = vld [vmem:[%s30250_s5 + $0xcd8] sm:$0xff] }
 0xb6a   :  { %23386 = vmatprep.subr.bf16.mxu1 %v23385_v55  ;;  %v23423_v55 = vpack.c.bf16 %v18060_v43, %v18058_v14  ;;  %v23425_v40 = vpack.c.bf16 %v18065_v51, %v18063_v16  ;;  %v18098_v43 = vld [vmem:[%s30250_s5 + $0xde0] sm:$0xff]  ;;  %v18100_v16 = vld [vmem:[%s30250_s5 + $0xdf0] sm:$0xff]  ;;  %v18103_v51 = vld [vmem:[%s30250_s5 + $0xe08] sm:$0xff] }
 0xb6d   :  { %23388 = vmatpush1.bf16.msra.mxu1 %v23387_v15  ;;  %v18069_v15 = vld [vmem:[%s30250_s5 + $0xcf8] sm:$0xff] }
 0xb6e   :  { %23390 = vmatprep.subr.bf16.mxu1 %v23389_v35  ;;  %v23427_v35 = vpack.c.bf16 %v18064_v45, %v18062_v26  ;;  %v23429_v31 = vpack.c.bf16 %v18069_v15, %v18067_v23  ;;  %v23463_v26 = vpack.c.bf16 %v18100_v16, %v18098_v43  ;;  %v18102_v23 = vld [vmem:[%s30250_s5 + $0xe00] sm:$0xff]  ;;  %v18104_v15 = vld [vmem:[%s30250_s5 + $0xe10] sm:$0xff]  ;;  %v18141_v43 = vld [vmem:[%s30250_s5 + $0xf38] sm:$0xff] }
 0xb6f   :  { %v23467_v53 = vpack.c.bf16 %v18104_v15, %v18102_v23  ;;  %v18143_v23 = vld [vmem:[%s30250_s5 + $0xf48] sm:$0xff]  ;;  %v18145_v15 = vld [vmem:[%s30250_s5 + $0xf58] sm:$0xff] }
 0xb71   :  { %23392 = vmatpush1.bf16.msra.mxu1 %v23391_v8  ;;  %v18073_v8 = vld [vmem:[%s30250_s5 + $0xd18] sm:$0xff] }
 0xb72   :  { %23394 = vmatprep.subr.bf16.mxu1 %v23393_v19  ;;  %v15792_v19 = vld [vmem:[#allocation5 + $0x1c] sm:$0x1]  ;;  %v23433_v6 = vpack.c.bf16 %v18073_v8, %v18071_v0  ;;  %v15904_v0 = vld [vmem:[#allocation5 + $0xd] sm:$0x1] }
 0xb75   :  { %23396 = vmatpush1.bf16.msra.mxu1 %v23395_v13  ;;  %v15828_v13 = vrot.slane %v15792_v19, 7  ;;  %v18106_v19 = vld [vmem:[%s30250_s5 + $0xe20] sm:$0xff] }
 0xb76   :  { %23398 = vmatprep.subr.bf16.mxu1 %v23397_v4  ;;  %v18075_v4 = vld [vmem:[%s30250_s5 + $0xd28] sm:$0xff] }
 0xb77   :  { %v23437_v5 = vpack.c.bf16 %v18077_v36, %v18075_v4  ;;  %v23473_v4 = vpack.c.bf16 %v18113_v12, %v18111_v56  ;;  %v18110_v36 = vld [vmem:[%s30250_s5 + $0xe40] sm:$0xff]  ;;  %v18151_v56 = vld [vmem:[%s30250_s5 + $0xf88] sm:$0xff]  ;;  %v18153_v12 = vld [vmem:[%s30250_s5 + $0xf98] sm:$0xff] }
 0xb79   :  { %23400 = vmatpush1.bf16.msra.mxu1 %v23399_v48  ;;  %v18076_v48 = vld [vmem:[%s30250_s5 + $0xd30] sm:$0xff] }
 0xb7a   :  { %23402 = vmatprep.subr.bf16.mxu1 %v23401_v24  ;;  %v15829_v24 = vsel %vm14508_vm2, %v15828_v13, %v15791_v32  ;;  %v23439_v20 = vpack.c.bf16 %v18076_v48, %v18074_v22  ;;  %v18115_v32 = vld [vmem:[%s30250_s5 + $0xe68] sm:$0xff] }
 0xb7c   :  { %15782 = vmatmul.mubr.f32.vlgmr.msra.gmra.mrb[46].mxu1 %v15715_v62  ;;  %v18082_v62 = vld [vmem:[%s30250_s5 + $0xd60] sm:$0xff] }
 0xb7d   :  { %23404 = vmatpush1.bf16.msra.mxu1 %v23403_v52  ;;  %15895 = vmatprep.mubr.f32.mxu1 %v24678_v39  ;;  %v18080_v52 = vld [vmem:[%s30250_s5 + $0xd50] sm:$0xff] }
 0xb7e   :  { %23406 = vmatprep.subr.bf16.mxu1 %v23405_v54  ;;  %v18085_v54 = vld [vmem:[%s30250_s5 + $0xd78] sm:$0xff]  ;;  %v23443_v21 = vpack.c.bf16 %v18080_v52, %v18078_v41  ;;  %v18118_v52 = vld [vmem:[%s30250_s5 + $0xe80] sm:$0xff] }
 0xb7f   :  { %v23445_v61 = vpack.c.bf16 %v18085_v54, %v18083_v42  ;;  %v18120_v42 = vld [vmem:[%s30250_s5 + $0xe90] sm:$0xff]  ;;  %v18123_v54 = vld [vmem:[%s30250_s5 + $0xea8] sm:$0xff] }
 0xb81   :  { %23408 = vmatpush1.bf16.msra.mxu1 %v23407_v28  ;;  %v18089_v28 = vld [vmem:[%s30250_s5 + $0xd98] sm:$0xff] }
 0xb82   :  { %23410 = vmatprep.subr.bf16.mxu1 %v23409_v59  ;;  %v23447_v59 = vpack.c.bf16 %v18084_v33, %v18082_v62  ;;  %v23449_v9 = vpack.c.bf16 %v18089_v28, %v18087_v49  ;;  %v18122_v33 = vld [vmem:[%s30250_s5 + $0xea0] sm:$0xff]  ;;  %v18124_v49 = vld [vmem:[%s30250_s5 + $0xeb0] sm:$0xff]  ;;  %v18127_v28 = vld [vmem:[%s30250_s5 + $0xec8] sm:$0xff] }
 0xb85   :  { %23412 = vmatpush1.bf16.msra.mxu1 %v23411_v57  ;;  %v18093_v57 = vld [vmem:[%s30250_s5 + $0xdb8] sm:$0xff] }
 0xb86   :  { %23414 = vmatprep.subr.bf16.mxu1 %v23413_v1  ;;  %v23451_v1 = vpack.c.bf16 %v18088_v60, %v18086_v7  ;;  %v23453_v11 = vpack.c.bf16 %v18093_v57, %v18091_v37  ;;  %v18126_v60 = vld [vmem:[%s30250_s5 + $0xec0] sm:$0xff]  ;;  %v18128_v37 = vld [vmem:[%s30250_s5 + $0xed0] sm:$0xff]  ;;  %v18131_v57 = vld [vmem:[%s30250_s5 + $0xee8] sm:$0xff] }
 0xb89   :  { %23416 = vmatpush1.bf16.msra.mxu1 %v23415_v47  ;;  %v18097_v47 = vld [vmem:[%s30250_s5 + $0xdd8] sm:$0xff] }
 0xb8a   :  { %23418 = vmatprep.subr.bf16.mxu1 %v23417_v25  ;;  %v23455_v25 = vpack.c.bf16 %v18092_v18, %v18090_v17  ;;  %v23457_v44 = vpack.c.bf16 %v18097_v47, %v18095_v50  ;;  %v18130_v18 = vld [vmem:[%s30250_s5 + $0xee0] sm:$0xff]  ;;  %v18132_v50 = vld [vmem:[%s30250_s5 + $0xef0] sm:$0xff]  ;;  %v18135_v47 = vld [vmem:[%s30250_s5 + $0xf08] sm:$0xff] }
 0xb8d   :  { %23420 = vmatpush1.bf16.msra.mxu1 %v23419_v30  ;;  %v18101_v30 = vld [vmem:[%s30250_s5 + $0xdf8] sm:$0xff] }
 0xb8e   :  { %23422 = vmatprep.subr.bf16.mxu1 %v23421_v34  ;;  %v23459_v34 = vpack.c.bf16 %v18096_v29, %v18094_v63  ;;  %v23461_v14 = vpack.c.bf16 %v18101_v30, %v18099_v58  ;;  %v23495_v63 = vpack.c.bf16 %v18132_v50, %v18130_v18  ;;  %v18134_v58 = vld [vmem:[%s30250_s5 + $0xf00] sm:$0xff]  ;;  %v18136_v30 = vld [vmem:[%s30250_s5 + $0xf10] sm:$0xff]  ;;  %v16130_v50 = vld [vmem:[#allocation5 + $0xf] sm:$0x1] }
 0xb8f   :  { %v23499_v16 = vpack.c.bf16 %v18136_v30, %v18134_v58  ;;  %v16280_v58 = vld [vmem:[%s30252_s7 + $0xa8] sm:$0xff] }
 0xb91   :  { %23424 = vmatpush1.bf16.msra.mxu1 %v23423_v55  ;;  %v18105_v55 = vld [vmem:[%s30250_s5 + $0xe18] sm:$0xff] }
 0xb92   :  { %23426 = vmatprep.subr.bf16.mxu1 %v23425_v40  ;;  %v15905_v40 = vld [vmem:[#allocation5 + $0x1d] sm:$0x1]  ;;  %v23465_v45 = vpack.c.bf16 %v18105_v55, %v18103_v51  ;;  %v16017_v51 = vld [vmem:[#allocation5 + $0xe] sm:$0x1] }
 0xb95   :  { %23428 = vmatpush1.bf16.msra.mxu1 %v23427_v35  ;;  %v15941_v35 = vrot.slane %v15905_v40, 7  ;;  %v18138_v40 = vld [vmem:[%s30250_s5 + $0xf20] sm:$0xff] }
 0xb96   :  { %23430 = vmatprep.subr.bf16.mxu1 %v23429_v31  ;;  %v18107_v31 = vld [vmem:[%s30250_s5 + $0xe28] sm:$0xff] }
 0xb97   :  { %v23469_v8 = vpack.c.bf16 %v18109_v46, %v18107_v31  ;;  %v23505_v31 = vpack.c.bf16 %v18145_v15, %v18143_v23  ;;  %v18142_v46 = vld [vmem:[%s30250_s5 + $0xf40] sm:$0xff]  ;;  %v16284_v15 = vld [vmem:[%s30252_s7 + $0xc8] sm:$0xff] }
 0xb98   :  { %v16283_v23 = vld [vmem:[%s30252_s7 + $0xc0] sm:$0xff] }
 0xb99   :  { %23432 = vmatpush1.bf16.msra.mxu1 %v23431_v27  ;;  %v18108_v27 = vld [vmem:[%s30250_s5 + $0xe30] sm:$0xff] }
 0xb9a   :  { %23434 = vmatprep.subr.bf16.mxu1 %v23433_v6  ;;  %v15942_v6 = vsel %vm14508_vm2, %v15941_v35, %v15904_v0  ;;  %v23471_v13 = vpack.c.bf16 %v18108_v27, %v18106_v19  ;;  %v18147_v0 = vld [vmem:[%s30250_s5 + $0xf68] sm:$0xff]  ;;  %v18146_v27 = vld [vmem:[%s30250_s5 + $0xf60] sm:$0xff] }
 0xb9c   :  { %15896 = vmatmul.mubr.f32.vlgmr.msra.gmra.mrb[46].mxu1 %v15829_v24  ;;  %v18114_v24 = vld [vmem:[%s30250_s5 + $0xe60] sm:$0xff] }
 0xb9d   :  { %23436 = vmatpush1.bf16.msra.mxu1 %v23435_v38  ;;  %16008 = vmatprep.mubr.f32.mxu1 %v24678_v39  ;;  %v18112_v38 = vld [vmem:[%s30250_s5 + $0xe50] sm:$0xff] }
 0xb9e   :  { %23438 = vmatprep.subr.bf16.mxu1 %v23437_v5  ;;  %v18117_v5 = vld [vmem:[%s30250_s5 + $0xe78] sm:$0xff]  ;;  %v23475_v22 = vpack.c.bf16 %v18112_v38, %v18110_v36  ;;  %v18150_v36 = vld [vmem:[%s30250_s5 + $0xf80] sm:$0xff]  ;;  %v18152_v38 = vld [vmem:[%s30250_s5 + $0xf90] sm:$0xff] }
 0xb9f   :  { %v23477_v48 = vpack.c.bf16 %v18117_v5, %v18115_v32  ;;  %v18155_v32 = vld [vmem:[%s30250_s5 + $0xfa8] sm:$0xff]  ;;  %v18157_v5 = vld [vmem:[%s30250_s5 + $0xfb8] sm:$0xff] }
 0xba1   :  { %23440 = vmatpush1.bf16.msra.mxu1 %v23439_v20  ;;  %v18121_v20 = vld [vmem:[%s30250_s5 + $0xe98] sm:$0xff] }
 0xba2   :  { %23442 = vmatprep.subr.bf16.mxu1 %v23441_v2  ;;  %v23479_v2 = vpack.c.bf16 %v18116_v3, %v18114_v24  ;;  %v23481_v41 = vpack.c.bf16 %v18121_v20, %v18119_v10  ;;  %v18154_v24 = vld [vmem:[%s30250_s5 + $0xfa0] sm:$0xff]  ;;  %v18156_v3 = vld [vmem:[%s30250_s5 + $0xfb0] sm:$0xff]  ;;  %v18159_v10 = vld [vmem:[%s30250_s5 + $0xfc8] sm:$0xff] }
 0xba3   :  { %v18161_v20 = vld [vmem:[%s30250_s5 + $0xfd8] sm:$0xff] }
 0xba5   :  { %23444 = vmatpush1.bf16.msra.mxu1 %v23443_v21  ;;  %v18125_v21 = vld [vmem:[%s30250_s5 + $0xeb8] sm:$0xff] }
 0xba6   :  { %23446 = vmatprep.subr.bf16.mxu1 %v23445_v61  ;;  %v23483_v61 = vpack.c.bf16 %v18120_v42, %v18118_v52  ;;  %v23485_v62 = vpack.c.bf16 %v18125_v21, %v18123_v54  ;;  %v18158_v52 = vld [vmem:[%s30250_s5 + $0xfc0] sm:$0xff]  ;;  %v18160_v42 = vld [vmem:[%s30250_s5 + $0xfd0] sm:$0xff]  ;;  %v18163_v54 = vld [vmem:[%s30250_s5 + $0xfe8] sm:$0xff] }
 0xba7   :  { %v18165_v21 = vld [vmem:[%s30250_s5 + $0xff8] sm:$0xff] }
 0xba9   :  { %23448 = vmatpush1.bf16.msra.mxu1 %v23447_v59  ;;  %v18129_v59 = vld [vmem:[%s30250_s5 + $0xed8] sm:$0xff] }
 0xbaa   :  { %23450 = vmatprep.subr.bf16.mxu1 %v23449_v9  ;;  %v23487_v9 = vpack.c.bf16 %v18124_v49, %v18122_v33  ;;  %v23489_v7 = vpack.c.bf16 %v18129_v59, %v18127_v28  ;;  %v18162_v33 = vld [vmem:[%s30250_s5 + $0xfe0] sm:$0xff]  ;;  %v18164_v49 = vld [vmem:[%s30250_s5 + $0xff0] sm:$0xff]  ;;  %v16276_v59 = vld [vmem:[%s30252_s7 + $0x88] sm:$0xff] }
 0xbab   :  { %v16275_v28 = vld [vmem:[%s30252_s7 + $0x80] sm:$0xff] }
 0xbad   :  { %23452 = vmatpush1.bf16.msra.mxu1 %v23451_v1  ;;  %v18133_v1 = vld [vmem:[%s30250_s5 + $0xef8] sm:$0xff] }
 0xbae   :  { %23454 = vmatprep.subr.bf16.mxu1 %v23453_v11  ;;  %v23491_v11 = vpack.c.bf16 %v18128_v37, %v18126_v60  ;;  %v23493_v17 = vpack.c.bf16 %v18133_v1, %v18131_v57  ;;  %v23529_v60 = vpack.c.bf16 %v16276_v59, %v16275_v28  ;;  %v16259_v37 = vld [vmem:[%s30252_s7] sm:$0xff]  ;;  %v16260_v57 = vld [vmem:[%s30252_s7 + $0x8] sm:$0xff] }
 0xbaf   :  { %v23531_v18 = vpack.c.bf16 %v16260_v57, %v16259_v37 }
 0xbb1   :  { %23456 = vmatpush1.bf16.msra.mxu1 %v23455_v25  ;;  %v18137_v25 = vld [vmem:[%s30250_s5 + $0xf18] sm:$0xff] }
 0xbb2   :  { %23458 = vmatprep.subr.bf16.mxu1 %v23457_v44  ;;  %v16018_v44 = vld [vmem:[#allocation5 + $0x1e] sm:$0x1]  ;;  %v23497_v29 = vpack.c.bf16 %v18137_v25, %v18135_v47  ;;  %v16261_v25 = vld [vmem:[%s30252_s7 + $0x10] sm:$0xff] }
 0xbb5   :  { %23460 = vmatpush1.bf16.msra.mxu1 %v23459_v34  ;;  %v16054_v34 = vrot.slane %v16018_v44, 7  ;;  %v16262_v44 = vld [vmem:[%s30252_s7 + $0x18] sm:$0xff] }
 0xbb6   :  { %23462 = vmatprep.subr.bf16.mxu1 %v23461_v14  ;;  %v18139_v14 = vld [vmem:[%s30250_s5 + $0xf28] sm:$0xff]  ;;  %v23535_v30 = vpack.c.bf16 %v16262_v44, %v16261_v25 }
 0xbb7   :  { %v23501_v55 = vpack.c.bf16 %v18141_v43, %v18139_v14  ;;  %v16263_v14 = vld [vmem:[%s30252_s7 + $0x20] sm:$0xff]  ;;  %v16264_v43 = vld [vmem:[%s30252_s7 + $0x28] sm:$0xff] }
 0xbb9   :  { %23464 = vmatpush1.bf16.msra.mxu1 %v23463_v26  ;;  %v18140_v26 = vld [vmem:[%s30250_s5 + $0xf30] sm:$0xff] }
 0xbba   :  { %23466 = vmatprep.subr.bf16.mxu1 %v23465_v45  ;;  %v16055_v45 = vsel %vm14508_vm2, %v16054_v34, %v16017_v51  ;;  %v23503_v35 = vpack.c.bf16 %v18140_v26, %v18138_v40  ;;  %v16282_v51 = vld [vmem:[%s30252_s7 + $0xb8] sm:$0xff]  ;;  %v16265_v26 = vld [vmem:[%s30252_s7 + $0x30] sm:$0xff] }
 0xbbc   :  { %16009 = vmatmul.mubr.f32.vlgmr.msra.gmra.mrb[46].mxu1 %v15942_v6  ;;  %v18148_v6 = vld [vmem:[%s30250_s5 + $0xf70] sm:$0xff] }
 0xbbd   :  { %23468 = vmatpush1.bf16.msra.mxu1 %v23467_v53  ;;  %16121 = vmatprep.mubr.f32.mxu1 %v24678_v39  ;;  %v18144_v53 = vld [vmem:[%s30250_s5 + $0xf50] sm:$0xff] }
 0xbbe   :  { %23470 = vmatprep.subr.bf16.mxu1 %v23469_v8  ;;  %v18149_v8 = vld [vmem:[%s30250_s5 + $0xf78] sm:$0xff] }
 0xbbf   :  { %v23509_v19 = vpack.c.bf16 %v18149_v8, %v18147_v0  ;;  %v16285_v0 = vld [vmem:[%s30252_s7 + $0xd0] sm:$0xff]  ;;  %v16286_v8 = vld [vmem:[%s30252_s7 + $0xd8] sm:$0xff] }
 0xbc1   :  { %23472 = vmatpush1.bf16.msra.mxu1 %v23471_v13  ;;  %v23511_v13 = vpack.c.bf16 %v18148_v6, %v18146_v27  ;;  %v16269_v27 = vld [vmem:[%s30252_s7 + $0x50] sm:$0xff]  ;;  %v16270_v6 = vld [vmem:[%s30252_s7 + $0x58] sm:$0xff] }
 0xbc2   :  { %23474 = vmatprep.subr.bf16.mxu1 %v23473_v4  ;;  %v23513_v4 = vpack.c.bf16 %v18153_v12, %v18151_v56  ;;  %v16287_v56 = vld [vmem:[%s30252_s7 + $0xe0] sm:$0xff]  ;;  %v16288_v12 = vld [vmem:[%s30252_s7 + $0xe8] sm:$0xff] }
 0xbc5   :  { %23476 = vmatpush1.bf16.msra.mxu1 %v23475_v22  ;;  %v23515_v22 = vpack.c.bf16 %v18152_v38, %v18150_v36  ;;  %v16271_v36 = vld [vmem:[%s30252_s7 + $0x60] sm:$0xff]  ;;  %v16272_v38 = vld [vmem:[%s30252_s7 + $0x68] sm:$0xff] }
 0xbc6   :  { %23478 = vmatprep.subr.bf16.mxu1 %v23477_v48  ;;  %v23517_v48 = vpack.c.bf16 %v18157_v5, %v18155_v32  ;;  %v23555_v32 = vpack.c.bf16 %v16272_v38, %v16271_v36  ;;  %v16289_v5 = vld [vmem:[%s30252_s7 + $0xf0] sm:$0xff] }
 0xbc9   :  { %23480 = vmatpush1.bf16.msra.mxu1 %v23479_v2  ;;  %v23519_v2 = vpack.c.bf16 %v18156_v3, %v18154_v24  ;;  %v16274_v3 = vld [vmem:[%s30252_s7 + $0x78] sm:$0xff] }
 0xbca   :  { %23482 = vmatprep.subr.bf16.mxu1 %v23481_v41  ;;  %v23521_v41 = vpack.c.bf16 %v18161_v20, %v18159_v10  ;;  %v16245_v20 = vlaneseq }
 0xbcd   :  { %23484 = vmatpush1.bf16.msra.mxu1 %v23483_v61  ;;  %v23523_v61 = vpack.c.bf16 %v18160_v42, %v18158_v52  ;;  %v16243_v52 = vld [vmem:[%s30251_s6] sm:$0x3]  ;;  %s24649_s6 = scalar_lea.vmem %s16376_s11, 32 }
 0xbce   :  { %23486 = vmatprep.subr.bf16.mxu1 %v23485_v62  ;;  %v23525_v62 = vpack.c.bf16 %v18165_v21, %v18163_v54  ;;  %p24650_p8 = scmp.ne.s32.totalorder %s16376_s11, %s24649_s6  ;;  %p24655_p10 = scmp.lt.s32.totalorder %s24649_s6, %s24649_s6 }
 0xbd0   :  { %p24656_p11 = por %p24655_p10, %p24654_p9 }
 0xbd1   :  { %23488 = vmatpush1.bf16.msra.mxu1 %v23487_v9  ;;  %v16131_v9 = vld [vmem:[#allocation5 + $0x1f] sm:$0x1] }
 0xbd2   :  { %23490 = vmatprep.subr.bf16.mxu1 %v23489_v7  ;;  %v23527_v7 = vpack.c.bf16 %v18164_v49, %v18162_v33  ;;  %v16167_v1 = vrot.slane %v16131_v9, 7  ;;  %p24657_p12 = pnand %p24656_p11, %p24650_p8 }
 0xbd5   :  { %23492 = vmatpush1.bf16.msra.mxu1 %v23491_v11  ;;  %v16277_v11 = vld [vmem:[%s30252_s7 + $0x90] sm:$0xff] }
 0xbd6   :  { %23494 = vmatprep.subr.bf16.mxu1 %v23493_v17  ;;  %v16278_v17 = vld [vmem:[%s30252_s7 + $0x98] sm:$0xff] }
 0xbd7   :  { %v23533_v47 = vpack.c.bf16 %v16278_v17, %v16277_v11 }
 0xbd9   :  { %23496 = vmatpush1.bf16.msra.mxu1 %v23495_v63  ;;  %v16168_v63 = vsel %vm14508_vm2, %v16167_v1, %v16130_v50 }
 0xbda   :  { %23498 = vmatprep.subr.bf16.mxu1 %v23497_v29  ;;  %v16279_v29 = vld [vmem:[%s30252_s7 + $0xa0] sm:$0xff] }
 0xbdb   :  { %v23537_v34 = vpack.c.bf16 %v16280_v58, %v16279_v29 }
 0xbdc   :  { %16122 = vmatmul.mubr.f32.vlgmr.msra.gmra.mrb[46].mxu1 %v16055_v45  ;;  %v16266_v45 = vld [vmem:[%s30252_s7 + $0x38] sm:$0xff] }
 0xbdd   :  { %23500 = vmatpush1.bf16.msra.mxu1 %v23499_v16  ;;  %16234 = vmatprep.mubr.f32.mxu1 %v24678_v39  ;;  %v23507_v39 = vpack.c.bf16 %v18144_v53, %v18142_v46  ;;  %v16281_v16 = vld [vmem:[%s30252_s7 + $0xb0] sm:$0xff]  ;;  %v16267_v46 = vld [vmem:[%s30252_s7 + $0x40] sm:$0xff]  ;;  %v16268_v53 = vld [vmem:[%s30252_s7 + $0x48] sm:$0xff] }
 0xbde   :  { %23502 = vmatprep.subr.bf16.mxu1 %v23501_v55  ;;  %v23539_v55 = vpack.c.bf16 %v16264_v43, %v16263_v14  ;;  %v23541_v40 = vpack.c.bf16 %v16282_v51, %v16281_v16 }
 0xbe1   :  { %23504 = vmatpush1.bf16.msra.mxu1 %v23503_v35  ;;  %v23543_v35 = vpack.c.bf16 %v16266_v45, %v16265_v26 }
 0xbe2   :  { %23506 = vmatprep.subr.bf16.mxu1 %v23505_v31  ;;  %v23545_v31 = vpack.c.bf16 %v16284_v15, %v16283_v23 }
 0xbe5   :  { %23508 = vmatpush1.bf16.msra.mxu1 %v23507_v39  ;;  %v23547_v39 = vpack.c.bf16 %v16268_v53, %v16267_v46 }
 0xbe6   :  { %23510 = vmatprep.subr.bf16.mxu1 %v23509_v19  ;;  %v23549_v19 = vpack.c.bf16 %v16286_v8, %v16285_v0 }
 0xbe9   :  { %23512 = vmatpush1.bf16.msra.mxu1 %v23511_v13  ;;  %v23551_v13 = vpack.c.bf16 %v16270_v6, %v16269_v27 }
 0xbea   :  { %23514 = vmatprep.subr.bf16.mxu1 %v23513_v4  ;;  %v23553_v4 = vpack.c.bf16 %v16288_v12, %v16287_v56 }
 0xbed   :  { %23516 = vmatpush1.bf16.msra.mxu1 %v23515_v22  ;;  %v16290_v22 = vld [vmem:[%s30252_s7 + $0xf8] sm:$0xff] }
 0xbee   :  { %23518 = vmatprep.subr.bf16.mxu1 %v23517_v48  ;;  %v16273_v48 = vld [vmem:[%s30252_s7 + $0x70] sm:$0xff]  ;;  %v23557_v24 = vpack.c.bf16 %v16290_v22, %v16289_v5 }
 0xbef   :  { %v23559_v10 = vpack.c.bf16 %v16274_v3, %v16273_v48 }
 0xbf1   :  { %23520 = vmatpush1.bf16.msra.mxu1 %v23519_v2  ;;  %v16246_v2 = vshrl.u32 %v16245_v20, 7 }
 0xbf2   :  { %23522 = vmatprep.subr.bf16.mxu1 %v23521_v41 }
 0xbf3   :  { %v16247_v41 = vsub.s32 0, %v16246_v2  ;;  %v16251_v42 = vsub.s32 1, %v16246_v2 }
 0xbf5   :  { %23524 = vmatpush1.bf16.msra.mxu1 %v23523_v61  ;;  %v16248_v54 = vrot.slane %v16243_v52, %v16247_v41  ;;  %v16252_v21 = vrot.slane %v16243_v52, %v16251_v42 }
 0xbf6   :  { %23526 = vmatprep.subr.bf16.mxu1 %v23525_v62 }
 0xbf9   :  { %23528 = vmatpush1.bf16.msra.mxu1 %v23527_v7  ;;  %v18166_v7 = vld [vmem:[%s30253_s8] ss:$0 sm:$0xff] }
 0xbfa   :  { %23530 = vmatprep.subr.bf16.mxu1 %v23529_v60 }
 0xbfc   :  { %16235 = vmatmul.mubr.f32.vlgmr.msra.gmra.mrb[46].mxu1 %v16168_v63 }
 0xbfd   :  { %23532 = vmatpush3.bf16.msra.mxu1 %v23531_v18 }
 0xbfe   :  { %23534 = vmatprep.subr.bf16.mxu1 %v23533_v47 }
 0xc01   :  { %23536 = vmatpush3.bf16.msra.mxu1 %v23535_v30 }
 0xc02   :  { %23538 = vmatprep.subr.bf16.mxu1 %v23537_v34 }
 0xc05   :  { %23540 = vmatpush3.bf16.msra.mxu1 %v23539_v55 }
 0xc06   :  { %23542 = vmatprep.subr.bf16.mxu1 %v23541_v40 }
 0xc09   :  { %23544 = vmatpush3.bf16.msra.mxu1 %v23543_v35 }
 0xc0a   :  { %23546 = vmatprep.subr.bf16.mxu1 %v23545_v31 }
 0xc0d   :  { %23548 = vmatpush3.bf16.msra.mxu1 %v23547_v39 }
 0xc0e   :  { %23550 = vmatprep.subr.bf16.mxu1 %v23549_v19 }
 0xc11   :  { %23552 = vmatpush3.bf16.msra.mxu1 %v23551_v13 }
 0xc12   :  { %23554 = vmatprep.subr.bf16.mxu1 %v23553_v4 }
 0xc15   :  { %23556 = vmatpush3.bf16.msra.mxu1 %v23555_v32 }
 0xc16   :  { %23558 = vmatprep.subr.bf16.mxu1 %v23557_v24 }
 0xc19   :  { %23560 = vmatpush3.bf16.msra.mxu1 %v23559_v10 }
 0xccf   :  { %v16236_v61 = vpop.f32.mrb[46].mxu1 }
 0xcd0   :  { %v16255_v62 = vadd.f32 %v16248_v54, %v16236_v61  ;;  %v16238_v33 = vpop.f32.mrb[47].mxu1 }
 0xcd1   :  { %v16256_v49 = vadd.f32 %v16252_v21, %v16238_v33 }
 0xcd2   :  { %v16257_v59 = vmax.f32 %v16255_v62, 0.0 }
 0xcd3   :  { %v16258_v28 = vmax.f32 %v16256_v49, 0.0 }
 0xcd5   :  { %16362 = vmatprep.mubr.f32.mxu1 %v16258_v28 }
 0xcd6   :  { %16363 = vmatmul.mubr.f32.vlgmr.msra.gmra.mrb[48].mxu1 %v16257_v59 }
 0xda9   :  { %v19724_v9 = vpop.f32.mrb[48].mxu1 }
 0xdaa   :  { %v19725_v60 = vpop.f32.mrb[49].mxu1 }
 0xdab   :  { %v19726_v37 = vadd.f32 %v19725_v60, %v19724_v9 }
 0xdad   :  { %v16365_v57 = vadd.f32 %v19726_v37, %v18166_v7 }
 0xdaf   :  { %16368 = vst [vmem:[#allocation9] sm:$0x3] %v16365_v57 }
 0xdb0   :  { %24660 = shalt.err (!%p24657_p12)
}
 0xdb1   :  { %s24661_s14 = scalar_lea.hbm %s30254_s9, 32 }
 0xdb2   :  { %p24662_p13 = scmp.ne.s32.totalorder %s30254_s9, %s24661_s14  ;;  %p24665_p0 = scmp.lt.u32.totalorder %s24661_s14, %s30254_s9 }
 0xdb4   :  { %p24667_p1 = pnand %p24665_p0, %p24662_p13 }
 0xdb6   :  { %24670 = shalt.err (!%p24667_p1)
}
 0xdb7   :  { %16378 = dma.vmem_to_hbm [thread:$0]  %s16376_s11, 32, %s30254_s9, [#allocation8]  }
 0xdb8   :  { %24673 = dma.done.wait [#allocation8], 32  }
 0xdb9   :  { %24674 = vsyncadd [#allocation8], 4294967264 }
 0xdba   :  { %16382 = vsyncpa [#allocation7], 1 }
 0xdbb   :  { %16383 = vsyncpa [#allocation8], 1 }

</bundles_post_ra>
